<compile_context>
chip_gen: v5e
topology: v5e:2x2
jax: 0.10.0
libtpu: 0.0.40
codegen_flags: <defaults>
</compile_context>

<pallas_src>
import functools

import jax
import jax.numpy as jnp
from jax.experimental import pallas as pl
from jax.experimental.pallas import tpu as pltpu

BN_EPS = 1e-5
VMEM_LIMIT = 48 * 1024 * 1024          # explicit scoped-VMEM budget (fits v7x's 64 MiB)


def _compiler_params(*sems):
    return pltpu.CompilerParams(dimension_semantics=tuple(sems),
                                vmem_limit_bytes=VMEM_LIMIT)


# ----------------------------- tile-size helpers ----------------------------

def _pick_block(n, cap):
    """Largest divisor of n <= cap, preferring multiples of 8 (sublane aligned)."""
    cap = max(1, min(n, cap))
    divs = [d for d in range(1, cap + 1) if n % d == 0]
    mult8 = [d for d in divs if d % 8 == 0]
    return (mult8 or divs)[-1]


def _pick_tile_h(H, W, target_out_rows=1024):
    cap = max(8, target_out_rows // max(1, W))   # >=8 rows keeps output blocks aligned
    if H >= 16:
        cap = min(cap, H // 2)                   # >=2 row tiles (exercises the halo path)
    return _pick_block(H, cap)


def _pick_tile_rows(rows, lane_width, target_elems=128 * 1024):
    return _pick_block(rows, max(8, target_elems // max(1, lane_width)))


# ------------------------ pass 1: conv3x3 + BN partials ----------------------

def _conv3x3_pass1_kernel(xm_ref, xa_ref, xb_ref, w_ref, y_ref, s_ref, *,
                          tile_h, W, Cin, Cout):
    """3x3 conv (stride 1, pad 1) over one (batch, row-tile) block.

    xm_ref : [1, tile_h, W+2, Cin]  main rows of the zero-padded bf16 input
    xa_ref : [1, 1,     W+2, Cin]   halo row (first row below the tile)
    xb_ref : [1, 1,     W+2, Cin]   halo row (second row below the tile)
    w_ref  : [9*Cin, Cout]          bf16 weights, (kh, kw, cin) row-major
    y_ref  : [1, tile_h, W*Cout]    f32 pre-BN conv output (lane-dense store)
    s_ref  : [1, 2, Cout]           f32 per-tile (sum, sum_sq) BN partials
    """
    Wp = W + 2
    R = tile_h * Wp                        # slab rows (incl. 2 junk cols per row)

    xm = xm_ref[...].reshape(tile_h * Wp, Cin)
    xa = xa_ref[...].reshape(Wp, Cin)
    xb = xb_ref[...].reshape(Wp, Cin)
    tail = jnp.zeros((2, Cin), xm.dtype)   # keeps the largest tap slice in-bounds
    xw = jnp.concatenate([xm, xa, xb, tail], axis=0)   # [(tile_h+2)*Wp + 2, Cin]

    # im2col: tap (kh, kw) is a contiguous row-shifted slice of the flattened
    # window (offset kh*Wp + kw) -> a single MXU matmul with K = 9*Cin.
    slab = jnp.concatenate(
        [xw[kh * Wp + kw: kh * Wp + kw + R, :]
         for kh in range(3) for kw in range(3)], axis=-1)            # [R, 9*Cin]
    acc = jnp.dot(slab, w_ref[...], preferred_element_type=jnp.float32)

    # slab row r = h*Wp + w ; columns w in {W, W+1} are junk -> drop them once.
    y = acc.reshape(tile_h, Wp, Cout)[:, :W, :]                      # [tile_h, W, Cout]

    yk = y.reshape(tile_h * W, Cout)
    ssum = jnp.sum(yk, axis=0, keepdims=True)
    ssq = jnp.sum(yk * yk, axis=0, keepdims=True)
    s_ref[...] = jnp.concatenate([ssum, ssq], axis=0).reshape(1, 2, Cout)

    y_ref[...] = y.reshape(1, tile_h, W * Cout)


def conv3x3_pass1(xp, w2d, *, N, H, W, Cin, Cout, tile_h):
    """xp: [N, H+2, W+2, Cin] bf16 (zero-padded). Returns (pre_act, tile_stats)."""
    Wp = W + 2
    n_t = H // tile_h
    kernel = functools.partial(_conv3x3_pass1_kernel,
                               tile_h=tile_h, W=W, Cin=Cin, Cout=Cout)
    return pl.pallas_call(
        kernel,
        grid=(N, n_t),
        in_specs=[
            # main rows of the tile, plus the 2-row halo below it (same array,
            # three block views) -> overlapping windows with plain Blocked specs.
            pl.BlockSpec((1, tile_h, Wp, Cin), lambda n, t: (n, t, 0, 0)),
            pl.BlockSpec((1, 1, Wp, Cin), lambda n, t: (n, (t + 1) * tile_h, 0, 0)),
            pl.BlockSpec((1, 1, Wp, Cin), lambda n, t: (n, (t + 1) * tile_h + 1, 0, 0)),
            pl.BlockSpec((9 * Cin, Cout), lambda n, t: (0, 0)),
        ],
        out_specs=(
            pl.BlockSpec((1, tile_h, W * Cout), lambda n, t: (n, t, 0)),
            pl.BlockSpec((1, 2, Cout), lambda n, t: (n * n_t + t, 0, 0)),
        ),
        out_shape=(
            jax.ShapeDtypeStruct((N, H, W * Cout), jnp.float32),
            jax.ShapeDtypeStruct((N * n_t, 2, Cout), jnp.float32),
        ),
        compiler_params=_compiler_params("parallel", "parallel"),
    )(xp, xp, xp, w2d)


# ----------------- pass 2: BN apply + PReLU + residual (fused) ---------------

def _bn_act_kernel(y_ref, scale_ref, shift_ref, alpha_ref, *rest,
                   apply_prelu, has_res):
    if has_res:
        res_ref, o_ref = rest
    else:
        (o_ref,) = rest
    out = y_ref[...] * scale_ref[...] + shift_ref[...]
    if apply_prelu:
        a = alpha_ref[0, 0]
        out = jnp.where(out >= 0, out, a * out)
    if has_res:
        out = out + res_ref[...].astype(jnp.float32)
    o_ref[...] = out.astype(o_ref.dtype)


def bn_act_apply(y, scale_t, shift_t, alpha, *, residual=None, apply_prelu=True,
                 out_dtype=jnp.bfloat16):
    """y: [N*H, W*C] f32 pre-act; scale/shift: [1, W*C]; alpha: [1, 1]."""
    rows, WC = y.shape
    tile_r = _pick_tile_rows(rows, WC)
    kernel = functools.partial(_bn_act_kernel, apply_prelu=apply_prelu,
                               has_res=residual is not None)
    in_specs = [
        pl.BlockSpec((tile_r, WC), lambda i: (i, 0)),
        pl.BlockSpec((1, WC), lambda i: (0, 0)),
        pl.BlockSpec((1, WC), lambda i: (0, 0)),
        pl.BlockSpec((1, 1), lambda i: (0, 0)),
    ]
    args = [y, scale_t, shift_t, alpha]
    if residual is not None:
        in_specs.append(pl.BlockSpec((tile_r, WC), lambda i: (i, 0)))
        args.append(residual)
    return pl.pallas_call(
        kernel,
        grid=(rows // tile_r,),
        in_specs=in_specs,
        out_specs=pl.BlockSpec((tile_r, WC), lambda i: (i, 0)),
        out_shape=jax.ShapeDtypeStruct((rows, WC), out_dtype),
        compiler_params=_compiler_params("parallel"),
    )(*args)


# ------------------------------- fc: 1x1 conv --------------------------------

def _conv1x1_kernel(x_ref, w_ref, b_ref, o_ref):
    out = jnp.dot(x_ref[...], w_ref[...], preferred_element_type=jnp.float32)
    o_ref[...] = (out + b_ref[...]).astype(o_ref.dtype)


def conv1x1(x, p):
    """x: [N, H, W, Cin] -> [N, H, W, Cout] f32 (1x1 conv + bias)."""
    N, H, W, Cin = x.shape
    Cout = p["w"].shape[-1]
    rows = N * H * W
    x2 = x.reshape(rows, Cin).astype(jnp.bfloat16)
    w = p["w"].reshape(Cin, Cout).astype(jnp.bfloat16)
    b = p["b"].reshape(1, Cout).astype(jnp.float32)
    tile_r = _pick_tile_rows(rows, max(Cin, Cout), target_elems=256 * 1024)
    # NOTE: Cout (=3) < 128 lanes -> masked stores on the final tiny output;
    # lane-padding it to 128 would write 40x more HBM bytes, so we keep it as-is.
    out = pl.pallas_call(
        _conv1x1_kernel,
        grid=(rows // tile_r,),
        in_specs=[pl.BlockSpec((tile_r, Cin), lambda i: (i, 0)),
                  pl.BlockSpec((Cin, Cout), lambda i: (0, 0)),
                  pl.BlockSpec((1, Cout), lambda i: (0, 0))],
        out_specs=pl.BlockSpec((tile_r, Cout), lambda i: (i, 0)),
        out_shape=jax.ShapeDtypeStruct((rows, Cout), jnp.float32),
        compiler_params=_compiler_params("parallel"),
    )(x2, w, b)
    return out.reshape(N, H, W, Cout)


# ------------------------------ layer wrappers -------------------------------

def conv3x3_bn_act(x, p, *, apply_prelu=True, residual=None):
    """Conv3x3(p=1, bias dropped) + train-mode BatchNorm + PReLU + optional skip.

    x: [N, H, W, Cin] -> [N, H, W, Cout] bf16.  Conv bias is skipped because
    train-mode BN's mean subtraction cancels a per-channel constant exactly.
    """
    N, H, W, Cin = x.shape
    Cout = p["gamma"].shape[0]
    # TODO(synk): fetch the +/-1-row halo through the conv BlockSpec (pl.Element
    # index_map) instead of a per-layer jnp.pad, to save one HBM round trip/layer.
    xp = jnp.pad(x.astype(jnp.bfloat16), ((0, 0), (1, 1), (1, 1), (0, 0)))
    w2d = p["w"].reshape(9 * Cin, Cout).astype(jnp.bfloat16)

    tile_h = _pick_tile_h(H, W)
    y, stats = conv3x3_pass1(xp, w2d, N=N, H=H, W=W, Cin=Cin, Cout=Cout,
                             tile_h=tile_h)

    # Global (N, H, W) batch statistics from per-tile partial sums (tiny reduce).
    s = jnp.sum(stats, axis=0)                         # [2, Cout]
    cnt = float(N * H * W)
    mean = s[0] / cnt
    var = jnp.maximum(s[1] / cnt - mean * mean, 0.0)   # biased var (PyTorch BN)
    scale = p["gamma"] * jax.lax.rsqrt(var + BN_EPS)
    shift = p["beta"] - mean * scale

    WC = W * Cout
    scale_t = jnp.tile(scale, W).reshape(1, WC)        # lane-dense per-(w,c) params
    shift_t = jnp.tile(shift, W).reshape(1, WC)
    alpha = p["prelu"].reshape(1, 1)

    res2 = None if residual is None else residual.reshape(N * H, WC)
    out = bn_act_apply(y.reshape(N * H, WC), scale_t, shift_t, alpha,
                       residual=res2, apply_prelu=apply_prelu)
    return out.reshape(N, H, W, Cout)


# ------------------------------ parameter setup ------------------------------

def _conv_layer_params(key, cin, cout, ksize):
    k1, k2 = jax.random.split(key)
    fan_in = cin * ksize * ksize
    bound = 1.0 / (fan_in ** 0.5)                      # PyTorch conv default init
    shape = (ksize, ksize, cin, cout) if ksize > 1 else (cin, cout)
    return {
        "w": jax.random.uniform(k1, shape, jnp.float32, -bound, bound),
        "b": jax.random.uniform(k2, (cout,), jnp.float32, -bound, bound),
        "gamma": jnp.ones((cout,), jnp.float32),       # BatchNorm2d init
        "beta": jnp.zeros((cout,), jnp.float32),
        "prelu": jnp.full((1,), 0.25, jnp.float32),    # shared-slope PReLU init
    }


def init_resnet_params(key, in_channels, out_channels, nker, n_blocks):
    keys = jax.random.split(key, 3 + 2 * n_blocks)
    return {
        "enc": _conv_layer_params(keys[0], in_channels, nker, 3),
        "res": [{"c1": _conv_layer_params(keys[3 + 2 * i], nker, nker, 3),
                 "c2": _conv_layer_params(keys[4 + 2 * i], nker, nker, 3)}
                for i in range(n_blocks)],
        "dec": _conv_layer_params(keys[1], nker, nker, 3),
        "fc": _conv_layer_params(keys[2], nker, out_channels, 1),
    }


# -------------------------------- forward pass -------------------------------

def resnet_forward(x_nchw, params, learning_type="plain"):
    x = jnp.transpose(x_nchw, (0, 2, 3, 1)).astype(jnp.float32)   # NCHW -> NHWC
    x0 = x

    h = conv3x3_bn_act(x, params["enc"])                          # enc
    for blk in params["res"]:                                     # residual blocks
        y = conv3x3_bn_act(h, blk["c1"])
        h = conv3x3_bn_act(y, blk["c2"], apply_prelu=False, residual=h)
    h = conv3x3_bn_act(h, params["dec"])                          # dec
    out = conv1x1(h, params["fc"])                                # fc

    if learning_type == "residual":
        out = out + x0
    return jnp.transpose(out, (0, 3, 1, 2))                       # back to NCHW


# ------------------------- pure-JAX reference (checks) -----------------------

def reference_forward(x_nchw, params, learning_type="plain"):
    """lax.conv mirror of resnet_forward's numerics (same dtype strategy)."""
    x = jnp.transpose(x_nchw, (0, 2, 3, 1)).astype(jnp.float32)
    x0 = x

    def layer(h, p, apply_prelu=True, residual=None):
        hp = jnp.pad(h.astype(jnp.bfloat16), ((0, 0), (1, 1), (1, 1), (0, 0)))
        y = jax.lax.conv_general_dilated(
            hp, p["w"].astype(jnp.bfloat16), (1, 1), "VALID",
            dimension_numbers=("NHWC", "HWIO", "NHWC"),
            preferred_element_type=jnp.float32)
        mean = jnp.mean(y, axis=(0, 1, 2))
        var = jnp.mean(y * y, axis=(0, 1, 2)) - mean * mean
        out = (y - mean) * jax.lax.rsqrt(var + BN_EPS) * p["gamma"] + p["beta"]
        if apply_prelu:
            out = jnp.where(out >= 0, out, p["prelu"][0] * out)
        if residual is not None:
            out = out + residual.astype(jnp.float32)
        return out.astype(jnp.bfloat16)

    h = layer(x, params["enc"])
    for blk in params["res"]:
        y = layer(h, blk["c1"])
        h = layer(y, blk["c2"], apply_prelu=False, residual=h)
    h = layer(h, params["dec"])
    C = h.shape[-1]
    out = jnp.dot(h.reshape(-1, C),
                  params["fc"]["w"].reshape(C, -1).astype(jnp.bfloat16),
                  preferred_element_type=jnp.float32) + params["fc"]["b"]
    out = out.reshape(h.shape[:3] + (-1,))
    if learning_type == "residual":
        out = out + x0
    return jnp.transpose(out, (0, 3, 1, 2))


if __name__ == "__main__":
    # Small, module-consistent shapes: N=2, in=3, out=3, nker=32, 16x16 spatial,
    # n_blocks=2 (module default is 16; reduced for the smoke test).
    IN_CH, OUT_CH, NKER, N_BLOCKS = 3, 3, 32, 2
    N, H, W = 2, 16, 16

    key = jax.random.PRNGKey(0)
    k_param, k_x = jax.random.split(key)
    params = init_resnet_params(k_param, IN_CH, OUT_CH, NKER, N_BLOCKS)
    x = jax.random.normal(k_x, (N, IN_CH, H, W), jnp.float32)

    fwd = jax.jit(functools.partial(resnet_forward, learning_type="plain"))
    out = fwd(x, params)
    jax.block_until_ready(out)

    assert out.shape == (N, OUT_CH, H, W), out.shape
    assert bool(jnp.all(jnp.isfinite(out)))

    ref = jax.jit(functools.partial(reference_forward, learning_type="plain"))(x, params)
    err = float(jnp.max(jnp.abs(out - ref.astype(out.dtype))))
    assert err < 5e-2, f"mismatch vs pure-JAX reference: max abs err = {err}"
    print("KERNEL_OK")
</pallas_src>

<mosaic_0001>
module attributes {stable_mosaic.version = 11 : i64} {
  func.func @_conv3x3_pass1_kernel(%arg0: i32, %arg1: i32, %arg2: memref<1x8x18x3xbf16, #tpu.memory_space<vmem>>, %arg3: memref<1x1x18x3xbf16, #tpu.memory_space<vmem>>, %arg4: memref<1x1x18x3xbf16, #tpu.memory_space<vmem>>, %arg5: memref<27x32xbf16, #tpu.memory_space<vmem>>, %arg6: memref<1x8x512xf32, #tpu.memory_space<vmem>>, %arg7: memref<1x2x32xf32, #tpu.memory_space<vmem>>) attributes {dimension_semantics = [#tpu.dimension_semantics<parallel>, #tpu.dimension_semantics<parallel>], iteration_bounds = array<i64: 2, 2>, scalar_prefetch = 0 : i64, scratch_operands = 0 : i64, tpu.core_type = #tpu.core_type<tc>, window_params = [{transform_indices = @transform_0, window_bounds = array<i64: 1, 8, 18, 3>}, {transform_indices = @transform_1, window_bounds = array<i64: 1, 1, 18, 3>}, {transform_indices = @transform_2, window_bounds = array<i64: 1, 1, 18, 3>}, {pipeline_mode = #tpu.pipeline_mode<synchronous>, transform_indices = @transform_3, window_bounds = array<i64: 27, 32>}, {transform_indices = @transform_4, window_bounds = array<i64: 1, 8, 512>}, {transform_indices = @transform_5, window_bounds = array<i64: 1, 2, 32>}]} {
    %c0 = arith.constant 0 : index
    %c0_0 = arith.constant 0 : index
    %c0_1 = arith.constant 0 : index
    %c0_2 = arith.constant 0 : index
    %0 = vector.load %arg2[%c0, %c0_0, %c0_1, %c0_2] : memref<1x8x18x3xbf16, #tpu.memory_space<vmem>>, vector<1x8x18x3xbf16>
    %1 = vector.shape_cast %0 : vector<1x8x18x3xbf16> to vector<144x3xbf16>
    %c0_3 = arith.constant 0 : index
    %c0_4 = arith.constant 0 : index
    %c0_5 = arith.constant 0 : index
    %c0_6 = arith.constant 0 : index
    %2 = vector.load %arg3[%c0_3, %c0_4, %c0_5, %c0_6] : memref<1x1x18x3xbf16, #tpu.memory_space<vmem>>, vector<1x1x18x3xbf16>
    %3 = vector.shape_cast %2 : vector<1x1x18x3xbf16> to vector<18x3xbf16>
    %c0_7 = arith.constant 0 : index
    %c0_8 = arith.constant 0 : index
    %c0_9 = arith.constant 0 : index
    %c0_10 = arith.constant 0 : index
    %4 = vector.load %arg4[%c0_7, %c0_8, %c0_9, %c0_10] : memref<1x1x18x3xbf16, #tpu.memory_space<vmem>>, vector<1x1x18x3xbf16>
    %5 = vector.shape_cast %4 : vector<1x1x18x3xbf16> to vector<18x3xbf16>
    %cst = arith.constant 0.000000e+00 : bf16
    %6 = vector.broadcast %cst : bf16 to vector<2x3xbf16>
    %7 = tpu.concatenate %1, %3, %5, %6 in 0 : vector<144x3xbf16>, vector<18x3xbf16>, vector<18x3xbf16>, vector<2x3xbf16> -> vector<182x3xbf16>
    %8 = vector.extract_strided_slice %7 {offsets = [0, 0], sizes = [144, 3], strides = [1, 1]} : vector<182x3xbf16> to vector<144x3xbf16>
    %9 = vector.extract_strided_slice %7 {offsets = [1, 0], sizes = [144, 3], strides = [1, 1]} : vector<182x3xbf16> to vector<144x3xbf16>
    %10 = vector.extract_strided_slice %7 {offsets = [2, 0], sizes = [144, 3], strides = [1, 1]} : vector<182x3xbf16> to vector<144x3xbf16>
    %11 = vector.extract_strided_slice %7 {offsets = [18, 0], sizes = [144, 3], strides = [1, 1]} : vector<182x3xbf16> to vector<144x3xbf16>
    %12 = vector.extract_strided_slice %7 {offsets = [19, 0], sizes = [144, 3], strides = [1, 1]} : vector<182x3xbf16> to vector<144x3xbf16>
    %13 = vector.extract_strided_slice %7 {offsets = [20, 0], sizes = [144, 3], strides = [1, 1]} : vector<182x3xbf16> to vector<144x3xbf16>
    %14 = vector.extract_strided_slice %7 {offsets = [36, 0], sizes = [144, 3], strides = [1, 1]} : vector<182x3xbf16> to vector<144x3xbf16>
    %15 = vector.extract_strided_slice %7 {offsets = [37, 0], sizes = [144, 3], strides = [1, 1]} : vector<182x3xbf16> to vector<144x3xbf16>
    %16 = vector.extract_strided_slice %7 {offsets = [38, 0], sizes = [144, 3], strides = [1, 1]} : vector<182x3xbf16> to vector<144x3xbf16>
    %17 = tpu.concatenate %8, %9, %10, %11, %12, %13, %14, %15, %16 in 1 : vector<144x3xbf16>, vector<144x3xbf16>, vector<144x3xbf16>, vector<144x3xbf16>, vector<144x3xbf16>, vector<144x3xbf16>, vector<144x3xbf16>, vector<144x3xbf16>, vector<144x3xbf16> -> vector<144x27xbf16>
    %c0_11 = arith.constant 0 : index
    %c0_12 = arith.constant 0 : index
    %18 = vector.load %arg5[%c0_11, %c0_12] : memref<27x32xbf16, #tpu.memory_space<vmem>>, vector<27x32xbf16>
    %cst_13 = arith.constant dense<0.000000e+00> : vector<144x32xf32>
    %19 = tpu.matmul %17, %18, %cst_13 {dimension_numbers = #tpu.dot_dimension_numbers<[1], [0], [0], [1], [0, 0, 1, 1], [], []>} : vector<144x27xbf16>, vector<27x32xbf16>, vector<144x32xf32> -> vector<144x32xf32>
    %20 = vector.shape_cast %19 : vector<144x32xf32> to vector<8x18x32xf32>
    %21 = vector.extract_strided_slice %20 {offsets = [0, 0, 0], sizes = [8, 16, 32], strides = [1, 1, 1]} : vector<8x18x32xf32> to vector<8x16x32xf32>
    %22 = vector.shape_cast %21 : vector<8x16x32xf32> to vector<128x32xf32>
    %cst_14 = arith.constant dense<0.000000e+00> : vector<32xf32>
    %23 = vector.multi_reduction <add>, %22, %cst_14 [0] : vector<128x32xf32> to vector<32xf32>
    %24 = vector.shape_cast %23 : vector<32xf32> to vector<1x32xf32>
    %25 = arith.mulf %22, %22 : vector<128x32xf32>
    %cst_15 = arith.constant dense<0.000000e+00> : vector<32xf32>
    %26 = vector.multi_reduction <add>, %25, %cst_15 [0] : vector<128x32xf32> to vector<32xf32>
    %27 = vector.shape_cast %26 : vector<32xf32> to vector<1x32xf32>
    %28 = tpu.concatenate %24, %27 in 0 : vector<1x32xf32>, vector<1x32xf32> -> vector<2x32xf32>
    %29 = vector.shape_cast %28 : vector<2x32xf32> to vector<1x2x32xf32>
    %c0_16 = arith.constant 0 : index
    %c0_17 = arith.constant 0 : index
    %c0_18 = arith.constant 0 : index
    %30 = vector.load %arg7[%c0_16, %c0_17, %c0_18] : memref<1x2x32xf32, #tpu.memory_space<vmem>>, vector<1x2x32xf32>
    tpu.vector_store %arg7[%c0_16, %c0_17, %c0_18], %29 {strides = array<i32>} : memref<1x2x32xf32, #tpu.memory_space<vmem>>, vector<1x2x32xf32>,
    %31 = vector.shape_cast %21 : vector<8x16x32xf32> to vector<1x8x512xf32>
    %c0_19 = arith.constant 0 : index
    %c0_20 = arith.constant 0 : index
    %c0_21 = arith.constant 0 : index
    %32 = vector.load %arg6[%c0_19, %c0_20, %c0_21] : memref<1x8x512xf32, #tpu.memory_space<vmem>>, vector<1x8x512xf32>
    tpu.vector_store %arg6[%c0_19, %c0_20, %c0_21], %31 {strides = array<i32>} : memref<1x8x512xf32, #tpu.memory_space<vmem>>, vector<1x8x512xf32>,
    return
  }
  func.func @transform_0(%arg0: i32, %arg1: i32) -> (i32, i32, i32, i32) {
    %c0_i32 = arith.constant 0 : i32
    %c0_i32_0 = arith.constant 0 : i32
    %c0_i32_1 = arith.constant 0 : i32
    return %arg0, %arg1, %c0_i32, %c0_i32_0 : i32, i32, i32, i32
  }
  func.func @transform_1(%arg0: i32, %arg1: i32) -> (i32, i32, i32, i32) {
    %c1_i32 = arith.constant 1 : i32
    %0 = arith.addi %arg1, %c1_i32 : i32
    %c8_i32 = arith.constant 8 : i32
    %1 = arith.muli %0, %c8_i32 : i32
    %c0_i32 = arith.constant 0 : i32
    %c0_i32_0 = arith.constant 0 : i32
    %c0_i32_1 = arith.constant 0 : i32
    return %arg0, %1, %c0_i32, %c0_i32_0 : i32, i32, i32, i32
  }
  func.func @transform_2(%arg0: i32, %arg1: i32) -> (i32, i32, i32, i32) {
    %c1_i32 = arith.constant 1 : i32
    %0 = arith.addi %arg1, %c1_i32 : i32
    %c8_i32 = arith.constant 8 : i32
    %1 = arith.muli %0, %c8_i32 : i32
    %c1_i32_0 = arith.constant 1 : i32
    %2 = arith.addi %1, %c1_i32_0 : i32
    %c0_i32 = arith.constant 0 : i32
    %c0_i32_1 = arith.constant 0 : i32
    %c0_i32_2 = arith.constant 0 : i32
    return %arg0, %2, %c0_i32, %c0_i32_1 : i32, i32, i32, i32
  }
  func.func @transform_3(%arg0: i32, %arg1: i32) -> (i32, i32) {
    %c0_i32 = arith.constant 0 : i32
    %c0_i32_0 = arith.constant 0 : i32
    %c0_i32_1 = arith.constant 0 : i32
    return %c0_i32, %c0_i32_0 : i32, i32
  }
  func.func @transform_4(%arg0: i32, %arg1: i32) -> (i32, i32, i32) {
    %c0_i32 = arith.constant 0 : i32
    %c0_i32_0 = arith.constant 0 : i32
    return %arg0, %arg1, %c0_i32 : i32, i32, i32
  }
  func.func @transform_5(%arg0: i32, %arg1: i32) -> (i32, i32, i32) {
    %c2_i32 = arith.constant 2 : i32
    %0 = arith.muli %arg0, %c2_i32 : i32
    %1 = arith.addi %0, %arg1 : i32
    %c0_i32 = arith.constant 0 : i32
    %c0_i32_0 = arith.constant 0 : i32
    %c0_i32_1 = arith.constant 0 : i32
    return %1, %c0_i32, %c0_i32_0 : i32, i32, i32
  }
}

module attributes {stable_mosaic.version = 11 : i64} {
  func.func @_bn_act_kernel(%arg0: i32, %arg1: memref<32x512xf32, #tpu.memory_space<vmem>>, %arg2: memref<1x512xf32, #tpu.memory_space<vmem>>, %arg3: memref<1x512xf32, #tpu.memory_space<vmem>>, %arg4: memref<1x1xf32, #tpu.memory_space<vmem>>, %arg5: memref<32x512xbf16, #tpu.memory_space<vmem>>) attributes {dimension_semantics = [#tpu.dimension_semantics<parallel>], iteration_bounds = array<i64: 1>, scalar_prefetch = 0 : i64, scratch_operands = 0 : i64, tpu.core_type = #tpu.core_type<tc>, window_params = [{transform_indices = @transform_0, window_bounds = array<i64: 32, 512>}, {pipeline_mode = #tpu.pipeline_mode<synchronous>, transform_indices = @transform_1, window_bounds = array<i64: 1, 512>}, {pipeline_mode = #tpu.pipeline_mode<synchronous>, transform_indices = @transform_2, window_bounds = array<i64: 1, 512>}, {pipeline_mode = #tpu.pipeline_mode<synchronous>, transform_indices = @transform_3, window_bounds = array<i64: 1, 1>}, {transform_indices = @transform_4, window_bounds = array<i64: 32, 512>}]} {
    %c0 = arith.constant 0 : index
    %c0_0 = arith.constant 0 : index
    %0 = vector.load %arg1[%c0, %c0_0] : memref<32x512xf32, #tpu.memory_space<vmem>>, vector<32x512xf32>
    %c0_1 = arith.constant 0 : index
    %c0_2 = arith.constant 0 : index
    %1 = vector.load %arg2[%c0_1, %c0_2] : memref<1x512xf32, #tpu.memory_space<vmem>>, vector<1x512xf32>
    %2 = vector.broadcast %1 : vector<1x512xf32> to vector<32x512xf32>
    %3 = arith.mulf %0, %2 : vector<32x512xf32>
    %c0_3 = arith.constant 0 : index
    %c0_4 = arith.constant 0 : index
    %4 = vector.load %arg3[%c0_3, %c0_4] : memref<1x512xf32, #tpu.memory_space<vmem>>, vector<1x512xf32>
    %5 = vector.broadcast %4 : vector<1x512xf32> to vector<32x512xf32>
    %6 = arith.addf %3, %5 : vector<32x512xf32>
    %c0_5 = arith.constant 0 : index
    %c0_6 = arith.constant 0 : index
    %7 = vector.load %arg4[%c0_5, %c0_6] : memref<1x1xf32, #tpu.memory_space<vmem>>, vector<1x1xf32>
    %8 = vector.extract %7[0, 0] : f32 from vector<1x1xf32>
    %cst = arith.constant 0.000000e+00 : f32
    %9 = vector.broadcast %cst : f32 to vector<32x512xf32>
    %10 = arith.cmpf oge, %6, %9 : vector<32x512xf32>
    %11 = vector.broadcast %8 : f32 to vector<32x512xf32>
    %12 = arith.mulf %11, %6 : vector<32x512xf32>
    %13 = arith.select %10, %6, %12 : vector<32x512xi1>, vector<32x512xf32>
    %14 = arith.truncf %13 : vector<32x512xf32> to vector<32x512xbf16>
    %c0_7 = arith.constant 0 : index
    %c0_8 = arith.constant 0 : index
    %15 = vector.load %arg5[%c0_7, %c0_8] : memref<32x512xbf16, #tpu.memory_space<vmem>>, vector<32x512xbf16>
    tpu.vector_store %arg5[%c0_7, %c0_8], %14 {strides = array<i32>} : memref<32x512xbf16, #tpu.memory_space<vmem>>, vector<32x512xbf16>,
    return
  }
  func.func @transform_0(%arg0: i32) -> (i32, i32) {
    %c0_i32 = arith.constant 0 : i32
    %c0_i32_0 = arith.constant 0 : i32
    return %arg0, %c0_i32 : i32, i32
  }
  func.func @transform_1(%arg0: i32) -> (i32, i32) {
    %c0_i32 = arith.constant 0 : i32
    %c0_i32_0 = arith.constant 0 : i32
    %c0_i32_1 = arith.constant 0 : i32
    return %c0_i32, %c0_i32_0 : i32, i32
  }
  func.func @transform_2(%arg0: i32) -> (i32, i32) {
    %c0_i32 = arith.constant 0 : i32
    %c0_i32_0 = arith.constant 0 : i32
    %c0_i32_1 = arith.constant 0 : i32
    return %c0_i32, %c0_i32_0 : i32, i32
  }
  func.func @transform_3(%arg0: i32) -> (i32, i32) {
    %c0_i32 = arith.constant 0 : i32
    %c0_i32_0 = arith.constant 0 : i32
    %c0_i32_1 = arith.constant 0 : i32
    return %c0_i32, %c0_i32_0 : i32, i32
  }
  func.func @transform_4(%arg0: i32) -> (i32, i32) {
    %c0_i32 = arith.constant 0 : i32
    %c0_i32_0 = arith.constant 0 : i32
    return %arg0, %c0_i32 : i32, i32
  }
}

module attributes {stable_mosaic.version = 11 : i64} {
  func.func @_conv3x3_pass1_kernel(%arg0: i32, %arg1: i32, %arg2: memref<1x8x18x32xbf16, #tpu.memory_space<vmem>>, %arg3: memref<1x1x18x32xbf16, #tpu.memory_space<vmem>>, %arg4: memref<1x1x18x32xbf16, #tpu.memory_space<vmem>>, %arg5: memref<288x32xbf16, #tpu.memory_space<vmem>>, %arg6: memref<1x8x512xf32, #tpu.memory_space<vmem>>, %arg7: memref<1x2x32xf32, #tpu.memory_space<vmem>>) attributes {dimension_semantics = [#tpu.dimension_semantics<parallel>, #tpu.dimension_semantics<parallel>], iteration_bounds = array<i64: 2, 2>, scalar_prefetch = 0 : i64, scratch_operands = 0 : i64, tpu.core_type = #tpu.core_type<tc>, window_params = [{transform_indices = @transform_0, window_bounds = array<i64: 1, 8, 18, 32>}, {transform_indices = @transform_1, window_bounds = array<i64: 1, 1, 18, 32>}, {transform_indices = @transform_2, window_bounds = array<i64: 1, 1, 18, 32>}, {pipeline_mode = #tpu.pipeline_mode<synchronous>, transform_indices = @transform_3, window_bounds = array<i64: 288, 32>}, {transform_indices = @transform_4, window_bounds = array<i64: 1, 8, 512>}, {transform_indices = @transform_5, window_bounds = array<i64: 1, 2, 32>}]} {
    %c0 = arith.constant 0 : index
    %c0_0 = arith.constant 0 : index
    %c0_1 = arith.constant 0 : index
    %c0_2 = arith.constant 0 : index
    %0 = vector.load %arg2[%c0, %c0_0, %c0_1, %c0_2] : memref<1x8x18x32xbf16, #tpu.memory_space<vmem>>, vector<1x8x18x32xbf16>
    %1 = vector.shape_cast %0 : vector<1x8x18x32xbf16> to vector<144x32xbf16>
    %c0_3 = arith.constant 0 : index
    %c0_4 = arith.constant 0 : index
    %c0_5 = arith.constant 0 : index
    %c0_6 = arith.constant 0 : index
    %2 = vector.load %arg3[%c0_3, %c0_4, %c0_5, %c0_6] : memref<1x1x18x32xbf16, #tpu.memory_space<vmem>>, vector<1x1x18x32xbf16>
    %3 = vector.shape_cast %2 : vector<1x1x18x32xbf16> to vector<18x32xbf16>
    %c0_7 = arith.constant 0 : index
    %c0_8 = arith.constant 0 : index
    %c0_9 = arith.constant 0 : index
    %c0_10 = arith.constant 0 : index
    %4 = vector.load %arg4[%c0_7, %c0_8, %c0_9, %c0_10] : memref<1x1x18x32xbf16, #tpu.memory_space<vmem>>, vector<1x1x18x32xbf16>
    %5 = vector.shape_cast %4 : vector<1x1x18x32xbf16> to vector<18x32xbf16>
    %cst = arith.constant 0.000000e+00 : bf16
    %6 = vector.broadcast %cst : bf16 to vector<2x32xbf16>
    %7 = tpu.concatenate %1, %3, %5, %6 in 0 : vector<144x32xbf16>, vector<18x32xbf16>, vector<18x32xbf16>, vector<2x32xbf16> -> vector<182x32xbf16>
    %8 = vector.extract_strided_slice %7 {offsets = [0, 0], sizes = [144, 32], strides = [1, 1]} : vector<182x32xbf16> to vector<144x32xbf16>
    %9 = vector.extract_strided_slice %7 {offsets = [1, 0], sizes = [144, 32], strides = [1, 1]} : vector<182x32xbf16> to vector<144x32xbf16>
    %10 = vector.extract_strided_slice %7 {offsets = [2, 0], sizes = [144, 32], strides = [1, 1]} : vector<182x32xbf16> to vector<144x32xbf16>
    %11 = vector.extract_strided_slice %7 {offsets = [18, 0], sizes = [144, 32], strides = [1, 1]} : vector<182x32xbf16> to vector<144x32xbf16>
    %12 = vector.extract_strided_slice %7 {offsets = [19, 0], sizes = [144, 32], strides = [1, 1]} : vector<182x32xbf16> to vector<144x32xbf16>
    %13 = vector.extract_strided_slice %7 {offsets = [20, 0], sizes = [144, 32], strides = [1, 1]} : vector<182x32xbf16> to vector<144x32xbf16>
    %14 = vector.extract_strided_slice %7 {offsets = [36, 0], sizes = [144, 32], strides = [1, 1]} : vector<182x32xbf16> to vector<144x32xbf16>
    %15 = vector.extract_strided_slice %7 {offsets = [37, 0], sizes = [144, 32], strides = [1, 1]} : vector<182x32xbf16> to vector<144x32xbf16>
    %16 = vector.extract_strided_slice %7 {offsets = [38, 0], sizes = [144, 32], strides = [1, 1]} : vector<182x32xbf16> to vector<144x32xbf16>
    %17 = tpu.concatenate %8, %9, %10, %11, %12, %13, %14, %15, %16 in 1 : vector<144x32xbf16>, vector<144x32xbf16>, vector<144x32xbf16>, vector<144x32xbf16>, vector<144x32xbf16>, vector<144x32xbf16>, vector<144x32xbf16>, vector<144x32xbf16>, vector<144x32xbf16> -> vector<144x288xbf16>
    %c0_11 = arith.constant 0 : index
    %c0_12 = arith.constant 0 : index
    %18 = vector.load %arg5[%c0_11, %c0_12] : memref<288x32xbf16, #tpu.memory_space<vmem>>, vector<288x32xbf16>
    %cst_13 = arith.constant dense<0.000000e+00> : vector<144x32xf32>
    %19 = tpu.matmul %17, %18, %cst_13 {dimension_numbers = #tpu.dot_dimension_numbers<[1], [0], [0], [1], [0, 0, 1, 1], [], []>} : vector<144x288xbf16>, vector<288x32xbf16>, vector<144x32xf32> -> vector<144x32xf32>
    %20 = vector.shape_cast %19 : vector<144x32xf32> to vector<8x18x32xf32>
    %21 = vector.extract_strided_slice %20 {offsets = [0, 0, 0], sizes = [8, 16, 32], strides = [1, 1, 1]} : vector<8x18x32xf32> to vector<8x16x32xf32>
    %22 = vector.shape_cast %21 : vector<8x16x32xf32> to vector<128x32xf32>
    %cst_14 = arith.constant dense<0.000000e+00> : vector<32xf32>
    %23 = vector.multi_reduction <add>, %22, %cst_14 [0] : vector<128x32xf32> to vector<32xf32>
    %24 = vector.shape_cast %23 : vector<32xf32> to vector<1x32xf32>
    %25 = arith.mulf %22, %22 : vector<128x32xf32>
    %cst_15 = arith.constant dense<0.000000e+00> : vector<32xf32>
    %26 = vector.multi_reduction <add>, %25, %cst_15 [0] : vector<128x32xf32> to vector<32xf32>
    %27 = vector.shape_cast %26 : vector<32xf32> to vector<1x32xf32>
    %28 = tpu.concatenate %24, %27 in 0 : vector<1x32xf32>, vector<1x32xf32> -> vector<2x32xf32>
    %29 = vector.shape_cast %28 : vector<2x32xf32> to vector<1x2x32xf32>
    %c0_16 = arith.constant 0 : index
    %c0_17 = arith.constant 0 : index
    %c0_18 = arith.constant 0 : index
    %30 = vector.load %arg7[%c0_16, %c0_17, %c0_18] : memref<1x2x32xf32, #tpu.memory_space<vmem>>, vector<1x2x32xf32>
    tpu.vector_store %arg7[%c0_16, %c0_17, %c0_18], %29 {strides = array<i32>} : memref<1x2x32xf32, #tpu.memory_space<vmem>>, vector<1x2x32xf32>,
    %31 = vector.shape_cast %21 : vector<8x16x32xf32> to vector<1x8x512xf32>
    %c0_19 = arith.constant 0 : index
    %c0_20 = arith.constant 0 : index
    %c0_21 = arith.constant 0 : index
    %32 = vector.load %arg6[%c0_19, %c0_20, %c0_21] : memref<1x8x512xf32, #tpu.memory_space<vmem>>, vector<1x8x512xf32>
    tpu.vector_store %arg6[%c0_19, %c0_20, %c0_21], %31 {strides = array<i32>} : memref<1x8x512xf32, #tpu.memory_space<vmem>>, vector<1x8x512xf32>,
    return
  }
  func.func @transform_0(%arg0: i32, %arg1: i32) -> (i32, i32, i32, i32) {
    %c0_i32 = arith.constant 0 : i32
    %c0_i32_0 = arith.constant 0 : i32
    %c0_i32_1 = arith.constant 0 : i32
    return %arg0, %arg1, %c0_i32, %c0_i32_0 : i32, i32, i32, i32
  }
  func.func @transform_1(%arg0: i32, %arg1: i32) -> (i32, i32, i32, i32) {
    %c1_i32 = arith.constant 1 : i32
    %0 = arith.addi %arg1, %c1_i32 : i32
    %c8_i32 = arith.constant 8 : i32
    %1 = arith.muli %0, %c8_i32 : i32
    %c0_i32 = arith.constant 0 : i32
    %c0_i32_0 = arith.constant 0 : i32
    %c0_i32_1 = arith.constant 0 : i32
    return %arg0, %1, %c0_i32, %c0_i32_0 : i32, i32, i32, i32
  }
  func.func @transform_2(%arg0: i32, %arg1: i32) -> (i32, i32, i32, i32) {
    %c1_i32 = arith.constant 1 : i32
    %0 = arith.addi %arg1, %c1_i32 : i32
    %c8_i32 = arith.constant 8 : i32
    %1 = arith.muli %0, %c8_i32 : i32
    %c1_i32_0 = arith.constant 1 : i32
    %2 = arith.addi %1, %c1_i32_0 : i32
    %c0_i32 = arith.constant 0 : i32
    %c0_i32_1 = arith.constant 0 : i32
    %c0_i32_2 = arith.constant 0 : i32
    return %arg0, %2, %c0_i32, %c0_i32_1 : i32, i32, i32, i32
  }
  func.func @transform_3(%arg0: i32, %arg1: i32) -> (i32, i32) {
    %c0_i32 = arith.constant 0 : i32
    %c0_i32_0 = arith.constant 0 : i32
    %c0_i32_1 = arith.constant 0 : i32
    return %c0_i32, %c0_i32_0 : i32, i32
  }
  func.func @transform_4(%arg0: i32, %arg1: i32) -> (i32, i32, i32) {
    %c0_i32 = arith.constant 0 : i32
    %c0_i32_0 = arith.constant 0 : i32
    return %arg0, %arg1, %c0_i32 : i32, i32, i32
  }
  func.func @transform_5(%arg0: i32, %arg1: i32) -> (i32, i32, i32) {
    %c2_i32 = arith.constant 2 : i32
    %0 = arith.muli %arg0, %c2_i32 : i32
    %1 = arith.addi %0, %arg1 : i32
    %c0_i32 = arith.constant 0 : i32
    %c0_i32_0 = arith.constant 0 : i32
    %c0_i32_1 = arith.constant 0 : i32
    return %1, %c0_i32, %c0_i32_0 : i32, i32, i32
  }
}

module attributes {stable_mosaic.version = 11 : i64} {
  func.func @_bn_act_kernel(%arg0: i32, %arg1: memref<32x512xf32, #tpu.memory_space<vmem>>, %arg2: memref<1x512xf32, #tpu.memory_space<vmem>>, %arg3: memref<1x512xf32, #tpu.memory_space<vmem>>, %arg4: memref<1x1xf32, #tpu.memory_space<vmem>>, %arg5: memref<32x512xbf16, #tpu.memory_space<vmem>>, %arg6: memref<32x512xbf16, #tpu.memory_space<vmem>>) attributes {dimension_semantics = [#tpu.dimension_semantics<parallel>], iteration_bounds = array<i64: 1>, scalar_prefetch = 0 : i64, scratch_operands = 0 : i64, tpu.core_type = #tpu.core_type<tc>, window_params = [{transform_indices = @transform_0, window_bounds = array<i64: 32, 512>}, {pipeline_mode = #tpu.pipeline_mode<synchronous>, transform_indices = @transform_1, window_bounds = array<i64: 1, 512>}, {pipeline_mode = #tpu.pipeline_mode<synchronous>, transform_indices = @transform_2, window_bounds = array<i64: 1, 512>}, {pipeline_mode = #tpu.pipeline_mode<synchronous>, transform_indices = @transform_3, window_bounds = array<i64: 1, 1>}, {transform_indices = @transform_4, window_bounds = array<i64: 32, 512>}, {transform_indices = @transform_5, window_bounds = array<i64: 32, 512>}]} {
    %c0 = arith.constant 0 : index
    %c0_0 = arith.constant 0 : index
    %0 = vector.load %arg1[%c0, %c0_0] : memref<32x512xf32, #tpu.memory_space<vmem>>, vector<32x512xf32>
    %c0_1 = arith.constant 0 : index
    %c0_2 = arith.constant 0 : index
    %1 = vector.load %arg2[%c0_1, %c0_2] : memref<1x512xf32, #tpu.memory_space<vmem>>, vector<1x512xf32>
    %2 = vector.broadcast %1 : vector<1x512xf32> to vector<32x512xf32>
    %3 = arith.mulf %0, %2 : vector<32x512xf32>
    %c0_3 = arith.constant 0 : index
    %c0_4 = arith.constant 0 : index
    %4 = vector.load %arg3[%c0_3, %c0_4] : memref<1x512xf32, #tpu.memory_space<vmem>>, vector<1x512xf32>
    %5 = vector.broadcast %4 : vector<1x512xf32> to vector<32x512xf32>
    %6 = arith.addf %3, %5 : vector<32x512xf32>
    %c0_5 = arith.constant 0 : index
    %c0_6 = arith.constant 0 : index
    %7 = vector.load %arg5[%c0_5, %c0_6] : memref<32x512xbf16, #tpu.memory_space<vmem>>, vector<32x512xbf16>
    %8 = arith.extf %7 : vector<32x512xbf16> to vector<32x512xf32>
    %9 = arith.addf %6, %8 : vector<32x512xf32>
    %10 = arith.truncf %9 : vector<32x512xf32> to vector<32x512xbf16>
    %c0_7 = arith.constant 0 : index
    %c0_8 = arith.constant 0 : index
    %11 = vector.load %arg6[%c0_7, %c0_8] : memref<32x512xbf16, #tpu.memory_space<vmem>>, vector<32x512xbf16>
    tpu.vector_store %arg6[%c0_7, %c0_8], %10 {strides = array<i32>} : memref<32x512xbf16, #tpu.memory_space<vmem>>, vector<32x512xbf16>,
    return
  }
  func.func @transform_0(%arg0: i32) -> (i32, i32) {
    %c0_i32 = arith.constant 0 : i32
    %c0_i32_0 = arith.constant 0 : i32
    return %arg0, %c0_i32 : i32, i32
  }
  func.func @transform_1(%arg0: i32) -> (i32, i32) {
    %c0_i32 = arith.constant 0 : i32
    %c0_i32_0 = arith.constant 0 : i32
    %c0_i32_1 = arith.constant 0 : i32
    return %c0_i32, %c0_i32_0 : i32, i32
  }
  func.func @transform_2(%arg0: i32) -> (i32, i32) {
    %c0_i32 = arith.constant 0 : i32
    %c0_i32_0 = arith.constant 0 : i32
    %c0_i32_1 = arith.constant 0 : i32
    return %c0_i32, %c0_i32_0 : i32, i32
  }
  func.func @transform_3(%arg0: i32) -> (i32, i32) {
    %c0_i32 = arith.constant 0 : i32
    %c0_i32_0 = arith.constant 0 : i32
    %c0_i32_1 = arith.constant 0 : i32
    return %c0_i32, %c0_i32_0 : i32, i32
  }
  func.func @transform_4(%arg0: i32) -> (i32, i32) {
    %c0_i32 = arith.constant 0 : i32
    %c0_i32_0 = arith.constant 0 : i32
    return %arg0, %c0_i32 : i32, i32
  }
  func.func @transform_5(%arg0: i32) -> (i32, i32) {
    %c0_i32 = arith.constant 0 : i32
    %c0_i32_0 = arith.constant 0 : i32
    return %arg0, %c0_i32 : i32, i32
  }
}

module attributes {stable_mosaic.version = 11 : i64} {
  func.func @_conv1x1_kernel(%arg0: i32, %arg1: memref<512x32xbf16, #tpu.memory_space<vmem>>, %arg2: memref<32x3xbf16, #tpu.memory_space<vmem>>, %arg3: memref<1x3xf32, #tpu.memory_space<vmem>>, %arg4: memref<512x3xf32, #tpu.memory_space<vmem>>) attributes {dimension_semantics = [#tpu.dimension_semantics<parallel>], iteration_bounds = array<i64: 1>, scalar_prefetch = 0 : i64, scratch_operands = 0 : i64, tpu.core_type = #tpu.core_type<tc>, window_params = [{transform_indices = @transform_0, window_bounds = array<i64: 512, 32>}, {pipeline_mode = #tpu.pipeline_mode<synchronous>, transform_indices = @transform_1, window_bounds = array<i64: 32, 3>}, {pipeline_mode = #tpu.pipeline_mode<synchronous>, transform_indices = @transform_2, window_bounds = array<i64: 1, 3>}, {transform_indices = @transform_3, window_bounds = array<i64: 512, 3>}]} {
    %c0 = arith.constant 0 : index
    %c0_0 = arith.constant 0 : index
    %0 = vector.load %arg1[%c0, %c0_0] : memref<512x32xbf16, #tpu.memory_space<vmem>>, vector<512x32xbf16>
    %c0_1 = arith.constant 0 : index
    %c0_2 = arith.constant 0 : index
    %1 = vector.load %arg2[%c0_1, %c0_2] : memref<32x3xbf16, #tpu.memory_space<vmem>>, vector<32x3xbf16>
    %cst = arith.constant dense<0.000000e+00> : vector<512x3xf32>
    %2 = tpu.matmul %0, %1, %cst {dimension_numbers = #tpu.dot_dimension_numbers<[1], [0], [0], [1], [0, 0, 1, 1], [], []>} : vector<512x32xbf16>, vector<32x3xbf16>, vector<512x3xf32> -> vector<512x3xf32>
    %c0_3 = arith.constant 0 : index
    %c0_4 = arith.constant 0 : index
    %3 = vector.load %arg3[%c0_3, %c0_4] : memref<1x3xf32, #tpu.memory_space<vmem>>, vector<1x3xf32>
    %4 = vector.broadcast %3 : vector<1x3xf32> to vector<512x3xf32>
    %5 = arith.addf %2, %4 : vector<512x3xf32>
    %c0_5 = arith.constant 0 : index
    %c0_6 = arith.constant 0 : index
    %6 = vector.load %arg4[%c0_5, %c0_6] : memref<512x3xf32, #tpu.memory_space<vmem>>, vector<512x3xf32>
    tpu.vector_store %arg4[%c0_5, %c0_6], %5 {strides = array<i32>} : memref<512x3xf32, #tpu.memory_space<vmem>>, vector<512x3xf32>,
    return
  }
  func.func @transform_0(%arg0: i32) -> (i32, i32) {
    %c0_i32 = arith.constant 0 : i32
    %c0_i32_0 = arith.constant 0 : i32
    return %arg0, %c0_i32 : i32, i32
  }
  func.func @transform_1(%arg0: i32) -> (i32, i32) {
    %c0_i32 = arith.constant 0 : i32
    %c0_i32_0 = arith.constant 0 : i32
    %c0_i32_1 = arith.constant 0 : i32
    return %c0_i32, %c0_i32_0 : i32, i32
  }
  func.func @transform_2(%arg0: i32) -> (i32, i32) {
    %c0_i32 = arith.constant 0 : i32
    %c0_i32_0 = arith.constant 0 : i32
    %c0_i32_1 = arith.constant 0 : i32
    return %c0_i32, %c0_i32_0 : i32, i32
  }
  func.func @transform_3(%arg0: i32) -> (i32, i32) {
    %c0_i32 = arith.constant 0 : i32
    %c0_i32_0 = arith.constant 0 : i32
    return %arg0, %c0_i32 : i32, i32
  }
}

</mosaic_0001>

<bundles_post_ra>
// kernel: tile.63
= control target key start
LH: loop header
LB: loop body
LE: loop exit
PB: predicated region body
PF: predicated region fallthrough
CT: control target
= control target key end

     0   :  { %s28_s0 = inlined_call_operand.vmem [shape: f32[32], index: 0, kind: input, shape index: {}]   ;;  %s29_s1 = inlined_call_operand.vmem [shape: f32[16,32], index: 1, kind: output, shape index: {}]  }
   0x1   :  { %v4_v0 = vld [vmem:[%s28_s0] ss:$0 sm:$0xff] }
   0x2   :  { %5 = vst [vmem:[%s29_s1] sm:$0xff] %v4_v0 }
   0x3   :  { %8 = vst [vmem:[%s29_s1 + $0x8] sm:$0xff] %v4_v0 }

// kernel: tile.64
= control target key start
LH: loop header
LB: loop body
LE: loop exit
PB: predicated region body
PF: predicated region fallthrough
CT: control target
= control target key end

     0   :  { %s56_s8 = smov 96   ;;  %s57_s11 = smov 32   ;;  %vm3_vm0 = vcmask 261120   ;;  %vm9_vm1 = vcmask 1048320   ;;  %vm15_vm2 = vcmask 785920   ;;  %vm21_vm3 = vcmask 523520   ;;  %s93_s0 = inlined_call_operand.vmem [shape: f32[16,32], index: 0, kind: input, shape index: {}]   ;;  %s94_s1 = inlined_call_operand.vmem [shape: f32[1,512], index: 1, kind: output, shape index: {}]  }
   0x1   :  { %v47_v0 = vld [vmem:[%s93_s0 + $0x3] ss:$4 sm:$0xf]   ;;  %v49_v1 = vld [vmem:[%s93_s0 + $0x1] ss:$4 sm:$0xf]  }
   0x2   :  { %7 = vrot.lane.b32.xlu0 %v47_v0, %s56_s8  ;;  %19 = vrot.lane.b32.xlu1 %v49_v1, %s57_s11  ;;  %v48_v2 = vld [vmem:[%s93_s0 + $0x2] ss:$4 sm:$0xf]   ;;  %s58_s14 = smov 64  }
   0x3   :  { %v2_v3 = vld [vmem:[%s93_s0] ss:$4 sm:$0xf]  }
   0x4   :  { %4 = vst.msk [vmem:[#allocation0] ss:$8 sm:$0xf] %vm3_vm0, %v2_v3  }
   0xa   :  { %13 = vrot.lane.b32.xlu0 %v48_v2, %s58_s14 }
  0x74   :  { %v8_v4 = vpop.permute.xlu0 %7   ;;  %v20_v5 = vpop.permute.xlu1 %19  }
  0x75   :  { %10 = vst.msk [vmem:[#allocation0] ss:$8 sm:$0xf] %vm9_vm1, %v8_v4  }
  0x7c   :  { %v14_v6 = vpop.permute.xlu0 %13  }
  0x7d   :  { %16 = vst.msk [vmem:[#allocation0] ss:$8 sm:$0xf] %vm15_vm2, %v14_v6  }
  0x7e   :  { %22 = vst.msk [vmem:[#allocation0] ss:$8 sm:$0xf] %vm21_vm3, %v20_v5  }
  0x85   :  { %v25_v7 = vld [vmem:[#allocation0] sm:$0x1]  ;;  %v30_v8 = vld [vmem:[#allocation0 + $0x8] sm:$0x1]  ;;  %v36_v9 = vld [vmem:[#allocation0 + $0x10] sm:$0x1] }
  0x86   :  { %28 = vst [vmem:[%s94_s1] sm:$0x1] %v25_v7  ;;  %v42_v10 = vld [vmem:[#allocation0 + $0x18] sm:$0x1] }
  0x87   :  { %50 = vst [vmem:[%s94_s1 + $0x1] sm:$0x1] %v30_v8 }
  0x88   :  { %51 = vst [vmem:[%s94_s1 + $0x2] sm:$0x1] %v36_v9 }
  0x89   :  { %52 = vst [vmem:[%s94_s1 + $0x3] sm:$0x1] %v42_v10 }

// kernel: resnet_forward.14
= control target key start
LH: loop header
LB: loop body
LE: loop exit
PB: predicated region body
PF: predicated region fallthrough
CT: control target
= control target key end

     0   :  { %s281_s3 = inlined_call_operand.<no memory space> [shape: f32[1,1], index: 3, kind: input, shape index: {}]   ;;  %s282_s1 = inlined_call_operand.vmem [shape: f32[1,512], index: 1, kind: input, shape index: {}]   ;;  %s283_s0 = inlined_call_operand.vmem [shape: f32[32,512], index: 0, kind: input, shape index: {}]   ;;  %s284_s2 = inlined_call_operand.vmem [shape: f32[1,512], index: 2, kind: input, shape index: {}]   ;;  %s285_s4 = inlined_call_operand.vmem [shape: bf16[32,512], index: 4, kind: output, shape index: {}]  }
   0x1   :  { %v9_v0 = vstv %s281_s3  ;;  %v35_v2 = vld [vmem:[%s282_s1] sm:$0xf]  ;;  %v20_v4 = vld [vmem:[%s283_s0 + $0x8] sm:$0xff]  ;;  %v21_v5 = vld [vmem:[%s283_s0 + $0x10] sm:$0xff] }
   0x2   :  { %10 = vst [vmem:[#allocation2] sm:$0x1] %v9_v0  ;;  %v19_v3 = vld [vmem:[%s283_s0] sm:$0xff]  ;;  %v22_v6 = vld [vmem:[%s283_s0 + $0x18] sm:$0xff]  ;;  %v37_v8 = vperm.slane %v35_v2, 0  ;;  %v38_v9 = vperm.slane %v35_v2, 1 }
   0x3   :  { %v23_v7 = vld [vmem:[%s283_s0 + $0x20] sm:$0xff]  ;;  %v39_v10 = vperm.slane %v35_v2, 2  ;;  %v40_v11 = vperm.slane %v35_v2, 3  ;;  %v24_v13 = vld [vmem:[%s283_s0 + $0x28] sm:$0xff]  ;;  %v25_v14 = vld [vmem:[%s283_s0 + $0x30] sm:$0xff] }
   0x4   :  { %v61_v12 = vld [vmem:[%s284_s2] sm:$0xf]  ;;  %v26_v15 = vld [vmem:[%s283_s0 + $0x38] sm:$0xff]  ;;  %v28_v17 = vld [vmem:[%s283_s0 + $0x48] sm:$0xff]  ;;  %v45_v28 = vmul.f32 %v37_v8, %v19_v3  ;;  %v46_v29 = vmul.f32 %v38_v9, %v20_v4  ;;  %v49_v32 = vmul.f32 %v37_v8, %v23_v7  ;;  %v50_v33 = vmul.f32 %v38_v9, %v24_v13 }
   0x5   :  { %v27_v16 = vld [vmem:[%s283_s0 + $0x40] sm:$0xff]  ;;  %v29_v18 = vld [vmem:[%s283_s0 + $0x50] sm:$0xff]  ;;  %v30_v19 = vld [vmem:[%s283_s0 + $0x58] sm:$0xff]  ;;  %v63_v21 = vperm.slane %v61_v12, 0  ;;  %v64_v22 = vperm.slane %v61_v12, 1  ;;  %v65_v23 = vperm.slane %v61_v12, 2  ;;  %v47_v30 = vmul.f32 %v39_v10, %v21_v5 }
   0x6   :  { %v31_v20 = vld [vmem:[%s283_s0 + $0x60] sm:$0xff]  ;;  %v66_v24 = vperm.slane %v61_v12, 3  ;;  %v32_v25 = vld [vmem:[%s283_s0 + $0x68] sm:$0xff]  ;;  %v33_v26 = vld [vmem:[%s283_s0 + $0x70] sm:$0xff]  ;;  %v48_v31 = vmul.f32 %v40_v11, %v22_v6  ;;  %v51_v34 = vmul.f32 %v39_v10, %v25_v14  ;;  %v52_v35 = vmul.f32 %v40_v11, %v26_v15 }
   0x7   :  { %v34_v27 = vld [vmem:[%s283_s0 + $0x78] sm:$0xff]  ;;  %v53_v36 = vmul.f32 %v37_v8, %v27_v16  ;;  %v54_v37 = vmul.f32 %v38_v9, %v28_v17  ;;  %v55_v38 = vmul.f32 %v39_v10, %v29_v18  ;;  %v56_v39 = vmul.f32 %v40_v11, %v30_v19 }
   0x8   :  { %v57_v40 = vmul.f32 %v37_v8, %v31_v20  ;;  %v58_v41 = vmul.f32 %v38_v9, %v32_v25  ;;  %v59_v42 = vmul.f32 %v39_v10, %v33_v26  ;;  %v60_v43 = vmul.f32 %v40_v11, %v34_v27 }
   0x9   :  { %v87_v1 = vld [vmem:[#allocation2] sm:$0x1]  ;;  %v71_v44 = vadd.f32 %v63_v21, %v45_v28  ;;  %v72_v45 = vadd.f32 %v64_v22, %v46_v29  ;;  %v73_v46 = vadd.f32 %v65_v23, %v47_v30  ;;  %v74_v47 = vadd.f32 %v66_v24, %v48_v31 }
   0xa   :  { %158 = vpush %v87_v1  ;;  %v75_v48 = vadd.f32 %v63_v21, %v49_v32  ;;  %v76_v49 = vadd.f32 %v64_v22, %v50_v33  ;;  %v77_v50 = vadd.f32 %v65_v23, %v51_v34  ;;  %v78_v51 = vadd.f32 %v66_v24, %v52_v35 }
   0xb   :  { %v79_v52 = vadd.f32 %v63_v21, %v53_v36  ;;  %v80_v53 = vadd.f32 %v64_v22, %v54_v37  ;;  %v81_v54 = vadd.f32 %v65_v23, %v55_v38  ;;  %v82_v55 = vadd.f32 %v66_v24, %v56_v39 }
   0xc   :  { %v83_v56 = vadd.f32 %v63_v21, %v57_v40  ;;  %v84_v57 = vadd.f32 %v64_v22, %v58_v41  ;;  %v85_v58 = vadd.f32 %v65_v23, %v59_v42  ;;  %v86_v59 = vadd.f32 %v66_v24, %v60_v43 }
   0xd   :  { %vm89_vm0 = vcmp.ge.f32.partialorder %v71_v44, 0.0  ;;  %vm90_vm1 = vcmp.ge.f32.partialorder %v72_v45, 0.0  ;;  %vm91_vm2 = vcmp.ge.f32.partialorder %v73_v46, 0.0  ;;  %vm92_vm3 = vcmp.ge.f32.partialorder %v74_v47, 0.0 }
   0xe   :  { %vm93_vm4 = vcmp.ge.f32.partialorder %v75_v48, 0.0  ;;  %vm94_vm5 = vcmp.ge.f32.partialorder %v76_v49, 0.0  ;;  %vm95_vm6 = vcmp.ge.f32.partialorder %v77_v50, 0.0  ;;  %vm96_vm7 = vcmp.ge.f32.partialorder %v78_v51, 0.0 }
   0xf   :  { %vm97_vm8 = vcmp.ge.f32.partialorder %v79_v52, 0.0  ;;  %vm98_vm9 = vcmp.ge.f32.partialorder %v80_v53, 0.0  ;;  %vm99_vm10 = vcmp.ge.f32.partialorder %v81_v54, 0.0  ;;  %vm100_vm11 = vcmp.ge.f32.partialorder %v82_v55, 0.0 }
  0x10   :  { %vm101_vm12 = vcmp.ge.f32.partialorder %v83_v56, 0.0  ;;  %vm102_vm13 = vcmp.ge.f32.partialorder %v84_v57, 0.0  ;;  %vm103_vm14 = vcmp.ge.f32.partialorder %v85_v58, 0.0  ;;  %vm104_vm15 = vcmp.ge.f32.partialorder %v86_v59, 0.0 }
  0x3b   :  { %s159_s0 = spop %158 }
  0x3c   :  { %v105_v60 = vstv %s159_s0 }
  0x3d   :  { %v106_v61 = vmul.f32 %v105_v60, %v71_v44  ;;  %v107_v62 = vmul.f32 %v105_v60, %v72_v45  ;;  %v108_v63 = vmul.f32 %v105_v60, %v73_v46  ;;  %v109_v0 = vmul.f32 %v105_v60, %v74_v47 }
  0x3e   :  { %v110_v1 = vmul.f32 %v105_v60, %v75_v48  ;;  %v111_v2 = vmul.f32 %v105_v60, %v76_v49  ;;  %v112_v3 = vmul.f32 %v105_v60, %v77_v50  ;;  %v113_v4 = vmul.f32 %v105_v60, %v78_v51 }
  0x3f   :  { %v114_v5 = vmul.f32 %v105_v60, %v79_v52  ;;  %v115_v6 = vmul.f32 %v105_v60, %v80_v53  ;;  %v116_v7 = vmul.f32 %v105_v60, %v81_v54  ;;  %v117_v8 = vmul.f32 %v105_v60, %v82_v55 }
  0x40   :  { %v118_v9 = vmul.f32 %v105_v60, %v83_v56  ;;  %v119_v10 = vmul.f32 %v105_v60, %v84_v57  ;;  %v122_v11 = vsel %vm89_vm0, %v71_v44, %v106_v61  ;;  %v123_v12 = vsel %vm90_vm1, %v72_v45, %v107_v62 }
  0x41   :  { %v124_v13 = vsel %vm91_vm2, %v73_v46, %v108_v63  ;;  %v125_v14 = vsel %vm92_vm3, %v74_v47, %v109_v0  ;;  %v126_v15 = vsel %vm93_vm4, %v75_v48, %v110_v1  ;;  %v127_v16 = vsel %vm94_vm5, %v76_v49, %v111_v2 }
  0x42   :  { %v120_v17 = vmul.f32 %v105_v60, %v85_v58  ;;  %v121_v18 = vmul.f32 %v105_v60, %v86_v59  ;;  %v128_v19 = vsel %vm95_vm6, %v77_v50, %v112_v3  ;;  %v129_v20 = vsel %vm96_vm7, %v78_v51, %v113_v4 }
  0x43   :  { %v130_v21 = vsel %vm97_vm8, %v79_v52, %v114_v5  ;;  %v131_v22 = vsel %vm98_vm9, %v80_v53, %v115_v6  ;;  %v132_v23 = vsel %vm99_vm10, %v81_v54, %v116_v7  ;;  %v133_v24 = vsel %vm100_vm11, %v82_v55, %v117_v8 }
  0x44   :  { %v138_v25 = vpack.c.bf16 %v123_v12, %v122_v11  ;;  %v139_v26 = vpack.c.bf16 %v125_v14, %v124_v13  ;;  %v140_v27 = vpack.c.bf16 %v127_v16, %v126_v15  ;;  %v134_v28 = vsel %vm101_vm12, %v83_v56, %v118_v9 }
  0x45   :  { %v135_v29 = vsel %vm102_vm13, %v84_v57, %v119_v10  ;;  %v141_v30 = vpack.c.bf16 %v129_v20, %v128_v19  ;;  %v136_v31 = vsel %vm103_vm14, %v85_v58, %v120_v17  ;;  %v137_v32 = vsel %vm104_vm15, %v86_v59, %v121_v18 }
  0x46   :  { %v142_v33 = vpack.c.bf16 %v131_v22, %v130_v21  ;;  %146 = vst [vmem:[%s285_s4] sm:$0xff] %v138_v25  ;;  %v143_v34 = vpack.c.bf16 %v133_v24, %v132_v23  ;;  %v144_v35 = vpack.c.bf16 %v135_v29, %v134_v28  ;;  %v145_v36 = vpack.c.bf16 %v137_v32, %v136_v31 }
  0x47   :  { %147 = vst [vmem:[%s285_s4 + $0x8] sm:$0xff] %v139_v26 }
  0x48   :  { %148 = vst [vmem:[%s285_s4 + $0x10] sm:$0xff] %v140_v27 }
  0x49   :  { %149 = vst [vmem:[%s285_s4 + $0x18] sm:$0xff] %v141_v30 }
  0x4a   :  { %150 = vst [vmem:[%s285_s4 + $0x20] sm:$0xff] %v142_v33 }
  0x4b   :  { %151 = vst [vmem:[%s285_s4 + $0x28] sm:$0xff] %v143_v34 }
  0x4c   :  { %152 = vst [vmem:[%s285_s4 + $0x30] sm:$0xff] %v144_v35 }
  0x4d   :  { %153 = vst [vmem:[%s285_s4 + $0x38] sm:$0xff] %v145_v36 }

// kernel: resnet_forward.18
= control target key start
LH: loop header
LB: loop body
LE: loop exit
PB: predicated region body
PF: predicated region fallthrough
CT: control target
= control target key end

     0   :  { %s330_s3 = inlined_call_operand.<no memory space> [shape: f32[1,1], index: 3, kind: input, shape index: {}]   ;;  %s331_s0 = inlined_call_operand.vmem [shape: f32[32,512], index: 0, kind: input, shape index: {}]   ;;  %s332_s1 = inlined_call_operand.vmem [shape: f32[1,512], index: 1, kind: input, shape index: {}]   ;;  %s333_s2 = inlined_call_operand.vmem [shape: f32[1,512], index: 2, kind: input, shape index: {}]   ;;  %s334_s4 = inlined_call_operand.vmem [shape: bf16[32,512], index: 4, kind: input, shape index: {}]   ;;  %s335_s5 = inlined_call_operand.vmem [shape: bf16[32,512], index: 5, kind: output, shape index: {}]  }
   0x1   :  { %v22_v0 = vld [vmem:[%s331_s0] sm:$0xff]  ;;  %v23_v1 = vld [vmem:[%s331_s0 + $0x8] sm:$0xff]  ;;  %v24_v9 = vld [vmem:[%s331_s0 + $0x10] sm:$0xff] }
   0x2   :  { %v38_v2 = vld [vmem:[%s332_s1] sm:$0xf]  ;;  %v25_v10 = vld [vmem:[%s331_s0 + $0x18] sm:$0xff]  ;;  %v91_v16 = vld [vmem:[%s334_s4 + $0x8] sm:$0xff] }
   0x3   :  { %v189_v3 = vperm.slane %v38_v2, 0  ;;  %v191_v4 = vperm.slane %v38_v2, 1  ;;  %v64_v5 = vld [vmem:[%s333_s2] sm:$0xf]  ;;  %v209_v11 = vperm.slane %v38_v2, 2  ;;  %v27_v18 = vld [vmem:[%s331_s0 + $0x28] sm:$0xff]  ;;  %v100_v26 = vunpack.c.l.bf16 %v91_v16 }
   0x4   :  { %v196_v6 = vperm.slane %v64_v5, 0  ;;  %v198_v7 = vperm.slane %v64_v5, 1  ;;  %v90_v8 = vld [vmem:[%s334_s4] sm:$0xff]  ;;  %v222_v19 = vperm.slane %v38_v2, 3  ;;  %v225_v21 = vperm.slane %v64_v5, 2  ;;  %v92_v23 = vld [vmem:[%s334_s4 + $0x10] sm:$0xff] }
   0x5   :  { %v48_v12 = vmul.f32 %v189_v3, %v22_v0  ;;  %v49_v13 = vmul.f32 %v191_v4, %v23_v1  ;;  %v98_v14 = vunpack.c.l.bf16 %v90_v8  ;;  %v99_v15 = vunpack.c.h.bf16 %v90_v8  ;;  %v26_v17 = vld [vmem:[%s331_s0 + $0x20] sm:$0xff]  ;;  %v28_v32 = vld [vmem:[%s331_s0 + $0x30] sm:$0xff]  ;;  %v29_v33 = vld [vmem:[%s331_s0 + $0x38] sm:$0xff] }
   0x6   :  { %v50_v20 = vmul.f32 %v209_v11, %v24_v9  ;;  %v227_v22 = vperm.slane %v64_v5, 3  ;;  %v101_v27 = vunpack.c.h.bf16 %v91_v16  ;;  %v51_v28 = vmul.f32 %v222_v19, %v25_v10  ;;  %v93_v34 = vld [vmem:[%s334_s4 + $0x18] sm:$0xff]  ;;  %v30_v43 = vld [vmem:[%s331_s0 + $0x40] sm:$0xff]  ;;  %v31_v44 = vld [vmem:[%s331_s0 + $0x48] sm:$0xff] }
   0x7   :  { %v74_v24 = vadd.f32 %v196_v6, %v48_v12  ;;  %v75_v25 = vadd.f32 %v198_v7, %v49_v13  ;;  %v52_v30 = vmul.f32 %v189_v3, %v26_v17  ;;  %v53_v31 = vmul.f32 %v191_v4, %v27_v18  ;;  %v94_v49 = vld [vmem:[%s334_s4 + $0x20] sm:$0xff]  ;;  %v32_v58 = vld [vmem:[%s331_s0 + $0x50] sm:$0xff]  ;;  %v33_v59 = vld [vmem:[%s331_s0 + $0x58] sm:$0xff] }
   0x8   :  { %v76_v29 = vadd.f32 %v225_v21, %v50_v20  ;;  %v102_v37 = vunpack.c.l.bf16 %v92_v23  ;;  %v103_v38 = vunpack.c.h.bf16 %v92_v23  ;;  %v77_v39 = vadd.f32 %v227_v22, %v51_v28  ;;  %v95_v60 = vld [vmem:[%s334_s4 + $0x28] sm:$0xff]  ;;  %v34_v1 = vld [vmem:[%s331_s0 + $0x60] sm:$0xff]  ;;  %v96_v12 = vld [vmem:[%s334_s4 + $0x30] sm:$0xff] }
   0x9   :  { %v114_v35 = vadd.f32 %v98_v14, %v74_v24  ;;  %v115_v36 = vadd.f32 %v99_v15, %v75_v25  ;;  %v78_v41 = vadd.f32 %v196_v6, %v52_v30  ;;  %v79_v42 = vadd.f32 %v198_v7, %v53_v31  ;;  %v35_v10 = vld [vmem:[%s331_s0 + $0x68] sm:$0xff]  ;;  %v36_v17 = vld [vmem:[%s331_s0 + $0x70] sm:$0xff]  ;;  %v37_v25 = vld [vmem:[%s331_s0 + $0x78] sm:$0xff] }
   0xa   :  { %v116_v40 = vadd.f32 %v100_v26, %v76_v29  ;;  %v54_v46 = vmul.f32 %v209_v11, %v28_v32  ;;  %v55_v47 = vmul.f32 %v222_v19, %v29_v33  ;;  %v104_v48 = vunpack.c.l.bf16 %v93_v34  ;;  %v97_v30 = vld [vmem:[%s334_s4 + $0x38] sm:$0xff] }
   0xb   :  { %v130_v45 = vpack.c.bf16 %v115_v36, %v114_v35  ;;  %v117_v50 = vadd.f32 %v101_v27, %v77_v39  ;;  %v118_v51 = vadd.f32 %v102_v37, %v78_v41  ;;  %v119_v52 = vadd.f32 %v103_v38, %v79_v42 }
   0xc   :  { %v105_v53 = vunpack.c.h.bf16 %v93_v34  ;;  %v80_v54 = vadd.f32 %v225_v21, %v54_v46  ;;  %v81_v55 = vadd.f32 %v227_v22, %v55_v47  ;;  %v56_v56 = vmul.f32 %v189_v3, %v30_v43 }
   0xd   :  { %138 = vst [vmem:[%s335_s5] sm:$0xff] %v130_v45  ;;  %v57_v57 = vmul.f32 %v191_v4, %v31_v44  ;;  %v131_v61 = vpack.c.bf16 %v117_v50, %v116_v40  ;;  %v132_v62 = vpack.c.bf16 %v119_v52, %v118_v51  ;;  %v106_v63 = vunpack.c.l.bf16 %v94_v49 }
   0xe   :  { %v107_v0 = vunpack.c.h.bf16 %v94_v49  ;;  %v120_v2 = vadd.f32 %v104_v48, %v80_v54  ;;  %v121_v5 = vadd.f32 %v105_v53, %v81_v55  ;;  %v82_v8 = vadd.f32 %v196_v6, %v56_v56 }
   0xf   :  { %v83_v9 = vadd.f32 %v198_v7, %v57_v57  ;;  %139 = vst [vmem:[%s335_s5 + $0x8] sm:$0xff] %v131_v61  ;;  %v58_v13 = vmul.f32 %v209_v11, %v32_v58  ;;  %v59_v14 = vmul.f32 %v222_v19, %v33_v59  ;;  %v108_v15 = vunpack.c.l.bf16 %v95_v60 }
  0x10   :  { %v109_v16 = vunpack.c.h.bf16 %v95_v60  ;;  %140 = vst [vmem:[%s335_s5 + $0x10] sm:$0xff] %v132_v62  ;;  %v133_v18 = vpack.c.bf16 %v121_v5, %v120_v2  ;;  %v122_v20 = vadd.f32 %v106_v63, %v82_v8  ;;  %v60_v24 = vmul.f32 %v189_v3, %v34_v1 }
  0x11   :  { %v123_v23 = vadd.f32 %v107_v0, %v83_v9  ;;  %v84_v26 = vadd.f32 %v225_v21, %v58_v13  ;;  %v85_v27 = vadd.f32 %v227_v22, %v59_v14  ;;  %v61_v28 = vmul.f32 %v191_v4, %v35_v10 }
  0x12   :  { %v110_v29 = vunpack.c.l.bf16 %v96_v12  ;;  %141 = vst [vmem:[%s335_s5 + $0x18] sm:$0xff] %v133_v18  ;;  %v86_v31 = vadd.f32 %v196_v6, %v60_v24  ;;  %v111_v32 = vunpack.c.h.bf16 %v96_v12  ;;  %v62_v33 = vmul.f32 %v209_v11, %v36_v17 }
  0x13   :  { %v134_v3 = vpack.c.bf16 %v123_v23, %v122_v20  ;;  %v124_v34 = vadd.f32 %v108_v15, %v84_v26  ;;  %v125_v35 = vadd.f32 %v109_v16, %v85_v27  ;;  %v87_v36 = vadd.f32 %v198_v7, %v61_v28 }
  0x14   :  { %v63_v4 = vmul.f32 %v222_v19, %v37_v25  ;;  %v126_v37 = vadd.f32 %v110_v29, %v86_v31  ;;  %v88_v38 = vadd.f32 %v225_v21, %v62_v33  ;;  %v112_v39 = vunpack.c.l.bf16 %v97_v30 }
  0x15   :  { %142 = vst [vmem:[%s335_s5 + $0x20] sm:$0xff] %v134_v3  ;;  %v113_v40 = vunpack.c.h.bf16 %v97_v30  ;;  %v135_v41 = vpack.c.bf16 %v125_v35, %v124_v34  ;;  %v127_v6 = vadd.f32 %v111_v32, %v87_v36 }
  0x16   :  { %v89_v42 = vadd.f32 %v227_v22, %v63_v4  ;;  %v128_v11 = vadd.f32 %v112_v39, %v88_v38 }
  0x17   :  { %143 = vst [vmem:[%s335_s5 + $0x28] sm:$0xff] %v135_v41  ;;  %v136_v7 = vpack.c.bf16 %v127_v6, %v126_v37 }
  0x18   :  { %v129_v19 = vadd.f32 %v113_v40, %v89_v42 }
  0x19   :  { %144 = vst [vmem:[%s335_s5 + $0x30] sm:$0xff] %v136_v7 }
  0x1a   :  { %v137_v43 = vpack.c.bf16 %v129_v19, %v128_v11 }
  0x1c   :  { %145 = vst [vmem:[%s335_s5 + $0x38] sm:$0xff] %v137_v43 }

// kernel: resnet_forward.15
= control target key start
LH: loop header
LB: loop body
LE: loop exit
PB: predicated region body
PF: predicated region fallthrough
CT: control target
= control target key end

     0   :  { %s3180_s18 = smov 0   ;;  %s3182_s19 = smov 0   ;;  %s4705_s0 = inlined_call_operand.vmem [shape: bf16[2,18,18,32], index: 0, kind: input, shape index: {}, may-alias: {0,1,2}]   ;;  %s4706_s1 = inlined_call_operand.vmem [shape: bf16[2,18,18,32], index: 1, kind: input, shape index: {}, may-alias: {0,1,2}]   ;;  %s4707_s2 = inlined_call_operand.vmem [shape: bf16[2,18,18,32], index: 2, kind: input, shape index: {}, may-alias: {0,1,2}]   ;;  %s4708_s3 = inlined_call_operand.vmem [shape: bf16[288,32], index: 3, kind: input, shape index: {}]   ;;  %s4709_s4 = inlined_call_operand.vmem [shape: f32[2,16,512], index: 4, kind: output, shape index: {0}]   ;;  %s4710_s5 = inlined_call_operand.vmem [shape: f32[4,2,32], index: 5, kind: output, shape index: {1}]  }
   0x1   :  { %s3184_s20 = smov 0   ;;  %s3186_s21 = smov 0  }
   0x2   :  { %s3188_s22 = smov 0  }
   0x3 LB: > { %s25_s23 = sadd.s32 1, %s3136_s20  ;;  %s28_s24 = sadd.s32 1, %s3140_s21  ;;  %s3144_s22 = sphi %s3188_s22, %s16_s22   ;;  %s3140_s21 = sphi %s3186_s21, %s4830_s21   ;;  %s3136_s20 = sphi %s3184_s20, %s4829_s20   ;;  %s3132_s19 = sphi %s3182_s19, %s4828_s19   ;;  %s3128_s18 = sphi %s3180_s18, %s4827_s18  }
   0x4   : > { %p26_p0 = scmp.ge.s32.totalorder %s25_s23, 2  ;;  %p2904_p1 = scmp.ge.s32.totalorder %s3144_s22, 1 }
   0x5   : > { %p278_p2 = scmp.lt.s32.totalorder %s3144_s22, 5 }
   0x6   : > { %s4832_s23 = smov (%p26_p0, %s25_s23), 0  ;;  %s4834_s24 = smov (!%p26_p0, %s28_s24), %s3140_s21 }
   0x7   : > { %p279_p3 = pnand %p2904_p1, %p278_p2  ;;  %p30_p4 = scmp.ge.s32.totalorder %s4834_s24, 2 }
   0x9   : > { %s4836_s24 = smov (%p30_p4, %s4834_s24), 0  ;;  %282 = sbr.rel (%p279_p3) target bundleno = 892 (0x37c), region = 36 }
   0xe   : > { %s2905_s25 = sshll.u32 %s3128_s18, 3  ;;  %p355_p5 = scmp.lt.s32.totalorder %s3132_s19, 1  ;;  %vm488_vm0 = vcmask 1040384   ;;  %vm492_vm1 = vcmask 1041409   ;;  %vm496_vm2 = vcmask 1042434   ;;  %vm500_vm3 = vcmask 1043459  }
   0xf   : > { %p357_p6 = scmp.lt.s32.totalorder %s2905_s25, 17  ;;  %s3016_s30 = sadd.s32 8, %s2905_s25  ;;  %vm972_vm4 = vcmask 1046528   ;;  %vm886_vm5 = vsmask.f32 7424  ;;  %vm1077_vm6 = vcmask 1045504  }
  0x10   : > { %s3217_s26 = scalar_select %p355_p5, %s3132_s19, 1  ;;  %vm1136_vm7 = vsmask.f32 5376  ;;  %vm1218_vm8 = vcmask 261120   ;;  %vm1237_vm9 = vcmask 523264   ;;  %vm1256_vm10 = vcmask 785408  }
  0x11   : > { %s358_s27 = scalar_select %p357_p6, %s2905_s25, 17  ;;  %vm1198_vm11 = vcmask 1044480   ;;  %vm882_vm12 = vcmask 1041408   ;;  %vm1031_vm13 = vsmask.f32 6400  ;;  %vm2215_vm14 = vcmask 1047556  }
  0x12   : > { %s3220_s28 = smul.u32 54, %s3217_s26  ;;  %s385_s6 = sadd.s32 1, %s3016_s30  ;;  %vm2212_vm15 = vcmask 254976  }
  0x13   : > { %s3057_s29 = smul.u32 3, %s358_s27  ;;  %p374_p7 = scmp.lt.s32.totalorder %s3016_s30, 17 }
  0x14   : > { %p388_p8 = scmp.lt.s32.totalorder %s385_s6, 17  ;;  %s3148_s9 = smov 32  }
  0x15   : > { %s361_s7 = sadd.s32 %s3220_s28, %s3057_s29  ;;  %s4838_s30 = smov (!%p374_p7, %s3016_s30), 17 }
  0x16   : > { %s2906_s8 = sshll.u32 %s361_s7, 2  ;;  %s4840_s6 = smov (!%p388_p8, %s385_s6), 17 }
  0x17   : > { %s3226_s11 = scalar_lea.vmem %s4705_s0, %s2906_s8  ;;  %s3059_s12 = smul.u32 3, %s4838_s30 }
  0x18   : > { %v416_v0 = vld [vmem:[%s3226_s11] sm:$0xf]  ;;  %v417_v1 = vld [vmem:[%s3226_s11 + $0x4] sm:$0xf]  ;;  %s3060_s13 = smul.u32 3, %s4840_s6  ;;  %s3147_s8 = smov 64  }
  0x19   : > { %v464_v2 = vrot.slane %v416_v0, 3  ;;  %v465_v3 = vrot.slane %v417_v1, 3  ;;  %v419_v15 = vld [vmem:[%s3226_s11 + $0xc] sm:$0xf]  ;;  %s378_s14 = sadd.s32 %s3059_s12, %s3220_s28  ;;  %v418_v19 = vld [vmem:[%s3226_s11 + $0x8] sm:$0x1] }
  0x1a   : > { %s2908_s15 = sshll.u32 %s378_s14, 2  ;;  %s392_s16 = sadd.s32 %s3060_s13, %s3220_s28  ;;  %v467_v20 = vrot.slane %v419_v15, 3  ;;  %v420_v24 = vld [vmem:[%s3226_s11 + $0x10] sm:$0xf]  ;;  %v466_v26 = vrot.slane %v418_v19, 3 }
  0x1b   : > { %v491_v4 = vsel %vm488_vm0, %v416_v0, %v464_v2  ;;  %v493_v5 = vsel %vm492_vm1, %v416_v0, %v464_v2  ;;  %v497_v6 = vsel %vm496_vm2, %v416_v0, %v464_v2  ;;  %v501_v7 = vsel %vm500_vm3, %v416_v0, %v464_v2  ;;  %s3244_s27 = scalar_lea.vmem %s4706_s1, %s2908_s15  ;;  %s2910_s29 = sshll.u32 %s392_s16, 2  ;;  %v422_v48 = vld [vmem:[%s3226_s11 + $0x18] sm:$0xf]  ;;  %v421_v49 = vld [vmem:[%s3226_s11 + $0x14] sm:$0x1] }
  0x1c   : > { %v495_v8 = vrot.slane %v493_v5, 1  ;;  %v499_v9 = vrot.slane %v497_v6, 2  ;;  %v503_v10 = vrot.slane %v501_v7, 3  ;;  %v506_v11 = vsel %vm488_vm0, %v417_v1, %v465_v3  ;;  %714 = vst [vmem:[#allocation1] ss:$9 sm:$0xff] %v491_v4  ;;  %s3250_s7 = scalar_lea.vmem %s4707_s2, %s2910_s29  ;;  %v3253_v21 = vld [vmem:[%s3244_s27] sm:$0xff] }
  0x1d   : > { %v507_v12 = vsel %vm492_vm1, %v417_v1, %v465_v3  ;;  %v510_v13 = vsel %vm496_vm2, %v417_v1, %v465_v3  ;;  %v513_v14 = vsel %vm500_vm3, %v417_v1, %v465_v3  ;;  %725 = vst [vmem:[#allocation1 + $0x4] ss:$9 sm:$0xff] %v506_v11  ;;  %v710_v22 = vld [vmem:[%s3244_s27 + $0x8] sm:$0x1]  ;;  %v3257_v23 = vld [vmem:[%s3250_s7] sm:$0xff]  ;;  %v468_v29 = vrot.slane %v420_v24, 3 }
  0x1e   : > { %v509_v16 = vrot.slane %v507_v12, 1  ;;  %v512_v17 = vrot.slane %v510_v13, 2  ;;  %717 = vst [vmem:[#allocation1 + $0x1] ss:$9 sm:$0xff] %v495_v8  ;;  %v515_v18 = vrot.slane %v513_v14, 3  ;;  %v864_v25 = vunpack.c.l.b16 %v710_v22  ;;  %s3146_s28 = smov 96  }
  0x1f   : > { %720 = vst [vmem:[#allocation1 + $0x2] ss:$9 sm:$0xff] %v499_v9  ;;  %v876_v27 = vrot.slane %v3257_v23, 7  ;;  %v522_v30 = vsel %vm492_vm1, %v419_v15, %v467_v20  ;;  %v990_v31 = vrot.slane %v3253_v21, 1  ;;  %v525_v32 = vsel %vm496_vm2, %v419_v15, %v467_v20  ;;  %v423_v51 = vld [vmem:[%s3226_s11 + $0x1c] sm:$0xf] }
  0x20   : > { %723 = vst [vmem:[#allocation1 + $0x3] ss:$9 sm:$0xff] %v503_v10  ;;  %v866_v28 = vpack.c.b16 %v864_v25, %v864_v25  ;;  %v518_v34 = vsel %vm488_vm0, %v418_v19, %v466_v26  ;;  %v528_v35 = vsel %vm500_vm3, %v419_v15, %v467_v20  ;;  %v521_v37 = vsel %vm488_vm0, %v419_v15, %v467_v20  ;;  %v425_v14 = vld [vmem:[%s3226_s11 + $0x24] sm:$0xf]  ;;  %v424_v15 = vld [vmem:[%s3226_s11 + $0x20] sm:$0x1] }
  0x21   : > { %728 = vst [vmem:[#allocation1 + $0x5] ss:$9 sm:$0xff] %v509_v16  ;;  %v524_v38 = vrot.slane %v522_v30, 1  ;;  %v527_v39 = vrot.slane %v525_v32, 2  ;;  %v534_v40 = vsel %vm492_vm1, %v420_v24, %v468_v29  ;;  %v530_v43 = vrot.slane %v528_v35, 3  ;;  %p400_p10 = scmp.lt.s32.totalorder %s3128_s18, 1 }
  0x22   : > { %731 = vst [vmem:[#allocation1 + $0x6] ss:$9 sm:$0xff] %v512_v17  ;;  %v3267_v33 = vsel %vm488_vm0, %v866_v28, %v876_v27  ;;  %v537_v44 = vsel %vm496_vm2, %v420_v24, %v468_v29  ;;  %v533_v45 = vsel %vm488_vm0, %v420_v24, %v468_v29  ;;  %v536_v46 = vrot.slane %v534_v40, 1  ;;  %v426_v19 = vld [vmem:[%s3226_s11 + $0x28] sm:$0xf]  ;;  %s2912_s15 = sshll.u32 %s3217_s26, 3 }
  0x23   : > { %734 = vst [vmem:[#allocation1 + $0x7] ss:$9 sm:$0xff] %v515_v18  ;;  %v1011_v36 = vrot.slane %v3267_v33, 1  ;;  %v539_v47 = vrot.slane %v537_v44, 2  ;;  %v470_v52 = vrot.slane %v422_v48, 3  ;;  %v540_v53 = vsel %vm500_vm3, %v420_v24, %v468_v29 }
  0x24   : > { %v469_v54 = vrot.slane %v421_v49, 3  ;;  %v471_v55 = vrot.slane %v423_v51, 3  ;;  %v542_v56 = vrot.slane %v540_v53, 3  ;;  %v473_v16 = vrot.slane %v425_v14, 3 }
  0x25   : > { %v1012_v42 = vsel %vm972_vm4, %v990_v31, %v1011_v36  ;;  %v549_v59 = vsel %vm492_vm1, %v422_v48, %v470_v52  ;;  %v552_v60 = vsel %vm496_vm2, %v422_v48, %v470_v52  ;;  %v555_v63 = vsel %vm500_vm3, %v422_v48, %v470_v52 }
  0x26   : > { %1029 = vrot.lane.b32.xlu2 %v1012_v42, %s3146_s28  ;;  %v545_v62 = vsel %vm488_vm0, %v421_v49, %v469_v54  ;;  %v548_v1 = vsel %vm488_vm0, %v422_v48, %v470_v52  ;;  %v551_v2 = vrot.slane %v549_v59, 1  ;;  %v554_v3 = vrot.slane %v552_v60, 2  ;;  %v428_v49 = vld [vmem:[%s3226_s11 + $0x30] sm:$0xf] }
  0x27   : > { %v561_v7 = vsel %vm492_vm1, %v423_v51, %v471_v55  ;;  %v557_v8 = vrot.slane %v555_v63, 3  ;;  %v560_v11 = vsel %vm488_vm0, %v423_v51, %v471_v55  ;;  %v564_v17 = vsel %vm496_vm2, %v423_v51, %v471_v55 }
  0x28   : > { %v563_v12 = vrot.slane %v561_v7, 1  ;;  %v567_v18 = vsel %vm500_vm3, %v423_v51, %v471_v55  ;;  %v472_v20 = vrot.slane %v424_v15, 3  ;;  %v566_v22 = vrot.slane %v564_v17, 2 }
  0x29   : > { %v576_v24 = vsel %vm492_vm1, %v425_v14, %v473_v16  ;;  %v569_v25 = vrot.slane %v567_v18, 3  ;;  %v474_v28 = vrot.slane %v426_v19, 3  ;;  %v579_v29 = vsel %vm496_vm2, %v425_v14, %v473_v16  ;;  %v429_v18 = vld [vmem:[%s3226_s11 + $0x34] sm:$0xf] }
  0x2a   : > { %v3274_v41 = vld [vmem:[#allocation1] sm:$0xff]  ;;  %v572_v32 = vsel %vm488_vm0, %v424_v15, %v472_v20  ;;  %v578_v35 = vrot.slane %v576_v24, 1  ;;  %v582_v36 = vsel %vm500_vm3, %v425_v14, %v473_v16  ;;  %v581_v42 = vrot.slane %v579_v29, 2 }
  0x2b   : > { %737 = vst [vmem:[#allocation1] ss:$9 sm:$0xff] %v518_v34  ;;  %v889_v50 = vshll.u32 %v3274_v41, 16  ;;  %v887_v57 = vshrl.u32 %v3274_v41, 16  ;;  %v973_v61 = vrot.slane %v3274_v41, 1  ;;  %v575_v34 = vsel %vm488_vm0, %v425_v14, %v473_v16 }
  0x2c   : > { %738 = vst [vmem:[#allocation1 + $0x1] ss:$9 sm:$0xff] %v521_v37  ;;  %v584_v44 = vrot.slane %v582_v36, 3  ;;  %v588_v52 = vsel %vm492_vm1, %v426_v19, %v474_v28  ;;  %v476_v53 = vrot.slane %v428_v49, 3  ;;  %v591_v54 = vsel %vm496_vm2, %v426_v19, %v474_v28 }
  0x2d   : > { %740 = vst [vmem:[#allocation1 + $0x2] ss:$9 sm:$0xff] %v524_v38  ;;  %v891_v58 = vrot.slane %v889_v50, 1  ;;  %v427_v50 = vld [vmem:[%s3226_s11 + $0x2c] sm:$0x1]  ;;  %v593_v59 = vrot.slane %v591_v54, 2 }
  0x2e   : > { %742 = vst [vmem:[#allocation1 + $0x3] ss:$9 sm:$0xff] %v527_v39 }
  0x2f   : > { %744 = vst [vmem:[#allocation1 + $0x4] ss:$9 sm:$0xff] %v530_v43  ;;  %v892_v4 = vor.u32 %v891_v58, %v887_v57  ;;  %v594_v57 = vsel %vm500_vm3, %v426_v19, %v474_v28  ;;  %v590_v58 = vrot.slane %v588_v52, 1 }
  0x30   : > { %745 = vst [vmem:[#allocation1 + $0x5] ss:$9 sm:$0xff] %v533_v45  ;;  %v596_v60 = vrot.slane %v594_v57, 3 }
  0x31   : > { %747 = vst [vmem:[#allocation1 + $0x6] ss:$9 sm:$0xff] %v536_v46  ;;  %v587_v46 = vsel %vm488_vm0, %v426_v19, %v474_v28  ;;  %v431_v28 = vld [vmem:[%s3226_s11 + $0x3c] sm:$0xf] }
  0x32   : > { %749 = vst [vmem:[#allocation1 + $0x7] ss:$9 sm:$0xff] %v539_v47 }
  0x39   : > { %v3293_v0 = vld [vmem:[#allocation1] sm:$0xff] }
  0x3a   : > { %v893_v5 = vshll.u32 %v3293_v0, 16  ;;  %v974_v6 = vrot.slane %v3293_v0, 1  ;;  %753 = vst [vmem:[#allocation1] ss:$9 sm:$0xff] %v542_v56  ;;  %v1078_v26 = vrot.slane %v3293_v0, 2  ;;  %v897_v39 = vshrl.u32 %v3293_v0, 16 }
  0x3b   : > { %754 = vst [vmem:[#allocation1 + $0x1] ss:$9 sm:$0xff] %v545_v62  ;;  %v475_v56 = vrot.slane %v427_v50, 3  ;;  %v606_v62 = vsel %vm496_vm2, %v428_v49, %v476_v53 }
  0x3c   : > { %v895_v9 = vrot.slane %v893_v5, 1  ;;  %v975_v10 = vsel %vm972_vm4, %v973_v61, %v974_v6  ;;  %755 = vst [vmem:[#allocation1 + $0x2] ss:$9 sm:$0xff] %v548_v1  ;;  %v603_v61 = vsel %vm492_vm1, %v428_v49, %v476_v53 }
  0x3d   : > { %992 = vrot.lane.b32.xlu1 %v975_v10, %s3147_s8  ;;  %757 = vst [vmem:[#allocation1 + $0x3] ss:$9 sm:$0xff] %v551_v2  ;;  %v599_v2 = vsel %vm488_vm0, %v427_v50, %v475_v56  ;;  %v605_v10 = vrot.slane %v603_v61, 1  ;;  %v432_v61 = vld [vmem:[%s3226_s11 + $0x40] sm:$0xf] }
  0x3e   : > { %v896_v13 = vsel %vm886_vm5, %v892_v4, %v895_v9  ;;  %759 = vst [vmem:[#allocation1 + $0x4] ss:$9 sm:$0xff] %v554_v3  ;;  %v899_v47 = vor.u32 %v897_v39, %v895_v9  ;;  %v602_v3 = vsel %vm488_vm0, %v428_v49, %v476_v53  ;;  %v609_v4 = vsel %vm500_vm3, %v428_v49, %v476_v53 }
  0x3f   : > { %954 = vrot.lane.b32.xlu0 %v896_v13, %s3148_s9  ;;  %761 = vst [vmem:[#allocation1 + $0x5] ss:$9 sm:$0xff] %v557_v8  ;;  %v611_v19 = vrot.slane %v609_v4, 3  ;;  %v480_v4 = vrot.slane %v432_v61, 3 }
  0x40   : > { %762 = vst [vmem:[#allocation1 + $0x6] ss:$9 sm:$0xff] %v560_v11  ;;  %v608_v11 = vrot.slane %v606_v62, 2 }
  0x41   : > { %764 = vst [vmem:[#allocation1 + $0x7] ss:$9 sm:$0xff] %v563_v12 }
  0x48   : > { %v3314_v30 = vld [vmem:[#allocation1] sm:$0xff] }
  0x49   : > { %v1079_v37 = vrot.slane %v3314_v30, 2  ;;  %768 = vst [vmem:[#allocation1] ss:$9 sm:$0xff] %v566_v22  ;;  %v976_v38 = vrot.slane %v3314_v30, 1  ;;  %v3323_v40 = vshll.u32 %v3314_v30, 16  ;;  %v3339_v55 = vshrl.u32 %v3314_v30, 16 }
  0x4a   : > { %770 = vst [vmem:[#allocation1 + $0x1] ss:$9 sm:$0xff] %v569_v25 }
  0x4b   : > { %v1080_v43 = vsel %vm1077_vm6, %v1078_v26, %v1079_v37  ;;  %771 = vst [vmem:[#allocation1 + $0x2] ss:$9 sm:$0xff] %v572_v32  ;;  %v977_v45 = vsel %vm972_vm4, %v974_v6, %v976_v38  ;;  %v902_v48 = vrot.slane %v3323_v40, 1  ;;  %v1137_v12 = vrot.slane %v3339_v55, 2  ;;  %v430_v32 = vld [vmem:[%s3226_s11 + $0x38] sm:$0x1] }
  0x4c   : > { %1097 = vrot.lane.b32.xlu0 %v1080_v43, %s3148_s9  ;;  %772 = vst [vmem:[#allocation1 + $0x3] ss:$9 sm:$0xff] %v575_v34  ;;  %1013 = vrot.lane.b32.xlu2 %v977_v45, %s3146_s28  ;;  %v1138_v13 = vrot.slane %v3323_v40, 3  ;;  %v477_v26 = vrot.slane %v429_v18, 3 }
  0x4d   : > { %774 = vst [vmem:[#allocation1 + $0x4] ss:$9 sm:$0xff] %v578_v35  ;;  %v903_v51 = vsel %vm886_vm5, %v899_v47, %v902_v48  ;;  %v906_v1 = vor.u32 %v3339_v55, %v902_v48  ;;  %v479_v35 = vrot.slane %v431_v28, 3 }
  0x4e   : > { %776 = vst [vmem:[#allocation1 + $0x5] ss:$9 sm:$0xff] %v581_v42  ;;  %v1139_v24 = vor.u32 %v1138_v13, %v1137_v12  ;;  %v615_v34 = vsel %vm492_vm1, %v429_v18, %v477_v26  ;;  %v618_v36 = vsel %vm496_vm2, %v429_v18, %v477_v26  ;;  %v614_v42 = vsel %vm488_vm0, %v429_v18, %v477_v26  ;;  %v433_v13 = vld [vmem:[%s3226_s11 + $0x44] sm:$0x1] }
  0x4f   : > { %778 = vst [vmem:[#allocation1 + $0x6] ss:$9 sm:$0xff] %v584_v44  ;;  %v617_v43 = vrot.slane %v615_v34, 1  ;;  %v620_v44 = vrot.slane %v618_v36, 2  ;;  %v630_v47 = vsel %vm492_vm1, %v431_v28, %v479_v35  ;;  %v633_v48 = vsel %vm496_vm2, %v431_v28, %v479_v35 }
  0x50   : > { %779 = vst [vmem:[#allocation1 + $0x7] ss:$9 sm:$0xff] %v587_v46  ;;  %v629_v56 = vsel %vm488_vm0, %v431_v28, %v479_v35  ;;  %v632_v57 = vrot.slane %v630_v47, 1 }
  0x54   : > { %956 = vrot.lane.b32.xlu0 %v903_v51, %s3148_s9  ;;  %994 = vrot.lane.b32.xlu2 %v977_v45, %s3147_s8 }
  0x57   : > { %v3346_v63 = vld [vmem:[#allocation1] sm:$0xff] }
  0x58   : > { %v1081_v6 = vrot.slane %v3346_v63, 2  ;;  %v3354_v7 = vshll.u32 %v3346_v63, 16  ;;  %v978_v8 = vrot.slane %v3346_v63, 1  ;;  %783 = vst [vmem:[#allocation1] ss:$9 sm:$0xff] %v590_v58  ;;  %v3358_v9 = vshrl.u32 %v3346_v63, 16 }
  0x59   : > { %785 = vst [vmem:[#allocation1 + $0x1] ss:$9 sm:$0xff] %v593_v59  ;;  %v635_v59 = vrot.slane %v633_v48, 2 }
  0x5a   : > { %v1082_v14 = vsel %vm1077_vm6, %v1079_v37, %v1081_v6  ;;  %v909_v15 = vrot.slane %v3354_v7, 1  ;;  %v979_v16 = vsel %vm972_vm4, %v976_v38, %v978_v8  ;;  %787 = vst [vmem:[#allocation1 + $0x2] ss:$9 sm:$0xff] %v596_v60  ;;  %v1140_v17 = vrot.slane %v3358_v9, 2 }
  0x5b   : > { %1118 = vrot.lane.b32.xlu1 %v1082_v14, %s3147_s8  ;;  %788 = vst [vmem:[#allocation1 + $0x3] ss:$9 sm:$0xff] %v599_v2  ;;  %v1141_v20 = vrot.slane %v3354_v7, 3  ;;  %v621_v37 = vsel %vm500_vm3, %v429_v18, %v477_v26  ;;  %v478_v38 = vrot.slane %v430_v32, 3  ;;  %v481_v18 = vrot.slane %v433_v13, 3 }
  0x5c   : > { %v910_v22 = vsel %vm886_vm5, %v906_v1, %v909_v15  ;;  %996 = vrot.lane.b32.xlu2 %v979_v16, %s3147_s8  ;;  %789 = vst [vmem:[#allocation1 + $0x4] ss:$9 sm:$0xff] %v602_v3  ;;  %v623_v46 = vrot.slane %v621_v37, 3  ;;  %v913_v62 = vor.u32 %v3358_v9, %v909_v15 }
  0x5d   : > { %958 = vrot.lane.b32.xlu0 %v910_v22, %s3148_s9  ;;  %791 = vst [vmem:[#allocation1 + $0x5] ss:$9 sm:$0xff] %v605_v10  ;;  %v1142_v25 = vor.u32 %v1141_v20, %v1140_v17  ;;  %v626_v53 = vsel %vm488_vm0, %v430_v32, %v478_v38  ;;  %v434_v10 = vld [vmem:[%s3226_s11 + $0x48] sm:$0xf]  ;;  %v648_v17 = vsel %vm500_vm3, %v432_v61, %v480_v4 }
  0x5e   : > { %793 = vst [vmem:[#allocation1 + $0x6] ss:$9 sm:$0xff] %v608_v11  ;;  %v636_v11 = vsel %vm500_vm3, %v431_v28, %v479_v35  ;;  %v650_v26 = vrot.slane %v648_v17, 3  ;;  %v653_v36 = vsel %vm488_vm0, %v433_v13, %v481_v18 }
  0x5f   : > { %795 = vst [vmem:[#allocation1 + $0x7] ss:$9 sm:$0xff] %v611_v19  ;;  %v1143_v29 = vsel %vm1136_vm7, %v1139_v24, %v1142_v25  ;;  %v638_v15 = vrot.slane %v636_v11, 3  ;;  %v641_v19 = vsel %vm488_vm0, %v432_v61, %v480_v4 }
  0x63   : > { %1099 = vrot.lane.b32.xlu1 %v1082_v14, %s3148_s9  ;;  %v642_v14 = vsel %vm492_vm1, %v432_v61, %v480_v4 }
  0x64   : > { %1180 = vrot.lane.b32.xlu2 %v1143_v29, %s3146_s28  ;;  %v644_v20 = vrot.slane %v642_v14, 1 }
  0x66   : > { %v3383_v45 = vld [vmem:[#allocation1] sm:$0xff] }
  0x67   : > { %v1083_v49 = vrot.slane %v3383_v45, 2  ;;  %v3389_v50 = vshll.u32 %v3383_v45, 16  ;;  %v980_v51 = vrot.slane %v3383_v45, 1  ;;  %798 = vst [vmem:[#allocation1] ss:$9 sm:$0xff] %v614_v42  ;;  %v3393_v52 = vshrl.u32 %v3383_v45, 16 }
  0x68   : > { %800 = vst [vmem:[#allocation1 + $0x1] ss:$9 sm:$0xff] %v617_v43 }
  0x69   : > { %v1084_v54 = vsel %vm1077_vm6, %v1081_v6, %v1083_v49  ;;  %802 = vst [vmem:[#allocation1 + $0x2] ss:$9 sm:$0xff] %v620_v44  ;;  %v1144_v58 = vrot.slane %v3393_v52, 2  ;;  %v1145_v60 = vrot.slane %v3389_v50, 3  ;;  %v916_v1 = vrot.slane %v3389_v50, 1 }
  0x6a   : > { %1120 = vrot.lane.b32.xlu0 %v1084_v54, %s3147_s8  ;;  %804 = vst [vmem:[#allocation1 + $0x3] ss:$9 sm:$0xff] %v623_v46  ;;  %v981_v2 = vsel %vm972_vm4, %v978_v8, %v980_v51  ;;  %v482_v8 = vrot.slane %v434_v10, 3  ;;  %v435_v44 = vld [vmem:[%s3226_s11 + $0x4c] sm:$0xf] }
  0x6b   : > { %1015 = vrot.lane.b32.xlu1 %v979_v16, %s3146_s28  ;;  %805 = vst [vmem:[#allocation1 + $0x4] ss:$9 sm:$0xff] %v626_v53  ;;  %v1146_v3 = vor.u32 %v1145_v60, %v1144_v58  ;;  %v917_v6 = vsel %vm886_vm5, %v913_v62, %v916_v1  ;;  %v645_v16 = vsel %vm496_vm2, %v432_v61, %v480_v4  ;;  %v436_v58 = vld [vmem:[%s3226_s11 + $0x50] sm:$0x1] }
  0x6c   : > { %806 = vst [vmem:[#allocation1 + $0x5] ss:$9 sm:$0xff] %v629_v56  ;;  %998 = vrot.lane.b32.xlu2 %v981_v2, %s3147_s8  ;;  %v647_v24 = vrot.slane %v645_v16, 2  ;;  %v657_v28 = vsel %vm492_vm1, %v434_v10, %v482_v8  ;;  %v656_v37 = vsel %vm488_vm0, %v434_v10, %v482_v8  ;;  %v920_v46 = vor.u32 %v3393_v52, %v916_v1 }
  0x6d   : > { %808 = vst [vmem:[#allocation1 + $0x6] ss:$9 sm:$0xff] %v632_v57  ;;  %v1147_v12 = vsel %vm1136_vm7, %v1142_v25, %v1146_v3  ;;  %v659_v38 = vrot.slane %v657_v28, 1  ;;  %v663_v57 = vsel %vm500_vm3, %v434_v10, %v482_v8 }
  0x6e   : > { %810 = vst [vmem:[#allocation1 + $0x7] ss:$9 sm:$0xff] %v635_v59  ;;  %v437_v59 = vld [vmem:[%s3226_s11 + $0x54] sm:$0xf]  ;;  %v665_v62 = vrot.slane %v663_v57, 3 }
  0x72   : > { %960 = vrot.lane.b32.xlu0 %v917_v6, %s3148_s9  ;;  %v484_v6 = vrot.slane %v436_v58, 3 }
  0x73   : > { %1101 = vrot.lane.b32.xlu1 %v1084_v54, %s3148_s9  ;;  %v660_v54 = vsel %vm496_vm2, %v434_v10, %v482_v8  ;;  %v485_v10 = vrot.slane %v437_v59, 3 }
  0x74   : > { %1182 = vrot.lane.b32.xlu2 %v1147_v12, %s3146_s28  ;;  %v662_v60 = vrot.slane %v660_v54, 2  ;;  %v3026_v54 = vld [vmem:[%s4708_s3 + $0x28] sm:$0xff] }
  0x75   : > { %v3423_v22 = vld [vmem:[#allocation1] sm:$0xff] }
  0x76   : > { %v1085_v25 = vrot.slane %v3423_v22, 2  ;;  %814 = vst [vmem:[#allocation1] ss:$9 sm:$0xff] %v638_v15  ;;  %v3428_v29 = vshrl.u32 %v3423_v22, 16  ;;  %v3431_v32 = vshll.u32 %v3423_v22, 16  ;;  %v982_v34 = vrot.slane %v3423_v22, 1 }
  0x77   : > { %815 = vst [vmem:[#allocation1 + $0x1] ss:$9 sm:$0xff] %v641_v19  ;;  %v680_v19 = vsel %vm488_vm0, %v436_v58, %v484_v6 }
  0x78   : > { %v1086_v35 = vsel %vm1077_vm6, %v1083_v49, %v1085_v25  ;;  %817 = vst [vmem:[#allocation1 + $0x2] ss:$9 sm:$0xff] %v644_v20  ;;  %v1148_v42 = vrot.slane %v3428_v29, 2  ;;  %v1149_v43 = vrot.slane %v3431_v32, 3  ;;  %v923_v47 = vrot.slane %v3431_v32, 1  ;;  %v3028_v20 = vld [vmem:[%s4708_s3 + $0x38] sm:$0xff] }
  0x79   : > { %819 = vst [vmem:[#allocation1 + $0x3] ss:$9 sm:$0xff] %v647_v24  ;;  %v983_v48 = vsel %vm972_vm4, %v980_v51, %v982_v34  ;;  %v483_v49 = vrot.slane %v435_v44, 3  ;;  %v683_v24 = vsel %vm488_vm0, %v437_v59, %v485_v10  ;;  %1527 = vmatpush.bf16.msra.mxu0 %v3028_v20  ;;  %3039 = vmatpush.bf16.msra.mxu3 %v3028_v20 }
  0x7a   : > { %1122 = vrot.lane.b32.xlu0 %v1086_v35, %s3147_s8  ;;  %821 = vst [vmem:[#allocation1 + $0x4] ss:$9 sm:$0xff] %v650_v26  ;;  %v1150_v53 = vor.u32 %v1149_v43, %v1148_v42  ;;  %v924_v56 = vsel %vm886_vm5, %v920_v46, %v923_v47  ;;  %v439_v42 = vld [vmem:[%s3226_s11 + $0x5c] sm:$0x1] }
  0x7b   : > { %1017 = vrot.lane.b32.xlu1 %v981_v2, %s3146_s28  ;;  %822 = vst [vmem:[#allocation1 + $0x5] ss:$9 sm:$0xff] %v653_v36  ;;  %v669_v51 = vsel %vm492_vm1, %v435_v44, %v483_v49  ;;  %v672_v1 = vsel %vm496_vm2, %v435_v44, %v483_v49  ;;  %v675_v2 = vsel %vm500_vm3, %v435_v44, %v483_v49  ;;  %v487_v57 = vrot.slane %v439_v42, 3 }
  0x7c   : > { %823 = vst [vmem:[#allocation1 + $0x6] ss:$9 sm:$0xff] %v656_v37  ;;  %1000 = vrot.lane.b32.xlu2 %v983_v48, %s3147_s8  ;;  %v1151_v61 = vsel %vm1136_vm7, %v1146_v3, %v1150_v53  ;;  %v668_v11 = vsel %vm488_vm0, %v435_v44, %v483_v49  ;;  %v671_v12 = vrot.slane %v669_v51, 1  ;;  %v674_v13 = vrot.slane %v672_v1, 2  ;;  %v3027_v44 = vld [vmem:[%s4708_s3 + $0x30] sm:$0xff] }
  0x7d   : > { %825 = vst [vmem:[#allocation1 + $0x7] ss:$9 sm:$0xff] %v659_v38  ;;  %v677_v15 = vrot.slane %v675_v2, 3  ;;  %v684_v36 = vsel %vm492_vm1, %v437_v59, %v485_v10  ;;  %v687_v37 = vsel %vm496_vm2, %v437_v59, %v485_v10  ;;  %v690_v38 = vsel %vm500_vm3, %v437_v59, %v485_v10  ;;  %1528 = vmatpush.bf16.msra.mxu0 %v3027_v44 }
  0x7e   : > { %v686_v43 = vrot.slane %v684_v36, 1  ;;  %v689_v46 = vrot.slane %v687_v37, 2  ;;  %v692_v49 = vrot.slane %v690_v38, 3  ;;  %3040 = vmatpush.bf16.msra.mxu3 %v3027_v44  ;;  %v707_v10 = vsel %vm488_vm0, %v439_v42, %v487_v57  ;;  %v3022_v38 = vld [vmem:[%s4708_s3 + $0x8] sm:$0xff]  ;;  %v3580_v42 = vld [vmem:[%s4708_s3 + $0x60] sm:$0xff] }
  0x81   : > { %1529 = vmatpush.bf16.msra.mxu0 %v3026_v54 }
  0x82   : > { %962 = vrot.lane.b32.xlu0 %v924_v56, %s3148_s9  ;;  %3041 = vmatpush.bf16.msra.mxu3 %v3026_v54 }
  0x83   : > { %1103 = vrot.lane.b32.xlu1 %v1086_v35, %s3148_s9 }
  0x84   : > { %v3463_v4 = vld [vmem:[#allocation1] sm:$0xff]  ;;  %1184 = vrot.lane.b32.xlu2 %v1151_v61, %s3146_s28 }
  0x85   : > { %v1087_v3 = vrot.slane %v3463_v4, 2  ;;  %829 = vst [vmem:[#allocation1] ss:$9 sm:$0xff] %v662_v60  ;;  %v3469_v14 = vshll.u32 %v3463_v4, 16  ;;  %v3472_v8 = vshrl.u32 %v3463_v4, 16  ;;  %v984_v60 = vrot.slane %v3463_v4, 1 }
  0x86   : > { %831 = vst [vmem:[#allocation1 + $0x1] ss:$9 sm:$0xff] %v665_v62 }
  0x87   : > { %v1088_v16 = vsel %vm1077_vm6, %v1085_v25, %v1087_v3  ;;  %832 = vst [vmem:[#allocation1 + $0x2] ss:$9 sm:$0xff] %v668_v11  ;;  %v1152_v17 = vrot.slane %v3472_v8, 2  ;;  %v1153_v18 = vrot.slane %v3469_v14, 3  ;;  %v438_v25 = vld [vmem:[%s3226_s11 + $0x58] sm:$0xf]  ;;  %v3521_v6 = vsel %vm972_vm4, %v982_v34, %v984_v60 }
  0x88   : > { %834 = vst [vmem:[#allocation1 + $0x3] ss:$9 sm:$0xff] %v671_v12  ;;  %v486_v35 = vrot.slane %v438_v25, 3  ;;  %v3025_v11 = vld [vmem:[%s4708_s3 + $0x20] sm:$0xff]  ;;  %v3530_v12 = vld [vmem:[%s4708_s3 + $0x78] sm:$0xff] }
  0x89   : > { %836 = vst [vmem:[#allocation1 + $0x4] ss:$9 sm:$0xff] %v674_v13  ;;  %v3482_v26 = vor.u32 %v1153_v18, %v1152_v17  ;;  %1530 = vmatpush.bf16.msra.mxu0 %v3025_v11  ;;  %1581 = vmatpush.bf16.msra.mxu1 %v3530_v12  ;;  %v3024_v34 = vld [vmem:[%s4708_s3 + $0x18] sm:$0xff]  ;;  %v3023_v18 = vld [vmem:[%s4708_s3 + $0x10] sm:$0xff] }
  0x8a   : > { %1124 = vrot.lane.b32.xlu0 %v1088_v16, %s3147_s8  ;;  %838 = vst [vmem:[#allocation1 + $0x5] ss:$9 sm:$0xff] %v677_v15  ;;  %v702_v58 = vsel %vm500_vm3, %v438_v25, %v486_v35  ;;  %v695_v51 = vsel %vm488_vm0, %v438_v25, %v486_v35  ;;  %3042 = vmatpush.bf16.msra.mxu3 %v3025_v11  ;;  %v3546_v15 = vpop.permute.xlu2 %1029  ;;  %v4712_v11 = vshll.u32 %v3267_v33, 16 }
  0x8b   : > { %1019 = vrot.lane.b32.xlu1 %v983_v48, %s3146_s28  ;;  %839 = vst [vmem:[#allocation1 + $0x6] ss:$9 sm:$0xff] %v680_v19  ;;  %v1155_v28 = vsel %vm1136_vm7, %v1150_v53, %v3482_v26  ;;  %v696_v48 = vsel %vm492_vm1, %v438_v25, %v486_v35  ;;  %v699_v53 = vsel %vm496_vm2, %v438_v25, %v486_v35  ;;  %v704_v2 = vrot.slane %v702_v58, 3  ;;  %v3559_v19 = vld [vmem:[%s4708_s3 + $0x68] sm:$0xff]  ;;  %v3021_v58 = vld [vmem:[%s4708_s3] sm:$0xff] }
  0x8c   : > { %840 = vst [vmem:[#allocation1 + $0x7] ss:$9 sm:$0xff] %v683_v24  ;;  %1186 = vrot.lane.b32.xlu2 %v1155_v28, %s3146_s28  ;;  %v698_v61 = vrot.slane %v696_v48, 1  ;;  %v701_v62 = vrot.slane %v699_v53, 2 }
  0x8d   : > { %1531 = vmatpush.bf16.msra.mxu0 %v3024_v34 }
  0x8e   : > { %3043 = vmatpush.bf16.msra.mxu3 %v3024_v34  ;;  %v3626_v34 = vrot.slane %v893_v5, 2 }
  0x91   : > { %1532 = vmatpush.bf16.msra.mxu0 %v3023_v18 }
  0x92   : > { %3044 = vmatpush.bf16.msra.mxu3 %v3023_v18  ;;  %v3630_v18 = vrot.slane %v897_v39, 1 }
  0x93   : > { %1105 = vrot.lane.b32.xlu1 %v1088_v16, %s3148_s9  ;;  %v3503_v56 = vld [vmem:[#allocation1] sm:$0xff] }
  0x94   : > { %v1089_v59 = vrot.slane %v3503_v56, 2  ;;  %844 = vst [vmem:[#allocation1] ss:$9 sm:$0xff] %v686_v43  ;;  %v3544_v13 = vshll.u32 %v3503_v56, 16  ;;  %v3551_v17 = vshrl.u32 %v3503_v56, 16  ;;  %v986_v20 = vrot.slane %v3503_v56, 1 }
  0x95   : > { %846 = vst [vmem:[#allocation1 + $0x1] ss:$9 sm:$0xff] %v689_v46  ;;  %v3583_v43 = vshll.u32 %v3253_v21, 16  ;;  %1533 = vmatpush.bf16.msra.mxu0 %v3022_v38 }
  0x96   : > { %v3512_v1 = vsel %vm1077_vm6, %v1087_v3, %v1089_v59  ;;  %848 = vst [vmem:[#allocation1 + $0x2] ss:$9 sm:$0xff] %v692_v49  ;;  %v3539_v3 = vld [vmem:[%s4708_s3 + $0x70] sm:$0xff]  ;;  %v4714_v16 = vrot.slane %v3544_v13, 1  ;;  %v1156_v25 = vrot.slane %v3551_v17, 2  ;;  %v1157_v37 = vrot.slane %v3544_v13, 3  ;;  %3045 = vmatpush.bf16.msra.mxu3 %v3022_v38 }
  0x97   : > { %1126 = vrot.lane.b32.xlu0 %v3512_v1, %s3147_s8  ;;  %849 = vst [vmem:[#allocation1 + $0x3] ss:$9 sm:$0xff] %v695_v51  ;;  %1582 = vmatpush.bf16.msra.mxu1 %v3539_v3  ;;  %v3616_v51 = vld [vmem:[%s4708_s3 + $0x88] sm:$0xff] }
  0x98   : > { %851 = vst [vmem:[#allocation1 + $0x4] ss:$9 sm:$0xff] %v698_v61  ;;  %v941_v28 = vor.u32 %v3551_v17, %v4714_v16  ;;  %v3601_v54 = vor.u32 %v1157_v37, %v1156_v25  ;;  %1641 = vmatpush.bf16.msra.mxu2 %v3616_v51  ;;  %v1169_v37 = vrot.slane %v4712_v11, 3  ;;  %v713_v38 = vld [vmem:[%s3250_s7 + $0x8] sm:$0x1] }
  0x99   : > { %853 = vst [vmem:[#allocation1 + $0x5] ss:$9 sm:$0xff] %v701_v62  ;;  %v952_v62 = vrot.slane %v3583_v43, 1  ;;  %1534 = vmatpush.bf16.msra.mxu0 %v3021_v58 }
  0x9a   : > { %855 = vst [vmem:[#allocation1 + $0x6] ss:$9 sm:$0xff] %v704_v2  ;;  %v4713_v2 = vshrl.u32 %v3253_v21, 16  ;;  %v1159_v25 = vsel %vm1136_vm7, %v3482_v26, %v3601_v54  ;;  %3046 = vmatpush.bf16.msra.mxu3 %v3021_v58 }
  0x9b   : > { %1021 = vrot.lane.b32.xlu1 %v3521_v6, %s3146_s28  ;;  %856 = vst [vmem:[#allocation1 + $0x7] ss:$9 sm:$0xff] %v707_v10  ;;  %1583 = vmatpush.bf16.msra.mxu1 %v3559_v19  ;;  %v4711_v10 = vshrl.u32 %v3267_v33, 16 }
  0x9c   : > { %v1164_v5 = vrot.slane %v4713_v2, 2 }
  0x9d   : > { %v1168_v39 = vrot.slane %v4711_v10, 2 }
  0x9e   : > { %3047 = vmatpush.bf16.msrb.mxu3 %v3530_v12 }
  0x9f   : > { %1584 = vmatpush.bf16.msra.mxu1 %v3580_v42  ;;  %v3658_v11 = vor.u32 %v1169_v37, %v1168_v39  ;;  %v1199_v39 = vrot.slane %v3314_v30, 3  ;;  %v1200_v37 = vrot.slane %v3346_v63, 3 }
  0xa2   : > { %v3562_v24 = vld [vmem:[#allocation1] sm:$0xff]  ;;  %3048 = vmatpush.bf16.msrb.mxu3 %v3539_v3  ;;  %v1201_v3 = vsel %vm1198_vm11, %v1199_v39, %v1200_v37 }
  0xa3   : > { %v3570_v35 = vshll.u32 %v3562_v24, 16  ;;  %v988_v36 = vrot.slane %v3562_v24, 1  ;;  %v3592_v48 = vshrl.u32 %v3562_v24, 16  ;;  %v1091_v58 = vrot.slane %v3562_v24, 2 }
  0xa5   : > { %v944_v44 = vrot.slane %v3570_v35, 1  ;;  %v3589_v46 = vsel %vm972_vm4, %v986_v20, %v988_v36  ;;  %v991_v49 = vsel %vm972_vm4, %v988_v36, %v990_v31  ;;  %v3611_v31 = vld [vmem:[%s4708_s3 + $0x58] sm:$0xff]  ;;  %v1165_v36 = vrot.slane %v3583_v43, 3 }
  0xa6   : > { %1006 = vrot.lane.b32.xlu1 %v3589_v46, %s3147_s8  ;;  %1027 = vrot.lane.b32.xlu2 %v991_v49, %s3146_s28  ;;  %v1014_v57 = vpop.permute.xlu2 %1013 }
  0xa7   : > { %v945_v53 = vsel %vm886_vm5, %v941_v28, %v944_v44  ;;  %v948_v61 = vor.u32 %v3592_v48, %v944_v44  ;;  %1585 = vmatpush.bf16.msra.mxu1 %v3611_v31  ;;  %v3639_v28 = vld [vmem:[%s4708_s3 + $0x50] sm:$0xff]  ;;  %v1093_v44 = vrot.slane %v3253_v21, 2  ;;  %v3656_v10 = vor.u32 %v1165_v36, %v1164_v5  ;;  %3049 = vmatpush.bf16.msrb.mxu3 %v3559_v19 }
  0xa8   : > { %968 = vrot.lane.b32.xlu0 %v945_v53, %s3148_s9  ;;  %v4715_v53 = vrot.slane %v3267_v33, 2  ;;  %v1160_v19 = vrot.slane %v3592_v48, 2 }
  0xa9   : > { %v953_v26 = vsel %vm886_vm5, %v948_v61, %v952_v62  ;;  %v3672_v62 = vld [vmem:[%s4708_s3 + $0x48] sm:$0xff]  ;;  %v1171_v16 = vsel %vm1136_vm7, %v3656_v10, %v3658_v11 }
  0xab   : > { %1586 = vmatpush.bf16.msra.mxu1 %v3639_v28  ;;  %3050 = vmatpush.bf16.msrb.mxu3 %v3580_v42  ;;  %v1035_v42 = vrot.slane %v3339_v55, 1  ;;  %v987_v55 = vsel %vm972_vm4, %v984_v60, %v986_v20 }
  0xae   : > { %1008 = vrot.lane.b32.xlu1 %v991_v49, %s3147_s8  ;;  %1188 = vrot.lane.b32.xlu2 %v1159_v25, %s3146_s28  ;;  %v3665_v49 = vld [vmem:[%s4708_s3 + $0x80] sm:$0xff]  ;;  %v872_v25 = vunpack.c.l.b16 %v713_v38  ;;  %v3674_v5 = vpop.permute.xlu2 %994  ;;  %v3685_v38 = vsel %vm1077_vm6, %v1093_v44, %v4715_v53  ;;  %v3698_v53 = vsel %vm1077_vm6, %v1091_v58, %v1093_v44 }
  0xaf   : > { %v993_v12 = vpop.permute.xlu1 %992  ;;  %1642 = vmatpush.bf16.msra.mxu2 %v3665_v49  ;;  %1587 = vmatpush.bf16.msra.mxu1 %v3672_v62 }
  0xb0   : > { %970 = vrot.lane.b32.xlu0 %v953_v26, %s3148_s9  ;;  %v874_v61 = vpack.c.b16 %v872_v25, %v872_v25  ;;  %v1161_v25 = vrot.slane %v3570_v35, 3  ;;  %3051 = vmatpush.bf16.msrb.mxu3 %v3611_v31 }
  0xb1   : > { %v955_v36 = vpop.permute.xlu0 %954 }
  0xb2   : > { %v1220_v26 = vsel %vm1218_vm8, %v3274_v41, %v955_v36  ;;  %v3029_v41 = vld [vmem:[%s4708_s3 + $0x40] sm:$0xff]  ;;  %2996 = vmatmul.msk.bf16.vlgmr.msra.gmra.mxu2 %vm1218_vm8, %v1201_v3  ;;  %v1162_v23 = vor.u32 %v1161_v25, %v1160_v19 }
  0xb3   : > { %v1239_v2 = vsel %vm1237_vm9, %v1220_v26, %v993_v12  ;;  %1588 = vmatpush.bf16.msra.mxu1 %v3029_v41  ;;  %v877_v12 = vrot.slane %v874_v61, 7  ;;  %v1202_v26 = vrot.slane %v3383_v45, 3 }
  0xb4   : > { %v1258_v36 = vsel %vm1256_vm10, %v1239_v2, %v1014_v57  ;;  %v927_v57 = vor.u32 %v3428_v29, %v923_v47  ;;  %v930_v2 = vrot.slane %v3469_v14, 1  ;;  %3052 = vmatpush.bf16.msrb.mxu3 %v3639_v28 }
  0xb5   : > { %1535 = vmatmul.bf16.vlgmr.msra.gmra.mxu0 %v1258_v36  ;;  %v1203_v36 = vsel %vm1198_vm11, %v1200_v37, %v1202_v26 }
  0xb6   : > { %1132 = vrot.lane.b32.xlu1 %v3685_v38, %s3147_s8  ;;  %1194 = vrot.lane.b32.xlu2 %v1171_v16, %s3146_s28  ;;  %v3711_v44 = vpop.permute.xlu2 %996  ;;  %v878_v16 = vsel %vm488_vm0, %v876_v27, %v877_v12  ;;  %v931_v61 = vsel %vm886_vm5, %v927_v57, %v930_v2  ;;  %v1036_v27 = vrot.slane %v3323_v40, 2  ;;  %v1092_v57 = vsel %vm1077_vm6, %v1089_v59, %v1091_v58 }
  0xb7   : > { %v3725_v39 = vsel %vm882_vm12, %v878_v16, 0  ;;  %v4724_v16 = vrot.slane %v3267_v33, 2 }
  0xb8   : > { %1111 = vrot.lane.b32.xlu0 %v3698_v53, %s3148_s9  ;;  %v1172_v3 = vshrl.u32 %v3725_v39, 16  ;;  %v1037_v40 = vor.u32 %v1036_v27, %v1035_v42  ;;  %v1116_v60 = vrot.slane %v3725_v39, 2  ;;  %3053 = vmatpush.bf16.msrb.mxu3 %v3672_v62  ;;  %v1040_v42 = vrot.slane %v3354_v7, 2 }
  0xba   : > { %v1174_v31 = vrot.slane %v1172_v3, 2  ;;  %v1117_v19 = vsel %vm1077_vm6, %v4724_v16, %v1116_v60 }
  0xbc   : > { %3054 = vmatpush.bf16.msrb.mxu3 %v3029_v41  ;;  %v1039_v41 = vrot.slane %v3358_v9, 1 }
  0xbe   : > { %1107 = vrot.lane.b32.xlu1 %v3512_v1, %s3148_s9  ;;  %v1098_v47 = vpop.permute.xlu0 %1097  ;;  %1002 = vrot.lane.b32.xlu2 %v3521_v6, %s3147_s8  ;;  %v1175_v1 = vshll.u32 %v3725_v39, 16  ;;  %v1163_v6 = vsel %vm1136_vm7, %v3601_v54, %v1162_v23  ;;  %v1181_v37 = vpop.permute.xlu2 %1180  ;;  %v4723_v54 = vor.u32 %v3626_v34, %v3630_v18  ;;  %v1204_v18 = vrot.slane %v3423_v22, 3 }
  0xc0   : > { %964 = vrot.lane.b32.xlu0 %v931_v61, %s3148_s9  ;;  %v1177_v12 = vrot.slane %v1175_v1, 3  ;;  %v1038_v59 = vsel %vm1031_vm13, %v4723_v54, %v1037_v40  ;;  %v1205_v3 = vsel %vm1198_vm11, %v1202_v26, %v1204_v18  ;;  %v4725_v1 = vrot.slane %v3544_v13, 1 }
  0xc1   : > { %v1286_v58 = vsel %vm1218_vm8, %v1038_v59, %v1098_v47 }
  0xc2   : > { %2997 = vmatmul.msk.bf16.gmra.mxu2 %vm1218_vm8, %v1203_v36  ;;  %v1178_v20 = vor.u32 %v1177_v12, %v1174_v31  ;;  %v1041_v31 = vor.u32 %v1040_v42, %v1039_v41 }
  0xc4   : > { %v1179_v25 = vsel %vm1136_vm7, %v3658_v11, %v1178_v20  ;;  %v934_v11 = vor.u32 %v3472_v8, %v930_v2  ;;  %v1042_v7 = vsel %vm1031_vm13, %v1037_v40, %v1041_v31  ;;  %v1167_v2 = vsel %vm1136_vm7, %v1162_v23, %v3656_v10 }
  0xc5   : > { %v1043_v10 = vrot.slane %v3393_v52, 1 }
  0xc6   : > { %1023 = vrot.lane.b32.xlu1 %v987_v55, %s3146_s28  ;;  %1190 = vrot.lane.b32.xlu2 %v1163_v6, %s3146_s28  ;;  %v957_v28 = vpop.permute.xlu0 %956  ;;  %v3761_v62 = vpop.permute.xlu2 %998  ;;  %v938_v36 = vsel %vm886_vm5, %v934_v11, %v4725_v1 }
  0xc7   : > { %v1222_v9 = vsel %vm1218_vm8, %v3293_v0, %v957_v28  ;;  %v1206_v0 = vrot.slane %v3463_v4, 3 }
  0xc8   : > { %1128 = vrot.lane.b32.xlu0 %v1092_v57, %s3147_s8 }
  0xcd   : > { %v1119_v61 = vpop.permute.xlu1 %1118 }
  0xce   : > { %1134 = vrot.lane.b32.xlu1 %v1117_v19, %s3147_s8  ;;  %v1312_v34 = vsel %vm1237_vm9, %v1286_v58, %v1119_v61  ;;  %1196 = vrot.lane.b32.xlu2 %v1179_v25, %s3146_s28 }
  0xcf   : > { %v1330_v47 = vsel %vm1256_vm10, %v1312_v34, %v1181_v37  ;;  %v959_v27 = vpop.permute.xlu0 %958 }
  0xd0   : > { %1113 = vrot.lane.b32.xlu0 %v3685_v38, %s3148_s9  ;;  %1589 = vmatmul.bf16.vlgmr.msra.gmra.mxu1 %v1330_v47  ;;  %v1183_v38 = vpop.permute.xlu2 %1182  ;;  %v1224_v58 = vsel %vm1218_vm8, %v3314_v30, %v959_v27  ;;  %v1047_v30 = vrot.slane %v3428_v29, 1  ;;  %v1048_v47 = vrot.slane %v3431_v32, 2 }
  0xd2   : > { %2998 = vmatmul.msk.bf16.gmra.mxu2 %vm1218_vm8, %v1205_v3  ;;  %v1049_v27 = vor.u32 %v1048_v47, %v1047_v30  ;;  %v1059_v30 = vrot.slane %v3592_v48, 1  ;;  %v1060_v47 = vrot.slane %v3570_v35, 2 }
  0xd5   : > { %v1100_v6 = vpop.permute.xlu1 %1099 }
  0xd6   : > { %1109 = vrot.lane.b32.xlu1 %v1092_v57, %s3148_s9  ;;  %1004 = vrot.lane.b32.xlu2 %v987_v55, %s3147_s8  ;;  %v1289_v26 = vsel %vm1218_vm8, %v1042_v7, %v1100_v6  ;;  %v1241_v57 = vsel %vm1237_vm9, %v1222_v9, %v3674_v5  ;;  %v1044_v5 = vrot.slane %v3389_v50, 2  ;;  %v1243_v50 = vsel %vm1237_vm9, %v1224_v58, %v3711_v44 }
  0xd7   : > { %v1051_v9 = vrot.slane %v3472_v8, 1 }
  0xd8   : > { %966 = vrot.lane.b32.xlu0 %v938_v36, %s3148_s9  ;;  %v1001_v23 = vpop.permute.xlu2 %1000  ;;  %v1045_v59 = vor.u32 %v1044_v5, %v1043_v10 }
  0xda   : > { %v1046_v28 = vsel %vm1031_vm13, %v1041_v31, %v1045_v59  ;;  %v1050_v3 = vsel %vm1031_vm13, %v1045_v59, %v1049_v27 }
  0xdc   : > { %v1121_v12 = vpop.permute.xlu0 %1120 }
  0xdd   : > { %v1016_v37 = vpop.permute.xlu1 %1015  ;;  %v1314_v55 = vsel %vm1237_vm9, %v1289_v26, %v1121_v12  ;;  %v1210_v12 = vrot.slane %v3562_v24, 3 }
  0xde   : > { %1025 = vrot.lane.b32.xlu1 %v3589_v46, %s3146_s28  ;;  %v1261_v40 = vsel %vm1256_vm10, %v1241_v57, %v1016_v37  ;;  %v1333_v60 = vsel %vm1256_vm10, %v1314_v55, %v1183_v38  ;;  %1192 = vrot.lane.b32.xlu2 %v1167_v2, %s3146_s28  ;;  %v1207_v46 = vsel %vm1198_vm11, %v1204_v18, %v1206_v0  ;;  %v1208_v18 = vrot.slane %v3503_v56, 3 }
  0xdf   : > { %1540 = vmatmul.bf16.gmra.mxu0 %v1261_v40  ;;  %v1052_v2 = vrot.slane %v3469_v14, 2 }
  0xe0   : > { %1130 = vrot.lane.b32.xlu0 %v3698_v53, %s3147_s8  ;;  %1594 = vmatmul.bf16.gmra.mxu1 %v1333_v60  ;;  %v1185_v16 = vpop.permute.xlu2 %1184  ;;  %v1209_v11 = vsel %vm1198_vm11, %v1206_v0, %v1208_v18  ;;  %v1211_v37 = vsel %vm1198_vm11, %v1208_v18, %v1210_v12 }
  0xe1   : > { %v1053_v26 = vor.u32 %v1052_v2, %v1051_v9 }
  0xe2   : > { %2999 = vmatmul.msk.bf16.gmra.mxu2 %vm1218_vm8, %v1207_v46 }
  0xe3   : > { %v1054_v57 = vsel %vm1031_vm13, %v1049_v27, %v1053_v26  ;;  %v1055_v27 = vrot.slane %v3551_v17, 1 }
  0xe4   : > { %v961_v20 = vpop.permute.xlu0 %960 }
  0xe5   : > { %v1102_v54 = vpop.permute.xlu1 %1101  ;;  %v1226_v1 = vsel %vm1218_vm8, %v3346_v63, %v961_v20  ;;  %v3105_v20 = vld [vmem:[%s3244_s27] sm:$0xff]  ;;  %s2914_s27 = sshll.u32 %s3132_s19, 1 }
  0xe6   : > { %v1292_v53 = vsel %vm1218_vm8, %v1046_v28, %v1102_v54  ;;  %v1245_v29 = vsel %vm1237_vm9, %v1226_v1, %v3761_v62  ;;  %v1212_v54 = vrot.slane %v3105_v20, 3  ;;  %s408_s6 = sadd.s32 %s3128_s18, %s2914_s27  ;;  %s4844_s18 = smov (!%p400_p10, %s3128_s18), 1 }
  0xe7   : > { %p409_p9 = scmp.lt.s32.totalorder %s408_s6, 3  ;;  %s2911_s14 = sshll.u32 %s4844_s18, 2 }
  0xe8   : > { %v1187_v44 = vpop.permute.xlu2 %1186  ;;  %v1213_v59 = vsel %vm1198_vm11, %v1210_v12, %v1212_v54  ;;  %s404_s16 = sadd.s32 %s2912_s15, %s2911_s14 }
  0xe9   : > { %s4842_s6 = smov (!%p409_p9, %s408_s6), 3  ;;  %s2913_s7 = sshll.u32 %s404_s16, 3 }
  0xea   : > { %s2915_s19 = sshll.u32 %s4842_s6, 1  ;;  %s4653_s11 = scalar_lea.vmem %s4709_s4, %s2913_s7 }
  0xeb   : > { %s412_s13 = scalar_lea.vmem %s4710_s5, %s2915_s19 }
  0xec   : > { %v1123_v19 = vpop.permute.xlu0 %1122 }
  0xed   : > { %v1018_v52 = vpop.permute.xlu1 %1017  ;;  %v1316_v25 = vsel %vm1237_vm9, %v1292_v53, %v1123_v19 }
  0xee   : > { %v1264_v61 = vsel %vm1256_vm10, %v1243_v50, %v1018_v52  ;;  %v1336_v34 = vsel %vm1256_vm10, %v1316_v25, %v1185_v16  ;;  %v1214_v50 = vrot.slane %v3267_v33, 3 }
  0xef   : > { %1545 = vmatmul.bf16.gmra.mxu0 %v1264_v61 }
  0xf0   : > { %1599 = vmatmul.bf16.gmra.mxu1 %v1336_v34  ;;  %v1215_v25 = vsel %vm1198_vm11, %v1212_v54, %v1214_v50 }
  0xf2   : > { %3000 = vmatmul.msk.bf16.gmra.mxu2 %vm1218_vm8, %v1209_v11 }
  0xf4   : > { %v963_v41 = vpop.permute.xlu0 %962 }
  0xf5   : > { %v1104_v42 = vpop.permute.xlu1 %1103  ;;  %v1228_v14 = vsel %vm1218_vm8, %v3383_v45, %v963_v41  ;;  %v1066_v41 = vrot.slane %v3583_v43, 2 }
  0xf6   : > { %v1295_v36 = vsel %vm1218_vm8, %v1050_v3, %v1104_v42  ;;  %v1247_v10 = vsel %vm1237_vm9, %v1228_v14, %v1001_v23 }
  0xfc   : > { %v1125_v6 = vpop.permute.xlu0 %1124 }
  0xfd   : > { %v1020_v31 = vpop.permute.xlu1 %1019  ;;  %v1318_v32 = vsel %vm1237_vm9, %v1295_v36, %v1125_v6 }
  0xfe   : > { %v1267_v38 = vsel %vm1256_vm10, %v1245_v29, %v1020_v31  ;;  %v1339_v7 = vsel %vm1256_vm10, %v1318_v32, %v1187_v44  ;;  %v1061_v44 = vor.u32 %v1060_v47, %v1059_v30 }
  0xff   : > { %1550 = vmatmul.bf16.gmra.mxu0 %v1267_v38 }
 0x100   : > { %1604 = vmatmul.bf16.gmra.mxu1 %v1339_v7  ;;  %v1028_v63 = vpop.permute.xlu2 %1027 }
 0x102   : > { %3001 = vmatmul.msk.bf16.gmra.mxu2 %vm1218_vm8, %v1211_v37 }
 0x105   : > { %v1106_v62 = vpop.permute.xlu1 %1105 }
 0x106   : > { %v1298_v55 = vsel %vm1218_vm8, %v1054_v57, %v1106_v62 }
 0x108   : > { %v1189_v60 = vpop.permute.xlu2 %1188 }
 0x109   : > { %v1127_v40 = vpop.permute.xlu0 %1126 }
 0x10a   : > { %v1320_v8 = vsel %vm1237_vm9, %v1298_v55, %v1127_v40 }
 0x10b   : > { %v1342_v46 = vsel %vm1256_vm10, %v1320_v8, %v1189_v60 }
 0x10d   : > { %v1022_v0 = vpop.permute.xlu1 %1021 }
 0x10e   : > { %v1270_v5 = vsel %vm1256_vm10, %v1247_v10, %v1022_v0 }
 0x10f   : > { %1555 = vmatmul.bf16.gmra.mxu0 %v1270_v5 }
 0x110   : > { %1609 = vmatmul.bf16.gmra.mxu1 %v1342_v46  ;;  %v1195_v53 = vpop.permute.xlu2 %1194 }
 0x112   : > { %3002 = vmatmul.msk.bf16.gmra.mxu2 %vm1218_vm8, %v1213_v59 }
 0x118   : > { %v1007_v28 = vpop.permute.xlu1 %1006  ;;  %v1003_v34 = vpop.permute.xlu2 %1002 }
 0x11a   : > { %v969_v45 = vpop.permute.xlu0 %968 }
 0x11b   : > { %v1234_v58 = vsel %vm1218_vm8, %v3503_v56, %v969_v45 }
 0x11c   : > { %v1253_v16 = vsel %vm1237_vm9, %v1234_v58, %v1007_v28 }
 0x11d   : > { %v1279_v23 = vsel %vm1256_vm10, %v1253_v16, %v1028_v63  ;;  %v4728_v63 = vshll.u32 %v3267_v33, 16 }
 0x11e   : > { %1570 = vmatmul.bf16.vlgmr.msra.gmra.mxu3 %v1279_v23 }
 0x11f   : > { %3055 = vmatpush.bf16.msra.mxu3 %v3616_v51 }
 0x120   : > { %v1009_v19 = vpop.permute.xlu1 %1008  ;;  %v1191_v6 = vpop.permute.xlu2 %1190 }
 0x122   : > { %v971_v52 = vpop.permute.xlu0 %970  ;;  %3003 = vmatmul.msk.bf16.gmra.mxu2 %vm1218_vm8, %v1215_v25 }
 0x123   : > { %3056 = vmatpush.bf16.msra.mxu3 %v3665_v49  ;;  %v1236_v56 = vsel %vm1218_vm8, %v3562_v24, %v971_v52  ;;  %v4726_v49 = vshrl.u32 %v3253_v21, 16  ;;  %v1056_v24 = vrot.slane %v3544_v13, 2 }
 0x124   : > { %v1255_v18 = vsel %vm1237_vm9, %v1236_v56, %v1009_v19 }
 0x125   : > { %v1065_v11 = vrot.slane %v4726_v49, 1  ;;  %v1282_v42 = vsel %vm1256_vm10, %v1255_v18, %v3546_v15  ;;  %v1057_v36 = vor.u32 %v1056_v24, %v1055_v27 }
 0x127   : > { %v1067_v3 = vor.u32 %v1066_v41, %v1065_v11  ;;  %v1058_v43 = vsel %vm1031_vm13, %v1053_v26, %v1057_v36  ;;  %v1074_v26 = vrot.slane %v4728_v63, 2  ;;  %v1062_v59 = vsel %vm1031_vm13, %v1057_v36, %v1061_v44 }
 0x128   : > { %v1133_v61 = vpop.permute.xlu1 %1132  ;;  %v1197_v12 = vpop.permute.xlu2 %1196  ;;  %v1216_v41 = vrot.slane %v3725_v39, 3 }
 0x129   : > { %v1068_v35 = vsel %vm1031_vm13, %v1061_v44, %v1067_v3 }
 0x12a   : > { %v1112_v51 = vpop.permute.xlu0 %1111 }
 0x12b   : > { %v1307_v15 = vsel %vm1218_vm8, %v1068_v35, %v1112_v51 }
 0x12c   : > { %v1326_v32 = vsel %vm1237_vm9, %v1307_v15, %v1133_v61 }
 0x12d   : > { %v1351_v37 = vsel %vm1256_vm10, %v1326_v32, %v1195_v53 }
 0x12e   : > { %1575 = vmatmul.bf16.gmra.mxu3 %v1282_v42 }
 0x130   : > { %v1108_v1 = vpop.permute.xlu1 %1107  ;;  %v1005_v60 = vpop.permute.xlu2 %1004 }
 0x131   : > { %v1301_v13 = vsel %vm1218_vm8, %v1058_v43, %v1108_v1 }
 0x132   : > { %v965_v48 = vpop.permute.xlu0 %964  ;;  %v1536_v20 = vpop.f32.mrf.mxu0 }
 0x133   : > { %v1230_v21 = vsel %vm1218_vm8, %v3423_v22, %v965_v48  ;;  %v4727_v22 = vshrl.u32 %v3267_v33, 16 }
 0x134   : > { %v1249_v17 = vsel %vm1237_vm9, %v1230_v21, %v1003_v34 }
 0x135   : > { %v1071_v2 = vrot.slane %v4727_v22, 1  ;;  %v1644_v62 = vpop.f32.mrf.mxu2 }
 0x137   : > { %v1075_v57 = vor.u32 %v1074_v26, %v1071_v2 }
 0x138   : > { %v1024_v31 = vpop.permute.xlu1 %1023  ;;  %v1193_v52 = vpop.permute.xlu2 %1192 }
 0x139   : > { %v1273_v29 = vsel %vm1256_vm10, %v1249_v17, %v1024_v31  ;;  %v1076_v14 = vsel %vm1031_vm13, %v1067_v3, %v1075_v57  ;;  %v1217_v3 = vsel %vm1198_vm11, %v1214_v50, %v1216_v41 }
 0x13a   : > { %v1129_v38 = vpop.permute.xlu0 %1128  ;;  %1560 = vmatmul.bf16.gmra.mxu0 %v1273_v29  ;;  %v1538_v30 = vpop.f32.mrf.mxu0 }
 0x13b   : > { %v1322_v7 = vsel %vm1237_vm9, %v1301_v13, %v1129_v38 }
 0x13c   : > { %v1345_v9 = vsel %vm1256_vm10, %v1322_v7, %v1191_v6 }
 0x13d   : > { %1614 = vmatmul.bf16.gmra.mxu1 %v1345_v9  ;;  %v1646_v0 = vpop.f32.mrf.mxu2 }
 0x13e   : > { %1624 = vmatmul.bf16.vlgmr.msrb.gmra.mxu3 %v1351_v37 }
 0x140   : > { %v1135_v55 = vpop.permute.xlu1 %1134 }
 0x142   : > { %v1114_v40 = vpop.permute.xlu0 %1113 }
 0x143   : > { %v1310_v8 = vsel %vm1218_vm8, %v1076_v14, %v1114_v40 }
 0x144   : > { %v1328_v5 = vsel %vm1237_vm9, %v1310_v8, %v1135_v55 }
 0x145   : > { %v1354_v28 = vsel %vm1256_vm10, %v1328_v5, %v1197_v12  ;;  %v1649_v56 = vpop.f32.mrf.mxu2 }
 0x148   : > { %v1110_v10 = vpop.permute.xlu1 %1109 }
 0x149   : > { %v1304_v23 = vsel %vm1218_vm8, %v1062_v59, %v1110_v10 }
 0x14a   : > { %v967_v46 = vpop.permute.xlu0 %966 }
 0x14b   : > { %v1232_v54 = vsel %vm1218_vm8, %v3463_v4, %v967_v46 }
 0x14c   : > { %v1251_v16 = vsel %vm1237_vm9, %v1232_v54, %v1005_v60 }
 0x14d   : > { %v1590_v45 = vpop.f32.mrf.mxu1  ;;  %v1651_v1 = vpop.f32.mrf.mxu2 }
 0x14e   : > { %1629 = vmatmul.bf16.gmra.mxu3 %v1354_v28  ;;  %v1591_v58 = vadd.f32 %v1590_v45, %v1536_v20 }
 0x150   : > { %v3889_v53 = vadd.f32 %v1644_v62, %v1591_v58  ;;  %v1026_v19 = vpop.permute.xlu1 %1025 }
 0x151   : > { %v1276_v25 = vsel %vm1256_vm10, %v1251_v16, %v1026_v19 }
 0x152   : > { %v1131_v61 = vpop.permute.xlu0 %1130  ;;  %v3893_v4 = vrot.slane %v3889_v53, 2  ;;  %v3896_v34 = vrot.slane %v3889_v53, 4  ;;  %v3899_v18 = vrot.slane %v3889_v53, 6  ;;  %1803 = vst [vmem:[#allocation1] ss:$4 sm:$0xff] %v3889_v53  ;;  %1565 = vmatmul.bf16.gmra.mxu0 %v1276_v25 }
 0x153   : > { %v1324_v51 = vsel %vm1237_vm9, %v1304_v23, %v1131_v61 }
 0x154   : > { %v1348_v47 = vsel %vm1256_vm10, %v1324_v51, %v1193_v52  ;;  %1805 = vst [vmem:[#allocation1 + $0x1] ss:$4 sm:$0xff] %v3893_v4 }
 0x155   : > { %1619 = vmatmul.bf16.gmra.mxu1 %v1348_v47  ;;  %1807 = vst [vmem:[#allocation1 + $0x2] ss:$4 sm:$0xff] %v3896_v34  ;;  %v1592_v49 = vpop.f32.mrf.mxu1  ;;  %v1654_v29 = vpop.f32.mrf.mxu2 }
 0x156   : > { %1809 = vst [vmem:[#allocation1 + $0x3] ss:$4 sm:$0xff] %v3899_v18  ;;  %v1593_v11 = vadd.f32 %v1592_v49, %v1538_v30 }
 0x158   : > { %v3908_v42 = vadd.f32 %v1646_v0, %v1593_v11 }
 0x15a   : > { %v3911_v27 = vrot.slane %v3908_v42, 2  ;;  %v3914_v24 = vrot.slane %v3908_v42, 4  ;;  %v3917_v44 = vrot.slane %v3908_v42, 6  ;;  %1811 = vst [vmem:[#allocation1 + $0x20] ss:$4 sm:$0xff] %v3908_v42 }
 0x15c   : > { %1813 = vst [vmem:[#allocation1 + $0x21] ss:$4 sm:$0xff] %v3911_v27  ;;  %v1541_v39 = vpop.f32.mrf.mxu0 }
 0x15d   : > { %1815 = vst [vmem:[#allocation1 + $0x22] ss:$4 sm:$0xff] %v3914_v24  ;;  %v1595_v36 = vpop.f32.mrf.mxu1  ;;  %v3933_v50 = vld.sshfl [vmem:[#allocation1] sm:$0xff pattern:$0x73625140]  ;;  %v1656_v10 = vpop.f32.mrf.mxu2 }
 0x15e   : > { %1817 = vst [vmem:[#allocation1 + $0x23] ss:$4 sm:$0xff] %v3917_v44  ;;  %3004 = vmatmul.msk.bf16.vlgmr.msra.gmra.mxu3 %vm1218_vm8, %v1217_v3  ;;  %v1596_v48 = vadd.f32 %v1595_v36, %v1541_v39 }
 0x15f   : > { %4729 = vst [vmem:[#allocation2_spill] sm:$0xff] %v3933_v50 }
 0x160   : > { %v1650_v6 = vadd.f32 %v1649_v56, %v1596_v48 }
 0x162   : > { %v3927_v35 = vrot.slane %v1650_v6, 2  ;;  %v3929_v21 = vrot.slane %v1650_v6, 4  ;;  %v3931_v33 = vrot.slane %v1650_v6, 6 }
 0x164   : > { %1820 = vst [vmem:[#allocation1] ss:$4 sm:$0xff] %v3927_v35  ;;  %v2214_v43 = vrot.slane %v3927_v35, 4  ;;  %v1543_v15 = vpop.f32.mrf.mxu0  ;;  %v2247_v17 = vrot.slane %v3929_v21, 4  ;;  %v2279_v13 = vrot.slane %v3931_v33, 4 }
 0x165   : > { %1821 = vst [vmem:[#allocation1 + $0x1] ss:$4 sm:$0xff] %v3929_v21  ;;  %v1597_v31 = vpop.f32.mrf.mxu1  ;;  %v3965_v12 = vld.sshfl [vmem:[#allocation1 + $0x20] sm:$0xff pattern:$0x73625140]  ;;  %v1659_v19 = vpop.f32.mrf.mxu2 }
 0x166   : > { %1822 = vst [vmem:[#allocation1 + $0x2] ss:$4 sm:$0xff] %v3931_v33  ;;  %v3943_v32 = vsel %vm2215_vm14, %v2214_v43, %v3889_v53  ;;  %v1598_v38 = vadd.f32 %v1597_v31, %v1543_v15  ;;  %v3947_v7 = vsel %vm2215_vm14, %v2247_v17, %v3893_v4  ;;  %v3951_v9 = vsel %vm2215_vm14, %v2279_v13, %v3896_v34 }
 0x167   : > { %4730 = vst [vmem:[#allocation3_spill] sm:$0xff] %v3943_v32 }
 0x168   : > { %4731 = vst [vmem:[#allocation4_spill] sm:$0xff] %v3947_v7  ;;  %v3953_v22 = vadd.f32 %v1651_v1, %v1598_v38 }
 0x169   : > { %4732 = vst [vmem:[#allocation5_spill] sm:$0xff] %v3951_v9 }
 0x16a   : > { %v3956_v2 = vrot.slane %v3953_v22, 2  ;;  %v3959_v63 = vrot.slane %v3953_v22, 4  ;;  %1823 = vst [vmem:[#allocation1 + $0x3] ss:$4 sm:$0xff] %v3953_v22  ;;  %v3963_v26 = vrot.slane %v3953_v22, 6 }
 0x16b   : > { %4733 = vst [vmem:[#allocation6_spill] sm:$0xff] %v3965_v12 }
 0x16c   : > { %v1546_v37 = vpop.f32.mrf.mxu0  ;;  %1824 = vst [vmem:[#allocation1 + $0x20] ss:$4 sm:$0xff] %v3956_v2  ;;  %v3971_v62 = vsel %vm2215_vm14, %v3959_v63, %v3899_v18  ;;  %v2343_v57 = vrot.slane %v3956_v2, 4  ;;  %v2375_v55 = vrot.slane %v3959_v63, 4  ;;  %v2407_v14 = vrot.slane %v3963_v26, 4 }
 0x16d   : > { %4734 = vst [vmem:[#allocation7_spill] sm:$0xff] %v3971_v62  ;;  %v1600_v40 = vpop.f32.mrf.mxu1  ;;  %v1661_v1 = vpop.f32.mrf.mxu2 }
 0x16e   : > { %1825 = vst [vmem:[#allocation1 + $0x21] ss:$4 sm:$0xff] %v3959_v63  ;;  %v1601_v8 = vadd.f32 %v1600_v40, %v1546_v37  ;;  %v3980_v60 = vsel %vm2215_vm14, %v2343_v57, %v3908_v42  ;;  %v3984_v0 = vsel %vm2215_vm14, %v2375_v55, %v3911_v27  ;;  %v3988_v5 = vsel %vm2215_vm14, %v2407_v14, %v3914_v24 }
 0x16f   : > { %1826 = vst [vmem:[#allocation1 + $0x22] ss:$4 sm:$0xff] %v3963_v26 }
 0x170   : > { %4735 = vst [vmem:[#allocation8_spill] sm:$0xff] %v3980_v60  ;;  %v3990_v46 = vadd.f32 %v1654_v29, %v1601_v8 }
 0x171   : > { %4736 = vst [vmem:[#allocation9_spill] sm:$0xff] %v3984_v0  ;;  %v3999_v59 = vld.sshfl [vmem:[#allocation1] sm:$0xff pattern:$0x73625140] }
 0x172   : > { %4737 = vst [vmem:[#allocation10_spill] sm:$0xff] %v3988_v5  ;;  %v3993_v20 = vrot.slane %v3990_v46, 4  ;;  %v3996_v54 = vrot.slane %v3990_v46, 6 }
 0x173   : > { %1827 = vst [vmem:[#allocation1 + $0x23] ss:$4 sm:$0xff] %v3990_v46 }
 0x174   : > { %4738 = vst [vmem:[#allocation11_spill] sm:$0xff] %v3999_v59  ;;  %v1548_v28 = vpop.f32.mrf.mxu0  ;;  %v4005_v45 = vsel %vm2215_vm14, %v3993_v20, %v3917_v44 }
 0x175   : > { %1830 = vst [vmem:[#allocation1] ss:$4 sm:$0xff] %v3993_v20  ;;  %v1602_v58 = vpop.f32.mrf.mxu1  ;;  %v1664_v14 = vpop.f32.mrf.mxu2 }
 0x176   : > { %4739 = vst [vmem:[#allocation12_spill] sm:$0xff] %v4005_v45  ;;  %v1603_v16 = vadd.f32 %v1602_v58, %v1548_v28 }
 0x177   : > { %1831 = vst [vmem:[#allocation1 + $0x1] ss:$4 sm:$0xff] %v3996_v54 }
 0x178   : > { %v4008_v23 = vadd.f32 %v1656_v10, %v1603_v16 }
 0x17a   : > { %v4011_v52 = vrot.slane %v4008_v23, 2  ;;  %v4014_v25 = vrot.slane %v4008_v23, 4  ;;  %v4017_v56 = vrot.slane %v4008_v23, 6  ;;  %1832 = vst [vmem:[#allocation1 + $0x2] ss:$4 sm:$0xff] %v4008_v23 }
 0x17b   : > { %v4021_v51 = vld.sshfl [vmem:[#allocation1 + $0x20] sm:$0xff pattern:$0x73625140] }
 0x17c   : > { %1833 = vst [vmem:[#allocation1 + $0x3] ss:$4 sm:$0xff] %v4011_v52  ;;  %v1551_v61 = vpop.f32.mrf.mxu0 }
 0x17d   : > { %4740 = vst [vmem:[#allocation13_spill] sm:$0xff] %v4021_v51  ;;  %v1605_v30 = vpop.f32.mrf.mxu1 }
 0x17e   : > { %1834 = vst [vmem:[#allocation1 + $0x20] ss:$4 sm:$0xff] %v4014_v25  ;;  %v1606_v47 = vadd.f32 %v1605_v30, %v1551_v61 }
 0x17f   : > { %1835 = vst [vmem:[#allocation1 + $0x21] ss:$4 sm:$0xff] %v4017_v56 }
 0x180   : > { %v4025_v49 = vadd.f32 %v1659_v19, %v1606_v47 }
 0x182   : > { %v4028_v11 = vrot.slane %v4025_v49, 2  ;;  %v4031_v41 = vrot.slane %v4025_v49, 6  ;;  %1836 = vst [vmem:[#allocation1 + $0x22] ss:$4 sm:$0xff] %v4025_v49 }
 0x183   : > { %v4034_v3 = vld.sshfl [vmem:[#allocation1] sm:$0xff pattern:$0x73625140] }
 0x184   : > { %4741 = vst [vmem:[#allocation14_spill] sm:$0xff] %v4034_v3  ;;  %v2223_v39 = vrot.slane %v4031_v41, 4  ;;  %v1553_v36 = vpop.f32.mrf.mxu0 }
 0x185   : > { %1837 = vst [vmem:[#allocation1 + $0x23] ss:$4 sm:$0xff] %v4028_v11  ;;  %v1607_v48 = vpop.f32.mrf.mxu1 }
 0x186   : > { %1840 = vst [vmem:[#allocation1] ss:$4 sm:$0xff] %v4031_v41  ;;  %v4041_v6 = vsel %vm2215_vm14, %v2223_v39, %v3993_v20  ;;  %v1608_v43 = vadd.f32 %v1607_v48, %v1553_v36 }
 0x187   : > { %4742 = vst [vmem:[#allocation15_spill] sm:$0xff] %v4041_v6 }
 0x188   : > { %v4043_v15 = vadd.f32 %v1661_v1, %v1608_v43 }
 0x18a   : > { %v4046_v17 = vrot.slane %v4043_v15, 2  ;;  %v4049_v13 = vrot.slane %v4043_v15, 4  ;;  %v4052_v31 = vrot.slane %v4043_v15, 6  ;;  %1841 = vst [vmem:[#allocation1 + $0x1] ss:$4 sm:$0xff] %v4043_v15 }
 0x18c   : > { %v4055_v29 = vld.sshfl [vmem:[#allocation1 + $0x20] sm:$0xff pattern:$0x73625140]  ;;  %1842 = vst [vmem:[#allocation1 + $0x2] ss:$4 sm:$0xff] %v4046_v17  ;;  %v4061_v38 = vsel %vm2215_vm14, %v4049_v13, %v3996_v54  ;;  %v1556_v37 = vpop.f32.mrf.mxu0  ;;  %v2287_v57 = vrot.slane %v4046_v17, 4 }
 0x18d   : > { %4743 = vst [vmem:[#allocation16_spill] sm:$0xff] %v4055_v29  ;;  %v2319_v55 = vrot.slane %v4049_v13, 4  ;;  %v2351_v40 = vrot.slane %v4052_v31, 4  ;;  %v1610_v8 = vpop.f32.mrf.mxu1 }
 0x18e   : > { %4744 = vst [vmem:[#allocation17_spill] sm:$0xff] %v4061_v38  ;;  %v1611_v10 = vadd.f32 %v1610_v8, %v1556_v37  ;;  %v4070_v28 = vsel %vm2215_vm14, %v2287_v57, %v4008_v23 }
 0x18f   : > { %1843 = vst [vmem:[#allocation1 + $0x3] ss:$4 sm:$0xff] %v4049_v13  ;;  %v4074_v58 = vsel %vm2215_vm14, %v2319_v55, %v4011_v52  ;;  %v4078_v16 = vsel %vm2215_vm14, %v2351_v40, %v4014_v25  ;;  %v1666_v55 = vpop.f32.mrf.mxu2 }
 0x190   : > { %1844 = vst [vmem:[#allocation1 + $0x20] ss:$4 sm:$0xff] %v4052_v31  ;;  %v4080_v19 = vadd.f32 %v1664_v14, %v1611_v10 }
 0x191   : > { %4745 = vst [vmem:[#allocation18_spill] sm:$0xff] %v4070_v28 }
 0x192   : > { %4746 = vst [vmem:[#allocation19_spill] sm:$0xff] %v4074_v58  ;;  %v4083_v61 = vrot.slane %v4080_v19, 2  ;;  %v4087_v30 = vrot.slane %v4080_v19, 4 }
 0x193   : > { %4747 = vst [vmem:[#allocation20_spill] sm:$0xff] %v4078_v16 }
 0x194   : > { %4748 = vst [vmem:[#allocation21_spill] sm:$0xff] %v4083_v61  ;;  %v4093_v47 = vsel %vm2215_vm14, %v4087_v30, %v4017_v56  ;;  %v2415_v1 = vrot.slane %v4083_v61, 4  ;;  %v2447_v39 = vrot.slane %v4087_v30, 4  ;;  %v1558_v36 = vpop.f32.mrf.mxu0 }
 0x195   : > { %1845 = vst [vmem:[#allocation1 + $0x21] ss:$4 sm:$0xff] %v4080_v19  ;;  %v1612_v48 = vpop.f32.mrf.mxu1 }
 0x196   : > { %4749 = vst [vmem:[#allocation22_spill] sm:$0xff] %v4087_v30  ;;  %v1613_v43 = vadd.f32 %v1612_v48, %v1558_v36  ;;  %v4100_v37 = vsel %vm2215_vm14, %v2415_v1, %v4025_v49  ;;  %v4104_v57 = vsel %vm2215_vm14, %v2447_v39, %v4028_v11  ;;  %v4108_v14 = vld.sshfl [vmem:[#allocation1] sm:$0xff pattern:$0x73625140] }
 0x197   : > { %1846 = vst [vmem:[#allocation1 + $0x22] ss:$4 sm:$0xff] %v4083_v61  ;;  %v1669_v36 = vpop.f32.mrf.mxu2 }
 0x198   : > { %4750 = vst [vmem:[#allocation23_spill] sm:$0xff] %v4093_v47  ;;  %v4106_v40 = vadd.f32 %v1666_v55, %v1613_v43 }
 0x199   : > { %1847 = vst [vmem:[#allocation1 + $0x23] ss:$4 sm:$0xff] %v4087_v30 }
 0x19a   : > { %4751 = vst [vmem:[#allocation24_spill] sm:$0xff] %v4100_v37  ;;  %v4111_v8 = vrot.slane %v4106_v40, 6  ;;  %v4115_v10 = vrot.slane %v4106_v40, 2  ;;  %v4118_v1 = vrot.slane %v4106_v40, 4 }
 0x19b   : > { %4752 = vst [vmem:[#allocation25_spill] sm:$0xff] %v4104_v57 }
 0x19c   : > { %4753 = vst [vmem:[#allocation26_spill] sm:$0xff] %v4108_v14 }
 0x19d   : > { %1850 = vst [vmem:[#allocation1] ss:$4 sm:$0xff] %v4106_v40 }
 0x19e   : > { %1853 = vst [vmem:[#allocation1 + $0x3] ss:$4 sm:$0xff] %v4111_v8 }
 0x19f   : > { %1851 = vst [vmem:[#allocation1 + $0x1] ss:$4 sm:$0xff] %v4115_v10  ;;  %v1671_v43 = vpop.f32.mrf.mxu2 }
 0x1a0   : > { %1852 = vst [vmem:[#allocation1 + $0x2] ss:$4 sm:$0xff] %v4118_v1  ;;  %v4129_v16 = vld.sshfl [vmem:[#allocation1 + $0x20] sm:$0xff pattern:$0x73625140] }
 0x1a1   : > { %v1571_v39 = vpop.f32.mrf.mxu3  ;;  %4754 = vst [vmem:[#allocation27_spill] sm:$0xff] %v4129_v16 }
 0x1a7   : > { %v1674_v57 = vpop.f32.mrf.mxu2  ;;  %v4150_v32 = vld.sshfl [vmem:[#allocation1] sm:$0xff pattern:$0x73625140] }
 0x1a8   : > { %4755 = vst [vmem:[#allocation28_spill] sm:$0xff] %v4150_v32 }
 0x1a9   : > { %v1573_v48 = vpop.f32.mrf.mxu3 }
 0x1af   : > { %v1676_v9 = vpop.f32.mrf.mxu2 }
 0x1b1   : > { %v4123_v55 = vpop.f32.mrf.mxu3 }
 0x1b7   : > { %v1561_v45 = vpop.f32.mrf.mxu0 }
 0x1b9   : > { %v4125_v37 = vpop.f32.mrf.mxu3 }
 0x1ba   : > { %v1615_v5 = vpop.f32.mrf.mxu1 }
 0x1bb   : > { %v1616_v47 = vadd.f32 %v1615_v5, %v1561_v45 }
 0x1bd   : > { %v4127_v0 = vadd.f32 %v1669_v36, %v1616_v47 }
 0x1bf   : > { %v4132_v60 = vrot.slane %v4127_v0, 2  ;;  %v4135_v58 = vrot.slane %v4127_v0, 4  ;;  %v4138_v62 = vrot.slane %v4127_v0, 6  ;;  %1854 = vst [vmem:[#allocation1 + $0x20] ss:$4 sm:$0xff] %v4127_v0  ;;  %v1563_v28 = vpop.f32.mrf.mxu0 }
 0x1c1   : > { %1855 = vst [vmem:[#allocation1 + $0x21] ss:$4 sm:$0xff] %v4132_v60  ;;  %v1625_v5 = vpop.f32.mrf.mxu3 }
 0x1c2   : > { %1856 = vst [vmem:[#allocation1 + $0x22] ss:$4 sm:$0xff] %v4135_v58  ;;  %v1617_v45 = vpop.f32.mrf.mxu1  ;;  %v1626_v12 = vadd.f32 %v1625_v5, %v1571_v39 }
 0x1c3   : > { %1857 = vst [vmem:[#allocation1 + $0x23] ss:$4 sm:$0xff] %v4138_v62  ;;  %v1618_v47 = vadd.f32 %v1617_v45, %v1563_v28  ;;  %v1679_v45 = vpop.f32.mrf.mxu2 }
 0x1c5   : > { %v1672_v36 = vadd.f32 %v1671_v43, %v1618_v47 }
 0x1c7   : > { %v4144_v38 = vrot.slane %v1672_v36, 2  ;;  %v4146_v7 = vrot.slane %v1672_v36, 4  ;;  %v4148_v6 = vrot.slane %v1672_v36, 6 }
 0x1c9   : > { %1860 = vst [vmem:[#allocation1] ss:$4 sm:$0xff] %v4144_v38  ;;  %v2231_v16 = vrot.slane %v4144_v38, 4  ;;  %v1627_v14 = vpop.f32.mrf.mxu3  ;;  %v2263_v29 = vrot.slane %v4146_v7, 4  ;;  %v2295_v43 = vrot.slane %v4148_v6, 4 }
 0x1ca   : > { %1861 = vst [vmem:[#allocation1 + $0x1] ss:$4 sm:$0xff] %v4146_v7  ;;  %v1628_v50 = vadd.f32 %v1627_v14, %v1573_v48 }
 0x1cb   : > { %1862 = vst [vmem:[#allocation1 + $0x2] ss:$4 sm:$0xff] %v4148_v6  ;;  %v4159_v28 = vsel %vm2215_vm14, %v2231_v16, %v4106_v40  ;;  %v4164_v47 = vsel %vm2215_vm14, %v2263_v29, %v4115_v10  ;;  %v4168_v36 = vsel %vm2215_vm14, %v2295_v43, %v4118_v1  ;;  %v1681_v30 = vpop.f32.mrf.mxu2  ;;  %v4182_v43 = vld.sshfl [vmem:[#allocation1 + $0x20] sm:$0xff pattern:$0x73625140] }
 0x1cc   : > { %4756 = vst [vmem:[#allocation29_spill] sm:$0xff] %v4159_v28 }
 0x1cd   : > { %4757 = vst [vmem:[#allocation30_spill] sm:$0xff] %v4164_v47 }
 0x1ce   : > { %4758 = vst [vmem:[#allocation31_spill] sm:$0xff] %v4168_v36  ;;  %v4184_v36 = vadd.f32 %v1681_v30, %v1628_v50 }
 0x1cf   : > { %v1566_v32 = vpop.f32.mrf.mxu0  ;;  %4762 = vst [vmem:[#allocation35_spill] sm:$0xff] %v4182_v43 }
 0x1d0   : > { %v4202_v48 = vrot.slane %v4184_v36, 6 }
 0x1d1   : > { %v1630_v3 = vpop.f32.mrf.mxu3 }
 0x1d2   : > { %v1620_v51 = vpop.f32.mrf.mxu1 }
 0x1d3   : > { %v1621_v59 = vadd.f32 %v1620_v51, %v1566_v32  ;;  %v4186_v51 = vadd.f32 %v1679_v45, %v1626_v12 }
 0x1d5   : > { %v4170_v16 = vadd.f32 %v1674_v57, %v1621_v59  ;;  %v4217_v47 = vrot.slane %v4186_v51, 2 }
 0x1d7   : > { %v4173_v28 = vrot.slane %v4170_v16, 2  ;;  %v4176_v61 = vrot.slane %v4170_v16, 4  ;;  %v4179_v29 = vrot.slane %v4170_v16, 6  ;;  %1863 = vst [vmem:[#allocation1 + $0x3] ss:$4 sm:$0xff] %v4170_v16  ;;  %v1568_v32 = vpop.f32.mrf.mxu0 }
 0x1d9   : > { %4759 = vst [vmem:[#allocation32_spill] sm:$0xff] %v4173_v28  ;;  %v4192_v59 = vsel %vm2215_vm14, %v4176_v61, %v4111_v8  ;;  %v4194_v57 = vpop.f32.mrf.mxu3  ;;  %v2359_v14 = vrot.slane %v4173_v28, 4  ;;  %v2391_v39 = vrot.slane %v4176_v61, 4  ;;  %v2423_v50 = vrot.slane %v4179_v29, 4 }
 0x1da   : > { %4760 = vst [vmem:[#allocation33_spill] sm:$0xff] %v4176_v61  ;;  %v1622_v30 = vpop.f32.mrf.mxu1 }
 0x1db   : > { %4761 = vst [vmem:[#allocation34_spill] sm:$0xff] %v4179_v29  ;;  %v1623_v12 = vadd.f32 %v1622_v30, %v1568_v32  ;;  %v4206_v5 = vsel %vm2215_vm14, %v2359_v14, %v4127_v0  ;;  %v4210_v45 = vsel %vm2215_vm14, %v2391_v39, %v4132_v60  ;;  %v2239_v30 = vrot.slane %v4202_v48, 4 }
 0x1dc   : > { %1864 = vst [vmem:[#allocation1 + $0x20] ss:$4 sm:$0xff] %v4173_v28  ;;  %v1631_v39 = vadd.f32 %v1630_v3, %v4123_v55 }
 0x1dd   : > { %4763 = vst [vmem:[#allocation36_spill] sm:$0xff] %v4192_v59  ;;  %v4214_v59 = vsel %vm2215_vm14, %v2423_v50, %v4135_v58  ;;  %v4219_v43 = vadd.f32 %v1676_v9, %v1623_v12 }
 0x1de   : > { %1865 = vst [vmem:[#allocation1 + $0x21] ss:$4 sm:$0xff] %v4176_v61  ;;  %v4221_v32 = vld.sshfl [vmem:[#allocation1] sm:$0xff pattern:$0x73625140] }
 0x1df   : > { %1866 = vst [vmem:[#allocation1 + $0x22] ss:$4 sm:$0xff] %v4179_v29  ;;  %v4225_v14 = vrot.slane %v4219_v43, 4  ;;  %v4231_v50 = vrot.slane %v4219_v43, 6 }
 0x1e0   : > { %4764 = vst [vmem:[#allocation37_spill] sm:$0xff] %v4206_v5 }
 0x1e1   : > { %4765 = vst [vmem:[#allocation38_spill] sm:$0xff] %v4210_v45  ;;  %v1684_v9 = vpop.f32.mrf.mxu3  ;;  %v4237_v12 = vsel %vm2215_vm14, %v2239_v30, %v4225_v14 }
 0x1e2   : > { %4766 = vst [vmem:[#allocation39_spill] sm:$0xff] %v4214_v59  ;;  %v4242_v59 = vsel %vm2215_vm14, %v4225_v14, %v4138_v62  ;;  %v4244_v3 = vadd.f32 %v1684_v9, %v1631_v39  ;;  %v4266_v9 = vrot.slane %v4186_v51, 4 }
 0x1e3   : > { %4767 = vst [vmem:[#allocation40_spill] sm:$0xff] %v4219_v43 }
 0x1e4   : > { %4768 = vst [vmem:[#allocation41_spill] sm:$0xff] %v4221_v32  ;;  %v4248_v55 = vrot.slane %v4244_v3, 2  ;;  %v4251_v45 = vrot.slane %v4244_v3, 4  ;;  %v4254_v5 = vrot.slane %v4244_v3, 6 }
 0x1e5   : > { %1873 = vst [vmem:[#allocation1 + $0x3] ss:$4 sm:$0xff] %v4217_v47 }
 0x1e6   : > { %1872 = vst [vmem:[#allocation1 + $0x2] ss:$4 sm:$0xff] %v4186_v51  ;;  %v4259_v30 = vsel %vm2215_vm14, %v4251_v45, %v4231_v50  ;;  %v2303_v39 = vrot.slane %v4248_v55, 4  ;;  %v2335_v32 = vrot.slane %v4251_v45, 4 }
 0x1e7   : > { %1867 = vst [vmem:[#allocation1 + $0x23] ss:$4 sm:$0xff] %v4219_v43  ;;  %v2367_v43 = vrot.slane %v4254_v5, 4 }
 0x1e8   : > { %1870 = vst [vmem:[#allocation1] ss:$4 sm:$0xff] %v4225_v14  ;;  %v4275_v29 = vsel %vm2215_vm14, %v2303_v39, %v4186_v51 }
 0x1e9   : > { %4769 = vst [vmem:[#allocation42_spill] sm:$0xff] %v4237_v12  ;;  %v4289_v28 = vsel %vm2215_vm14, %v2367_v43, %v4266_v9  ;;  %v1943_v43 = vmul.f32 %v3889_v53, %v3889_v53  ;;  %v1952_v53 = vmul.f32 %v3929_v21, %v3929_v21 }
 0x1ea   : > { %4770 = vst [vmem:[#allocation43_spill] sm:$0xff] %v4242_v59  ;;  %v4262_v59 = vrot.slane %v4184_v36, 2 }
 0x1eb   : > { %1871 = vst [vmem:[#allocation1 + $0x1] ss:$4 sm:$0xff] %v4231_v50 }
 0x1ec   : > { %4771 = vst [vmem:[#allocation44_spill] sm:$0xff] %v4254_v5 }
 0x1ed   : > { %4772 = vst [vmem:[#allocation45_spill] sm:$0xff] %v4259_v30  ;;  %v4278_v30 = vrot.slane %v4186_v51, 6 }
 0x1ee   : > { %v4268_v12 = vld.sshfl [vmem:[#allocation1 + $0x20] sm:$0xff pattern:$0x73625140]  ;;  %4774 = vst [vmem:[#allocation47_spill] sm:$0xff] %v4275_v29  ;;  %v1946_v29 = vmul.f32 %v3899_v18, %v3899_v18  ;;  %v1954_v18 = vmul.f32 %v3953_v22, %v3953_v22 }
 0x1ef   : > { %4773 = vst [vmem:[#allocation46_spill] sm:$0xff] %v4268_v12  ;;  %v4285_v12 = vsel %vm2215_vm14, %v2335_v32, %v4217_v47  ;;  %v1944_v32 = vmul.f32 %v3893_v4, %v3893_v4  ;;  %v1633_v4 = vadd.f32 %v4194_v57, %v4125_v37 }
 0x1f0   : > { %1877 = vst [vmem:[#allocation1 + $0x23] ss:$4 sm:$0xff] %v4262_v59 }
 0x1f1   : > { %1874 = vst [vmem:[#allocation1 + $0x20] ss:$4 sm:$0xff] %v4266_v9 }
 0x1f2   : > { %v4280_v61 = vld.sshfl [vmem:[#allocation1] sm:$0xff pattern:$0x73625140]  ;;  %4775 = vst [vmem:[#allocation48_spill] sm:$0xff] %v4285_v12  ;;  %v1945_v12 = vmul.f32 %v3896_v34, %v3896_v34  ;;  %v1953_v34 = vmul.f32 %v3931_v33, %v3931_v33 }
 0x1f3   : > { %4776 = vst [vmem:[#allocation49_spill] sm:$0xff] %v4289_v28 }
 0x1f4   : > { %1880 = vst [vmem:[#allocation1] ss:$4 sm:$0xff] %v4202_v48 }
 0x1f5   : > { %1875 = vst [vmem:[#allocation1 + $0x21] ss:$4 sm:$0xff] %v4278_v30 }
 0x1f6   : > { %1876 = vst [vmem:[#allocation1 + $0x22] ss:$4 sm:$0xff] %v4184_v36 }
 0x1f7   : > { %1881 = vst [vmem:[#allocation1 + $0x1] ss:$4 sm:$0xff] %v4244_v3 }
 0x1f8   : > { %1882 = vst [vmem:[#allocation1 + $0x2] ss:$4 sm:$0xff] %v4248_v55 }
 0x1f9   : > { %1883 = vst [vmem:[#allocation1 + $0x3] ss:$4 sm:$0xff] %v4251_v45 }
 0x1fd   : > { %v4297_v39 = vld.sshfl [vmem:[#allocation1 + $0x20] sm:$0xff pattern:$0x73625140] }
 0x1fe   : > { %1884 = vst [vmem:[#allocation1 + $0x20] ss:$4 sm:$0xff] %v4254_v5  ;;  %v1951_v5 = vmul.f32 %v3927_v35, %v3927_v35 }
 0x200   : > { %v4304_v28 = vld.sshfl [vmem:[#allocation1] sm:$0xff pattern:$0x73625140] }
 0x201   : > { %4777 = vst [vmem:[#allocation50_spill] sm:$0xff] %v4304_v28 }
 0x202   : > { %2071 = vst [vmem:[#allocation1] ss:$4 sm:$0xff] %v1943_v43  ;;  %v1686_v43 = vpop.f32.mrf.mxu3 }
 0x203   : > { %2073 = vst [vmem:[#allocation1 + $0x1] ss:$4 sm:$0xff] %v1944_v32  ;;  %v1960_v32 = vmul.f32 %v3996_v54, %v3996_v54  ;;  %v1949_v54 = vmul.f32 %v3914_v24, %v3914_v24  ;;  %v1970_v24 = vmul.f32 %v4049_v13, %v4049_v13  ;;  %v1975_v13 = vmul.f32 %v4106_v40, %v4106_v40 }
 0x204   : > { %2075 = vst [vmem:[#allocation1 + $0x2] ss:$4 sm:$0xff] %v1945_v12  ;;  %v1959_v12 = vmul.f32 %v3993_v20, %v3993_v20  ;;  %v1948_v20 = vmul.f32 %v3911_v27, %v3911_v27  ;;  %v1969_v27 = vmul.f32 %v4046_v17, %v4046_v17  ;;  %v1958_v17 = vmul.f32 %v3990_v46, %v3990_v46 }
 0x205   : > { %2077 = vst [vmem:[#allocation1 + $0x3] ss:$4 sm:$0xff] %v1946_v29  ;;  %v4322_v29 = vadd.f32 %v1686_v43, %v1633_v4  ;;  %v1961_v4 = vmul.f32 %v4008_v23, %v4008_v23  ;;  %v1947_v43 = vmul.f32 %v3908_v42, %v3908_v42  ;;  %v1950_v23 = vmul.f32 %v3917_v44, %v3917_v44 }
 0x206   : > { %v1967_v42 = vmul.f32 %v4031_v41, %v4031_v41  ;;  %v1955_v44 = vmul.f32 %v3956_v2, %v3956_v2  ;;  %v1956_v41 = vmul.f32 %v3959_v63, %v3959_v63  ;;  %v1976_v2 = vmul.f32 %v4115_v10, %v4115_v10 }
 0x207   : > { %v4325_v35 = vrot.slane %v4322_v29, 2  ;;  %v4328_v21 = vrot.slane %v4322_v29, 4  ;;  %1885 = vst [vmem:[#allocation1 + $0x21] ss:$4 sm:$0xff] %v4322_v29  ;;  %v1977_v63 = vmul.f32 %v4118_v1, %v4118_v1  ;;  %v1963_v46 = vmul.f32 %v4014_v25, %v4014_v25 }
 0x208   : > { %v1964_v40 = vmul.f32 %v4017_v56, %v4017_v56  ;;  %v1965_v10 = vmul.f32 %v4025_v49, %v4025_v49  ;;  %v1966_v1 = vmul.f32 %v4028_v11, %v4028_v11  ;;  %v1984_v25 = vmul.f32 %v4146_v7, %v4146_v7  ;;  %v4778_v7 = vld [vmem:[#allocation21_spill] sm:$0xff] }
 0x209   : > { %1886 = vst [vmem:[#allocation1 + $0x22] ss:$4 sm:$0xff] %v4325_v35  ;;  %v4335_v33 = vsel %vm2215_vm14, %v4328_v21, %v4278_v30  ;;  %v2431_v22 = vrot.slane %v4325_v35, 4  ;;  %v2463_v37 = vrot.slane %v4328_v21, 4  ;;  %v1985_v56 = vmul.f32 %v4148_v6, %v4148_v6  ;;  %v4779_v6 = vld [vmem:[#allocation22_spill] sm:$0xff] }
 0x20a   : > { %1887 = vst [vmem:[#allocation1 + $0x23] ss:$4 sm:$0xff] %v4328_v21  ;;  %v1986_v49 = vmul.f32 %v4170_v16, %v4170_v16  ;;  %v1971_v11 = vmul.f32 %v4052_v31, %v4052_v31  ;;  %v1991_v31 = vmul.f32 %v4225_v14, %v4225_v14  ;;  %v1992_v16 = vmul.f32 %v4231_v50, %v4231_v50 }
 0x20b   : > { %v4342_v57 = vsel %vm2215_vm14, %v2431_v22, %v4184_v36  ;;  %v1980_v50 = vmul.f32 %v4132_v60, %v4132_v60  ;;  %v4783_v60 = vld [vmem:[#allocation13_spill] sm:$0xff] }
 0x20c   : > { %v4316_v28 = vld.sshfl [vmem:[#allocation1] sm:$0xff pattern:$0x73625140] }
 0x20d   : > { %2088 = vst [vmem:[#allocation1] ss:$4 sm:$0xff] %v1951_v5  ;;  %v4346_v5 = vsel %vm2215_vm14, %v2463_v37, %v4262_v59 }
 0x20e   : > { %2089 = vst [vmem:[#allocation1 + $0x1] ss:$4 sm:$0xff] %v1952_v53 }
 0x20f   : > { %2090 = vst [vmem:[#allocation1 + $0x2] ss:$4 sm:$0xff] %v1953_v34  ;;  %v1962_v34 = vmul.f32 %v4011_v52, %v4011_v52  ;;  %v1968_v52 = vmul.f32 %v4043_v15, %v4043_v15  ;;  %v1957_v15 = vmul.f32 %v3963_v26, %v3963_v26  ;;  %v1978_v26 = vmul.f32 %v4111_v8, %v4111_v8 }
 0x210   : > { %2091 = vst [vmem:[#allocation1 + $0x3] ss:$4 sm:$0xff] %v1954_v18  ;;  %v1983_v8 = vmul.f32 %v4144_v38, %v4144_v38  ;;  %v1972_v38 = vmul.f32 %v4080_v19, %v4080_v19 }
 0x211   : > { %v4360_v18 = vld.sshfl [vmem:[#allocation1 + $0x20] sm:$0xff pattern:$0x73625140] }
 0x212   : > { %2079 = vst [vmem:[#allocation1 + $0x20] ss:$4 sm:$0xff] %v1947_v43  ;;  %v1973_v43 = vmul.f32 %v4778_v7, %v4778_v7 }
 0x213   : > { %2081 = vst [vmem:[#allocation1 + $0x21] ss:$4 sm:$0xff] %v1948_v20  ;;  %v1974_v20 = vmul.f32 %v4779_v6, %v4779_v6 }
 0x214   : > { %2083 = vst [vmem:[#allocation1 + $0x22] ss:$4 sm:$0xff] %v1949_v54  ;;  %v1993_v54 = vmul.f32 %v4186_v51, %v4186_v51  ;;  %v1981_v51 = vmul.f32 %v4135_v58, %v4135_v58  ;;  %v2174_v58 = vsel %vm1218_vm8, %v4316_v28, 0.0 }
 0x215   : > { %2085 = vst [vmem:[#allocation1 + $0x23] ss:$4 sm:$0xff] %v1950_v23  ;;  %v1994_v23 = vmul.f32 %v4217_v47, %v4217_v47 }
 0x217   : > { %v4352_v53 = vld.sshfl [vmem:[#allocation1] sm:$0xff pattern:$0x73625140] }
 0x218   : > { %2098 = vst [vmem:[#allocation1] ss:$4 sm:$0xff] %v1959_v12 }
 0x219   : > { %2099 = vst [vmem:[#allocation1 + $0x1] ss:$4 sm:$0xff] %v1960_v32 }
 0x21a   : > { %2100 = vst [vmem:[#allocation1 + $0x2] ss:$4 sm:$0xff] %v1961_v4 }
 0x21b   : > { %2101 = vst [vmem:[#allocation1 + $0x3] ss:$4 sm:$0xff] %v1962_v34 }
 0x21c   : > { %v2087_v37 = vld.sshfl [vmem:[#allocation1 + $0x20] sm:$0xff pattern:$0x73625140] }
 0x21d   : > { %2092 = vst [vmem:[#allocation1 + $0x20] ss:$4 sm:$0xff] %v1955_v44  ;;  %v4782_v44 = vld [vmem:[#allocation11_spill] sm:$0xff] }
 0x21e   : > { %2093 = vst [vmem:[#allocation1 + $0x21] ss:$4 sm:$0xff] %v1956_v41  ;;  %v1909_v41 = vsel %vm1218_vm8, %v4782_v44, 0.0 }
 0x21f   : > { %2094 = vst [vmem:[#allocation1 + $0x22] ss:$4 sm:$0xff] %v1957_v15  ;;  %v1982_v15 = vmul.f32 %v4138_v62, %v4138_v62  ;;  %v1999_v62 = vmul.f32 %v4202_v48, %v4202_v48  ;;  %v2002_v48 = vmul.f32 %v4251_v45, %v4251_v45 }
 0x220   : > { %2095 = vst [vmem:[#allocation1 + $0x23] ss:$4 sm:$0xff] %v1958_v17 }
 0x222   : > { %v4372_v22 = vld.sshfl [vmem:[#allocation1] sm:$0xff pattern:$0x73625140] }
 0x223   : > { %2108 = vst [vmem:[#allocation1] ss:$4 sm:$0xff] %v1967_v42  ;;  %v1979_v42 = vmul.f32 %v4127_v0, %v4127_v0  ;;  %v2175_v0 = vsel %vm1218_vm8, %v2087_v37, 0.0  ;;  %v2177_v37 = vsel %vm1218_vm8, %v4352_v53, 0.0  ;;  %v2181_v45 = vsel %vm1218_vm8, %v4372_v22, 0.0 }
 0x224   : > { %2109 = vst [vmem:[#allocation1 + $0x1] ss:$4 sm:$0xff] %v1968_v52  ;;  %v4780_v52 = vld [vmem:[#allocation6_spill] sm:$0xff] }
 0x225   : > { %2110 = vst [vmem:[#allocation1 + $0x2] ss:$4 sm:$0xff] %v1969_v27  ;;  %v1907_v14 = vsel %vm1218_vm8, %v4780_v52, 0.0 }
 0x226   : > { %2111 = vst [vmem:[#allocation1 + $0x3] ss:$4 sm:$0xff] %v1970_v24  ;;  %v4781_v24 = vld [vmem:[#allocation2_spill] sm:$0xff] }
 0x227   : > { %v2097_v32 = vld.sshfl [vmem:[#allocation1 + $0x20] sm:$0xff pattern:$0x73625140]  ;;  %v1906_v47 = vsel %vm1218_vm8, %v4781_v24, 0.0 }
 0x228   : > { %2102 = vst [vmem:[#allocation1 + $0x20] ss:$4 sm:$0xff] %v1963_v46  ;;  %v1908_v17 = vadd.f32 %v1907_v14, %v1906_v47  ;;  %v4792_v47 = vld [vmem:[#allocation28_spill] sm:$0xff] }
 0x229   : > { %2103 = vst [vmem:[#allocation1 + $0x21] ss:$4 sm:$0xff] %v1964_v40  ;;  %v1921_v44 = vsel %vm1218_vm8, %v4792_v47, 0.0 }
 0x22a   : > { %2104 = vst [vmem:[#allocation1 + $0x22] ss:$4 sm:$0xff] %v1965_v10  ;;  %v2000_v10 = vmul.f32 %v4244_v3, %v4244_v3  ;;  %v4786_v3 = vld [vmem:[#allocation26_spill] sm:$0xff] }
 0x22b   : > { %2105 = vst [vmem:[#allocation1 + $0x23] ss:$4 sm:$0xff] %v1966_v1  ;;  %v1917_v7 = vsel %vm1218_vm8, %v4786_v3, 0.0 }
 0x22d   : > { %v4390_v12 = vld.sshfl [vmem:[#allocation1] sm:$0xff pattern:$0x73625140] }
 0x22e   : > { %2118 = vst [vmem:[#allocation1] ss:$4 sm:$0xff] %v1975_v13  ;;  %v1911_v13 = vsel %vm1218_vm8, %v4783_v60, 0.0 }
 0x22f   : > { %2119 = vst [vmem:[#allocation1 + $0x1] ss:$4 sm:$0xff] %v1976_v2  ;;  %v1910_v2 = vadd.f32 %v1909_v41, %v1908_v17 }
 0x230   : > { %2120 = vst [vmem:[#allocation1 + $0x2] ss:$4 sm:$0xff] %v1977_v63  ;;  %v2176_v63 = vadd.f32 %v2175_v0, %v2174_v58  ;;  %v4794_v58 = vld [vmem:[#allocation3_spill] sm:$0xff] }
 0x231   : > { %2121 = vst [vmem:[#allocation1 + $0x3] ss:$4 sm:$0xff] %v1978_v26  ;;  %v4784_v26 = vld [vmem:[#allocation14_spill] sm:$0xff]  ;;  %v1912_v40 = vadd.f32 %v1911_v13, %v1910_v2 }
 0x232   : > { %v4418_v34 = vld.sshfl [vmem:[#allocation1 + $0x20] sm:$0xff pattern:$0x73625140]  ;;  %v1913_v46 = vsel %vm1218_vm8, %v4784_v26, 0.0  ;;  %v2178_v53 = vadd.f32 %v2177_v37, %v2176_v63 }
 0x233   : > { %2112 = vst [vmem:[#allocation1 + $0x20] ss:$4 sm:$0xff] %v1971_v11  ;;  %v3149_v11 = vmov 1934713408   ;;  %v2183_v41 = vsel %vm1218_vm8, %v4418_v34, 0.0  ;;  %v4795_v63 = vld [vmem:[#allocation41_spill] sm:$0xff] }
 0x234   : > { %2113 = vst [vmem:[#allocation1 + $0x21] ss:$4 sm:$0xff] %v1972_v38  ;;  %v2218_v38 = vunpack.c.l.s4 %v3149_v11  ;;  %v1925_v26 = vsel %vm1218_vm8, %v4795_v63, 0.0  ;;  %v4796_v34 = vld [vmem:[#allocation15_spill] sm:$0xff] }
 0x235   : > { %2114 = vst [vmem:[#allocation1 + $0x22] ss:$4 sm:$0xff] %v1973_v43  ;;  %v4787_v43 = vld [vmem:[#allocation32_spill] sm:$0xff] }
 0x236   : > { %2115 = vst [vmem:[#allocation1 + $0x23] ss:$4 sm:$0xff] %v1974_v20  ;;  %v1987_v6 = vmul.f32 %v4787_v43, %v4787_v43  ;;  %v4788_v20 = vld [vmem:[#allocation27_spill] sm:$0xff] }
 0x238   : > { %v4408_v4 = vld.sshfl [vmem:[#allocation1] sm:$0xff pattern:$0x73625140] }
 0x239   : > { %2128 = vst [vmem:[#allocation1] ss:$4 sm:$0xff] %v1983_v8  ;;  %v4785_v8 = vld [vmem:[#allocation16_spill] sm:$0xff] }
 0x23a   : > { %2129 = vst [vmem:[#allocation1 + $0x1] ss:$4 sm:$0xff] %v1984_v25  ;;  %v1915_v28 = vsel %vm1218_vm8, %v4785_v8, 0.0  ;;  %v2179_v25 = vsel %vm1218_vm8, %v2097_v32, 0.0 }
 0x23b   : > { %2130 = vst [vmem:[#allocation1 + $0x2] ss:$4 sm:$0xff] %v1985_v56  ;;  %v2001_v56 = vmul.f32 %v4248_v55, %v4248_v55  ;;  %v1919_v55 = vsel %vm1218_vm8, %v4788_v20, 0.0 }
 0x23c   : > { %2131 = vst [vmem:[#allocation1 + $0x3] ss:$4 sm:$0xff] %v1986_v49  ;;  %v1914_v49 = vadd.f32 %v1913_v46, %v1912_v40  ;;  %v2185_v46 = vsel %vm1218_vm8, %v4390_v12, 0.0 }
 0x23d   : > { %v4440_v27 = vld.sshfl [vmem:[#allocation1 + $0x20] sm:$0xff pattern:$0x73625140] }
 0x23e   : > { %2122 = vst [vmem:[#allocation1 + $0x20] ss:$4 sm:$0xff] %v1979_v42  ;;  %v1916_v32 = vadd.f32 %v1915_v28, %v1914_v49  ;;  %v4790_v42 = vld [vmem:[#allocation34_spill] sm:$0xff] }
 0x23f   : > { %2123 = vst [vmem:[#allocation1 + $0x21] ss:$4 sm:$0xff] %v1980_v50  ;;  %v1989_v52 = vmul.f32 %v4790_v42, %v4790_v42  ;;  %v4484_v50 = vunpack.c.0.s8 %v2218_v38  ;;  %v4798_v28 = vld [vmem:[#allocation46_spill] sm:$0xff]  ;;  %v1995_v38 = vmul.f32 %v4266_v9, %v4266_v9  ;;  %v1998_v9 = vmul.f32 %v4262_v59, %v4262_v59 }
 0x240   : > { %2124 = vst [vmem:[#allocation1 + $0x22] ss:$4 sm:$0xff] %v1981_v51  ;;  %v1918_v14 = vadd.f32 %v1917_v7, %v1916_v32  ;;  %v4791_v51 = vld [vmem:[#allocation40_spill] sm:$0xff]  ;;  %v4799_v49 = vld [vmem:[#allocation42_spill] sm:$0xff]  ;;  %v2189_v32 = vsel %vm1218_vm8, %v4408_v4, 0.0 }
 0x241   : > { %2125 = vst [vmem:[#allocation1 + $0x23] ss:$4 sm:$0xff] %v1982_v15  ;;  %v1990_v24 = vmul.f32 %v4791_v51, %v4791_v51  ;;  %v4793_v15 = vld [vmem:[#allocation35_spill] sm:$0xff]  ;;  %v2220_v2 = vperm.slane %v4794_v58, %v4484_v50  ;;  %v2228_v37 = vperm.slane %v4796_v34, %v4484_v50  ;;  %v4800_v59 = vld [vmem:[#allocation50_spill] sm:$0xff]  ;;  %v2006_v58 = vmul.f32 %v4328_v21, %v4328_v21  ;;  %v4803_v34 = vld [vmem:[#allocation17_spill] sm:$0xff] }
 0x242   : > { %v1920_v0 = vadd.f32 %v1919_v55, %v1918_v14  ;;  %v1923_v17 = vsel %vm1218_vm8, %v4793_v15, 0.0  ;;  %v1933_v14 = vsel %vm1218_vm8, %v4800_v59, 0.0  ;;  %v4804_v21 = vld [vmem:[#allocation30_spill] sm:$0xff] }
 0x243   : > { %v4428_v19 = vld.sshfl [vmem:[#allocation1] sm:$0xff pattern:$0x73625140]  ;;  %v2221_v20 = vrot.slane %v2220_v2, 4 }
 0x244   : > { %2138 = vst [vmem:[#allocation1] ss:$4 sm:$0xff] %v1991_v31  ;;  %v2180_v31 = vadd.f32 %v2179_v25, %v2178_v53  ;;  %v1922_v60 = vadd.f32 %v1921_v44, %v1920_v0  ;;  %v1927_v25 = vsel %vm1218_vm8, %v4798_v28, 0.0  ;;  %v2244_v53 = vperm.slane %v4799_v49, %v4484_v50  ;;  %v4805_v28 = vld [vmem:[#allocation45_spill] sm:$0xff] }
 0x245   : > { %2139 = vst [vmem:[#allocation1 + $0x1] ss:$4 sm:$0xff] %v1992_v16  ;;  %v4789_v16 = vld [vmem:[#allocation33_spill] sm:$0xff]  ;;  %v2222_v4 = vsel %vm2215_vm14, 0.0, %v2221_v20 }
 0x246   : > { %2140 = vst [vmem:[#allocation1 + $0x2] ss:$4 sm:$0xff] %v1993_v54  ;;  %v1988_v54 = vmul.f32 %v4789_v16, %v4789_v16  ;;  %v2182_v22 = vadd.f32 %v2181_v45, %v2180_v31  ;;  %v1924_v40 = vadd.f32 %v1923_v17, %v1922_v60  ;;  %v2229_v31 = vrot.slane %v2228_v37, 4 }
 0x247   : > { %2141 = vst [vmem:[#allocation1 + $0x3] ss:$4 sm:$0xff] %v1994_v23 }
 0x248   : > { %v2127_v23 = vld.sshfl [vmem:[#allocation1 + $0x20] sm:$0xff pattern:$0x73625140]  ;;  %v2184_v13 = vadd.f32 %v2183_v41, %v2182_v22  ;;  %v1926_v12 = vadd.f32 %v1925_v26, %v1924_v40  ;;  %v4801_v41 = vld [vmem:[#allocation44_spill] sm:$0xff] }
 0x249   : > { %2132 = vst [vmem:[#allocation1 + $0x20] ss:$4 sm:$0xff] %v1987_v6  ;;  %v1929_v6 = vsel %vm1218_vm8, %v4280_v61, 0.0  ;;  %v2191_v55 = vsel %vm1218_vm8, %v2127_v23, 0.0  ;;  %v2230_v23 = vsel %vm2215_vm14, 0.0, %v2229_v31  ;;  %v2003_v0 = vmul.f32 %v4801_v41, %v4801_v41 }
 0x24a   : > { %2133 = vst [vmem:[#allocation1 + $0x21] ss:$4 sm:$0xff] %v1988_v54  ;;  %v2186_v11 = vadd.f32 %v2185_v46, %v2184_v13  ;;  %v1928_v3 = vadd.f32 %v1927_v25, %v1926_v12  ;;  %v2245_v54 = vrot.slane %v2244_v53, 4  ;;  %v2005_v13 = vmul.f32 %v4325_v35, %v4325_v35  ;;  %v4802_v46 = vld [vmem:[#allocation4_spill] sm:$0xff] }
 0x24b   : > { %2134 = vst [vmem:[#allocation1 + $0x22] ss:$4 sm:$0xff] %v1989_v52  ;;  %v2252_v35 = vperm.slane %v4802_v46, %v4484_v50  ;;  %v2276_v25 = vperm.slane %v4805_v28, %v4484_v50  ;;  %v4812_v46 = vld [vmem:[#allocation36_spill] sm:$0xff] }
 0x24c   : > { %2135 = vst [vmem:[#allocation1 + $0x23] ss:$4 sm:$0xff] %v1990_v24  ;;  %v1935_v24 = vsel %vm1218_vm8, %v4360_v18, 0.0  ;;  %v2246_v44 = vsel %vm2215_vm14, 0.0, %v2245_v54 }
 0x24e   : > { %v4463_v1 = vld.sshfl [vmem:[#allocation1] sm:$0xff pattern:$0x73625140] }
 0x24f   : > { %2148 = vst [vmem:[#allocation1] ss:$4 sm:$0xff] %v1999_v62 }
 0x250   : > { %2149 = vst [vmem:[#allocation1 + $0x1] ss:$4 sm:$0xff] %v2000_v10  ;;  %v4797_v10 = vld [vmem:[#allocation29_spill] sm:$0xff] }
 0x251   : > { %2150 = vst [vmem:[#allocation1 + $0x2] ss:$4 sm:$0xff] %v2001_v56  ;;  %v2236_v8 = vperm.slane %v4797_v10, %v4484_v50  ;;  %v2187_v56 = vsel %vm1218_vm8, %v4440_v27, 0.0  ;;  %v1997_v27 = vmul.f32 %v4184_v36, %v4184_v36  ;;  %v1930_v36 = vadd.f32 %v1929_v6, %v1928_v3 }
 0x252   : > { %2151 = vst [vmem:[#allocation1 + $0x3] ss:$4 sm:$0xff] %v2002_v48  ;;  %v1996_v48 = vmul.f32 %v4278_v30, %v4278_v30  ;;  %v2188_v43 = vadd.f32 %v2187_v56, %v2186_v11  ;;  %v1931_v30 = vsel %vm1218_vm8, %v4297_v39, 0.0  ;;  %v2193_v39 = vsel %vm1218_vm8, %v4428_v19, 0.0 }
 0x253   : > { %v2137_v7 = vld.sshfl [vmem:[#allocation1 + $0x20] sm:$0xff pattern:$0x73625140]  ;;  %v2237_v61 = vrot.slane %v2236_v8, 4  ;;  %v1932_v45 = vadd.f32 %v1931_v30, %v1930_v36  ;;  %v2004_v19 = vmul.f32 %v4322_v29, %v4322_v29 }
 0x254   : > { %2142 = vst [vmem:[#allocation1 + $0x20] ss:$4 sm:$0xff] %v1995_v38  ;;  %v2190_v16 = vadd.f32 %v2189_v32, %v2188_v43  ;;  %v2195_v47 = vsel %vm1218_vm8, %v2137_v7, 0.0  ;;  %v2277_v43 = vrot.slane %v2276_v25, 4 }
 0x255   : > { %2143 = vst [vmem:[#allocation1 + $0x21] ss:$4 sm:$0xff] %v1996_v48  ;;  %v2238_v51 = vsel %vm2215_vm14, 0.0, %v2237_v61  ;;  %v1934_v22 = vadd.f32 %v1933_v14, %v1932_v45  ;;  %v2253_v48 = vrot.slane %v2252_v35, 4  ;;  %v4807_v14 = vld [vmem:[#allocation18_spill] sm:$0xff] }
 0x256   : > { %2144 = vst [vmem:[#allocation1 + $0x22] ss:$4 sm:$0xff] %v1997_v27  ;;  %v2192_v42 = vadd.f32 %v2191_v55, %v2190_v16  ;;  %v2278_v31 = vsel %vm2215_vm14, 0.0, %v2277_v43 }
 0x257   : > { %2145 = vst [vmem:[#allocation1 + $0x23] ss:$4 sm:$0xff] %v1998_v9  ;;  %v1936_v60 = vadd.f32 %v1935_v24, %v1934_v22  ;;  %v2254_v32 = vsel %vm2215_vm14, 0.0, %v2253_v48 }
 0x258   : > { %v2194_v15 = vadd.f32 %v2193_v39, %v2192_v42  ;;  %v2292_v39 = vperm.slane %v4807_v14, %v4484_v50  ;;  %v2404_v14 = vperm.slane %v4335_v33, %v4484_v50 }
 0x259   : > { %v4502_v62 = vld.sshfl [vmem:[#allocation1] sm:$0xff pattern:$0x73625140]  ;;  %v1937_v29 = vrot.slane %v1936_v60, 4 }
 0x25a   : > { %2475 = vst [vmem:[#allocation1] ss:$4 sm:$0xff] %v2220_v2  ;;  %v2196_v18 = vadd.f32 %v2195_v47, %v2194_v15  ;;  %v2197_v2 = vsel %vm1218_vm8, %v4463_v1, 0.0  ;;  %v2201_v1 = vsel %vm1218_vm8, %v4502_v62, 0.0  ;;  %v4809_v47 = vld [vmem:[#allocation47_spill] sm:$0xff] }
 0x25b   : > { %2477 = vst [vmem:[#allocation1 + $0x1] ss:$4 sm:$0xff] %v2228_v37  ;;  %v2260_v37 = vperm.slane %v4803_v34, %v4484_v50  ;;  %v1938_v56 = vadd.f32 %v1937_v29, %v1936_v60  ;;  %v4813_v34 = vld [vmem:[#allocation48_spill] sm:$0xff] }
 0x25c   : > { %2479 = vst [vmem:[#allocation1 + $0x2] ss:$4 sm:$0xff] %v2236_v8  ;;  %v2198_v26 = vadd.f32 %v2197_v2, %v2196_v18  ;;  %v2268_v8 = vperm.slane %v4804_v21, %v4484_v50 }
 0x25d   : > { %2481 = vst [vmem:[#allocation1 + $0x3] ss:$4 sm:$0xff] %v2244_v53  ;;  %v1939_v11 = vrot.slane %v1938_v56, 2  ;;  %v2261_v3 = vrot.slane %v2260_v37, 4 }
 0x25e   : > { %v2147_v17 = vld.sshfl [vmem:[#allocation1 + $0x20] sm:$0xff pattern:$0x73625140]  ;;  %v2269_v7 = vrot.slane %v2268_v8, 4 }
 0x25f   : > { %2152 = vst [vmem:[#allocation1 + $0x20] ss:$4 sm:$0xff] %v2003_v0  ;;  %v2199_v63 = vsel %vm1218_vm8, %v2147_v17, 0.0  ;;  %v1940_v27 = vadd.f32 %v1939_v11, %v1938_v56  ;;  %v2262_v20 = vsel %vm2215_vm14, 0.0, %v2261_v3  ;;  %v2293_v0 = vrot.slane %v2292_v39, 4  ;;  %v4815_v11 = vld [vmem:[#allocation20_spill] sm:$0xff] }
 0x260   : > { %2153 = vst [vmem:[#allocation1 + $0x21] ss:$4 sm:$0xff] %v2004_v19  ;;  %v2200_v10 = vadd.f32 %v2199_v63, %v2198_v26  ;;  %v2270_v55 = vsel %vm2215_vm14, 0.0, %v2269_v7  ;;  %v4811_v63 = vld [vmem:[#allocation19_spill] sm:$0xff]  ;;  %v4816_v3 = vld [vmem:[#allocation37_spill] sm:$0xff] }
 0x261   : > { %2154 = vst [vmem:[#allocation1 + $0x22] ss:$4 sm:$0xff] %v2005_v13  ;;  %v1941_v36 = vrot.slane %v1940_v27, 1  ;;  %v2294_v60 = vsel %vm2215_vm14, 0.0, %v2293_v0  ;;  %v2324_v29 = vperm.slane %v4811_v63, %v4484_v50  ;;  %v4817_v7 = vld [vmem:[#allocation49_spill] sm:$0xff] }
 0x262   : > { %2155 = vst [vmem:[#allocation1 + $0x23] ss:$4 sm:$0xff] %v2006_v58  ;;  %v2202_v53 = vadd.f32 %v2201_v1, %v2200_v10  ;;  %v4810_v58 = vld [vmem:[#allocation7_spill] sm:$0xff]  ;;  %v2372_v43 = vperm.slane %v4817_v7, %v4484_v50 }
 0x263   : > { %v1942_v54 = vadd.f32 %v1941_v36, %v1940_v27  ;;  %v2316_v2 = vperm.slane %v4810_v58, %v4484_v50  ;;  %v2325_v10 = vrot.slane %v2324_v29, 4 }
 0x264   : > { %v4528_v52 = vld.sshfl [vmem:[#allocation1] sm:$0xff pattern:$0x73625140] }
 0x265   : > { %2488 = vst [vmem:[#allocation1] ss:$4 sm:$0xff] %v2222_v4  ;;  %v4806_v4 = vld [vmem:[#allocation5_spill] sm:$0xff] }
 0x266   : > { %2490 = vst [vmem:[#allocation1 + $0x1] ss:$4 sm:$0xff] %v2230_v23  ;;  %v2284_v59 = vperm.slane %v4806_v4, %v4484_v50  ;;  %v4820_v4 = vld [vmem:[#allocation38_spill] sm:$0xff] }
 0x267   : > { %2492 = vst [vmem:[#allocation1 + $0x2] ss:$4 sm:$0xff] %v2238_v51  ;;  %v4808_v51 = vld [vmem:[#allocation31_spill] sm:$0xff] }
 0x268   : > { %2494 = vst [vmem:[#allocation1 + $0x3] ss:$4 sm:$0xff] %v2246_v44  ;;  %v2300_v24 = vperm.slane %v4808_v51, %v4484_v50  ;;  %v2308_v44 = vperm.slane %v4809_v47, %v4484_v50  ;;  %v2285_v41 = vrot.slane %v2284_v59, 4 }
 0x269   : > { %v2157_v49 = vld.sshfl [vmem:[#allocation1 + $0x20] sm:$0xff pattern:$0x73625140] }
 0x26a   : > { %v2203_v12 = vsel %vm1218_vm8, %v2157_v49, 0.0  ;;  %v2301_v22 = vrot.slane %v2300_v24, 4  ;;  %v2309_v15 = vrot.slane %v2308_v44, 4  ;;  %v2286_v19 = vsel %vm2215_vm14, 0.0, %v2285_v41 }
 0x26b   : > { %v2204_v38 = vadd.f32 %v2203_v12, %v2202_v53  ;;  %v4814_v53 = vld [vmem:[#allocation8_spill] sm:$0xff] }
 0x26c   : > { %v2302_v13 = vsel %vm2215_vm14, 0.0, %v2301_v22  ;;  %v2310_v18 = vsel %vm2215_vm14, 0.0, %v2309_v15  ;;  %v2348_v12 = vperm.slane %v4814_v53, %v4484_v50  ;;  %v4821_v22 = vld [vmem:[#allocation10_spill] sm:$0xff]  ;;  %v4825_v53 = vld [vmem:[#allocation25_spill] sm:$0xff] }
 0x26d   : > { %v2205_v62 = vrot.slane %v2204_v38, 4  ;;  %v2412_v15 = vperm.slane %v4821_v22, %v4484_v50 }
 0x26e   : > { %v2349_v27 = vrot.slane %v2348_v12, 4 }
 0x26f   : > { %v2495_v40 = vld.sshfl [vmem:[#allocation1] sm:$0xff pattern:$0x73625140]  ;;  %v2206_v6 = vadd.f32 %v2205_v62, %v2204_v38  ;;  %v2356_v38 = vperm.slane %v4815_v11, %v4484_v50  ;;  %v2364_v62 = vperm.slane %v4816_v3, %v4484_v50  ;;  %v2413_v63 = vrot.slane %v2412_v15, 4  ;;  %v4826_v11 = vld [vmem:[#allocation43_spill] sm:$0xff] }
 0x270   : > { %2503 = vst [vmem:[#allocation1] ss:$4 sm:$0xff] %v2252_v35  ;;  %2496 = vrot.lane.b32.xlu0 %v2495_v40, %s3148_s9  ;;  %v2332_v35 = vperm.slane %v4812_v46, %v4484_v50  ;;  %v2317_v40 = vrot.slane %v2316_v2, 4  ;;  %v2468_v3 = vperm.slane %v4346_v5, %v4484_v50 }
 0x271   : > { %2505 = vst [vmem:[#allocation1 + $0x1] ss:$4 sm:$0xff] %v2260_v37  ;;  %v2207_v30 = vrot.slane %v2206_v6, 2  ;;  %v2340_v37 = vperm.slane %v4813_v34, %v4484_v50 }
 0x272   : > { %2507 = vst [vmem:[#allocation1 + $0x2] ss:$4 sm:$0xff] %v2268_v8  ;;  %v2333_v21 = vrot.slane %v2332_v35, 4  ;;  %v2318_v1 = vsel %vm2215_vm14, 0.0, %v2317_v40 }
 0x273   : > { %2509 = vst [vmem:[#allocation1 + $0x3] ss:$4 sm:$0xff] %v2276_v25  ;;  %v2208_v16 = vadd.f32 %v2207_v30, %v2206_v6  ;;  %v2341_v8 = vrot.slane %v2340_v37, 4  ;;  %v2326_v25 = vsel %vm2215_vm14, 0.0, %v2325_v10  ;;  %v2357_v6 = vrot.slane %v2356_v38, 4 }
 0x274   : > { %v2334_v56 = vsel %vm2215_vm14, 0.0, %v2333_v21 }
 0x275   : > { %v2209_v61 = vrot.slane %v2208_v16, 1  ;;  %v2342_v49 = vsel %vm2215_vm14, 0.0, %v2341_v8 }
 0x277   : > { %v2210_v45 = vadd.f32 %v2209_v61, %v2208_v16  ;;  %v4818_v16 = vld [vmem:[#allocation9_spill] sm:$0xff] }
 0x278   : > { %v2380_v61 = vperm.slane %v4818_v16, %v4484_v50 }
 0x279   : > { %v2211_v42 = vsel %vm488_vm0, %v1942_v54, %v2210_v45  ;;  %v4819_v54 = vld [vmem:[#allocation23_spill] sm:$0xff] }
 0x27a   : > { %v2510_v9 = vld.sshfl [vmem:[#allocation1] sm:$0xff pattern:$0x73625140]  ;;  %2213 = vst.msk [vmem:[%s412_s13] sm:$0x3] %vm2212_vm15, %v2211_v42  ;;  %v2388_v45 = vperm.slane %v4819_v54, %v4484_v50 }
 0x27b   : > { %2518 = vst [vmem:[#allocation1] ss:$4 sm:$0xff] %v2254_v32  ;;  %2511 = vrot.lane.b32.xlu1 %v2510_v9, %s3147_s8  ;;  %v2365_v32 = vrot.slane %v2364_v62, 4  ;;  %v2373_v9 = vrot.slane %v2372_v43, 4 }
 0x27c   : > { %2520 = vst [vmem:[#allocation1 + $0x1] ss:$4 sm:$0xff] %v2262_v20  ;;  %v2350_v20 = vsel %vm2215_vm14, 0.0, %v2349_v27  ;;  %v2469_v27 = vrot.slane %v2468_v3, 4 }
 0x27d   : > { %2522 = vst [vmem:[#allocation1 + $0x2] ss:$4 sm:$0xff] %v2270_v55  ;;  %v2358_v55 = vsel %vm2215_vm14, 0.0, %v2357_v6  ;;  %v2374_v36 = vsel %vm2215_vm14, 0.0, %v2373_v9 }
 0x27e   : > { %2524 = vst [vmem:[#allocation1 + $0x3] ss:$4 sm:$0xff] %v2278_v31  ;;  %v2366_v31 = vsel %vm2215_vm14, 0.0, %v2365_v32 }
 0x285   : > { %v2525_v23 = vld.sshfl [vmem:[#allocation1] sm:$0xff pattern:$0x73625140] }
 0x286   : > { %2533 = vst [vmem:[#allocation1] ss:$4 sm:$0xff] %v2284_v59  ;;  %2526 = vrot.lane.b32.xlu2 %v2525_v23, %s3146_s28  ;;  %v2396_v59 = vperm.slane %v4820_v4, %v4484_v50  ;;  %v2389_v23 = vrot.slane %v2388_v45, 4 }
 0x287   : > { %2535 = vst [vmem:[#allocation1 + $0x1] ss:$4 sm:$0xff] %v2292_v39  ;;  %v2381_v39 = vrot.slane %v2380_v61, 4 }
 0x288   : > { %2537 = vst [vmem:[#allocation1 + $0x2] ss:$4 sm:$0xff] %v2300_v24  ;;  %v2397_v51 = vrot.slane %v2396_v59, 4  ;;  %v2405_v24 = vrot.slane %v2404_v14, 4  ;;  %v2390_v41 = vsel %vm2215_vm14, 0.0, %v2389_v23 }
 0x289   : > { %2539 = vst [vmem:[#allocation1 + $0x3] ss:$4 sm:$0xff] %v2308_v44  ;;  %v2382_v47 = vsel %vm2215_vm14, 0.0, %v2381_v39 }
 0x28a   : > { %v2398_v0 = vsel %vm2215_vm14, 0.0, %v2397_v51  ;;  %v2406_v33 = vsel %vm2215_vm14, 0.0, %v2405_v24 }
 0x290   : > { %v4584_v17 = vld.sshfl [vmem:[#allocation1] sm:$0xff pattern:$0x73625140] }
 0x291   : > { %2546 = vst [vmem:[#allocation1] ss:$4 sm:$0xff] %v2286_v19  ;;  %v4822_v19 = vld [vmem:[#allocation24_spill] sm:$0xff] }
 0x292   : > { %2548 = vst [vmem:[#allocation1 + $0x1] ss:$4 sm:$0xff] %v2294_v60  ;;  %v2420_v60 = vperm.slane %v4822_v19, %v4484_v50 }
 0x293   : > { %2550 = vst [vmem:[#allocation1 + $0x2] ss:$4 sm:$0xff] %v2302_v13 }
 0x294   : > { %2552 = vst [vmem:[#allocation1 + $0x3] ss:$4 sm:$0xff] %v2310_v18  ;;  %v4823_v18 = vld [vmem:[#allocation39_spill] sm:$0xff] }
 0x295   : > { %v2428_v58 = vperm.slane %v4823_v18, %v4484_v50 }
 0x29b   : > { %v2553_v26 = vld.sshfl [vmem:[#allocation1] sm:$0xff pattern:$0x73625140] }
 0x29c   : > { %2561 = vst [vmem:[#allocation1] ss:$4 sm:$0xff] %v2316_v2  ;;  %2554 = vrot.lane.b32.xlu1 %v2553_v26, %s3148_s9  ;;  %v2436_v2 = vperm.slane %v4342_v57, %v4484_v50  ;;  %v2429_v26 = vrot.slane %v2428_v58, 4 }
 0x29d   : > { %2563 = vst [vmem:[#allocation1 + $0x1] ss:$4 sm:$0xff] %v2324_v29  ;;  %v2421_v29 = vrot.slane %v2420_v60, 4 }
 0x29e   : > { %2565 = vst [vmem:[#allocation1 + $0x2] ss:$4 sm:$0xff] %v2332_v35  ;;  %v2437_v46 = vrot.slane %v2436_v2, 4  ;;  %v2414_v35 = vsel %vm2215_vm14, 0.0, %v2413_v63  ;;  %v2430_v40 = vsel %vm2215_vm14, 0.0, %v2429_v26 }
 0x29f   : > { %2567 = vst [vmem:[#allocation1 + $0x3] ss:$4 sm:$0xff] %v2340_v37  ;;  %v2422_v37 = vsel %vm2215_vm14, 0.0, %v2421_v29 }
 0x2a0   : > { %v2438_v10 = vsel %vm2215_vm14, 0.0, %v2437_v46 }
 0x2a6   : > { %v2568_v28 = vld.sshfl [vmem:[#allocation1] sm:$0xff pattern:$0x73625140] }
 0x2a7   : > { %2576 = vst [vmem:[#allocation1] ss:$4 sm:$0xff] %v2318_v1  ;;  %2569 = vrot.lane.b32.xlu2 %v2568_v28, %s3147_s8 }
 0x2a8   : > { %2578 = vst [vmem:[#allocation1 + $0x1] ss:$4 sm:$0xff] %v2326_v25 }
 0x2a9   : > { %2580 = vst [vmem:[#allocation1 + $0x2] ss:$4 sm:$0xff] %v2334_v56  ;;  %v4824_v56 = vld [vmem:[#allocation12_spill] sm:$0xff] }
 0x2aa   : > { %2582 = vst [vmem:[#allocation1 + $0x3] ss:$4 sm:$0xff] %v2342_v49  ;;  %v2444_v49 = vperm.slane %v4824_v56, %v4484_v50 }
 0x2b1   : > { %v4607_v48 = vld.sshfl [vmem:[#allocation1] sm:$0xff pattern:$0x73625140] }
 0x2b2   : > { %2591 = vst [vmem:[#allocation1] ss:$4 sm:$0xff] %v2348_v12  ;;  %v2452_v12 = vperm.slane %v4825_v53, %v4484_v50 }
 0x2b3   : > { %2593 = vst [vmem:[#allocation1 + $0x1] ss:$4 sm:$0xff] %v2356_v38  ;;  %v2460_v38 = vperm.slane %v4826_v11, %v4484_v50  ;;  %v2470_v50 = vsel %vm2215_vm14, 0.0, %v2469_v27 }
 0x2b4   : > { %2595 = vst [vmem:[#allocation1 + $0x2] ss:$4 sm:$0xff] %v2364_v62  ;;  %v2445_v62 = vrot.slane %v2444_v49, 4  ;;  %v2453_v7 = vrot.slane %v2452_v12, 4 }
 0x2b5   : > { %2597 = vst [vmem:[#allocation1 + $0x3] ss:$4 sm:$0xff] %v2372_v43  ;;  %v2461_v43 = vrot.slane %v2460_v38, 4 }
 0x2b6   : > { %v2446_v6 = vsel %vm2215_vm14, 0.0, %v2445_v62  ;;  %v2454_v9 = vsel %vm2215_vm14, 0.0, %v2453_v7 }
 0x2b7   : > { %v2462_v5 = vsel %vm2215_vm14, 0.0, %v2461_v43 }
 0x2bc   : > { %v4614_v30 = vld.sshfl [vmem:[#allocation1] sm:$0xff pattern:$0x73625140] }
 0x2bd   : > { %2604 = vst [vmem:[#allocation1] ss:$4 sm:$0xff] %v2350_v20 }
 0x2be   : > { %2606 = vst [vmem:[#allocation1 + $0x1] ss:$4 sm:$0xff] %v2358_v55 }
 0x2bf   : > { %2608 = vst [vmem:[#allocation1 + $0x2] ss:$4 sm:$0xff] %v2366_v31 }
 0x2c0   : > { %2610 = vst [vmem:[#allocation1 + $0x3] ss:$4 sm:$0xff] %v2374_v36 }
 0x2c7   : > { %v2611_v42 = vld.sshfl [vmem:[#allocation1] sm:$0xff pattern:$0x73625140] }
 0x2c8   : > { %2612 = vrot.lane.b32.xlu2 %v2611_v42, %s3148_s9  ;;  %2619 = vst [vmem:[#allocation1] ss:$4 sm:$0xff] %v2380_v61 }
 0x2c9   : > { %2621 = vst [vmem:[#allocation1 + $0x1] ss:$4 sm:$0xff] %v2388_v45 }
 0x2ca   : > { %2623 = vst [vmem:[#allocation1 + $0x2] ss:$4 sm:$0xff] %v2396_v59 }
 0x2cb   : > { %2625 = vst [vmem:[#allocation1 + $0x3] ss:$4 sm:$0xff] %v2404_v14 }
 0x2d2   : > { %v2626_v44 = vld.sshfl [vmem:[#allocation1] sm:$0xff pattern:$0x73625140] }
 0x2d3   : > { %2627 = vrot.lane.b32.xlu0 %v2626_v44, %s3147_s8  ;;  %2634 = vst [vmem:[#allocation1] ss:$4 sm:$0xff] %v2382_v47 }
 0x2d4   : > { %2636 = vst [vmem:[#allocation1 + $0x1] ss:$4 sm:$0xff] %v2390_v41 }
 0x2d5   : > { %2638 = vst [vmem:[#allocation1 + $0x2] ss:$4 sm:$0xff] %v2398_v0 }
 0x2d6   : > { %2640 = vst [vmem:[#allocation1 + $0x3] ss:$4 sm:$0xff] %v2406_v33 }
 0x2dd   : > { %v2641_v13 = vld.sshfl [vmem:[#allocation1] sm:$0xff pattern:$0x73625140] }
 0x2de   : > { %2649 = vst [vmem:[#allocation1] ss:$4 sm:$0xff] %v2412_v15 }
 0x2df   : > { %2651 = vst [vmem:[#allocation1 + $0x1] ss:$4 sm:$0xff] %v2420_v60 }
 0x2e0   : > { %2653 = vst [vmem:[#allocation1 + $0x2] ss:$4 sm:$0xff] %v2428_v58  ;;  %v2527_v1 = vpop.permute.xlu2 %2526 }
 0x2e1   : > { %2655 = vst [vmem:[#allocation1 + $0x3] ss:$4 sm:$0xff] %v2436_v2 }
 0x2e2   : > { %v2497_v57 = vpop.permute.xlu0 %2496 }
 0x2e3   : > { %v2703_v21 = vsel %vm1218_vm8, %v4528_v52, %v2497_v57 }
 0x2e8   : > { %v2656_v34 = vld.sshfl [vmem:[#allocation1] sm:$0xff pattern:$0x73625140] }
 0x2e9   : > { %2662 = vst [vmem:[#allocation1] ss:$4 sm:$0xff] %v2414_v35 }
 0x2ea   : > { %2664 = vst [vmem:[#allocation1 + $0x1] ss:$4 sm:$0xff] %v2422_v37 }
 0x2eb   : > { %2666 = vst [vmem:[#allocation1 + $0x2] ss:$4 sm:$0xff] %v2430_v40 }
 0x2ec   : > { %2668 = vst [vmem:[#allocation1 + $0x3] ss:$4 sm:$0xff] %v2438_v10 }
 0x2ed   : > { %v2512_v8 = vpop.permute.xlu1 %2511 }
 0x2ee   : > { %v2704_v28 = vsel %vm1237_vm9, %v2703_v21, %v2512_v8 }
 0x2ef   : > { %v2705_v25 = vsel %vm1256_vm10, %v2704_v28, %v2527_v1 }
 0x2f0   : > { %2715 = vst [vmem:[%s4653_s11] sm:$0xff] %v2705_v25 }
 0x2f3   : > { %v2669_v52 = vld.sshfl [vmem:[#allocation1] sm:$0xff pattern:$0x73625140] }
 0x2f4   : > { %2670 = vrot.lane.b32.xlu0 %v2669_v52, %s3148_s9  ;;  %2677 = vst [vmem:[#allocation1] ss:$4 sm:$0xff] %v2444_v49 }
 0x2f5   : > { %2679 = vst [vmem:[#allocation1 + $0x1] ss:$4 sm:$0xff] %v2452_v12 }
 0x2f6   : > { %2681 = vst [vmem:[#allocation1 + $0x2] ss:$4 sm:$0xff] %v2460_v38 }
 0x2f7   : > { %2683 = vst [vmem:[#allocation1 + $0x3] ss:$4 sm:$0xff] %v2468_v3 }
 0x2fc   : > { %2584 = vrot.lane.b32.xlu0 %v4607_v48, %s3146_s28 }
 0x2fe   : > { %v2684_v32 = vld.sshfl [vmem:[#allocation1] sm:$0xff pattern:$0x73625140] }
 0x2ff   : > { %2685 = vrot.lane.b32.xlu1 %v2684_v32, %s3147_s8  ;;  %2692 = vst [vmem:[#allocation1] ss:$4 sm:$0xff] %v2446_v6 }
 0x300   : > { %2694 = vst [vmem:[#allocation1 + $0x1] ss:$4 sm:$0xff] %v2454_v9 }
 0x301   : > { %2696 = vst [vmem:[#allocation1 + $0x2] ss:$4 sm:$0xff] %v2462_v5  ;;  %v2570_v55 = vpop.permute.xlu2 %2569 }
 0x302   : > { %2698 = vst [vmem:[#allocation1 + $0x3] ss:$4 sm:$0xff] %v2470_v50 }
 0x307   : > { %2642 = vrot.lane.b32.xlu1 %v2641_v13, %s3146_s28 }
 0x309   : > { %v2699_v48 = vld.sshfl [vmem:[#allocation1] sm:$0xff pattern:$0x73625140] }
 0x30a   : > { %2700 = vrot.lane.b32.xlu2 %v2699_v48, %s3146_s28 }
 0x30e   : > { %v2555_v36 = vpop.permute.xlu1 %2554 }
 0x30f   : > { %v2706_v61 = vsel %vm1218_vm8, %v4584_v17, %v2555_v36 }
 0x310   : > { %v2707_v54 = vsel %vm1237_vm9, %v2706_v61, %v2570_v55 }
 0x322   : > { %v2613_v16 = vpop.permute.xlu2 %2612 }
 0x323   : > { %v2709_v51 = vsel %vm1218_vm8, %v4614_v30, %v2613_v16 }
 0x345   : > { %v2628_v20 = vpop.permute.xlu0 %2627 }
 0x346   : > { %v2710_v17 = vsel %vm1237_vm9, %v2709_v51, %v2628_v20 }
 0x364   : > { %v2701_v14 = vpop.permute.xlu2 %2700 }
 0x366   : > { %v2671_v31 = vpop.permute.xlu0 %2670 }
 0x367   : > { %v2712_v4 = vsel %vm1218_vm8, %v2656_v34, %v2671_v31 }
 0x36e   : > { %v2585_v45 = vpop.permute.xlu0 %2584 }
 0x36f   : > { %v2708_v42 = vsel %vm1256_vm10, %v2707_v54, %v2585_v45 }
 0x370   : > { %2716 = vst [vmem:[%s4653_s11 + $0x8] sm:$0xff] %v2708_v42 }
 0x371   : > { %v2686_v59 = vpop.permute.xlu1 %2685 }
 0x372   : > { %v2713_v39 = vsel %vm1237_vm9, %v2712_v4, %v2686_v59 }
 0x373   : > { %v2714_v23 = vsel %vm1256_vm10, %v2713_v39, %v2701_v14 }
 0x374   : > { %2718 = vst [vmem:[%s4653_s11 + $0x18] sm:$0xff] %v2714_v23 }
 0x379   : > { %v2643_v24 = vpop.permute.xlu1 %2642 }
 0x37a   : > { %v2711_v47 = vsel %vm1256_vm10, %v2710_v17, %v2643_v24 }
 0x37b   : > { %2717 = vst [vmem:[%s4653_s11 + $0x10] sm:$0xff] %v2711_v47 }
 0x37c PF: > { %s16_s22 = sadd.s32 1, %s3144_s22   ;;  %s4827_s18 = smov %s3136_s20 }
 0x37d   : > { %p13_p11 = scmp.ge.s32.totalorder %s16_s22, 6   ;;  %s4828_s19 = smov %s3140_s21 }
 0x37e   : > { %s4829_s20 = smov %s4832_s23  ;;  %s4830_s21 = smov %s4836_s24 }
 0x37f   :  { %15 = sbr.rel (!%p13_p11) target bundleno = 3 (0x3), region = 153 }

// kernel: resnet_forward.13
= control target key start
LH: loop header
LB: loop body
LE: loop exit
PB: predicated region body
PF: predicated region fallthrough
CT: control target
= control target key end

     0   :  { %s2920_s18 = smov 0   ;;  %s2922_s19 = smov 0   ;;  %s4470_s0 = inlined_call_operand.vmem [shape: bf16[2,18,18,3], index: 0, kind: input, shape index: {}, may-alias: {0,1,2}]   ;;  %s4471_s1 = inlined_call_operand.vmem [shape: bf16[2,18,18,3], index: 1, kind: input, shape index: {}, may-alias: {0,1,2}]   ;;  %s4472_s2 = inlined_call_operand.vmem [shape: bf16[2,18,18,3], index: 2, kind: input, shape index: {}, may-alias: {0,1,2}]   ;;  %s4473_s3 = inlined_call_operand.vmem [shape: bf16[27,32], index: 3, kind: input, shape index: {}]   ;;  %s4474_s4 = inlined_call_operand.vmem [shape: f32[2,16,512], index: 4, kind: output, shape index: {0}]   ;;  %s4475_s5 = inlined_call_operand.vmem [shape: f32[4,2,32], index: 5, kind: output, shape index: {1}]  }
   0x1   :  { %s2924_s20 = smov 0   ;;  %s2926_s21 = smov 0  }
   0x2   :  { %s2928_s22 = smov 0  }
   0x3 LB: > { %s25_s23 = sadd.s32 1, %s2867_s20  ;;  %s28_s24 = sadd.s32 1, %s2871_s21  ;;  %s2875_s22 = sphi %s2928_s22, %s16_s22   ;;  %s2871_s21 = sphi %s2926_s21, %s4575_s21   ;;  %s2867_s20 = sphi %s2924_s20, %s4574_s20   ;;  %s2863_s19 = sphi %s2922_s19, %s4573_s19   ;;  %s2859_s18 = sphi %s2920_s18, %s4572_s18  }
   0x4   : > { %p26_p0 = scmp.ge.s32.totalorder %s25_s23, 2  ;;  %p2719_p1 = scmp.ge.s32.totalorder %s2875_s22, 1 }
   0x5   : > { %p278_p2 = scmp.lt.s32.totalorder %s2875_s22, 5 }
   0x6   : > { %s4577_s23 = smov (%p26_p0, %s25_s23), 0  ;;  %s4579_s24 = smov (!%p26_p0, %s28_s24), %s2871_s21 }
   0x7   : > { %p279_p3 = pnand %p2719_p1, %p278_p2  ;;  %p30_p4 = scmp.ge.s32.totalorder %s4579_s24, 2 }
   0x9   : > { %s4581_s24 = smov (%p30_p4, %s4579_s24), 0  ;;  %282 = sbr.rel (%p279_p3) target bundleno = 903 (0x387), region = 36 }
   0xe   : > { %s2955_s25 = sshll.u32 %s2859_s18, 3  ;;  %p355_p5 = scmp.lt.s32.totalorder %s2863_s19, 1  ;;  %vm488_vm0 = vcmask 1040384   ;;  %vm492_vm1 = vcmask 1041409   ;;  %vm496_vm2 = vcmask 1042434   ;;  %vm500_vm3 = vcmask 1043459  }
   0xf   : > { %p357_p6 = scmp.lt.s32.totalorder %s2955_s25, 17  ;;  %vm972_vm4 = vcmask 1046528   ;;  %s2877_s10 = smov 6   ;;  %vm886_vm5 = vsmask.f32 7424  ;;  %vm1095_vm6 = vcmask 1045504  }
  0x10   : > { %s2960_s26 = scalar_select %p355_p5, %s2863_s19, 1  ;;  %vm1216_vm7 = vcmask 1044480   ;;  %vm1031_vm8 = vsmask.f32 6400  ;;  %vm4476_vm9 = vsmask.f32 5376 }
  0x11   : > { %s358_s27 = scalar_select %p357_p6, %s2955_s25, 17  ;;  %vm1254_vm10 = vcmask 23552   ;;  %vm1273_vm11 = vcmask 48128   ;;  %vm1292_vm12 = vcmask 72704   ;;  %vm1311_vm13 = vcmask 97280  }
  0x12   : > { %s2964_s28 = smul.u32 54, %s2960_s26  ;;  %s2878_s11 = smov 3   ;;  %vm1330_vm14 = vcmask 121856   ;;  %vm1349_vm15 = vcmask 146432  }
  0x13   : > { %s2780_s29 = smul.u32 3, %s358_s27  ;;  %s2879_s12 = smov 9  }
  0x14   : > { %s2880_s13 = smov 15   ;;  %s2881_s14 = smov 24  }
  0x15   : > { %s361_s30 = sadd.s32 %s2964_s28, %s2780_s29  ;;  %s2882_s15 = smov 12  }
  0x16   : > { %s2721_s6 = sshll.u32 %s361_s30, 2  ;;  %s2883_s16 = smov 18  }
  0x17   : > { %s2970_s9 = scalar_lea.vmem %s4470_s0, %s2721_s6  ;;  %s2884_s17 = smov 21  }
  0x18   : > { %v416_v0 = vld [vmem:[%s2970_s9] sm:$0xf]  ;;  %v417_v1 = vld [vmem:[%s2970_s9 + $0x4] sm:$0xf]  ;;  %v419_v17 = vld [vmem:[%s2970_s9 + $0xc] sm:$0xf] }
  0x19   : > { %v464_v2 = vrot.slane %v416_v0, 3  ;;  %v465_v3 = vrot.slane %v417_v1, 3  ;;  %v418_v19 = vld [vmem:[%s2970_s9 + $0x8] sm:$0x1]  ;;  %v467_v20 = vrot.slane %v419_v17, 3  ;;  %s3234_s27 = sadd.s32 8, %s2955_s25 }
  0x1a   : > { %v420_v21 = vld [vmem:[%s2970_s9 + $0x10] sm:$0xf]  ;;  %v466_v22 = vrot.slane %v418_v19, 3  ;;  %v422_v38 = vld [vmem:[%s2970_s9 + $0x18] sm:$0xf]  ;;  %p374_p7 = scmp.lt.s32.totalorder %s3234_s27, 17 }
  0x1b   : > { %v491_v4 = vsel %vm488_vm0, %v416_v0, %v464_v2  ;;  %v493_v5 = vsel %vm492_vm1, %v416_v0, %v464_v2  ;;  %v497_v6 = vsel %vm496_vm2, %v416_v0, %v464_v2  ;;  %v501_v7 = vsel %vm500_vm3, %v416_v0, %v464_v2  ;;  %v421_v39 = vld [vmem:[%s2970_s9 + $0x14] sm:$0x1]  ;;  %v423_v40 = vld [vmem:[%s2970_s9 + $0x1c] sm:$0xf]  ;;  %p400_p10 = scmp.lt.s32.totalorder %s2859_s18, 1 }
  0x1c   : > { %v495_v8 = vrot.slane %v493_v5, 1  ;;  %v499_v9 = vrot.slane %v497_v6, 2  ;;  %v503_v10 = vrot.slane %v501_v7, 3  ;;  %v506_v11 = vsel %vm488_vm0, %v417_v1, %v465_v3  ;;  %714 = vst [vmem:[#allocation1] ss:$9 sm:$0xff] %v491_v4  ;;  %s3262_s25 = scalar_select %p374_p7, %s3234_s27, 17 }
  0x1d   : > { %v507_v12 = vsel %vm492_vm1, %v417_v1, %v465_v3  ;;  %v510_v13 = vsel %vm496_vm2, %v417_v1, %v465_v3  ;;  %v513_v14 = vsel %vm500_vm3, %v417_v1, %v465_v3  ;;  %725 = vst [vmem:[#allocation1 + $0x4] ss:$9 sm:$0xff] %v506_v11  ;;  %v468_v23 = vrot.slane %v420_v21, 3  ;;  %v425_v3 = vld [vmem:[%s2970_s9 + $0x24] sm:$0xf] }
  0x1e   : > { %v509_v15 = vrot.slane %v507_v12, 1  ;;  %v512_v16 = vrot.slane %v510_v13, 2  ;;  %717 = vst [vmem:[#allocation1 + $0x1] ss:$9 sm:$0xff] %v495_v8  ;;  %v515_v18 = vrot.slane %v513_v14, 3  ;;  %v522_v24 = vsel %vm492_vm1, %v419_v17, %v467_v20  ;;  %s2782_s29 = smul.u32 3, %s3262_s25 }
  0x1f   : > { %720 = vst [vmem:[#allocation1 + $0x2] ss:$9 sm:$0xff] %v499_v9  ;;  %v525_v25 = vsel %vm496_vm2, %v419_v17, %v467_v20  ;;  %v518_v26 = vsel %vm488_vm0, %v418_v19, %v466_v22  ;;  %v528_v27 = vsel %vm500_vm3, %v419_v17, %v467_v20  ;;  %v521_v28 = vsel %vm488_vm0, %v419_v17, %v467_v20  ;;  %v424_v4 = vld [vmem:[%s2970_s9 + $0x20] sm:$0x1]  ;;  %s385_s25 = sadd.s32 1, %s3234_s27  ;;  %s2727_s27 = sshll.u32 %s2960_s26, 3 }
  0x20   : > { %723 = vst [vmem:[#allocation1 + $0x3] ss:$9 sm:$0xff] %v503_v10  ;;  %v524_v29 = vrot.slane %v522_v24, 1  ;;  %v527_v30 = vrot.slane %v525_v25, 2  ;;  %v534_v31 = vsel %vm492_vm1, %v420_v21, %v468_v23  ;;  %v530_v33 = vrot.slane %v528_v27, 3  ;;  %s378_s30 = sadd.s32 %s2782_s29, %s2964_s28  ;;  %p388_p8 = scmp.lt.s32.totalorder %s385_s25, 17 }
  0x21   : > { %728 = vst [vmem:[#allocation1 + $0x5] ss:$9 sm:$0xff] %v509_v15  ;;  %v537_v34 = vsel %vm496_vm2, %v420_v21, %v468_v23  ;;  %v533_v35 = vsel %vm488_vm0, %v420_v21, %v468_v23  ;;  %v536_v36 = vrot.slane %v534_v31, 1  ;;  %v470_v41 = vrot.slane %v422_v38, 3  ;;  %v426_v10 = vld [vmem:[%s2970_s9 + $0x28] sm:$0xf] }
  0x22   : > { %731 = vst [vmem:[#allocation1 + $0x6] ss:$9 sm:$0xff] %v512_v16  ;;  %v539_v37 = vrot.slane %v537_v34, 2  ;;  %v540_v42 = vsel %vm500_vm3, %v420_v21, %v468_v23  ;;  %v469_v43 = vrot.slane %v421_v39, 3  ;;  %v471_v44 = vrot.slane %v423_v40, 3  ;;  %s2723_s6 = sshll.u32 %s378_s30, 2 }
  0x23   : > { %734 = vst [vmem:[#allocation1 + $0x7] ss:$9 sm:$0xff] %v515_v18  ;;  %v542_v46 = vrot.slane %v540_v42, 3  ;;  %v549_v47 = vsel %vm492_vm1, %v422_v38, %v470_v41  ;;  %v552_v48 = vsel %vm496_vm2, %v422_v38, %v470_v41  ;;  %v555_v51 = vsel %vm500_vm3, %v422_v38, %v470_v41  ;;  %s4583_s25 = smov (!%p388_p8, %s385_s25), 17 }
  0x24   : > { %v545_v50 = vsel %vm488_vm0, %v421_v39, %v469_v43  ;;  %v548_v53 = vsel %vm488_vm0, %v422_v38, %v470_v41  ;;  %v551_v54 = vrot.slane %v549_v47, 1  ;;  %v554_v55 = vrot.slane %v552_v48, 2  ;;  %v427_v38 = vld [vmem:[%s2970_s9 + $0x2c] sm:$0x1]  ;;  %s2783_s29 = smul.u32 3, %s4583_s25 }
  0x25   : > { %v561_v56 = vsel %vm492_vm1, %v423_v40, %v471_v44  ;;  %v557_v61 = vrot.slane %v555_v51, 3  ;;  %v560_v63 = vsel %vm488_vm0, %v423_v40, %v471_v44  ;;  %v473_v5 = vrot.slane %v425_v3, 3 }
  0x26   : > { %v563_v0 = vrot.slane %v561_v56, 1  ;;  %v564_v7 = vsel %vm496_vm2, %v423_v40, %v471_v44  ;;  %v472_v8 = vrot.slane %v424_v4, 3  ;;  %v567_v9 = vsel %vm500_vm3, %v423_v40, %v471_v44  ;;  %s392_s30 = sadd.s32 %s2783_s29, %s2964_s28 }
  0x27   : > { %v566_v11 = vrot.slane %v564_v7, 2  ;;  %v576_v12 = vsel %vm492_vm1, %v425_v3, %v473_v5  ;;  %v569_v13 = vrot.slane %v567_v9, 3  ;;  %v474_v14 = vrot.slane %v426_v10, 3 }
  0x28   : > { %v572_v15 = vsel %vm488_vm0, %v424_v4, %v472_v8  ;;  %v579_v16 = vsel %vm496_vm2, %v425_v3, %v473_v5  ;;  %v575_v18 = vsel %vm488_vm0, %v425_v3, %v473_v5  ;;  %v578_v19 = vrot.slane %v576_v12, 1  ;;  %v429_v8 = vld [vmem:[%s2970_s9 + $0x34] sm:$0xf] }
  0x29   : > { %v582_v20 = vsel %vm500_vm3, %v425_v3, %v473_v5  ;;  %v581_v25 = vrot.slane %v579_v16, 2  ;;  %v588_v43 = vsel %vm492_vm1, %v426_v10, %v474_v14  ;;  %v591_v44 = vsel %vm496_vm2, %v426_v10, %v474_v14 }
  0x2a   : > { %v2991_v32 = vld [vmem:[#allocation1] sm:$0xff]  ;;  %v590_v47 = vrot.slane %v588_v43, 1 }
  0x2b   : > { %737 = vst [vmem:[#allocation1] ss:$9 sm:$0xff] %v518_v26  ;;  %v889_v45 = vshll.u32 %v2991_v32, 16  ;;  %v973_v49 = vrot.slane %v2991_v32, 1  ;;  %v887_v58 = vshrl.u32 %v2991_v32, 16 }
  0x2c   : > { %738 = vst [vmem:[#allocation1 + $0x1] ss:$9 sm:$0xff] %v521_v28  ;;  %v584_v28 = vrot.slane %v582_v20, 3 }
  0x2d   : > { %740 = vst [vmem:[#allocation1 + $0x2] ss:$9 sm:$0xff] %v524_v29  ;;  %v891_v59 = vrot.slane %v889_v45, 1  ;;  %v475_v45 = vrot.slane %v427_v38, 3 }
  0x2e   : > { %742 = vst [vmem:[#allocation1 + $0x3] ss:$9 sm:$0xff] %v527_v30 }
  0x2f   : > { %744 = vst [vmem:[#allocation1 + $0x4] ss:$9 sm:$0xff] %v530_v33  ;;  %v892_v1 = vor.u32 %v891_v59, %v887_v58  ;;  %v587_v33 = vsel %vm488_vm0, %v426_v10, %v474_v14 }
  0x30   : > { %745 = vst [vmem:[#allocation1 + $0x5] ss:$9 sm:$0xff] %v533_v35  ;;  %v428_v35 = vld [vmem:[%s2970_s9 + $0x30] sm:$0xf] }
  0x31   : > { %747 = vst [vmem:[#allocation1 + $0x6] ss:$9 sm:$0xff] %v536_v36  ;;  %v476_v39 = vrot.slane %v428_v35, 3 }
  0x32   : > { %749 = vst [vmem:[#allocation1 + $0x7] ss:$9 sm:$0xff] %v539_v37 }
  0x33   : > { %v603_v48 = vsel %vm492_vm1, %v428_v35, %v476_v39  ;;  %v602_v58 = vsel %vm488_vm0, %v428_v35, %v476_v39 }
  0x34   : > { %v605_v59 = vrot.slane %v603_v48, 1  ;;  %v432_v48 = vld [vmem:[%s2970_s9 + $0x40] sm:$0xf] }
  0x39   : > { %v3005_v52 = vld [vmem:[#allocation1] sm:$0xff] }
  0x3a   : > { %v974_v57 = vrot.slane %v3005_v52, 1  ;;  %v893_v60 = vshll.u32 %v3005_v52, 16  ;;  %753 = vst [vmem:[#allocation1] ss:$9 sm:$0xff] %v542_v46  ;;  %v1096_v21 = vrot.slane %v3005_v52, 2  ;;  %v897_v23 = vshrl.u32 %v3005_v52, 16 }
  0x3b   : > { %754 = vst [vmem:[#allocation1 + $0x1] ss:$9 sm:$0xff] %v545_v50  ;;  %v594_v46 = vsel %vm500_vm3, %v426_v10, %v474_v14  ;;  %v477_v14 = vrot.slane %v429_v8, 3 }
  0x3c   : > { %v975_v62 = vsel %vm972_vm4, %v973_v49, %v974_v57  ;;  %755 = vst [vmem:[#allocation1 + $0x2] ss:$9 sm:$0xff] %v548_v53  ;;  %v895_v2 = vrot.slane %v893_v60, 1  ;;  %v1032_v36 = vrot.slane %v897_v23, 1  ;;  %v1033_v37 = vrot.slane %v893_v60, 2 }
  0x3d   : > { %992 = vrot.lane.b32.xlu0 %v975_v62, %s2877_s10  ;;  %757 = vst [vmem:[#allocation1 + $0x3] ss:$9 sm:$0xff] %v551_v54  ;;  %v606_v49 = vsel %vm496_vm2, %v428_v35, %v476_v39  ;;  %v593_v53 = vrot.slane %v591_v44, 2 }
  0x3e   : > { %759 = vst [vmem:[#allocation1 + $0x4] ss:$9 sm:$0xff] %v554_v55  ;;  %v896_v6 = vsel %vm886_vm5, %v892_v1, %v895_v2  ;;  %v899_v30 = vor.u32 %v897_v23, %v895_v2  ;;  %v1034_v50 = vor.u32 %v1033_v37, %v1032_v36  ;;  %v596_v55 = vrot.slane %v594_v46, 3 }
  0x3f   : > { %761 = vst [vmem:[#allocation1 + $0x5] ss:$9 sm:$0xff] %v557_v61  ;;  %v608_v60 = vrot.slane %v606_v49, 2  ;;  %v615_v23 = vsel %vm492_vm1, %v429_v8, %v477_v14 }
  0x40   : > { %762 = vst [vmem:[#allocation1 + $0x6] ss:$9 sm:$0xff] %v560_v63 }
  0x41   : > { %764 = vst [vmem:[#allocation1 + $0x7] ss:$9 sm:$0xff] %v563_v0  ;;  %v609_v0 = vsel %vm500_vm3, %v428_v35, %v476_v39 }
  0x42   : > { %v611_v9 = vrot.slane %v609_v0, 3 }
  0x45   : > { %954 = vrot.lane.b32.xlu0 %v896_v6, %s2878_s11 }
  0x48   : > { %v3027_v17 = vld [vmem:[#allocation1] sm:$0xff] }
  0x49   : > { %v976_v22 = vrot.slane %v3027_v17, 1  ;;  %v3035_v24 = vshll.u32 %v3027_v17, 16  ;;  %768 = vst [vmem:[#allocation1] ss:$9 sm:$0xff] %v566_v11  ;;  %v1097_v26 = vrot.slane %v3027_v17, 2  ;;  %v3048_v34 = vshrl.u32 %v3027_v17, 16 }
  0x4a   : > { %770 = vst [vmem:[#allocation1 + $0x1] ss:$9 sm:$0xff] %v569_v13  ;;  %v1217_v54 = vrot.slane %v3027_v17, 3 }
  0x4b   : > { %v977_v27 = vsel %vm972_vm4, %v974_v57, %v976_v22  ;;  %771 = vst [vmem:[#allocation1 + $0x2] ss:$9 sm:$0xff] %v572_v15  ;;  %v1098_v29 = vsel %vm1095_vm6, %v1096_v21, %v1097_v26  ;;  %v902_v31 = vrot.slane %v3035_v24, 1  ;;  %v1035_v41 = vrot.slane %v3048_v34, 1  ;;  %v431_v15 = vld [vmem:[%s2970_s9 + $0x3c] sm:$0xf] }
  0x4c   : > { %1013 = vrot.lane.b32.xlu1 %v977_v27, %s2879_s12  ;;  %772 = vst [vmem:[#allocation1 + $0x3] ss:$9 sm:$0xff] %v575_v18  ;;  %1115 = vrot.lane.b32.xlu2 %v1098_v29, %s2880_s13  ;;  %v1036_v42 = vrot.slane %v3035_v24, 2  ;;  %v599_v57 = vsel %vm488_vm0, %v427_v38, %v475_v45  ;;  %v1155_v2 = vrot.slane %v3048_v34, 2  ;;  %v1156_v3 = vrot.slane %v3035_v24, 3 }
  0x4d   : > { %774 = vst [vmem:[#allocation1 + $0x4] ss:$9 sm:$0xff] %v578_v19  ;;  %v903_v40 = vsel %vm886_vm5, %v899_v30, %v902_v31  ;;  %v430_v21 = vld [vmem:[%s2970_s9 + $0x38] sm:$0x1]  ;;  %v614_v30 = vsel %vm488_vm0, %v429_v8, %v477_v14 }
  0x4e   : > { %776 = vst [vmem:[#allocation1 + $0x5] ss:$9 sm:$0xff] %v581_v25  ;;  %v3066_v51 = vor.u32 %v1036_v42, %v1035_v41  ;;  %v1157_v12 = vor.u32 %v1156_v3, %v1155_v2  ;;  %v479_v25 = vrot.slane %v431_v15, 3  ;;  %v478_v29 = vrot.slane %v430_v21, 3 }
  0x4f   : > { %778 = vst [vmem:[#allocation1 + $0x6] ss:$9 sm:$0xff] %v584_v28 }
  0x50   : > { %779 = vst [vmem:[#allocation1 + $0x7] ss:$9 sm:$0xff] %v587_v33  ;;  %v1038_v1 = vsel %vm1031_vm8, %v1034_v50, %v3066_v51  ;;  %v617_v33 = vrot.slane %v615_v23, 1  ;;  %v629_v43 = vsel %vm488_vm0, %v431_v15, %v479_v25 }
  0x54   : > { %956 = vrot.lane.b32.xlu1 %v903_v40, %s2878_s11  ;;  %994 = vrot.lane.b32.xlu2 %v977_v27, %s2877_s10  ;;  %v906_v27 = vor.u32 %v3048_v34, %v902_v31  ;;  %v630_v31 = vsel %vm492_vm1, %v431_v15, %v479_v25  ;;  %v633_v34 = vsel %vm496_vm2, %v431_v15, %v479_v25 }
  0x55   : > { %v626_v40 = vsel %vm488_vm0, %v430_v21, %v478_v29  ;;  %v632_v44 = vrot.slane %v630_v31, 1  ;;  %v635_v45 = vrot.slane %v633_v34, 2 }
  0x57   : > { %v3070_v56 = vld [vmem:[#allocation1] sm:$0xff] }
  0x58   : > { %v1218_v61 = vrot.slane %v3070_v56, 3  ;;  %v3076_v62 = vshll.u32 %v3070_v56, 16  ;;  %v3079_v63 = vshrl.u32 %v3070_v56, 16  ;;  %783 = vst [vmem:[#allocation1] ss:$9 sm:$0xff] %v590_v47  ;;  %v1099_v4 = vrot.slane %v3070_v56, 2 }
  0x59   : > { %785 = vst [vmem:[#allocation1 + $0x1] ss:$9 sm:$0xff] %v593_v53  ;;  %v978_v11 = vrot.slane %v3070_v56, 1 }
  0x5a   : > { %v1219_v5 = vsel %vm1216_vm7, %v1217_v54, %v1218_v61  ;;  %v1158_v6 = vrot.slane %v3079_v63, 2  ;;  %v1159_v7 = vrot.slane %v3076_v62, 3  ;;  %787 = vst [vmem:[#allocation1 + $0x2] ss:$9 sm:$0xff] %v596_v55  ;;  %v1100_v10 = vsel %vm1095_vm6, %v1097_v26, %v1099_v4  ;;  %v434_v54 = vld [vmem:[%s2970_s9 + $0x48] sm:$0xf] }
  0x5b   : > { %1236 = vrot.lane.b32.xlu0 %v1219_v5, %s2881_s14  ;;  %788 = vst [vmem:[#allocation1 + $0x3] ss:$9 sm:$0xff] %v599_v57  ;;  %v979_v16 = vsel %vm972_vm4, %v976_v22, %v978_v11  ;;  %v1039_v19 = vrot.slane %v3079_v63, 1  ;;  %v1040_v20 = vrot.slane %v3076_v62, 2  ;;  %v618_v26 = vsel %vm496_vm2, %v429_v8, %v477_v14 }
  0x5c   : > { %1077 = vrot.lane.b32.xlu1 %v1038_v1, %s2882_s15  ;;  %789 = vst [vmem:[#allocation1 + $0x4] ss:$9 sm:$0xff] %v602_v58  ;;  %v3101_v13 = vor.u32 %v1159_v7, %v1158_v6  ;;  %1136 = vrot.lane.b32.xlu2 %v1100_v10, %s2883_s16  ;;  %v621_v22 = vsel %vm500_vm3, %v429_v8, %v477_v14  ;;  %v909_v28 = vrot.slane %v3076_v62, 1  ;;  %v620_v36 = vrot.slane %v618_v26, 2 }
  0x5d   : > { %791 = vst [vmem:[#allocation1 + $0x5] ss:$9 sm:$0xff] %v605_v59  ;;  %v1041_v35 = vor.u32 %v1040_v20, %v1039_v19  ;;  %v623_v24 = vrot.slane %v621_v22, 3  ;;  %v636_v55 = vsel %vm500_vm3, %v431_v15, %v479_v25  ;;  %v433_v59 = vld [vmem:[%s2970_s9 + $0x44] sm:$0x1] }
  0x5e   : > { %793 = vst [vmem:[#allocation1 + $0x6] ss:$9 sm:$0xff] %v608_v60  ;;  %v1161_v18 = vsel %vm4476_vm9, %v1157_v12, %v3101_v13  ;;  %v910_v39 = vsel %vm886_vm5, %v906_v27, %v909_v28  ;;  %v482_v60 = vrot.slane %v434_v54, 3  ;;  %v638_v0 = vrot.slane %v636_v55, 3  ;;  %v435_v25 = vld [vmem:[%s2970_s9 + $0x4c] sm:$0xf] }
  0x5f   : > { %795 = vst [vmem:[#allocation1 + $0x7] ss:$9 sm:$0xff] %v611_v9  ;;  %v1042_v42 = vsel %vm1031_vm8, %v3066_v51, %v1041_v35  ;;  %v480_v51 = vrot.slane %v432_v48, 3  ;;  %v481_v7 = vrot.slane %v433_v59, 3  ;;  %v483_v27 = vrot.slane %v435_v25, 3 }
  0x60   : > { %v656_v20 = vsel %vm488_vm0, %v434_v54, %v482_v60  ;;  %v660_v22 = vsel %vm496_vm2, %v434_v54, %v482_v60  ;;  %v663_v29 = vsel %vm500_vm3, %v434_v54, %v482_v60 }
  0x61   : > { %v642_v1 = vsel %vm492_vm1, %v432_v48, %v480_v51  ;;  %v645_v6 = vsel %vm496_vm2, %v432_v48, %v480_v51  ;;  %v641_v8 = vsel %vm488_vm0, %v432_v48, %v480_v51  ;;  %v665_v31 = vrot.slane %v663_v29, 3 }
  0x62   : > { %v644_v9 = vrot.slane %v642_v1, 1  ;;  %v647_v12 = vrot.slane %v645_v6, 2  ;;  %v672_v34 = vsel %vm496_vm2, %v435_v25, %v483_v27 }
  0x63   : > { %1015 = vrot.lane.b32.xlu0 %v979_v16, %s2879_s12 }
  0x64   : > { %1198 = vrot.lane.b32.xlu1 %v1161_v18, %s2884_s17  ;;  %996 = vrot.lane.b32.xlu2 %v979_v16, %s2877_s10  ;;  %v657_v16 = vsel %vm492_vm1, %v434_v54, %v482_v60  ;;  %v653_v18 = vsel %vm488_vm0, %v433_v59, %v481_v7 }
  0x65   : > { %v659_v21 = vrot.slane %v657_v16, 1  ;;  %v439_v16 = vld [vmem:[%s2970_s9 + $0x5c] sm:$0x1] }
  0x66   : > { %v3126_v37 = vld [vmem:[#allocation1] sm:$0xff] }
  0x67   : > { %v3131_v38 = vshll.u32 %v3126_v37, 16  ;;  %798 = vst [vmem:[#allocation1] ss:$9 sm:$0xff] %v614_v30  ;;  %v3138_v41 = vshrl.u32 %v3126_v37, 16  ;;  %v1101_v49 = vrot.slane %v3126_v37, 2  ;;  %v980_v50 = vrot.slane %v3126_v37, 1 }
  0x68   : > { %800 = vst [vmem:[#allocation1 + $0x1] ss:$9 sm:$0xff] %v617_v33  ;;  %v436_v30 = vld [vmem:[%s2970_s9 + $0x50] sm:$0x1] }
  0x69   : > { %802 = vst [vmem:[#allocation1 + $0x2] ss:$9 sm:$0xff] %v620_v36  ;;  %v1043_v46 = vrot.slane %v3138_v41, 1  ;;  %v1044_v47 = vrot.slane %v3131_v38, 2  ;;  %v1102_v57 = vsel %vm1095_vm6, %v1099_v4, %v1101_v49  ;;  %v981_v58 = vsel %vm972_vm4, %v978_v11, %v980_v50 }
  0x6a   : > { %804 = vst [vmem:[#allocation1 + $0x3] ss:$9 sm:$0xff] %v623_v24  ;;  %v1162_v3 = vrot.slane %v3138_v41, 2  ;;  %v1163_v5 = vrot.slane %v3131_v38, 3  ;;  %v648_v4 = vsel %vm500_vm3, %v432_v48, %v480_v51  ;;  %v916_v26 = vrot.slane %v3131_v38, 1 }
  0x6b   : > { %958 = vrot.lane.b32.xlu0 %v910_v39, %s2878_s11  ;;  %805 = vst [vmem:[#allocation1 + $0x4] ss:$9 sm:$0xff] %v626_v40  ;;  %v3151_v53 = vor.u32 %v1044_v47, %v1043_v46  ;;  %v650_v15 = vrot.slane %v648_v4, 3  ;;  %v437_v24 = vld [vmem:[%s2970_s9 + $0x54] sm:$0xf]  ;;  %v484_v40 = vrot.slane %v436_v30, 3  ;;  %v668_v46 = vsel %vm488_vm0, %v435_v25, %v483_v27 }
  0x6c   : > { %1079 = vrot.lane.b32.xlu1 %v1042_v42, %s2882_s15  ;;  %806 = vst [vmem:[#allocation1 + $0x5] ss:$9 sm:$0xff] %v629_v43  ;;  %1117 = vrot.lane.b32.xlu2 %v1100_v10, %s2880_s13  ;;  %v1220_v10 = vrot.slane %v3126_v37, 3  ;;  %v3178_v14 = vor.u32 %v1163_v5, %v1162_v3  ;;  %v675_v42 = vsel %vm500_vm3, %v435_v25, %v483_v27  ;;  %v674_v51 = vrot.slane %v672_v34, 2  ;;  %v438_v3 = vld [vmem:[%s2970_s9 + $0x58] sm:$0xf]  ;;  %s3317_s9 = scalar_lea.vmem %s4471_s1, %s2723_s6 }
  0x6d   : > { %808 = vst [vmem:[#allocation1 + $0x6] ss:$9 sm:$0xff] %v632_v44  ;;  %v1046_v2 = vsel %vm1031_vm8, %v1041_v35, %v3151_v53  ;;  %v677_v54 = vrot.slane %v675_v42, 3  ;;  %v680_v60 = vsel %vm488_vm0, %v436_v30, %v484_v40  ;;  %v486_v4 = vrot.slane %v438_v3, 3  ;;  %s2725_s6 = sshll.u32 %s392_s30, 2 }
  0x6e   : > { %810 = vst [vmem:[#allocation1 + $0x7] ss:$9 sm:$0xff] %v635_v45  ;;  %v1221_v19 = vsel %vm1216_vm7, %v1218_v61, %v1220_v10  ;;  %v1165_v23 = vsel %vm4476_vm9, %v3101_v13, %v3178_v14  ;;  %v913_v61 = vor.u32 %v3079_v63, %v909_v28  ;;  %v662_v63 = vrot.slane %v660_v22, 2  ;;  %s3470_s7 = scalar_lea.vmem %s4472_s2, %s2725_s6 }
  0x6f   : > { %v669_v28 = vsel %vm492_vm1, %v435_v25, %v483_v27  ;;  %v487_v27 = vrot.slane %v439_v16, 3  ;;  %v702_v22 = vsel %vm500_vm3, %v438_v3, %v486_v4  ;;  %v695_v30 = vsel %vm488_vm0, %v438_v3, %v486_v4 }
  0x70   : > { %v917_v62 = vsel %vm886_vm5, %v913_v61, %v916_v26  ;;  %v671_v47 = vrot.slane %v669_v28, 1 }
  0x73   : > { %1119 = vrot.lane.b32.xlu0 %v1102_v57, %s2880_s13 }
  0x74   : > { %1017 = vrot.lane.b32.xlu1 %v981_v58, %s2879_s12  ;;  %1081 = vrot.lane.b32.xlu2 %v1046_v2, %s2882_s15 }
  0x75   : > { %v3175_v11 = vld [vmem:[#allocation1] sm:$0xff] }
  0x76   : > { %814 = vst [vmem:[#allocation1] ss:$9 sm:$0xff] %v638_v0  ;;  %v982_v13 = vrot.slane %v3175_v11, 1  ;;  %v3205_v33 = vshll.u32 %v3175_v11, 16  ;;  %v3209_v35 = vshrl.u32 %v3175_v11, 16  ;;  %v1222_v39 = vrot.slane %v3175_v11, 3 }
  0x77   : > { %815 = vst [vmem:[#allocation1 + $0x1] ss:$9 sm:$0xff] %v641_v8  ;;  %v1103_v48 = vrot.slane %v3175_v11, 2 }
  0x78   : > { %817 = vst [vmem:[#allocation1 + $0x2] ss:$9 sm:$0xff] %v644_v9  ;;  %v3214_v36 = vsel %vm972_vm4, %v980_v50, %v982_v13  ;;  %v1166_v44 = vrot.slane %v3209_v35, 2  ;;  %v1167_v45 = vrot.slane %v3205_v33, 3  ;;  %v485_v50 = vrot.slane %v437_v24, 3 }
  0x79   : > { %819 = vst [vmem:[#allocation1 + $0x3] ss:$9 sm:$0xff] %v647_v12  ;;  %v1223_v55 = vsel %vm1216_vm7, %v1220_v10, %v1222_v39  ;;  %v1104_v0 = vsel %vm1095_vm6, %v1101_v49, %v1103_v48 }
  0x7a   : > { %821 = vst [vmem:[#allocation1 + $0x4] ss:$9 sm:$0xff] %v650_v15  ;;  %v1168_v59 = vor.u32 %v1167_v45, %v1166_v44  ;;  %v683_v1 = vsel %vm488_vm0, %v437_v24, %v485_v50  ;;  %v684_v7 = vsel %vm492_vm1, %v437_v24, %v485_v50  ;;  %v687_v8 = vsel %vm496_vm2, %v437_v24, %v485_v50 }
  0x7b   : > { %1138 = vrot.lane.b32.xlu0 %v1102_v57, %s2883_s16  ;;  %822 = vst [vmem:[#allocation1 + $0x5] ss:$9 sm:$0xff] %v653_v18  ;;  %v1047_v57 = vrot.slane %v3209_v35, 1  ;;  %v690_v10 = vsel %vm500_vm3, %v437_v24, %v485_v50  ;;  %v686_v18 = vrot.slane %v684_v7, 1  ;;  %v707_v44 = vsel %vm488_vm0, %v439_v16, %v487_v27  ;;  %v3324_v50 = vld [vmem:[%s3317_s9] sm:$0xff] }
  0x7c   : > { %1238 = vrot.lane.b32.xlu1 %v1221_v19, %s2881_s14  ;;  %823 = vst [vmem:[#allocation1 + $0x6] ss:$9 sm:$0xff] %v656_v20  ;;  %1200 = vrot.lane.b32.xlu2 %v1165_v23, %s2884_s17  ;;  %v1169_v2 = vsel %vm4476_vm9, %v3178_v14, %v1168_v59  ;;  %v689_v19 = vrot.slane %v687_v8, 2  ;;  %v696_v20 = vsel %vm492_vm1, %v438_v3, %v486_v4  ;;  %vm1368_vm1 = vcmask 171008  }
  0x7d   : > { %825 = vst [vmem:[#allocation1 + $0x7] ss:$9 sm:$0xff] %v659_v21  ;;  %v692_v21 = vrot.slane %v690_v10, 3  ;;  %v699_v23 = vsel %vm496_vm2, %v438_v3, %v486_v4  ;;  %vm1387_vm2 = vcmask 195584   ;;  %vm1421_vm3 = vcmask 220160  }
  0x7e   : > { %v701_v24 = vrot.slane %v699_v23, 2 }
  0x83   : > { %998 = vrot.lane.b32.xlu0 %v981_v58, %s2877_s10  ;;  %v1048_v58 = vrot.slane %v3205_v33, 2 }
  0x84   : > { %960 = vrot.lane.b32.xlu1 %v917_v62, %s2878_s11  ;;  %v3222_v43 = vld [vmem:[#allocation1] sm:$0xff]  ;;  %1019 = vrot.lane.b32.xlu2 %v3214_v36, %s2879_s12  ;;  %v698_v62 = vrot.slane %v696_v20, 1 }
  0x85   : > { %829 = vst [vmem:[#allocation1] ss:$9 sm:$0xff] %v662_v63  ;;  %v3249_v5 = vor.u32 %v1048_v58, %v1047_v57  ;;  %v3252_v49 = vshll.u32 %v3222_v43, 16  ;;  %v3255_v6 = vshrl.u32 %v3222_v43, 16  ;;  %v1105_v9 = vrot.slane %v3222_v43, 2 }
  0x86   : > { %831 = vst [vmem:[#allocation1 + $0x1] ss:$9 sm:$0xff] %v665_v31  ;;  %v1224_v28 = vrot.slane %v3222_v43, 3  ;;  %v704_v31 = vrot.slane %v702_v22, 3 }
  0x87   : > { %832 = vst [vmem:[#allocation1 + $0x2] ss:$9 sm:$0xff] %v668_v46  ;;  %v1050_v12 = vsel %vm1031_vm8, %v3151_v53, %v3249_v5  ;;  %v1170_v14 = vrot.slane %v3255_v6, 2  ;;  %v1171_v15 = vrot.slane %v3252_v49, 3  ;;  %v3276_v25 = vsel %vm1095_vm6, %v1103_v48, %v1105_v9 }
  0x88   : > { %834 = vst [vmem:[#allocation1 + $0x3] ss:$9 sm:$0xff] %v671_v47  ;;  %v930_v53 = vrot.slane %v3252_v49, 1  ;;  %v1225_v45 = vsel %vm1216_vm7, %v1222_v39, %v1224_v28  ;;  %v984_v47 = vrot.slane %v3222_v43, 1 }
  0x89   : > { %836 = vst [vmem:[#allocation1 + $0x4] ss:$9 sm:$0xff] %v674_v51  ;;  %v3285_v29 = vor.u32 %v1171_v15, %v1170_v14 }
  0x8a   : > { %838 = vst [vmem:[#allocation1 + $0x5] ss:$9 sm:$0xff] %v677_v54  ;;  %v934_v34 = vor.u32 %v3255_v6, %v930_v53 }
  0x8b   : > { %1240 = vrot.lane.b32.xlu0 %v1223_v55, %s2881_s14  ;;  %839 = vst [vmem:[#allocation1 + $0x6] ss:$9 sm:$0xff] %v680_v60  ;;  %v1173_v42 = vsel %vm4476_vm9, %v1168_v59, %v3285_v29  ;;  %v3339_v59 = vshll.u32 %v3324_v50, 16  ;;  %v1063_v60 = vshrl.u32 %v3324_v50, 16 }
  0x8c   : > { %1140 = vrot.lane.b32.xlu1 %v1104_v0, %s2883_s16  ;;  %840 = vst [vmem:[#allocation1 + $0x7] ss:$9 sm:$0xff] %v683_v1  ;;  %1202 = vrot.lane.b32.xlu2 %v1169_v2, %s2884_s17 }
  0x8d   : > { %v1182_v14 = vrot.slane %v1063_v60, 2  ;;  %v1183_v15 = vrot.slane %v3339_v59, 3 }
  0x93   : > { %1083 = vrot.lane.b32.xlu0 %v1050_v12, %s2882_s15  ;;  %v3281_v61 = vld [vmem:[#allocation1] sm:$0xff]  ;;  %v1111_v12 = vrot.slane %v3324_v50, 2 }
  0x94   : > { %1121 = vrot.lane.b32.xlu1 %v1104_v0, %s2880_s13  ;;  %844 = vst [vmem:[#allocation1] ss:$9 sm:$0xff] %v686_v18  ;;  %v3289_v63 = vshll.u32 %v3281_v61, 16  ;;  %1142 = vrot.lane.b32.xlu2 %v3276_v25, %s2883_s16  ;;  %v986_v48 = vrot.slane %v3281_v61, 1  ;;  %v3321_v39 = vshrl.u32 %v3281_v61, 16  ;;  %v1107_v0 = vrot.slane %v3281_v61, 2 }
  0x95   : > { %846 = vst [vmem:[#allocation1 + $0x1] ss:$9 sm:$0xff] %v689_v19 }
  0x96   : > { %848 = vst [vmem:[#allocation1 + $0x2] ss:$9 sm:$0xff] %v692_v21  ;;  %v937_v40 = vrot.slane %v3289_v63, 1  ;;  %v3329_v51 = vsel %vm972_vm4, %v984_v47, %v986_v48  ;;  %v1055_v55 = vrot.slane %v3321_v39, 1  ;;  %v1056_v57 = vrot.slane %v3289_v63, 2 }
  0x97   : > { %849 = vst [vmem:[#allocation1 + $0x3] ss:$9 sm:$0xff] %v695_v30  ;;  %v3389_v30 = vor.u32 %v1183_v15, %v1182_v14 }
  0x98   : > { %851 = vst [vmem:[#allocation1 + $0x4] ss:$9 sm:$0xff] %v698_v62  ;;  %v938_v46 = vsel %vm886_vm5, %v934_v34, %v937_v40  ;;  %v3357_v7 = vor.u32 %v1056_v57, %v1055_v55  ;;  %v920_v62 = vor.u32 %v3138_v41, %v916_v26  ;;  %v1230_v26 = vrot.slane %v3324_v50, 3 }
  0x99   : > { %853 = vst [vmem:[#allocation1 + $0x5] ss:$9 sm:$0xff] %v701_v24  ;;  %v923_v24 = vrot.slane %v3205_v33, 1  ;;  %v2745_v33 = vld [vmem:[%s4473_s3 + $0x8] sm:$0xf] }
  0x9a   : > { %855 = vst [vmem:[#allocation1 + $0x6] ss:$9 sm:$0xff] %v704_v31 }
  0x9b   : > { %1204 = vrot.lane.b32.xlu0 %v1173_v42, %s2884_s17  ;;  %856 = vst [vmem:[#allocation1 + $0x7] ss:$9 sm:$0xff] %v707_v44  ;;  %v924_v42 = vsel %vm886_vm5, %v920_v62, %v923_v24  ;;  %v927_v41 = vor.u32 %v3209_v35, %v923_v24  ;;  %v2773_v44 = vld [vmem:[%s4473_s3 + $0x8] sm:$0x30] }
  0x9c   : > { %1242 = vrot.lane.b32.xlu1 %v1225_v45, %s2881_s14  ;;  %966 = vrot.lane.b32.xlu2 %v938_v46, %s2878_s11  ;;  %v2746_v45 = vor.u32 %v2773_v44, %v2745_v33  ;;  %v2885_v46 = vmov 65535  }
  0xa2   : > { %v3331_v54 = vld [vmem:[#allocation1] sm:$0xff] }
  0xa3   : > { %1004 = vrot.lane.b32.xlu0 %v3329_v51, %s2877_s10  ;;  %v988_v58 = vrot.slane %v3331_v54, 1  ;;  %v1109_v1 = vrot.slane %v3331_v54, 2  ;;  %v3345_v2 = vshll.u32 %v3331_v54, 16  ;;  %v3348_v3 = vshrl.u32 %v3331_v54, 16 }
  0xa4   : > { %v1228_v38 = vrot.slane %v3331_v54, 3 }
  0xa5   : > { %v3353_v4 = vsel %vm972_vm4, %v986_v48, %v988_v58  ;;  %v1059_v8 = vrot.slane %v3348_v3, 1  ;;  %v1060_v10 = vrot.slane %v3345_v2, 2  ;;  %v3370_v18 = vsel %vm1095_vm6, %v1107_v0, %v1109_v1 }
  0xa6   : > { %1025 = vrot.lane.b32.xlu1 %v3353_v4, %s2879_s12  ;;  %v3365_v16 = vpop.permute.xlu2 %1115  ;;  %v1178_v19 = vrot.slane %v3348_v3, 2  ;;  %v1179_v20 = vrot.slane %v3345_v2, 3  ;;  %v3384_v27 = vsel %vm1095_vm6, %v1109_v1, %v1111_v12  ;;  %v1442_v48 = vsel %vm1216_vm7, 4294967295, %v2885_v46 }
  0xa7   : > { %v3374_v21 = vor.u32 %v1060_v10, %v1059_v8  ;;  %v1443_v55 = vsel %vm1095_vm6, %v1442_v48, 0  ;;  %v931_v1 = vsel %vm886_vm5, %v927_v41, %v930_v53  ;;  %v1051_v8 = vrot.slane %v3255_v6, 1  ;;  %v2772_v6 = vld [vmem:[%s4473_s3] sm:$0xff]  ;;  %v710_v41 = vld [vmem:[%s3317_s9 + $0x8] sm:$0x1] }
  0xa8   : > { %v3387_v22 = vor.u32 %v1179_v20, %v1178_v19  ;;  %v1445_v57 = vand.u32 %v2746_v45, %v1443_v55  ;;  %v1052_v10 = vrot.slane %v3252_v49, 2  ;;  %v985_v49 = vsel %vm972_vm4, %v982_v13, %v984_v47 }
  0xa9   : > { %v1062_v23 = vsel %vm1031_vm8, %v3357_v7, %v3374_v21  ;;  %v990_v20 = vrot.slane %v3324_v50, 1  ;;  %v864_v33 = vunpack.c.l.b16 %v710_v41 }
  0xaa   : > { %1089 = vrot.lane.b32.xlu2 %v1062_v23, %s2882_s15  ;;  %v1185_v34 = vsel %vm4476_vm9, %v3387_v22, %v3389_v30  ;;  %1453 = vmatpush.bf16.msra.mxu0 %v1445_v57  ;;  %v1053_v53 = vor.u32 %v1052_v10, %v1051_v8 }
  0xab   : > { %1127 = vrot.lane.b32.xlu0 %v3370_v18, %s2880_s13  ;;  %2774 = vmatpush.bf16.msra.mxu1 %v1445_v57  ;;  %v866_v46 = vpack.c.b16 %v864_v33, %v864_v33 }
  0xac   : > { %2776 = vmatpush.bf16.msra.mxu3 %v1445_v57  ;;  %2775 = vmatpush.bf16.msra.mxu2 %v1445_v57  ;;  %v1054_v13 = vsel %vm1031_vm8, %v3249_v5, %v1053_v53  ;;  %v3461_v5 = vsel %vm972_vm4, %v988_v58, %v990_v20  ;;  %v1058_v24 = vsel %vm1031_vm8, %v1053_v53, %v3357_v7  ;;  %v3484_v7 = vld [vmem:[%s3470_s7] sm:$0xff] }
  0xad   : > { %v1108_v58 = vsel %vm1095_vm6, %v1105_v9, %v1107_v0  ;;  %v876_v48 = vrot.slane %v3484_v7, 7 }
  0xae   : > { %1148 = vrot.lane.b32.xlu1 %v3384_v27, %s2883_s16  ;;  %v3397_v31 = vpop.permute.xlu2 %994  ;;  %1454 = vmatpush.bf16.msra.mxu0 %v2772_v6 }
  0xaf   : > { %v993_v14 = vpop.permute.xlu0 %992  ;;  %2777 = vmatpush.bf16.msra.mxu1 %v2772_v6 }
  0xb0   : > { %2779 = vmatpush.bf16.msra.mxu3 %v2772_v6  ;;  %2778 = vmatpush.bf16.msra.mxu2 %v2772_v6 }
  0xb2   : > { %962 = vrot.lane.b32.xlu2 %v924_v42, %s2878_s11  ;;  %v1175_v42 = vrot.slane %v3289_v63, 3 }
  0xb3   : > { %1210 = vrot.lane.b32.xlu0 %v1185_v34, %s2884_s17  ;;  %v1174_v34 = vrot.slane %v3321_v39, 2 }
  0xb6   : > { %1000 = vrot.lane.b32.xlu1 %v3214_v36, %s2877_s10  ;;  %v3419_v35 = vpop.permute.xlu2 %1136  ;;  %v1231_v36 = vsel %vm1216_vm7, %v1228_v38, %v1230_v26 }
  0xb7   : > { %v955_v47 = vpop.permute.xlu0 %954 }
  0xba   : > { %1248 = vrot.lane.b32.xlu2 %v1231_v36, %s2881_s14 }
  0xbb   : > { %964 = vrot.lane.b32.xlu0 %v931_v1, %s2878_s11 }
  0xbe   : > { %1021 = vrot.lane.b32.xlu1 %v985_v49, %s2879_s12  ;;  %v1014_v15 = vpop.permute.xlu1 %1013  ;;  %v3442_v19 = vpop.permute.xlu2 %996 }
  0xc2   : > { %1002 = vrot.lane.b32.xlu2 %v985_v49, %s2877_s10 }
  0xc3   : > { %1085 = vrot.lane.b32.xlu0 %v1054_v13, %s2882_s15 }
  0xc6   : > { %1023 = vrot.lane.b32.xlu1 %v3329_v51, %s2879_s12  ;;  %v3452_v23 = vpop.permute.xlu1 %956  ;;  %v3454_v62 = vpop.permute.xlu2 %1117  ;;  %v1256_v51 = vsel %vm1254_vm10, %v2991_v32, %v955_v47  ;;  %v1176_v32 = vor.u32 %v1175_v42, %v1174_v34  ;;  %v1065_v47 = vrot.slane %v1063_v60, 1  ;;  %v944_v34 = vrot.slane %v3345_v2, 1  ;;  %v713_v60 = vld [vmem:[%s3470_s7 + $0x8] sm:$0x1] }
  0xc7   : > { %v1275_v44 = vsel %vm1273_vm11, %v1256_v51, %v993_v14  ;;  %v1258_v2 = vsel %vm1254_vm10, %v3005_v52, %v3452_v23 }
  0xc8   : > { %v1294_v9 = vsel %vm1292_vm12, %v1275_v44, %v1014_v15  ;;  %v1177_v57 = vsel %vm4476_vm9, %v3285_v29, %v1176_v32 }
  0xca   : > { %1123 = vrot.lane.b32.xlu2 %v3276_v25, %s2880_s13  ;;  %v3495_v25 = vsel %vm488_vm0, %v866_v46, %v876_v48 }
  0xcb   : > { %1087 = vrot.lane.b32.xlu0 %v1058_v24, %s2882_s15  ;;  %v1113_v8 = vrot.slane %v3495_v25, 2 }
  0xcd   : > { %v1237_v45 = vpop.permute.xlu0 %1236  ;;  %v3506_v10 = vsel %vm1095_vm6, %v1111_v12, %v1113_v8  ;;  %v1226_v12 = vrot.slane %v3281_v61, 3 }
  0xce   : > { %1144 = vrot.lane.b32.xlu1 %v1108_v58, %s2883_s16  ;;  %v1078_v55 = vpop.permute.xlu1 %1077  ;;  %v3490_v0 = vpop.permute.xlu2 %1081 }
  0xcf   : > { %v1313_v1 = vsel %vm1311_vm13, %v1294_v9, %v1078_v55  ;;  %v1227_v13 = vsel %vm1216_vm7, %v1224_v28, %v1226_v12  ;;  %v1066_v28 = vrot.slane %v3339_v59, 2  ;;  %v1232_v9 = vrot.slane %v3495_v25, 3 }
  0xd0   : > { %v1332_v36 = vsel %vm1330_vm14, %v1313_v1, %v3365_v16  ;;  %v1181_v16 = vsel %vm4476_vm9, %v1176_v32, %v3387_v22  ;;  %v941_v22 = vor.u32 %v3321_v39, %v937_v40  ;;  %v1069_v40 = vshrl.u32 %v3495_v25, 16 }
  0xd1   : > { %v1351_v14 = vsel %vm1349_vm15, %v1332_v36, %v3419_v35  ;;  %v1072_v39 = vshll.u32 %v3495_v25, 16  ;;  %v1277_v32 = vsel %vm1273_vm11, %v1258_v2, %v3397_v31 }
  0xd2   : > { %1125 = vrot.lane.b32.xlu2 %v1108_v58, %s2880_s13  ;;  %v945_v51 = vsel %vm886_vm5, %v941_v22, %v944_v34 }
  0xd3   : > { %1206 = vrot.lane.b32.xlu0 %v1177_v57, %s2884_s17  ;;  %v1187_v33 = vrot.slane %v1072_v39, 3 }
  0xd5   : > { %v1016_v29 = vpop.permute.xlu0 %1015 }
  0xd6   : > { %1146 = vrot.lane.b32.xlu1 %v3370_v18, %s2883_s16  ;;  %v1199_v49 = vpop.permute.xlu1 %1198  ;;  %v1201_v53 = vpop.permute.xlu2 %1200  ;;  %v1229_v18 = vsel %vm1216_vm7, %v1226_v12, %v1228_v38  ;;  %v1067_v38 = vor.u32 %v1066_v28, %v1065_v47  ;;  %v1296_v46 = vsel %vm1292_vm12, %v1277_v32, %v1016_v29  ;;  %v952_v29 = vrot.slane %v3339_v59, 1 }
  0xd7   : > { %v1370_v6 = vsel %vm1368_vm1, %v1351_v14, %v1199_v49  ;;  %v1074_v59 = vrot.slane %v1072_v39, 2 }
  0xd8   : > { %v1389_v15 = vsel %vm1387_vm2, %v1370_v6, %v1237_v45  ;;  %v1068_v63 = vsel %vm1031_vm8, %v3374_v21, %v1067_v38  ;;  %v1186_v21 = vrot.slane %v1069_v40, 2 }
  0xd9   : > { %2747 = vmatmul.msk.bf16.vlgmr.msra.gmra.mxu0 %vm1421_vm3, %v1389_v15 }
  0xda   : > { %1244 = vrot.lane.b32.xlu2 %v1227_v13, %s2881_s14  ;;  %v1188_v45 = vor.u32 %v1187_v33, %v1186_v21 }
  0xdb   : > { %1208 = vrot.lane.b32.xlu0 %v1181_v16, %s2884_s17  ;;  %v1011_v16 = vrot.slane %v3495_v25, 1 }
  0xdc   : > { %v1189_v52 = vsel %vm4476_vm9, %v3389_v30, %v1188_v45  ;;  %v948_v30 = vor.u32 %v3348_v3, %v944_v34  ;;  %v1071_v3 = vrot.slane %v1069_v40, 1  ;;  %vm882_vm9 = vcmask 1041408  }
  0xdd   : > { %v959_v35 = vpop.permute.xlu0 %958 }
  0xde   : > { %1246 = vrot.lane.b32.xlu1 %v1229_v18, %s2881_s14  ;;  %v1080_v24 = vpop.permute.xlu1 %1079  ;;  %v3538_v42 = vpop.permute.xlu2 %1019  ;;  %v953_v6 = vsel %vm886_vm5, %v948_v30, %v952_v29  ;;  %v1075_v47 = vor.u32 %v1074_v59, %v1071_v3  ;;  %vm2028_vm5 = vcmask 1047556  }
  0xdf   : > { %v1315_v55 = vsel %vm1311_vm13, %v1296_v46, %v1080_v24  ;;  %v1012_v24 = vsel %vm972_vm4, %v990_v20, %v1011_v16  ;;  %vm4485_vm4 = vsmask.f32 5376 }
  0xe0   : > { %v1334_v57 = vsel %vm1330_vm14, %v1315_v55, %v3454_v62  ;;  %v1233_v62 = vsel %vm1216_vm7, %v1230_v26, %v1232_v9  ;;  %v1260_v26 = vsel %vm1254_vm10, %v3027_v17, %v959_v35  ;;  %v1076_v35 = vsel %vm1031_vm8, %v1067_v38, %v1075_v47 }
  0xe1   : > { %v1279_v22 = vsel %vm1273_vm11, %v1260_v26, %v3442_v19  ;;  %vm2519_vm8 = vcmask 785408  }
  0xe2   : > { %968 = vrot.lane.b32.xlu2 %v945_v51, %s2878_s11 }
  0xe3   : > { %1006 = vrot.lane.b32.xlu0 %v3353_v4, %s2877_s10  ;;  %v872_v4 = vunpack.c.l.b16 %v713_v60 }
  0xe5   : > { %v1120_v41 = vpop.permute.xlu0 %1119  ;;  %v874_v23 = vpack.c.b16 %v872_v4, %v872_v4 }
  0xe6   : > { %1027 = vrot.lane.b32.xlu1 %v3461_v5, %s2879_s12  ;;  %v1018_v58 = vpop.permute.xlu1 %1017  ;;  %v1203_v44 = vpop.permute.xlu2 %1202 }
  0xe7   : > { %v877_v14 = vrot.slane %v874_v23, 7 }
  0xea   : > { %1091 = vrot.lane.b32.xlu2 %v1068_v63, %s2882_s15 }
  0xeb   : > { %1129 = vrot.lane.b32.xlu0 %v3384_v27, %s2880_s13 }
  0xed   : > { %v1139_v31 = vpop.permute.xlu0 %1138 }
  0xee   : > { %v1353_v1 = vsel %vm1349_vm15, %v1334_v57, %v1139_v31  ;;  %1150 = vrot.lane.b32.xlu1 %v3506_v10, %s2883_s16  ;;  %v1239_v36 = vpop.permute.xlu1 %1238  ;;  %v1143_v12 = vpop.permute.xlu2 %1142 }
  0xef   : > { %v1372_v27 = vsel %vm1368_vm1, %v1353_v1, %v1201_v53  ;;  %v878_v53 = vsel %vm488_vm0, %v876_v48, %v877_v14  ;;  %v1298_v48 = vsel %vm1292_vm12, %v1279_v22, %v1018_v58 }
  0xf0   : > { %v1391_v49 = vsel %vm1387_vm2, %v1372_v27, %v1239_v36  ;;  %v885_v18 = vsel %vm882_vm9, %v878_v53, 0  ;;  %v1317_v17 = vsel %vm1311_vm13, %v1298_v48, %v3490_v0 }
  0xf1   : > { %2748 = vmatmul.msk.bf16.gmra.mxu0 %vm1421_vm3, %v1391_v49  ;;  %v1190_v7 = vshrl.u32 %v885_v18, 16  ;;  %v1193_v28 = vshll.u32 %v885_v18, 16  ;;  %v1134_v19 = vrot.slane %v885_v18, 2  ;;  %v1336_v50 = vsel %vm1330_vm14, %v1317_v17, %v1120_v41 }
  0xf2   : > { %1212 = vrot.lane.b32.xlu2 %v1189_v52, %s2884_s17  ;;  %v1234_v58 = vrot.slane %v885_v18, 3 }
  0xf3   : > { %1250 = vrot.lane.b32.xlu0 %v1233_v62, %s2881_s14  ;;  %v1192_v34 = vrot.slane %v1190_v7, 2  ;;  %v1195_v51 = vrot.slane %v1193_v28, 3  ;;  %v1135_v38 = vsel %vm1095_vm6, %v1113_v8, %v1134_v19  ;;  %vm1718_vm6 = vcmask 261120  }
  0xf4   : > { %v1235_v4 = vsel %vm1216_vm7, %v1232_v9, %v1234_v58  ;;  %vm2025_vm7 = vcmask 254976  }
  0xf5   : > { %v999_v15 = vpop.permute.xlu0 %998  ;;  %v1196_v0 = vor.u32 %v1195_v51, %v1192_v34 }
  0xf6   : > { %970 = vrot.lane.b32.xlu1 %v953_v6, %s2878_s11  ;;  %v961_v13 = vpop.permute.xlu1 %960  ;;  %v967_v63 = vpop.permute.xlu2 %966  ;;  %s2729_s11 = sshll.u32 %s2863_s19, 1 }
  0xf7   : > { %v1197_v41 = vsel %vm4485_vm4, %v1188_v45, %v1196_v0  ;;  %v1268_v9 = vsel %vm1254_vm10, %v3222_v43, %v967_v63 }
  0xfa   : > { %1008 = vrot.lane.b32.xlu2 %v3461_v5, %s2877_s10  ;;  %v1262_v5 = vsel %vm1254_vm10, %v3070_v56, %v961_v13  ;;  %s2887_s10 = smov 32  }
  0xfb   : > { %1029 = vrot.lane.b32.xlu0 %v1012_v24, %s2879_s12  ;;  %v1281_v21 = vsel %vm1273_vm11, %v1262_v5, %v999_v15  ;;  %s408_s12 = sadd.s32 %s2859_s18, %s2729_s11  ;;  %s4587_s18 = smov (!%p400_p10, %s2859_s18), 1 }
  0xfc   : > { %v1300_v56 = vsel %vm1292_vm12, %v1281_v21, %v3538_v42  ;;  %p409_p9 = scmp.lt.s32.totalorder %s408_s12, 3  ;;  %s2726_s9 = sshll.u32 %s4587_s18, 2 }
  0xfd   : > { %v1241_v40 = vpop.permute.xlu0 %1240  ;;  %s404_s8 = sadd.s32 %s2727_s27, %s2726_s9 }
  0xfe   : > { %1093 = vrot.lane.b32.xlu1 %v1076_v35, %s2882_s15  ;;  %v1141_v20 = vpop.permute.xlu1 %1140  ;;  %s4585_s12 = smov (!%p409_p9, %s408_s12), 3  ;;  %s2728_s29 = sshll.u32 %s404_s8, 3 }
  0xff   : > { %v1355_v39 = vsel %vm1349_vm15, %v1336_v50, %v1141_v20  ;;  %s2730_s19 = sshll.u32 %s4585_s12, 1  ;;  %s4416_s30 = scalar_lea.vmem %s4474_s4, %s2728_s29 }
 0x100   : > { %v1374_v60 = vsel %vm1368_vm1, %v1355_v39, %v1203_v44 }
 0x101   : > { %v1393_v2 = vsel %vm1387_vm2, %v1374_v60, %v1241_v40 }
 0x102   : > { %2749 = vmatmul.msk.bf16.vlgmr.msra.gmra.mxu1 %vm1421_vm3, %v1393_v2  ;;  %1131 = vrot.lane.b32.xlu2 %v3506_v10, %s2880_s13  ;;  %s2888_s13 = smov 64  }
 0x103   : > { %1152 = vrot.lane.b32.xlu0 %v1135_v38, %s2883_s16 }
 0x104   : > { %v1090_v33 = vpop.permute.xlu2 %1089 }
 0x105   : > { %v1084_v8 = vpop.permute.xlu0 %1083 }
 0x106   : > { %1214 = vrot.lane.b32.xlu1 %v1197_v41, %s2884_s17  ;;  %v1122_v44 = vpop.permute.xlu1 %1121  ;;  %v1319_v32 = vsel %vm1311_vm13, %v1300_v56, %v1084_v8  ;;  %s412_s17 = scalar_lea.vmem %s4475_s5, %s2730_s19 }
 0x107   : > { %v1338_v45 = vsel %vm1330_vm14, %v1319_v32, %v1122_v44 }
 0x108   : > { %v1357_v10 = vsel %vm1349_vm15, %v1338_v45, %v1143_v12 }
 0x10a   : > { %1252 = vrot.lane.b32.xlu2 %v1235_v4, %s2881_s14  ;;  %s2889_s14 = smov 96  }
 0x10c   : > { %v963_v55 = vpop.permute.xlu2 %962 }
 0x10d   : > { %v1205_v46 = vpop.permute.xlu0 %1204  ;;  %v1264_v18 = vsel %vm1254_vm10, %v3126_v37, %v963_v55 }
 0x10e   : > { %v1243_v52 = vpop.permute.xlu1 %1242  ;;  %v1376_v23 = vsel %vm1368_vm1, %v1357_v10, %v1205_v46 }
 0x10f   : > { %v1395_v57 = vsel %vm1387_vm2, %v1376_v23, %v1243_v52 }
 0x112   : > { %2750 = vmatmul.msk.bf16.gmra.mxu1 %vm1421_vm3, %v1395_v57 }
 0x114   : > { %v1249_v42 = vpop.permute.xlu2 %1248 }
 0x115   : > { %v1005_v25 = vpop.permute.xlu0 %1004 }
 0x116   : > { %v1287_v1 = vsel %vm1273_vm11, %v1268_v9, %v1005_v25 }
 0x118   : > { %v1026_v31 = vpop.permute.xlu1 %1025 }
 0x119   : > { %v1306_v36 = vsel %vm1292_vm12, %v1287_v1, %v1026_v31 }
 0x11a   : > { %v1325_v29 = vsel %vm1311_vm13, %v1306_v36, %v1090_v33 }
 0x11c   : > { %v1003_v14 = vpop.permute.xlu2 %1002 }
 0x11d   : > { %v1128_v30 = vpop.permute.xlu0 %1127 }
 0x11e   : > { %v1344_v62 = vsel %vm1330_vm14, %v1325_v29, %v1128_v30 }
 0x120   : > { %v1149_v27 = vpop.permute.xlu1 %1148 }
 0x121   : > { %v1363_v49 = vsel %vm1349_vm15, %v1344_v62, %v1149_v27 }
 0x124   : > { %v1124_v59 = vpop.permute.xlu2 %1123 }
 0x125   : > { %v1211_v12 = vpop.permute.xlu0 %1210 }
 0x126   : > { %v1382_v6 = vsel %vm1368_vm1, %v1363_v49, %v1211_v12 }
 0x127   : > { %v1401_v3 = vsel %vm1387_vm2, %v1382_v6, %v1249_v42 }
 0x128   : > { %2753 = vmatmul.msk.bf16.vlgmr.msra.gmra.mxu3 %vm1421_vm3, %v1401_v3  ;;  %v1001_v43 = vpop.permute.xlu1 %1000 }
 0x129   : > { %v1283_v22 = vsel %vm1273_vm11, %v1264_v18, %v1001_v43 }
 0x12c   : > { %v1126_v15 = vpop.permute.xlu2 %1125 }
 0x12d   : > { %v965_v53 = vpop.permute.xlu0 %964 }
 0x12e   : > { %v1266_v17 = vsel %vm1254_vm10, %v3175_v11, %v965_v53 }
 0x12f   : > { %v1285_v51 = vsel %vm1273_vm11, %v1266_v17, %v1003_v14 }
 0x130   : > { %v1022_v26 = vpop.permute.xlu1 %1021 }
 0x131   : > { %v1302_v47 = vsel %vm1292_vm12, %v1283_v22, %v1022_v26 }
 0x134   : > { %v1245_v48 = vpop.permute.xlu2 %1244 }
 0x135   : > { %v1086_v16 = vpop.permute.xlu0 %1085 }
 0x136   : > { %v1321_v28 = vsel %vm1311_vm13, %v1302_v47, %v1086_v16 }
 0x137   : > { %v1340_v35 = vsel %vm1330_vm14, %v1321_v28, %v1124_v59 }
 0x138   : > { %v1024_v13 = vpop.permute.xlu1 %1023 }
 0x139   : > { %v1304_v37 = vsel %vm1292_vm12, %v1285_v51, %v1024_v13 }
 0x13c   : > { %v969_v50 = vpop.permute.xlu2 %968 }
 0x13d   : > { %v1088_v7 = vpop.permute.xlu0 %1087  ;;  %v1270_v21 = vsel %vm1254_vm10, %v3281_v61, %v969_v50 }
 0x13e   : > { %v1323_v39 = vsel %vm1311_vm13, %v1304_v37, %v1088_v7 }
 0x13f   : > { %v1342_v11 = vsel %vm1330_vm14, %v1323_v39, %v1126_v15 }
 0x140   : > { %v1145_v24 = vpop.permute.xlu1 %1144 }
 0x141   : > { %v1359_v34 = vsel %vm1349_vm15, %v1340_v35, %v1145_v24 }
 0x144   : > { %v1092_v41 = vpop.permute.xlu2 %1091 }
 0x145   : > { %v1207_v63 = vpop.permute.xlu0 %1206 }
 0x146   : > { %v1378_v19 = vsel %vm1368_vm1, %v1359_v34, %v1207_v63 }
 0x147   : > { %v1397_v40 = vsel %vm1387_vm2, %v1378_v19, %v1245_v48 }
 0x148   : > { %2751 = vmatmul.msk.bf16.gmra.mxu1 %vm1421_vm3, %v1397_v40  ;;  %v1147_v20 = vpop.permute.xlu1 %1146 }
 0x149   : > { %v1361_v0 = vsel %vm1349_vm15, %v1342_v11, %v1147_v20 }
 0x14c   : > { %v1213_v45 = vpop.permute.xlu2 %1212 }
 0x14d   : > { %v1209_v38 = vpop.permute.xlu0 %1208 }
 0x14e   : > { %v1380_v60 = vsel %vm1368_vm1, %v1361_v0, %v1209_v38 }
 0x150   : > { %v1247_v2 = vpop.permute.xlu1 %1246 }
 0x151   : > { %v1399_v5 = vsel %vm1387_vm2, %v1380_v60, %v1247_v2 }
 0x152   : > { %2752 = vmatmul.msk.bf16.vlgmr.msra.gmra.mxu2 %vm1421_vm3, %v1399_v5 }
 0x154   : > { %v1009_v36 = vpop.permute.xlu2 %1008 }
 0x155   : > { %v1007_v58 = vpop.permute.xlu0 %1006 }
 0x156   : > { %v3662_v8 = vpop.f32.mrf.mxu0  ;;  %v1289_v32 = vsel %vm1273_vm11, %v1270_v21, %v1007_v58 }
 0x157   : > { %v3665_v33 = vrot.slane %v3662_v8, 2  ;;  %v3668_v44 = vrot.slane %v3662_v8, 4  ;;  %v3671_v56 = vrot.slane %v3662_v8, 6  ;;  %1615 = vst [vmem:[#allocation1] ss:$4 sm:$0xff] %v3662_v8 }
 0x158   : > { %v1028_v4 = vpop.permute.xlu1 %1027 }
 0x159   : > { %1617 = vst [vmem:[#allocation1 + $0x1] ss:$4 sm:$0xff] %v3665_v33  ;;  %v1308_v61 = vsel %vm1292_vm12, %v1289_v32, %v1028_v4 }
 0x15a   : > { %1619 = vst [vmem:[#allocation1 + $0x2] ss:$4 sm:$0xff] %v3668_v44  ;;  %v1327_v10 = vsel %vm1311_vm13, %v1308_v61, %v1092_v41 }
 0x15b   : > { %1621 = vst [vmem:[#allocation1 + $0x3] ss:$4 sm:$0xff] %v3671_v56 }
 0x15c   : > { %v1132_v3 = vpop.permute.xlu2 %1131 }
 0x15d   : > { %v1130_v46 = vpop.permute.xlu0 %1129 }
 0x15e   : > { %v3680_v55 = vpop.f32.mrf.mxu0  ;;  %v1346_v25 = vsel %vm1330_vm14, %v1327_v10, %v1130_v46 }
 0x15f   : > { %v3683_v52 = vrot.slane %v3680_v55, 2  ;;  %v3686_v23 = vrot.slane %v3680_v55, 4  ;;  %v3689_v57 = vrot.slane %v3680_v55, 6  ;;  %1623 = vst [vmem:[#allocation1 + $0x20] ss:$4 sm:$0xff] %v3680_v55 }
 0x160   : > { %v1151_v42 = vpop.permute.xlu1 %1150 }
 0x161   : > { %1625 = vst [vmem:[#allocation1 + $0x21] ss:$4 sm:$0xff] %v3683_v52  ;;  %v1365_v9 = vsel %vm1349_vm15, %v1346_v25, %v1151_v42 }
 0x162   : > { %1627 = vst [vmem:[#allocation1 + $0x22] ss:$4 sm:$0xff] %v3686_v23  ;;  %v1384_v31 = vsel %vm1368_vm1, %v1365_v9, %v1213_v45  ;;  %v3709_v59 = vld.sshfl [vmem:[#allocation1] sm:$0xff pattern:$0x73625140] }
 0x163   : > { %1629 = vst [vmem:[#allocation1 + $0x23] ss:$4 sm:$0xff] %v3689_v57 }
 0x164   : > { %4486 = vst [vmem:[#allocation2_spill] sm:$0xff] %v3709_v59  ;;  %v1253_v63 = vpop.permute.xlu2 %1252 }
 0x165   : > { %v1251_v1 = vpop.permute.xlu0 %1250 }
 0x166   : > { %v1403_v30 = vsel %vm1387_vm2, %v1384_v31, %v1251_v1 }
 0x167   : > { %2754 = vmatmul.msk.bf16.gmra.mxu3 %vm1421_vm3, %v1403_v30 }
 0x168   : > { %v971_v29 = vpop.permute.xlu1 %970 }
 0x169   : > { %v1272_v27 = vsel %vm1254_vm10, %v3331_v54, %v971_v29 }
 0x16a   : > { %v1291_v43 = vsel %vm1273_vm11, %v1272_v27, %v1009_v36  ;;  %v3744_v51 = vld.sshfl [vmem:[#allocation1 + $0x20] sm:$0xff pattern:$0x73625140] }
 0x16d   : > { %v1030_v14 = vpop.permute.xlu0 %1029 }
 0x16e   : > { %v1461_v62 = vpop.f32.mrf.mxu0  ;;  %v1310_v15 = vsel %vm1292_vm12, %v1291_v43, %v1030_v14 }
 0x16f   : > { %v3702_v49 = vrot.slane %v1461_v62, 2  ;;  %v3704_v12 = vrot.slane %v1461_v62, 4  ;;  %v3706_v6 = vrot.slane %v1461_v62, 6 }
 0x170   : > { %v1094_v53 = vpop.permute.xlu1 %1093 }
 0x171   : > { %1632 = vst [vmem:[#allocation1] ss:$4 sm:$0xff] %v3702_v49  ;;  %v2027_v26 = vrot.slane %v3702_v49, 4  ;;  %v2060_v54 = vrot.slane %v3704_v12, 4  ;;  %v2092_v16 = vrot.slane %v3706_v6, 4  ;;  %v1329_v47 = vsel %vm1311_vm13, %v1310_v15, %v1094_v53 }
 0x172   : > { %1633 = vst [vmem:[#allocation1 + $0x1] ss:$4 sm:$0xff] %v3704_v12  ;;  %v1348_v28 = vsel %vm1330_vm14, %v1329_v47, %v1132_v3 }
 0x173   : > { %1634 = vst [vmem:[#allocation1 + $0x2] ss:$4 sm:$0xff] %v3706_v6  ;;  %v3720_v13 = vsel %vm2028_vm5, %v2027_v26, %v3662_v8  ;;  %v3724_v18 = vsel %vm2028_vm5, %v2060_v54, %v3665_v33  ;;  %v3728_v22 = vsel %vm2028_vm5, %v2092_v16, %v3668_v44 }
 0x174   : > { %4487 = vst [vmem:[#allocation3_spill] sm:$0xff] %v3720_v13 }
 0x175   : > { %4488 = vst [vmem:[#allocation4_spill] sm:$0xff] %v3724_v18  ;;  %v1153_v48 = vpop.permute.xlu0 %1152 }
 0x176   : > { %4489 = vst [vmem:[#allocation5_spill] sm:$0xff] %v3728_v22  ;;  %v3731_v7 = vpop.f32.mrf.mxu0  ;;  %v1367_v37 = vsel %vm1349_vm15, %v1348_v28, %v1153_v48 }
 0x177   : > { %v3735_v24 = vrot.slane %v3731_v7, 2  ;;  %v3738_v17 = vrot.slane %v3731_v7, 4  ;;  %1635 = vst [vmem:[#allocation1 + $0x3] ss:$4 sm:$0xff] %v3731_v7  ;;  %v3742_v35 = vrot.slane %v3731_v7, 6 }
 0x178   : > { %v1215_v34 = vpop.permute.xlu1 %1214 }
 0x179   : > { %1636 = vst [vmem:[#allocation1 + $0x20] ss:$4 sm:$0xff] %v3735_v24  ;;  %v3751_v19 = vsel %vm2028_vm5, %v3738_v17, %v3671_v56  ;;  %v2156_v40 = vrot.slane %v3735_v24, 4  ;;  %v2188_v50 = vrot.slane %v3738_v17, 4  ;;  %v2220_v20 = vrot.slane %v3742_v35, 4 }
 0x17a   : > { %4490 = vst [vmem:[#allocation6_spill] sm:$0xff] %v3751_v19  ;;  %v1386_v39 = vsel %vm1368_vm1, %v1367_v37, %v1215_v34 }
 0x17b   : > { %1637 = vst [vmem:[#allocation1 + $0x21] ss:$4 sm:$0xff] %v3738_v17  ;;  %v3761_v11 = vsel %vm2028_vm5, %v2156_v40, %v3680_v55  ;;  %v3765_v0 = vsel %vm2028_vm5, %v2188_v50, %v3683_v52  ;;  %v1405_v38 = vsel %vm1387_vm2, %v1386_v39, %v1253_v63  ;;  %v3770_v60 = vsel %vm2028_vm5, %v2220_v20, %v3686_v23 }
 0x17c   : > { %1638 = vst [vmem:[#allocation1 + $0x22] ss:$4 sm:$0xff] %v3742_v35  ;;  %2755 = vmatmul.msk.bf16.gmra.mxu3 %vm1421_vm3, %v1405_v38 }
 0x17d   : > { %4491 = vst [vmem:[#allocation7_spill] sm:$0xff] %v3761_v11 }
 0x17e   : > { %4492 = vst [vmem:[#allocation8_spill] sm:$0xff] %v3765_v0  ;;  %v3782_v58 = vld.sshfl [vmem:[#allocation1] sm:$0xff pattern:$0x73625140] }
 0x17f   : > { %4493 = vst [vmem:[#allocation9_spill] sm:$0xff] %v3770_v60  ;;  %v3773_v2 = vpop.f32.mrf.mxu1 }
 0x180   : > { %v3776_v5 = vrot.slane %v3773_v2, 4  ;;  %v3779_v41 = vrot.slane %v3773_v2, 6  ;;  %1639 = vst [vmem:[#allocation1 + $0x23] ss:$4 sm:$0xff] %v3773_v2 }
 0x181   : > { %4494 = vst [vmem:[#allocation10_spill] sm:$0xff] %v3782_v58 }
 0x182   : > { %1642 = vst [vmem:[#allocation1] ss:$4 sm:$0xff] %v3776_v5  ;;  %v3788_v21 = vsel %vm2028_vm5, %v3776_v5, %v3689_v57 }
 0x183   : > { %4495 = vst [vmem:[#allocation11_spill] sm:$0xff] %v3788_v21 }
 0x184   : > { %1643 = vst [vmem:[#allocation1 + $0x1] ss:$4 sm:$0xff] %v3779_v41 }
 0x187   : > { %v3791_v4 = vpop.f32.mrf.mxu1  ;;  %v3804_v10 = vld.sshfl [vmem:[#allocation1 + $0x20] sm:$0xff pattern:$0x73625140] }
 0x188   : > { %v3794_v32 = vrot.slane %v3791_v4, 2  ;;  %v3797_v61 = vrot.slane %v3791_v4, 4  ;;  %v3800_v45 = vrot.slane %v3791_v4, 6  ;;  %1644 = vst [vmem:[#allocation1 + $0x2] ss:$4 sm:$0xff] %v3791_v4 }
 0x189   : > { %4496 = vst [vmem:[#allocation12_spill] sm:$0xff] %v3804_v10 }
 0x18a   : > { %1645 = vst [vmem:[#allocation1 + $0x3] ss:$4 sm:$0xff] %v3794_v32 }
 0x18b   : > { %1646 = vst [vmem:[#allocation1 + $0x20] ss:$4 sm:$0xff] %v3797_v61 }
 0x18c   : > { %1647 = vst [vmem:[#allocation1 + $0x21] ss:$4 sm:$0xff] %v3800_v45 }
 0x18f   : > { %v3808_v46 = vpop.f32.mrf.mxu1 }
 0x190   : > { %v3811_v25 = vrot.slane %v3808_v46, 2  ;;  %v3814_v42 = vrot.slane %v3808_v46, 6  ;;  %1648 = vst [vmem:[#allocation1 + $0x22] ss:$4 sm:$0xff] %v3808_v46 }
 0x191   : > { %v3817_v9 = vld.sshfl [vmem:[#allocation1] sm:$0xff pattern:$0x73625140] }
 0x192   : > { %4497 = vst [vmem:[#allocation13_spill] sm:$0xff] %v3817_v9  ;;  %v2036_v31 = vrot.slane %v3814_v42, 4 }
 0x193   : > { %1649 = vst [vmem:[#allocation1 + $0x23] ss:$4 sm:$0xff] %v3811_v25 }
 0x194   : > { %1652 = vst [vmem:[#allocation1] ss:$4 sm:$0xff] %v3814_v42  ;;  %v3824_v1 = vsel %vm2028_vm5, %v2036_v31, %v3776_v5 }
 0x195   : > { %4498 = vst [vmem:[#allocation14_spill] sm:$0xff] %v3824_v1 }
 0x197   : > { %v3826_v36 = vpop.f32.mrf.mxu1 }
 0x198   : > { %v3829_v30 = vrot.slane %v3826_v36, 2  ;;  %v3832_v29 = vrot.slane %v3826_v36, 4  ;;  %v3835_v27 = vrot.slane %v3826_v36, 6  ;;  %1653 = vst [vmem:[#allocation1 + $0x1] ss:$4 sm:$0xff] %v3826_v36 }
 0x19a   : > { %v3838_v14 = vld.sshfl [vmem:[#allocation1 + $0x20] sm:$0xff pattern:$0x73625140]  ;;  %1654 = vst [vmem:[#allocation1 + $0x2] ss:$4 sm:$0xff] %v3829_v30  ;;  %v3844_v62 = vsel %vm2028_vm5, %v3832_v29, %v3779_v41  ;;  %v2100_v3 = vrot.slane %v3829_v30, 4 }
 0x19b   : > { %4499 = vst [vmem:[#allocation15_spill] sm:$0xff] %v3838_v14  ;;  %v2132_v43 = vrot.slane %v3832_v29, 4  ;;  %v2164_v53 = vrot.slane %v3835_v27, 4 }
 0x19c   : > { %4500 = vst [vmem:[#allocation16_spill] sm:$0xff] %v3844_v62  ;;  %v3853_v26 = vsel %vm2028_vm5, %v2100_v3, %v3791_v4 }
 0x19d   : > { %1655 = vst [vmem:[#allocation1 + $0x3] ss:$4 sm:$0xff] %v3832_v29  ;;  %v3857_v54 = vsel %vm2028_vm5, %v2132_v43, %v3794_v32  ;;  %v3861_v16 = vsel %vm2028_vm5, %v2164_v53, %v3797_v61 }
 0x19e   : > { %1656 = vst [vmem:[#allocation1 + $0x20] ss:$4 sm:$0xff] %v3835_v27 }
 0x19f   : > { %4501 = vst [vmem:[#allocation17_spill] sm:$0xff] %v3853_v26 }
 0x1a0   : > { %4502 = vst [vmem:[#allocation18_spill] sm:$0xff] %v3857_v54 }
 0x1a1   : > { %4503 = vst [vmem:[#allocation19_spill] sm:$0xff] %v3861_v16 }
 0x1a4   : > { %v3891_v20 = vld.sshfl [vmem:[#allocation1] sm:$0xff pattern:$0x73625140] }
 0x1a5   : > { %4507 = vst [vmem:[#allocation23_spill] sm:$0xff] %v3891_v20 }
 0x1ab   : > { %v3889_v50 = vpop.f32.mrf.mxu3 }
 0x1ac   : > { %v3906_v43 = vrot.slane %v3889_v50, 4  ;;  %v3910_v53 = vrot.slane %v3889_v50, 2 }
 0x1ae   : > { %4508 = vst [vmem:[#allocation24_spill] sm:$0xff] %v3906_v43  ;;  %v2204_v0 = vrot.slane %v3906_v43, 4 }
 0x1af   : > { %4509 = vst [vmem:[#allocation25_spill] sm:$0xff] %v3910_v53 }
 0x1c5   : > { %v3863_v15 = vpop.f32.mrf.mxu1 }
 0x1c6   : > { %v3866_v47 = vrot.slane %v3863_v15, 2  ;;  %v3869_v28 = vrot.slane %v3863_v15, 4  ;;  %1657 = vst [vmem:[#allocation1 + $0x21] ss:$4 sm:$0xff] %v3863_v15 }
 0x1c8   : > { %1658 = vst [vmem:[#allocation1 + $0x22] ss:$4 sm:$0xff] %v3866_v47  ;;  %v3876_v48 = vsel %vm2028_vm5, %v3869_v28, %v3800_v45  ;;  %v2228_v34 = vrot.slane %v3866_v47, 4  ;;  %v2260_v63 = vrot.slane %v3869_v28, 4 }
 0x1c9   : > { %4504 = vst [vmem:[#allocation20_spill] sm:$0xff] %v3876_v48 }
 0x1ca   : > { %1659 = vst [vmem:[#allocation1 + $0x23] ss:$4 sm:$0xff] %v3869_v28  ;;  %v3883_v37 = vsel %vm2028_vm5, %v2228_v34, %v3808_v46  ;;  %v3887_v40 = vsel %vm2028_vm5, %v2260_v63, %v3811_v25  ;;  %v3920_v63 = vrot.slane %v3889_v50, 6 }
 0x1cb   : > { %4505 = vst [vmem:[#allocation21_spill] sm:$0xff] %v3883_v37 }
 0x1cc   : > { %4506 = vst [vmem:[#allocation22_spill] sm:$0xff] %v3887_v40  ;;  %v2172_v40 = vrot.slane %v3910_v53, 4  ;;  %v2236_v16 = vrot.slane %v3920_v63, 4 }
 0x1cd   : > { %v3893_v39 = vpop.f32.mrf.mxu1  ;;  %4511 = vst [vmem:[#allocation27_spill] sm:$0xff] %v3920_v63 }
 0x1ce   : > { %v3896_v38 = vrot.slane %v3893_v39, 2  ;;  %v3899_v31 = vrot.slane %v3893_v39, 4  ;;  %v3902_v3 = vrot.slane %v3893_v39, 6  ;;  %1662 = vst [vmem:[#allocation1] ss:$4 sm:$0xff] %v3893_v39 }
 0x1d0   : > { %1663 = vst [vmem:[#allocation1 + $0x1] ss:$4 sm:$0xff] %v3896_v38  ;;  %v3916_v34 = vsel %vm2028_vm5, %v3906_v43, %v3902_v3 }
 0x1d1   : > { %1664 = vst [vmem:[#allocation1 + $0x2] ss:$4 sm:$0xff] %v3899_v31  ;;  %v3925_v37 = vld.sshfl [vmem:[#allocation1 + $0x20] sm:$0xff pattern:$0x73625140] }
 0x1d2   : > { %4510 = vst [vmem:[#allocation26_spill] sm:$0xff] %v3916_v34 }
 0x1d3   : > { %1665 = vst [vmem:[#allocation1 + $0x3] ss:$4 sm:$0xff] %v3902_v3 }
 0x1d4   : > { %4512 = vst [vmem:[#allocation28_spill] sm:$0xff] %v3925_v37 }
 0x1d5   : > { %v3923_v21 = vpop.f32.mrf.mxu2 }
 0x1d6   : > { %v3928_v60 = vrot.slane %v3923_v21, 2  ;;  %v3931_v48 = vrot.slane %v3923_v21, 4  ;;  %1666 = vst [vmem:[#allocation1 + $0x20] ss:$4 sm:$0xff] %v3923_v21  ;;  %v3937_v11 = vrot.slane %v3923_v21, 6  ;;  %v3941_v34 = vsel %vm2028_vm5, %v2172_v40, %v3923_v21 }
 0x1d7   : > { %4513 = vst [vmem:[#allocation29_spill] sm:$0xff] %v3941_v34 }
 0x1d8   : > { %1667 = vst [vmem:[#allocation1 + $0x21] ss:$4 sm:$0xff] %v3928_v60  ;;  %v3949_v19 = vsel %vm2028_vm5, %v2204_v0, %v3928_v60  ;;  %v3953_v26 = vsel %vm2028_vm5, %v2236_v16, %v3931_v48 }
 0x1d9   : > { %1668 = vst [vmem:[#allocation1 + $0x22] ss:$4 sm:$0xff] %v3931_v48 }
 0x1da   : > { %v3944_v54 = vld.sshfl [vmem:[#allocation1] sm:$0xff pattern:$0x73625140]  ;;  %4515 = vst [vmem:[#allocation31_spill] sm:$0xff] %v3949_v19  ;;  %v3968_v19 = vpop.f32.mrf.mxu3 }
 0x1db   : > { %4514 = vst [vmem:[#allocation30_spill] sm:$0xff] %v3944_v54 }
 0x1dc   : > { %4516 = vst [vmem:[#allocation32_spill] sm:$0xff] %v3953_v26 }
 0x1dd   : > { %1675 = vst [vmem:[#allocation1 + $0x3] ss:$4 sm:$0xff] %v3889_v50  ;;  %v1483_v40 = vpop.f32.mrf.mxu2 }
 0x1de   : > { %1669 = vst [vmem:[#allocation1 + $0x23] ss:$4 sm:$0xff] %v3937_v11  ;;  %v3957_v34 = vrot.slane %v1483_v40, 2  ;;  %v3959_v22 = vrot.slane %v1483_v40, 4  ;;  %v3961_v62 = vrot.slane %v1483_v40, 6 }
 0x1df   : > { %4517 = vst [vmem:[#allocation33_spill] sm:$0xff] %v3968_v19 }
 0x1e0   : > { %1672 = vst [vmem:[#allocation1] ss:$4 sm:$0xff] %v3957_v34  ;;  %v2044_v0 = vrot.slane %v3957_v34, 4  ;;  %v2076_v16 = vrot.slane %v3959_v22, 4  ;;  %v2108_v26 = vrot.slane %v3961_v62, 4 }
 0x1e1   : > { %1673 = vst [vmem:[#allocation1 + $0x1] ss:$4 sm:$0xff] %v3959_v22 }
 0x1e2   : > { %1674 = vst [vmem:[#allocation1 + $0x2] ss:$4 sm:$0xff] %v3961_v62  ;;  %v3975_v40 = vsel %vm2028_vm5, %v2044_v0, %v3893_v39  ;;  %v3980_v54 = vsel %vm2028_vm5, %v2076_v16, %v3896_v38  ;;  %v3984_v1 = vsel %vm2028_vm5, %v2108_v26, %v3899_v31  ;;  %v3993_v0 = vrot.slane %v3968_v19, 6 }
 0x1e3   : > { %4519 = vst [vmem:[#allocation35_spill] sm:$0xff] %v3975_v40 }
 0x1e4   : > { %4520 = vst [vmem:[#allocation36_spill] sm:$0xff] %v3980_v54 }
 0x1e5   : > { %v3970_v18 = vld.sshfl [vmem:[#allocation1 + $0x20] sm:$0xff pattern:$0x73625140]  ;;  %4521 = vst [vmem:[#allocation37_spill] sm:$0xff] %v3984_v1 }
 0x1e6   : > { %4518 = vst [vmem:[#allocation34_spill] sm:$0xff] %v3970_v18  ;;  %v3990_v18 = vrot.slane %v3968_v19, 4 }
 0x1e7   : > { %1676 = vst [vmem:[#allocation1 + $0x20] ss:$4 sm:$0xff] %v3910_v53 }
 0x1e8   : > { %1677 = vst [vmem:[#allocation1 + $0x21] ss:$4 sm:$0xff] %v3906_v43 }
 0x1e9   : > { %1679 = vst [vmem:[#allocation1 + $0x23] ss:$4 sm:$0xff] %v3968_v19  ;;  %v3995_v40 = vld.sshfl [vmem:[#allocation1] sm:$0xff pattern:$0x73625140] }
 0x1ea   : > { %1678 = vst [vmem:[#allocation1 + $0x22] ss:$4 sm:$0xff] %v3920_v63  ;;  %v3998_v16 = vpop.f32.mrf.mxu3 }
 0x1eb   : > { %4522 = vst [vmem:[#allocation38_spill] sm:$0xff] %v3995_v40  ;;  %v4002_v26 = vrot.slane %v3998_v16, 2  ;;  %v4005_v1 = vrot.slane %v3998_v16, 4  ;;  %v4008_v54 = vrot.slane %v3998_v16, 6 }
 0x1ec   : > { %1682 = vst [vmem:[#allocation1] ss:$4 sm:$0xff] %v3990_v18 }
 0x1ed   : > { %1683 = vst [vmem:[#allocation1 + $0x1] ss:$4 sm:$0xff] %v3993_v0 }
 0x1ee   : > { %1684 = vst [vmem:[#allocation1 + $0x2] ss:$4 sm:$0xff] %v3998_v16 }
 0x1ef   : > { %1685 = vst [vmem:[#allocation1 + $0x3] ss:$4 sm:$0xff] %v4002_v26 }
 0x1f1   : > { %v4012_v40 = vld.sshfl [vmem:[#allocation1 + $0x20] sm:$0xff pattern:$0x73625140] }
 0x1f2   : > { %4523 = vst [vmem:[#allocation39_spill] sm:$0xff] %v4012_v40  ;;  %v4016_v37 = vpop.f32.mrf.mxu3 }
 0x1f3   : > { %1686 = vst [vmem:[#allocation1 + $0x20] ss:$4 sm:$0xff] %v4005_v1  ;;  %v4019_v13 = vrot.slane %v4016_v37, 2  ;;  %v4022_v20 = vrot.slane %v4016_v37, 6 }
 0x1f4   : > { %1687 = vst [vmem:[#allocation1 + $0x21] ss:$4 sm:$0xff] %v4008_v54 }
 0x1f5   : > { %1688 = vst [vmem:[#allocation1 + $0x22] ss:$4 sm:$0xff] %v4016_v37 }
 0x1f6   : > { %v4025_v19 = vld.sshfl [vmem:[#allocation1] sm:$0xff pattern:$0x73625140]  ;;  %1689 = vst [vmem:[#allocation1 + $0x23] ss:$4 sm:$0xff] %v4019_v13 }
 0x1f7   : > { %4524 = vst [vmem:[#allocation40_spill] sm:$0xff] %v4025_v19 }
 0x1f8   : > { %1692 = vst [vmem:[#allocation1] ss:$4 sm:$0xff] %v4022_v20 }
 0x1ff   : > { %v4029_v40 = vpop.f32.mrf.mxu3 }
 0x200   : > { %4525 = vst [vmem:[#allocation41_spill] sm:$0xff] %v4029_v40  ;;  %v4032_v63 = vrot.slane %v4029_v40, 2  ;;  %v4035_v14 = vrot.slane %v4029_v40, 4  ;;  %v4038_v43 = vrot.slane %v4029_v40, 6 }
 0x201   : > { %1693 = vst [vmem:[#allocation1 + $0x1] ss:$4 sm:$0xff] %v4029_v40  ;;  %v1756_v40 = vmul.f32 %v3662_v8, %v3662_v8  ;;  %v1764_v8 = vmul.f32 %v3702_v49, %v3702_v49 }
 0x202   : > { %4526 = vst [vmem:[#allocation42_spill] sm:$0xff] %v4032_v63  ;;  %v2116_v19 = vrot.slane %v4032_v63, 4  ;;  %v2148_v53 = vrot.slane %v4035_v14, 4  ;;  %v2180_v9 = vrot.slane %v4038_v43, 4 }
 0x203   : > { %4527 = vst [vmem:[#allocation43_spill] sm:$0xff] %v4035_v14 }
 0x204   : > { %1694 = vst [vmem:[#allocation1 + $0x2] ss:$4 sm:$0xff] %v4032_v63  ;;  %v4048_v10 = vsel %vm2028_vm5, %v2116_v19, %v3998_v16  ;;  %v4052_v58 = vsel %vm2028_vm5, %v2148_v53, %v4002_v26  ;;  %v4056_v59 = vsel %vm2028_vm5, %v2180_v9, %v4005_v1  ;;  %v1758_v19 = vmul.f32 %v3668_v44, %v3668_v44  ;;  %v4068_v9 = vld.sshfl [vmem:[#allocation1 + $0x20] sm:$0xff pattern:$0x73625140] }
 0x205   : > { %1695 = vst [vmem:[#allocation1 + $0x3] ss:$4 sm:$0xff] %v4035_v14  ;;  %v1757_v14 = vmul.f32 %v3665_v33, %v3665_v33  ;;  %v1759_v53 = vmul.f32 %v3671_v56, %v3671_v56  ;;  %v1765_v33 = vmul.f32 %v3704_v12, %v3704_v12  ;;  %v1766_v44 = vmul.f32 %v3706_v6, %v3706_v6 }
 0x206   : > { %4528 = vst [vmem:[#allocation44_spill] sm:$0xff] %v4056_v59  ;;  %v1767_v56 = vmul.f32 %v3731_v7, %v3731_v7  ;;  %v1772_v6 = vmul.f32 %v3776_v5, %v3776_v5 }
 0x207   : > { %1696 = vst [vmem:[#allocation1 + $0x20] ss:$4 sm:$0xff] %v4038_v43 }
 0x20c   : > { %v4062_v63 = vld.sshfl [vmem:[#allocation1] sm:$0xff pattern:$0x73625140] }
 0x20d   : > { %1884 = vst [vmem:[#allocation1] ss:$4 sm:$0xff] %v1756_v40 }
 0x20e   : > { %1886 = vst [vmem:[#allocation1 + $0x1] ss:$4 sm:$0xff] %v1757_v14  ;;  %v4081_v14 = vpop.f32.mrf.mxu3 }
 0x20f   : > { %1888 = vst [vmem:[#allocation1 + $0x2] ss:$4 sm:$0xff] %v1758_v19  ;;  %v4084_v40 = vrot.slane %v4081_v14, 2  ;;  %v4087_v49 = vrot.slane %v4081_v14, 4 }
 0x210   : > { %1890 = vst [vmem:[#allocation1 + $0x3] ss:$4 sm:$0xff] %v1759_v53  ;;  %v1773_v53 = vmul.f32 %v3779_v41, %v3779_v41  ;;  %v1760_v41 = vmul.f32 %v3680_v55, %v3680_v55  ;;  %v1781_v55 = vmul.f32 %v3826_v36, %v3826_v36  ;;  %v1770_v36 = vmul.f32 %v3742_v35, %v3742_v35 }
 0x211   : > { %1697 = vst [vmem:[#allocation1 + $0x21] ss:$4 sm:$0xff] %v4081_v14  ;;  %v4094_v12 = vsel %vm2028_vm5, %v4087_v49, %v4008_v54  ;;  %v2244_v7 = vrot.slane %v4084_v40, 4  ;;  %v2276_v19 = vrot.slane %v4087_v49, 4  ;;  %v1791_v35 = vmul.f32 %v3902_v3, %v3902_v3 }
 0x212   : > { %1698 = vst [vmem:[#allocation1 + $0x22] ss:$4 sm:$0xff] %v4084_v40  ;;  %v1796_v3 = vmul.f32 %v3957_v34, %v3957_v34  ;;  %v1785_v34 = vmul.f32 %v3863_v15, %v3863_v15  ;;  %v1806_v15 = vmul.f32 %v3998_v16, %v3998_v16 }
 0x213   : > { %1699 = vst [vmem:[#allocation1 + $0x23] ss:$4 sm:$0xff] %v4087_v49  ;;  %v4113_v5 = vsel %vm2028_vm5, %v2276_v19, %v4019_v13  ;;  %v1763_v19 = vmul.f32 %v3689_v57, %v3689_v57  ;;  %v1768_v57 = vmul.f32 %v3735_v24, %v3735_v24  ;;  %v1789_v24 = vmul.f32 %v3896_v38, %v3896_v38 }
 0x214   : > { %v1778_v38 = vmul.f32 %v3808_v46, %v3808_v46  ;;  %v1799_v46 = vmul.f32 %v3889_v50, %v3889_v50  ;;  %v1804_v50 = vmul.f32 %v3990_v18, %v3990_v18 }
 0x217   : > { %v4075_v59 = vld.sshfl [vmem:[#allocation1] sm:$0xff pattern:$0x73625140] }
 0x218   : > { %1901 = vst [vmem:[#allocation1] ss:$4 sm:$0xff] %v1764_v8 }
 0x219   : > { %1902 = vst [vmem:[#allocation1 + $0x1] ss:$4 sm:$0xff] %v1765_v33  ;;  %v1774_v33 = vmul.f32 %v3791_v4, %v3791_v4  ;;  %v1761_v4 = vmul.f32 %v3683_v52, %v3683_v52  ;;  %v1782_v52 = vmul.f32 %v3829_v30, %v3829_v30  ;;  %v1771_v30 = vmul.f32 %v3773_v2, %v3773_v2 }
 0x21a   : > { %1903 = vst [vmem:[#allocation1 + $0x2] ss:$4 sm:$0xff] %v1766_v44  ;;  %v4109_v44 = vsel %vm2028_vm5, %v2244_v7, %v4016_v37  ;;  %v1762_v7 = vmul.f32 %v3686_v23, %v3686_v23  ;;  %v1783_v23 = vmul.f32 %v3832_v29, %v3832_v29  ;;  %v1788_v29 = vmul.f32 %v3893_v39, %v3893_v39 }
 0x21b   : > { %1904 = vst [vmem:[#allocation1 + $0x3] ss:$4 sm:$0xff] %v1767_v56  ;;  %v1775_v56 = vmul.f32 %v3794_v32, %v3794_v32  ;;  %v1780_v32 = vmul.f32 %v3814_v42, %v3814_v42  ;;  %v1769_v42 = vmul.f32 %v3738_v17, %v3738_v17  ;;  %v1790_v17 = vmul.f32 %v3899_v31, %v3899_v31 }
 0x21c   : > { %v1776_v2 = vmul.f32 %v3797_v61, %v3797_v61  ;;  %v1777_v39 = vmul.f32 %v3800_v45, %v3800_v45  ;;  %v1779_v31 = vmul.f32 %v3811_v25, %v3811_v25  ;;  %v1797_v61 = vmul.f32 %v3959_v22, %v3959_v22 }
 0x21d   : > { %v1798_v45 = vmul.f32 %v3961_v62, %v3961_v62  ;;  %v1784_v25 = vmul.f32 %v3835_v27, %v3835_v27  ;;  %v1786_v22 = vmul.f32 %v3866_v47, %v3866_v47  ;;  %v1787_v62 = vmul.f32 %v3869_v28, %v3869_v28 }
 0x21e   : > { %v1805_v27 = vmul.f32 %v3993_v0, %v3993_v0  ;;  %v1807_v47 = vmul.f32 %v4002_v26, %v4002_v26  ;;  %v1792_v28 = vmul.f32 %v3923_v21, %v3923_v21  ;;  %v1795_v26 = vmul.f32 %v3937_v11, %v3937_v11 }
 0x21f   : > { %v1812_v21 = vmul.f32 %v4022_v20, %v4022_v20 }
 0x222   : > { %v4103_v8 = vld.sshfl [vmem:[#allocation1] sm:$0xff pattern:$0x73625140] }
 0x223   : > { %1911 = vst [vmem:[#allocation1] ss:$4 sm:$0xff] %v1772_v6  ;;  %v4121_v6 = vld.sshfl [vmem:[#allocation1 + $0x20] sm:$0xff pattern:$0x73625140] }
 0x224   : > { %1912 = vst [vmem:[#allocation1 + $0x1] ss:$4 sm:$0xff] %v1773_v53 }
 0x225   : > { %1913 = vst [vmem:[#allocation1 + $0x2] ss:$4 sm:$0xff] %v1774_v33 }
 0x226   : > { %1914 = vst [vmem:[#allocation1 + $0x3] ss:$4 sm:$0xff] %v1775_v56 }
 0x227   : > { %1892 = vst [vmem:[#allocation1 + $0x20] ss:$4 sm:$0xff] %v1760_v41 }
 0x228   : > { %1894 = vst [vmem:[#allocation1 + $0x21] ss:$4 sm:$0xff] %v1761_v4 }
 0x229   : > { %1896 = vst [vmem:[#allocation1 + $0x22] ss:$4 sm:$0xff] %v1762_v7 }
 0x22a   : > { %1898 = vst [vmem:[#allocation1 + $0x23] ss:$4 sm:$0xff] %v1763_v19 }
 0x22d   : > { %v4131_v53 = vld.sshfl [vmem:[#allocation1] sm:$0xff pattern:$0x73625140] }
 0x22e   : > { %1921 = vst [vmem:[#allocation1] ss:$4 sm:$0xff] %v1780_v32  ;;  %v1793_v32 = vmul.f32 %v3928_v60, %v3928_v60  ;;  %v1987_v60 = vsel %vm1718_vm6, %v4075_v59, 0.0 }
 0x22f   : > { %1922 = vst [vmem:[#allocation1 + $0x1] ss:$4 sm:$0xff] %v1781_v55 }
 0x230   : > { %1923 = vst [vmem:[#allocation1 + $0x2] ss:$4 sm:$0xff] %v1782_v52  ;;  %v1794_v52 = vmul.f32 %v3931_v48, %v3931_v48  ;;  %v4529_v48 = vld [vmem:[#allocation41_spill] sm:$0xff] }
 0x231   : > { %1924 = vst [vmem:[#allocation1 + $0x3] ss:$4 sm:$0xff] %v1783_v23  ;;  %v1900_v33 = vld.sshfl [vmem:[#allocation1 + $0x20] sm:$0xff pattern:$0x73625140]  ;;  %v1720_v23 = vsel %vm1718_vm6, %v3744_v51, 0.0 }
 0x232   : > { %1905 = vst [vmem:[#allocation1 + $0x20] ss:$4 sm:$0xff] %v1768_v57  ;;  %v1988_v16 = vsel %vm1718_vm6, %v1900_v33, 0.0 }
 0x233   : > { %1906 = vst [vmem:[#allocation1 + $0x21] ss:$4 sm:$0xff] %v1769_v42  ;;  %v1989_v57 = vadd.f32 %v1988_v16, %v1987_v60  ;;  %v1813_v42 = vmul.f32 %v4529_v48, %v4529_v48  ;;  %v4541_v48 = vld [vmem:[#allocation23_spill] sm:$0xff] }
 0x234   : > { %1907 = vst [vmem:[#allocation1 + $0x22] ss:$4 sm:$0xff] %v1770_v36  ;;  %v4530_v36 = vld [vmem:[#allocation2_spill] sm:$0xff] }
 0x235   : > { %1908 = vst [vmem:[#allocation1 + $0x23] ss:$4 sm:$0xff] %v1771_v30  ;;  %v1719_v30 = vsel %vm1718_vm6, %v4530_v36, 0.0  ;;  %v1994_v36 = vsel %vm1718_vm6, %v4131_v53, 0.0 }
 0x238   : > { %v4149_v56 = vld.sshfl [vmem:[#allocation1] sm:$0xff pattern:$0x73625140] }
 0x239   : > { %1931 = vst [vmem:[#allocation1] ss:$4 sm:$0xff] %v1788_v29  ;;  %v4531_v29 = vld [vmem:[#allocation10_spill] sm:$0xff] }
 0x23a   : > { %1932 = vst [vmem:[#allocation1 + $0x1] ss:$4 sm:$0xff] %v1789_v24  ;;  %v1722_v51 = vsel %vm1718_vm6, %v4531_v29, 0.0  ;;  %v2886_v24 = vmov 1934713408  }
 0x23b   : > { %1933 = vst [vmem:[#allocation1 + $0x2] ss:$4 sm:$0xff] %v1790_v17  ;;  %v2031_v17 = vunpack.c.l.s4 %v2886_v24 }
 0x23c   : > { %1934 = vst [vmem:[#allocation1 + $0x3] ss:$4 sm:$0xff] %v1791_v35  ;;  %v1910_v41 = vld.sshfl [vmem:[#allocation1 + $0x20] sm:$0xff pattern:$0x73625140]  ;;  %v4532_v35 = vld [vmem:[#allocation42_spill] sm:$0xff] }
 0x23d   : > { %1915 = vst [vmem:[#allocation1 + $0x20] ss:$4 sm:$0xff] %v1776_v2  ;;  %v1814_v59 = vmul.f32 %v4532_v35, %v4532_v35  ;;  %v1721_v2 = vadd.f32 %v1720_v23, %v1719_v30  ;;  %v4543_v35 = vld [vmem:[#allocation28_spill] sm:$0xff] }
 0x23e   : > { %1916 = vst [vmem:[#allocation1 + $0x21] ss:$4 sm:$0xff] %v1777_v39  ;;  %v4533_v39 = vld [vmem:[#allocation43_spill] sm:$0xff] }
 0x23f   : > { %1917 = vst [vmem:[#allocation1 + $0x22] ss:$4 sm:$0xff] %v1778_v38  ;;  %v1815_v38 = vmul.f32 %v4533_v39, %v4533_v39 }
 0x240   : > { %1918 = vst [vmem:[#allocation1 + $0x23] ss:$4 sm:$0xff] %v1779_v31  ;;  %v4534_v31 = vld [vmem:[#allocation12_spill] sm:$0xff] }
 0x243   : > { %v4167_v4 = vld.sshfl [vmem:[#allocation1] sm:$0xff pattern:$0x73625140] }
 0x244   : > { %1941 = vst [vmem:[#allocation1] ss:$4 sm:$0xff] %v1796_v3  ;;  %v1724_v3 = vsel %vm1718_vm6, %v4534_v31, 0.0 }
 0x245   : > { %1942 = vst [vmem:[#allocation1 + $0x1] ss:$4 sm:$0xff] %v1797_v61  ;;  %v1990_v61 = vsel %vm1718_vm6, %v4103_v8, 0.0  ;;  %v2052_v8 = vrot.slane %v4022_v20, 4 }
 0x246   : > { %1943 = vst [vmem:[#allocation1 + $0x2] ss:$4 sm:$0xff] %v1798_v45  ;;  %v1992_v45 = vsel %vm1718_vm6, %v1910_v41, 0.0  ;;  %v4538_v41 = vld [vmem:[#allocation15_spill] sm:$0xff] }
 0x247   : > { %1944 = vst [vmem:[#allocation1 + $0x3] ss:$4 sm:$0xff] %v1799_v46  ;;  %v4177_v7 = vld.sshfl [vmem:[#allocation1 + $0x20] sm:$0xff pattern:$0x73625140]  ;;  %v1723_v46 = vadd.f32 %v1722_v51, %v1721_v2  ;;  %v4542_v51 = vld [vmem:[#allocation3_spill] sm:$0xff] }
 0x248   : > { %1925 = vst [vmem:[#allocation1 + $0x20] ss:$4 sm:$0xff] %v1784_v25  ;;  %v1991_v25 = vadd.f32 %v1990_v61, %v1989_v57  ;;  %v1996_v20 = vsel %vm1718_vm6, %v4177_v7, 0.0  ;;  %v4544_v2 = vld [vmem:[#allocation14_spill] sm:$0xff] }
 0x249   : > { %1926 = vst [vmem:[#allocation1 + $0x21] ss:$4 sm:$0xff] %v1785_v34  ;;  %v4535_v34 = vld [vmem:[#allocation13_spill] sm:$0xff] }
 0x24a   : > { %1927 = vst [vmem:[#allocation1 + $0x22] ss:$4 sm:$0xff] %v1786_v22  ;;  %v1726_v22 = vsel %vm1718_vm6, %v4535_v34, 0.0 }
 0x24b   : > { %1928 = vst [vmem:[#allocation1 + $0x23] ss:$4 sm:$0xff] %v1787_v62  ;;  %v4536_v62 = vld [vmem:[#allocation25_spill] sm:$0xff] }
 0x24e   : > { %v4187_v19 = vld.sshfl [vmem:[#allocation1] sm:$0xff pattern:$0x73625140] }
 0x24f   : > { %1951 = vst [vmem:[#allocation1] ss:$4 sm:$0xff] %v1804_v50  ;;  %v1800_v50 = vmul.f32 %v4536_v62, %v4536_v62 }
 0x250   : > { %1952 = vst [vmem:[#allocation1 + $0x1] ss:$4 sm:$0xff] %v1805_v27  ;;  %v1725_v27 = vadd.f32 %v1724_v3, %v1723_v46  ;;  %v4545_v3 = vld [vmem:[#allocation35_spill] sm:$0xff] }
 0x251   : > { %1953 = vst [vmem:[#allocation1 + $0x2] ss:$4 sm:$0xff] %v1806_v15  ;;  %v1993_v15 = vadd.f32 %v1992_v45, %v1991_v25  ;;  %v4546_v45 = vld [vmem:[#allocation30_spill] sm:$0xff] }
 0x252   : > { %1954 = vst [vmem:[#allocation1 + $0x3] ss:$4 sm:$0xff] %v1807_v47  ;;  %v4197_v55 = vld.sshfl [vmem:[#allocation1 + $0x20] sm:$0xff pattern:$0x73625140]  ;;  %v4231_v47 = vunpack.c.0.s8 %v2031_v17  ;;  %v1727_v60 = vadd.f32 %v1726_v22, %v1725_v27  ;;  %v2053_v17 = vsel %vm2028_vm5, %v2052_v8, %v3990_v18  ;;  %v1734_v46 = vsel %vm1718_vm6, %v4546_v45, 0.0 }
 0x253   : > { %1935 = vst [vmem:[#allocation1 + $0x20] ss:$4 sm:$0xff] %v1792_v28  ;;  %v4537_v28 = vld [vmem:[#allocation24_spill] sm:$0xff]  ;;  %v1995_v29 = vadd.f32 %v1994_v36, %v1993_v15  ;;  %v4547_v22 = vld [vmem:[#allocation34_spill] sm:$0xff]  ;;  %v2000_v27 = vsel %vm1718_vm6, %v4197_v55, 0.0 }
 0x254   : > { %1936 = vst [vmem:[#allocation1 + $0x21] ss:$4 sm:$0xff] %v1793_v32  ;;  %v1801_v32 = vmul.f32 %v4537_v28, %v4537_v28  ;;  %v2033_v24 = vperm.slane %v4542_v51, %v4231_v47  ;;  %v2049_v61 = vperm.slane %v4545_v3, %v4231_v47  ;;  %v2057_v25 = vperm.slane %v2053_v17, %v4231_v47  ;;  %v4548_v8 = vld [vmem:[#allocation38_spill] sm:$0xff] }
 0x255   : > { %1937 = vst [vmem:[#allocation1 + $0x22] ss:$4 sm:$0xff] %v1794_v52  ;;  %v1728_v52 = vsel %vm1718_vm6, %v4538_v41, 0.0  ;;  %v1997_v7 = vadd.f32 %v1996_v20, %v1995_v29  ;;  %v1736_v62 = vsel %vm1718_vm6, %v4547_v22, 0.0  ;;  %v1738_v41 = vsel %vm1718_vm6, %v4548_v8, 0.0  ;;  %v4549_v29 = vld [vmem:[#allocation39_spill] sm:$0xff] }
 0x256   : > { %1938 = vst [vmem:[#allocation1 + $0x23] ss:$4 sm:$0xff] %v1795_v26  ;;  %v4539_v26 = vld [vmem:[#allocation27_spill] sm:$0xff]  ;;  %v1729_v30 = vadd.f32 %v1728_v52, %v1727_v60  ;;  %v1809_v52 = vmul.f32 %v4008_v54, %v4008_v54  ;;  %v2058_v36 = vrot.slane %v2057_v25, 4  ;;  %v1740_v51 = vsel %vm1718_vm6, %v4549_v29, 0.0  ;;  %v4553_v8 = vld [vmem:[#allocation36_spill] sm:$0xff] }
 0x257   : > { %v1802_v23 = vmul.f32 %v4539_v26, %v4539_v26 }
 0x259   : > { %v4212_v33 = vld.sshfl [vmem:[#allocation1] sm:$0xff pattern:$0x73625140] }
 0x25a   : > { %1961 = vst [vmem:[#allocation1] ss:$4 sm:$0xff] %v1812_v21  ;;  %v4540_v21 = vld [vmem:[#allocation33_spill] sm:$0xff] }
 0x25b   : > { %1962 = vst [vmem:[#allocation1 + $0x1] ss:$4 sm:$0xff] %v1813_v42  ;;  %v1803_v57 = vmul.f32 %v4540_v21, %v4540_v21  ;;  %v1730_v42 = vsel %vm1718_vm6, %v4541_v48, 0.0  ;;  %v2034_v21 = vrot.slane %v2033_v24, 4 }
 0x25c   : > { %1963 = vst [vmem:[#allocation1 + $0x2] ss:$4 sm:$0xff] %v1814_v59  ;;  %v1732_v59 = vsel %vm1718_vm6, %v4543_v35, 0.0  ;;  %v1731_v31 = vadd.f32 %v1730_v42, %v1729_v30  ;;  %v2002_v42 = vsel %vm1718_vm6, %v4167_v4, 0.0 }
 0x25d   : > { %1964 = vst [vmem:[#allocation1 + $0x3] ss:$4 sm:$0xff] %v1815_v38  ;;  %v1940_v16 = vld.sshfl [vmem:[#allocation1 + $0x20] sm:$0xff pattern:$0x73625140]  ;;  %v2041_v38 = vperm.slane %v4544_v2, %v4231_v47  ;;  %v2035_v30 = vsel %vm2028_vm5, 0.0, %v2034_v21 }
 0x25e   : > { %1945 = vst [vmem:[#allocation1 + $0x20] ss:$4 sm:$0xff] %v1800_v50  ;;  %v1733_v34 = vadd.f32 %v1732_v59, %v1731_v31  ;;  %v1998_v50 = vsel %vm1718_vm6, %v4149_v56, 0.0  ;;  %v1810_v56 = vmul.f32 %v4016_v37, %v4016_v37  ;;  %v2004_v54 = vsel %vm1718_vm6, %v1940_v16, 0.0 }
 0x25f   : > { %1946 = vst [vmem:[#allocation1 + $0x21] ss:$4 sm:$0xff] %v1801_v32  ;;  %v1999_v28 = vadd.f32 %v1998_v50, %v1997_v7  ;;  %v1808_v32 = vmul.f32 %v4005_v1, %v4005_v1  ;;  %v2042_v55 = vrot.slane %v2041_v38, 4  ;;  %v2050_v1 = vrot.slane %v2049_v61, 4  ;;  %v4551_v50 = vld [vmem:[#allocation4_spill] sm:$0xff] }
 0x260   : > { %1947 = vst [vmem:[#allocation1 + $0x22] ss:$4 sm:$0xff] %v1802_v23  ;;  %v1735_v15 = vadd.f32 %v1734_v46, %v1733_v34  ;;  %v1744_v59 = vsel %vm1718_vm6, %v4068_v9, 0.0  ;;  %v2059_v2 = vsel %vm2028_vm5, 0.0, %v2058_v36  ;;  %v1746_v31 = vsel %vm1718_vm6, %v4062_v63, 0.0 }
 0x261   : > { %1948 = vst [vmem:[#allocation1 + $0x23] ss:$4 sm:$0xff] %v1803_v57  ;;  %v2001_v60 = vadd.f32 %v2000_v27, %v1999_v28  ;;  %v1811_v57 = vmul.f32 %v4019_v13, %v4019_v13  ;;  %v4550_v13 = vld [vmem:[#allocation40_spill] sm:$0xff]  ;;  %v2043_v17 = vsel %vm2028_vm5, 0.0, %v2042_v55  ;;  %v2051_v16 = vsel %vm2028_vm5, 0.0, %v2050_v1 }
 0x262   : > { %v1737_v26 = vadd.f32 %v1736_v62, %v1735_v15  ;;  %v2006_v7 = vsel %vm1718_vm6, %v4187_v19, 0.0  ;;  %v1748_v9 = vsel %vm1718_vm6, %v4121_v6, 0.0  ;;  %v1818_v63 = vmul.f32 %v4084_v40, %v4084_v40  ;;  %v4552_v15 = vld [vmem:[#allocation16_spill] sm:$0xff] }
 0x263   : > { %v2003_v20 = vadd.f32 %v2002_v42, %v2001_v60  ;;  %v1819_v62 = vmul.f32 %v4087_v49, %v4087_v49  ;;  %v2065_v27 = vperm.slane %v4551_v50, %v4231_v47  ;;  %v2010_v6 = vsel %vm1718_vm6, %v4212_v33, 0.0 }
 0x264   : > { %v4256_v53 = vld.sshfl [vmem:[#allocation1] sm:$0xff pattern:$0x73625140]  ;;  %v1739_v48 = vadd.f32 %v1738_v41, %v1737_v26  ;;  %v2073_v28 = vperm.slane %v4552_v15, %v4231_v47  ;;  %v2081_v41 = vperm.slane %v4553_v8, %v4231_v47 }
 0x265   : > { %2288 = vst [vmem:[#allocation1] ss:$4 sm:$0xff] %v2033_v24  ;;  %v1742_v24 = vsel %vm1718_vm6, %v4550_v13, 0.0  ;;  %v2005_v4 = vadd.f32 %v2004_v54, %v2003_v20  ;;  %v2066_v21 = vrot.slane %v2065_v27, 4 }
 0x266   : > { %2290 = vst [vmem:[#allocation1 + $0x1] ss:$4 sm:$0xff] %v2041_v38  ;;  %v1741_v35 = vadd.f32 %v1740_v51, %v1739_v48  ;;  %v2074_v55 = vrot.slane %v2073_v28, 4  ;;  %v2082_v48 = vrot.slane %v2081_v41, 4 }
 0x267   : > { %2292 = vst [vmem:[#allocation1 + $0x2] ss:$4 sm:$0xff] %v2049_v61  ;;  %v1816_v61 = vmul.f32 %v4038_v43, %v4038_v43  ;;  %v2007_v46 = vadd.f32 %v2006_v7, %v2005_v4  ;;  %v2067_v36 = vsel %vm2028_vm5, 0.0, %v2066_v21 }
 0x268   : > { %2294 = vst [vmem:[#allocation1 + $0x3] ss:$4 sm:$0xff] %v2057_v25  ;;  %v1950_v23 = vld.sshfl [vmem:[#allocation1 + $0x20] sm:$0xff pattern:$0x73625140]  ;;  %v1743_v38 = vadd.f32 %v1742_v24, %v1741_v35  ;;  %v1817_v25 = vmul.f32 %v4081_v14, %v4081_v14  ;;  %v2085_v14 = vsel %vm2028_vm5, %v4533_v39, %v3993_v0  ;;  %v2083_v29 = vsel %vm2028_vm5, 0.0, %v2082_v48 }
 0x269   : > { %1955 = vst [vmem:[#allocation1 + $0x20] ss:$4 sm:$0xff] %v1808_v32  ;;  %v2008_v3 = vsel %vm1718_vm6, %v1950_v23, 0.0  ;;  %v2089_v0 = vperm.slane %v2085_v14, %v4231_v47  ;;  %v4562_v48 = vld [vmem:[#allocation29_spill] sm:$0xff] }
 0x26a   : > { %1956 = vst [vmem:[#allocation1 + $0x21] ss:$4 sm:$0xff] %v1809_v52  ;;  %v1745_v45 = vadd.f32 %v1744_v59, %v1743_v38  ;;  %v2009_v19 = vadd.f32 %v2008_v3, %v2007_v46  ;;  %v2014_v52 = vsel %vm1718_vm6, %v4256_v53, 0.0  ;;  %v4554_v59 = vld [vmem:[#allocation5_spill] sm:$0xff]  ;;  %v2121_v46 = vperm.slane %v4048_v10, %v4231_v47 }
 0x26b   : > { %1957 = vst [vmem:[#allocation1 + $0x22] ss:$4 sm:$0xff] %v1810_v56  ;;  %v2090_v1 = vrot.slane %v2089_v0, 4  ;;  %v4555_v38 = vld [vmem:[#allocation17_spill] sm:$0xff] }
 0x26c   : > { %1958 = vst [vmem:[#allocation1 + $0x23] ss:$4 sm:$0xff] %v1811_v57  ;;  %v1747_v22 = vadd.f32 %v1746_v31, %v1745_v45  ;;  %v2011_v32 = vadd.f32 %v2010_v6, %v2009_v19  ;;  %v2105_v31 = vperm.slane %v4555_v38, %v4231_v47  ;;  %v4558_v6 = vld [vmem:[#allocation18_spill] sm:$0xff]  ;;  %v4566_v38 = vld [vmem:[#allocation31_spill] sm:$0xff] }
 0x26d   : > { %v2091_v51 = vsel %vm2028_vm5, 0.0, %v2090_v1  ;;  %v2177_v1 = vperm.slane %v4562_v48, %v4231_v47 }
 0x26e   : > { %v1749_v43 = vadd.f32 %v1748_v9, %v1747_v22 }
 0x26f   : > { %v4283_v37 = vld.sshfl [vmem:[#allocation1] sm:$0xff pattern:$0x73625140] }
 0x270   : > { %2301 = vst [vmem:[#allocation1] ss:$4 sm:$0xff] %v2035_v30  ;;  %v1750_v33 = vrot.slane %v1749_v43, 4  ;;  %v2075_v30 = vsel %vm2028_vm5, 0.0, %v2074_v55 }
 0x271   : > { %2303 = vst [vmem:[#allocation1 + $0x1] ss:$4 sm:$0xff] %v2043_v17 }
 0x272   : > { %2305 = vst [vmem:[#allocation1 + $0x2] ss:$4 sm:$0xff] %v2051_v16  ;;  %v1751_v26 = vadd.f32 %v1750_v33, %v1749_v43 }
 0x273   : > { %2307 = vst [vmem:[#allocation1 + $0x3] ss:$4 sm:$0xff] %v2059_v2  ;;  %v1960_v34 = vld.sshfl [vmem:[#allocation1 + $0x20] sm:$0xff pattern:$0x73625140]  ;;  %v2097_v2 = vperm.slane %v4554_v59, %v4231_v47 }
 0x274   : > { %1965 = vst [vmem:[#allocation1 + $0x20] ss:$4 sm:$0xff] %v1816_v61  ;;  %v2012_v40 = vsel %vm1718_vm6, %v1960_v34, 0.0  ;;  %v1752_v42 = vrot.slane %v1751_v26, 2  ;;  %v4556_v61 = vld [vmem:[#allocation37_spill] sm:$0xff]  ;;  %v2106_v34 = vrot.slane %v2105_v31, 4 }
 0x275   : > { %1966 = vst [vmem:[#allocation1 + $0x21] ss:$4 sm:$0xff] %v1817_v25  ;;  %v2013_v39 = vadd.f32 %v2012_v40, %v2011_v32  ;;  %v2113_v45 = vperm.slane %v4556_v61, %v4231_v47  ;;  %v2098_v25 = vrot.slane %v2097_v2, 4  ;;  %v2137_v40 = vperm.slane %v4558_v6, %v4231_v47 }
 0x276   : > { %1967 = vst [vmem:[#allocation1 + $0x22] ss:$4 sm:$0xff] %v1818_v63  ;;  %v1753_v13 = vadd.f32 %v1752_v42, %v1751_v26  ;;  %v2122_v63 = vrot.slane %v2121_v46, 4  ;;  %v2107_v10 = vsel %vm2028_vm5, 0.0, %v2106_v34  ;;  %v2153_v32 = vperm.slane %v4052_v58, %v4231_v47  ;;  %v4563_v42 = vld [vmem:[#allocation44_spill] sm:$0xff] }
 0x277   : > { %1968 = vst [vmem:[#allocation1 + $0x23] ss:$4 sm:$0xff] %v1819_v62  ;;  %v2015_v60 = vadd.f32 %v2014_v52, %v2013_v39  ;;  %v2114_v22 = vrot.slane %v2113_v45, 4  ;;  %v2099_v19 = vsel %vm2028_vm5, 0.0, %v2098_v25  ;;  %v2249_v6 = vperm.slane %v4109_v44, %v4231_v47 }
 0x278   : > { %v1754_v35 = vrot.slane %v1753_v13, 1  ;;  %v2123_v50 = vsel %vm2028_vm5, 0.0, %v2122_v63  ;;  %v2154_v33 = vrot.slane %v2153_v32, 4  ;;  %v4567_v63 = vld [vmem:[#allocation9_spill] sm:$0xff] }
 0x279   : > { %v2115_v43 = vsel %vm2028_vm5, 0.0, %v2114_v22 }
 0x27a   : > { %v2308_v49 = vld.sshfl [vmem:[#allocation1] sm:$0xff pattern:$0x73625140]  ;;  %v1755_v3 = vadd.f32 %v1754_v35, %v1753_v13  ;;  %v2155_v58 = vsel %vm2028_vm5, 0.0, %v2154_v33  ;;  %v4564_v35 = vld [vmem:[#allocation8_spill] sm:$0xff] }
 0x27b   : > { %2316 = vst [vmem:[#allocation1] ss:$4 sm:$0xff] %v2065_v27  ;;  %2309 = vrot.lane.b32.xlu0 %v2308_v49, %s2887_s10  ;;  %v4557_v27 = vld [vmem:[#allocation6_spill] sm:$0xff] }
 0x27c   : > { %2318 = vst [vmem:[#allocation1 + $0x1] ss:$4 sm:$0xff] %v2073_v28  ;;  %v2129_v14 = vperm.slane %v4557_v27, %v4231_v47  ;;  %v4559_v28 = vld [vmem:[#allocation26_spill] sm:$0xff]  ;;  %v4569_v27 = vld [vmem:[#allocation32_spill] sm:$0xff] }
 0x27d   : > { %2320 = vst [vmem:[#allocation1 + $0x2] ss:$4 sm:$0xff] %v2081_v41  ;;  %v2145_v49 = vperm.slane %v4559_v28, %v4231_v47  ;;  %v2138_v41 = vrot.slane %v2137_v40, 4 }
 0x27e   : > { %2322 = vst [vmem:[#allocation1 + $0x3] ss:$4 sm:$0xff] %v2089_v0  ;;  %v1970_v23 = vld.sshfl [vmem:[#allocation1 + $0x20] sm:$0xff pattern:$0x73625140]  ;;  %v2130_v8 = vrot.slane %v2129_v14, 4 }
 0x27f   : > { %v2016_v56 = vsel %vm1718_vm6, %v1970_v23, 0.0  ;;  %v2146_v0 = vrot.slane %v2145_v49, 4  ;;  %v2139_v26 = vsel %vm2028_vm5, 0.0, %v2138_v41 }
 0x280   : > { %v2017_v57 = vadd.f32 %v2016_v56, %v2015_v60  ;;  %v2131_v39 = vsel %vm2028_vm5, 0.0, %v2130_v8  ;;  %v4560_v60 = vld [vmem:[#allocation7_spill] sm:$0xff] }
 0x281   : > { %v2147_v23 = vsel %vm2028_vm5, 0.0, %v2146_v0  ;;  %v2161_v21 = vperm.slane %v4560_v60, %v4231_v47  ;;  %v4561_v56 = vld [vmem:[#allocation19_spill] sm:$0xff]  ;;  %v2269_v60 = vsel %vm2028_vm5, %v3990_v18, %v3937_v11 }
 0x282   : > { %v2018_v54 = vrot.slane %v2017_v57, 4  ;;  %v2169_v55 = vperm.slane %v4561_v56, %v4231_v47  ;;  %v4571_v56 = vld [vmem:[#allocation22_spill] sm:$0xff] }
 0x284   : > { %v2019_v53 = vadd.f32 %v2018_v54, %v2017_v57  ;;  %v2185_v54 = vperm.slane %v4563_v42, %v4231_v47  ;;  %v2281_v42 = vperm.slane %v4113_v5, %v4231_v47 }
 0x285   : > { %v2323_v20 = vld.sshfl [vmem:[#allocation1] sm:$0xff pattern:$0x73625140] }
 0x286   : > { %2331 = vst [vmem:[#allocation1] ss:$4 sm:$0xff] %v2067_v36  ;;  %2324 = vrot.lane.b32.xlu1 %v2323_v20, %s2888_s13  ;;  %v2020_v24 = vrot.slane %v2019_v53, 2  ;;  %v2162_v36 = vrot.slane %v2161_v21, 4  ;;  %v2170_v20 = vrot.slane %v2169_v55, 4 }
 0x287   : > { %2333 = vst [vmem:[#allocation1 + $0x1] ss:$4 sm:$0xff] %v2075_v30  ;;  %v2178_v30 = vrot.slane %v2177_v1, 4 }
 0x288   : > { %2335 = vst [vmem:[#allocation1 + $0x2] ss:$4 sm:$0xff] %v2083_v29  ;;  %v2021_v17 = vadd.f32 %v2020_v24, %v2019_v53  ;;  %v2186_v53 = vrot.slane %v2185_v54, 4  ;;  %v2163_v29 = vsel %vm2028_vm5, 0.0, %v2162_v36  ;;  %v2171_v13 = vsel %vm2028_vm5, 0.0, %v2170_v20 }
 0x289   : > { %2337 = vst [vmem:[#allocation1 + $0x3] ss:$4 sm:$0xff] %v2091_v51  ;;  %v2179_v24 = vsel %vm2028_vm5, 0.0, %v2178_v30  ;;  %v2282_v36 = vrot.slane %v2281_v42, 4 }
 0x28a   : > { %v2022_v4 = vrot.slane %v2021_v17, 1 }
 0x28c   : > { %v2023_v16 = vadd.f32 %v2022_v4, %v2021_v17  ;;  %v2187_v17 = vsel %vm2028_vm5, 0.0, %v2186_v53  ;;  %v2193_v4 = vperm.slane %v4564_v35, %v4231_v47 }
 0x28e   : > { %v2024_v9 = vsel %vm488_vm0, %v1755_v3, %v2023_v16  ;;  %v4565_v16 = vld [vmem:[#allocation20_spill] sm:$0xff]  ;;  %v2194_v3 = vrot.slane %v2193_v4, 4  ;;  %vm2517_vm0 = vcmask 523264  }
 0x28f   : > { %2026 = vst.msk [vmem:[%s412_s17] sm:$0x3] %vm2025_vm7, %v2024_v9  ;;  %v2201_v59 = vperm.slane %v4565_v16, %v4231_v47 }
 0x290   : > { %v2338_v7 = vld.sshfl [vmem:[#allocation1] sm:$0xff pattern:$0x73625140]  ;;  %v2195_v9 = vsel %vm2028_vm5, 0.0, %v2194_v3 }
 0x291   : > { %2346 = vst [vmem:[#allocation1] ss:$4 sm:$0xff] %v2097_v2  ;;  %2339 = vrot.lane.b32.xlu2 %v2338_v7, %s2889_s14  ;;  %v2217_v7 = vperm.slane %v4094_v12, %v4231_v47  ;;  %v2202_v61 = vrot.slane %v2201_v59, 4 }
 0x292   : > { %2348 = vst [vmem:[#allocation1 + $0x1] ss:$4 sm:$0xff] %v2105_v31  ;;  %v2209_v31 = vperm.slane %v4566_v38, %v4231_v47 }
 0x293   : > { %2350 = vst [vmem:[#allocation1 + $0x2] ss:$4 sm:$0xff] %v2113_v45  ;;  %v2203_v34 = vsel %vm2028_vm5, 0.0, %v2202_v61 }
 0x294   : > { %2352 = vst [vmem:[#allocation1 + $0x3] ss:$4 sm:$0xff] %v2121_v46  ;;  %v2210_v45 = vrot.slane %v2209_v31, 4  ;;  %v2218_v46 = vrot.slane %v2217_v7, 4 }
 0x296   : > { %v2211_v22 = vsel %vm2028_vm5, 0.0, %v2210_v45  ;;  %v2219_v12 = vsel %vm2028_vm5, 0.0, %v2218_v46 }
 0x29b   : > { %v4347_v62 = vld.sshfl [vmem:[#allocation1] sm:$0xff pattern:$0x73625140] }
 0x29c   : > { %2359 = vst [vmem:[#allocation1] ss:$4 sm:$0xff] %v2099_v19  ;;  %v2225_v19 = vperm.slane %v4567_v63, %v4231_v47 }
 0x29d   : > { %2361 = vst [vmem:[#allocation1 + $0x1] ss:$4 sm:$0xff] %v2107_v10  ;;  %v4568_v10 = vld [vmem:[#allocation21_spill] sm:$0xff] }
 0x29e   : > { %2363 = vst [vmem:[#allocation1 + $0x2] ss:$4 sm:$0xff] %v2115_v43  ;;  %v2233_v43 = vperm.slane %v4568_v10, %v4231_v47 }
 0x29f   : > { %2365 = vst [vmem:[#allocation1 + $0x3] ss:$4 sm:$0xff] %v2123_v50 }
 0x2a6   : > { %v2366_v15 = vld.sshfl [vmem:[#allocation1] sm:$0xff pattern:$0x73625140] }
 0x2a7   : > { %2374 = vst [vmem:[#allocation1] ss:$4 sm:$0xff] %v2129_v14  ;;  %2367 = vrot.lane.b32.xlu1 %v2366_v15, %s2887_s10  ;;  %v2241_v14 = vperm.slane %v4569_v27, %v4231_v47  ;;  %v2234_v15 = vrot.slane %v2233_v43, 4 }
 0x2a8   : > { %2376 = vst [vmem:[#allocation1 + $0x1] ss:$4 sm:$0xff] %v2137_v40  ;;  %v2226_v40 = vrot.slane %v2225_v19, 4 }
 0x2a9   : > { %2378 = vst [vmem:[#allocation1 + $0x2] ss:$4 sm:$0xff] %v2145_v49  ;;  %v2242_v28 = vrot.slane %v2241_v14, 4  ;;  %v2250_v49 = vrot.slane %v2249_v6, 4  ;;  %v2235_v41 = vsel %vm2028_vm5, 0.0, %v2234_v15 }
 0x2aa   : > { %2380 = vst [vmem:[#allocation1 + $0x3] ss:$4 sm:$0xff] %v2153_v32  ;;  %v2227_v32 = vsel %vm2028_vm5, 0.0, %v2226_v40 }
 0x2ab   : > { %v2243_v0 = vsel %vm2028_vm5, 0.0, %v2242_v28  ;;  %v2251_v33 = vsel %vm2028_vm5, 0.0, %v2250_v49 }
 0x2b1   : > { %v2381_v52 = vld.sshfl [vmem:[#allocation1] sm:$0xff pattern:$0x73625140] }
 0x2b2   : > { %2389 = vst [vmem:[#allocation1] ss:$4 sm:$0xff] %v2131_v39  ;;  %2382 = vrot.lane.b32.xlu2 %v2381_v52, %s2888_s13 }
 0x2b3   : > { %2391 = vst [vmem:[#allocation1 + $0x1] ss:$4 sm:$0xff] %v2139_v26 }
 0x2b4   : > { %2393 = vst [vmem:[#allocation1 + $0x2] ss:$4 sm:$0xff] %v2147_v23 }
 0x2b5   : > { %2395 = vst [vmem:[#allocation1 + $0x3] ss:$4 sm:$0xff] %v2155_v58 }
 0x2bc   : > { %v4370_v57 = vld.sshfl [vmem:[#allocation1] sm:$0xff pattern:$0x73625140] }
 0x2bd   : > { %2404 = vst [vmem:[#allocation1] ss:$4 sm:$0xff] %v2161_v21  ;;  %v4570_v21 = vld [vmem:[#allocation11_spill] sm:$0xff] }
 0x2be   : > { %2406 = vst [vmem:[#allocation1 + $0x1] ss:$4 sm:$0xff] %v2169_v55  ;;  %v2265_v55 = vperm.slane %v4571_v56, %v4231_v47 }
 0x2bf   : > { %2408 = vst [vmem:[#allocation1 + $0x2] ss:$4 sm:$0xff] %v2177_v1  ;;  %v2273_v1 = vperm.slane %v2269_v60, %v4231_v47 }
 0x2c0   : > { %2410 = vst [vmem:[#allocation1 + $0x3] ss:$4 sm:$0xff] %v2185_v54  ;;  %v2266_v18 = vrot.slane %v2265_v55, 4 }
 0x2c1   : > { %v2274_v11 = vrot.slane %v2273_v1, 4 }
 0x2c2   : > { %v2267_v53 = vsel %vm2028_vm5, 0.0, %v2266_v18 }
 0x2c3   : > { %v2275_v5 = vsel %vm2028_vm5, 0.0, %v2274_v11 }
 0x2c7   : > { %v4377_v51 = vld.sshfl [vmem:[#allocation1] sm:$0xff pattern:$0x73625140] }
 0x2c8   : > { %2417 = vst [vmem:[#allocation1] ss:$4 sm:$0xff] %v2163_v29 }
 0x2c9   : > { %2419 = vst [vmem:[#allocation1 + $0x1] ss:$4 sm:$0xff] %v2171_v13 }
 0x2ca   : > { %2421 = vst [vmem:[#allocation1 + $0x2] ss:$4 sm:$0xff] %v2179_v24 }
 0x2cb   : > { %2423 = vst [vmem:[#allocation1 + $0x3] ss:$4 sm:$0xff] %v2187_v17 }
 0x2d2   : > { %v2424_v2 = vld.sshfl [vmem:[#allocation1] sm:$0xff pattern:$0x73625140] }
 0x2d3   : > { %2425 = vrot.lane.b32.xlu2 %v2424_v2, %s2887_s10  ;;  %2432 = vst [vmem:[#allocation1] ss:$4 sm:$0xff] %v2193_v4 }
 0x2d4   : > { %2434 = vst [vmem:[#allocation1 + $0x1] ss:$4 sm:$0xff] %v2201_v59 }
 0x2d5   : > { %2436 = vst [vmem:[#allocation1 + $0x2] ss:$4 sm:$0xff] %v2209_v31 }
 0x2d6   : > { %2438 = vst [vmem:[#allocation1 + $0x3] ss:$4 sm:$0xff] %v2217_v7 }
 0x2dd   : > { %v2439_v25 = vld.sshfl [vmem:[#allocation1] sm:$0xff pattern:$0x73625140] }
 0x2de   : > { %2440 = vrot.lane.b32.xlu0 %v2439_v25, %s2888_s13  ;;  %2447 = vst [vmem:[#allocation1] ss:$4 sm:$0xff] %v2195_v9 }
 0x2df   : > { %2449 = vst [vmem:[#allocation1 + $0x1] ss:$4 sm:$0xff] %v2203_v34 }
 0x2e0   : > { %2451 = vst [vmem:[#allocation1 + $0x2] ss:$4 sm:$0xff] %v2211_v22 }
 0x2e1   : > { %2453 = vst [vmem:[#allocation1 + $0x3] ss:$4 sm:$0xff] %v2219_v12 }
 0x2e8   : > { %v2454_v50 = vld.sshfl [vmem:[#allocation1] sm:$0xff pattern:$0x73625140] }
 0x2e9   : > { %2462 = vst [vmem:[#allocation1] ss:$4 sm:$0xff] %v2225_v19 }
 0x2ea   : > { %2464 = vst [vmem:[#allocation1 + $0x1] ss:$4 sm:$0xff] %v2233_v43 }
 0x2eb   : > { %2466 = vst [vmem:[#allocation1 + $0x2] ss:$4 sm:$0xff] %v2241_v14  ;;  %v2340_v26 = vpop.permute.xlu2 %2339 }
 0x2ec   : > { %2468 = vst [vmem:[#allocation1 + $0x3] ss:$4 sm:$0xff] %v2249_v6 }
 0x2ed   : > { %v2310_v44 = vpop.permute.xlu0 %2309 }
 0x2ee   : > { %v2516_v39 = vsel %vm1718_vm6, %v4283_v37, %v2310_v44  ;;  %v2257_v37 = vperm.slane %v4570_v21, %v4231_v47  ;;  %v2283_v47 = vsel %vm2028_vm5, 0.0, %v2282_v36 }
 0x2f0   : > { %v2258_v54 = vrot.slane %v2257_v37, 4 }
 0x2f2   : > { %v2259_v20 = vsel %vm2028_vm5, 0.0, %v2258_v54 }
 0x2f3   : > { %v2469_v8 = vld.sshfl [vmem:[#allocation1] sm:$0xff pattern:$0x73625140] }
 0x2f4   : > { %2475 = vst [vmem:[#allocation1] ss:$4 sm:$0xff] %v2227_v32 }
 0x2f5   : > { %2477 = vst [vmem:[#allocation1 + $0x1] ss:$4 sm:$0xff] %v2235_v41 }
 0x2f6   : > { %2479 = vst [vmem:[#allocation1 + $0x2] ss:$4 sm:$0xff] %v2243_v0 }
 0x2f7   : > { %2481 = vst [vmem:[#allocation1 + $0x3] ss:$4 sm:$0xff] %v2251_v33 }
 0x2f8   : > { %v2325_v52 = vpop.permute.xlu1 %2324 }
 0x2f9   : > { %v2518_v23 = vsel %vm2517_vm0, %v2516_v39, %v2325_v52 }
 0x2fa   : > { %v2520_v58 = vsel %vm2519_vm8, %v2518_v23, %v2340_v26 }
 0x2fb   : > { %2530 = vst [vmem:[%s4416_s30] sm:$0xff] %v2520_v58 }
 0x2fe   : > { %v2482_v48 = vld.sshfl [vmem:[#allocation1] sm:$0xff pattern:$0x73625140] }
 0x2ff   : > { %2483 = vrot.lane.b32.xlu0 %v2482_v48, %s2887_s10  ;;  %2490 = vst [vmem:[#allocation1] ss:$4 sm:$0xff] %v2257_v37 }
 0x300   : > { %2492 = vst [vmem:[#allocation1 + $0x1] ss:$4 sm:$0xff] %v2265_v55 }
 0x301   : > { %2494 = vst [vmem:[#allocation1 + $0x2] ss:$4 sm:$0xff] %v2273_v1 }
 0x302   : > { %2496 = vst [vmem:[#allocation1 + $0x3] ss:$4 sm:$0xff] %v2281_v42 }
 0x307   : > { %2397 = vrot.lane.b32.xlu0 %v4370_v57, %s2889_s14 }
 0x309   : > { %v2497_v30 = vld.sshfl [vmem:[#allocation1] sm:$0xff pattern:$0x73625140] }
 0x30a   : > { %2498 = vrot.lane.b32.xlu1 %v2497_v30, %s2888_s13  ;;  %2505 = vst [vmem:[#allocation1] ss:$4 sm:$0xff] %v2259_v20 }
 0x30b   : > { %2507 = vst [vmem:[#allocation1 + $0x1] ss:$4 sm:$0xff] %v2267_v53 }
 0x30c   : > { %2509 = vst [vmem:[#allocation1 + $0x2] ss:$4 sm:$0xff] %v2275_v5  ;;  %v2383_v13 = vpop.permute.xlu2 %2382 }
 0x30d   : > { %2511 = vst [vmem:[#allocation1 + $0x3] ss:$4 sm:$0xff] %v2283_v47 }
 0x312   : > { %2455 = vrot.lane.b32.xlu1 %v2454_v50, %s2889_s14 }
 0x314   : > { %v2512_v57 = vld.sshfl [vmem:[#allocation1] sm:$0xff pattern:$0x73625140] }
 0x315   : > { %2513 = vrot.lane.b32.xlu2 %v2512_v57, %s2889_s14 }
 0x319   : > { %v2368_v17 = vpop.permute.xlu1 %2367 }
 0x31a   : > { %v2521_v4 = vsel %vm1718_vm6, %v4347_v62, %v2368_v17 }
 0x31b   : > { %v2522_v16 = vsel %vm2517_vm0, %v2521_v4, %v2383_v13 }
 0x32d   : > { %v2426_v35 = vpop.permute.xlu2 %2425 }
 0x32e   : > { %v2524_v45 = vsel %vm1718_vm6, %v4377_v51, %v2426_v35 }
 0x350   : > { %v2441_v29 = vpop.permute.xlu0 %2440 }
 0x351   : > { %v2525_v62 = vsel %vm2517_vm0, %v2524_v45, %v2441_v29 }
 0x36f   : > { %v2514_v7 = vpop.permute.xlu2 %2513 }
 0x371   : > { %v2484_v24 = vpop.permute.xlu0 %2483 }
 0x372   : > { %v2527_v38 = vsel %vm1718_vm6, %v2469_v8, %v2484_v24 }
 0x379   : > { %v2398_v59 = vpop.permute.xlu0 %2397 }
 0x37a   : > { %v2523_v2 = vsel %vm2519_vm8, %v2522_v16, %v2398_v59 }
 0x37b   : > { %2531 = vst [vmem:[%s4416_s30 + $0x8] sm:$0xff] %v2523_v2 }
 0x37c   : > { %v2499_v31 = vpop.permute.xlu1 %2498 }
 0x37d   : > { %v2528_v3 = vsel %vm2517_vm0, %v2527_v38, %v2499_v31 }
 0x37e   : > { %v2529_v61 = vsel %vm2519_vm8, %v2528_v3, %v2514_v7 }
 0x37f   : > { %2533 = vst [vmem:[%s4416_s30 + $0x18] sm:$0xff] %v2529_v61 }
 0x384   : > { %v2456_v46 = vpop.permute.xlu1 %2455 }
 0x385   : > { %v2526_v9 = vsel %vm2519_vm8, %v2525_v62, %v2456_v46 }
 0x386   : > { %2532 = vst [vmem:[%s4416_s30 + $0x10] sm:$0xff] %v2526_v9 }
 0x387 PF: > { %s16_s22 = sadd.s32 1, %s2875_s22   ;;  %s4572_s18 = smov %s2867_s20 }
 0x388   : > { %p13_p11 = scmp.ge.s32.totalorder %s16_s22, 6   ;;  %s4573_s19 = smov %s2871_s21 }
 0x389   : > { %s4574_s20 = smov %s4577_s23  ;;  %s4575_s21 = smov %s4581_s24 }
 0x38a   :  { %15 = sbr.rel (!%p13_p11) target bundleno = 3 (0x3), region = 153 }

// kernel: resnet_forward.25
= control target key start
LH: loop header
LB: loop body
LE: loop exit
PB: predicated region body
PF: predicated region fallthrough
CT: control target
= control target key end

     0   :  { %vm259_vm0 = vcmask 261120   ;;  %vm525_vm1 = vcmask 23552   ;;  %s1282_s1 = inlined_call_operand.vmem [shape: bf16[32,3], index: 1, kind: input, shape index: {}]   ;;  %s1283_s0 = inlined_call_operand.vmem [shape: bf16[512,32], index: 0, kind: input, shape index: {}]   ;;  %s1284_s2 = inlined_call_operand.vmem [shape: f32[1,3], index: 2, kind: input, shape index: {}]   ;;  %s1285_s3 = inlined_call_operand.vmem [shape: f32[512,3], index: 3, kind: output, shape index: {}]  }
   0x1   :  { %v795_v0 = vld [vmem:[%s1282_s1 + $0x8] sm:$0xff]  ;;  %v794_v1 = vld [vmem:[%s1282_s1] sm:$0xff]  ;;  %v764_v10 = vld [vmem:[%s1283_s0 + $0x10] sm:$0xff] }
   0x2   :  { %362 = vmatpush.bf16.msra.mxu0 %v795_v0  ;;  %796 = vmatpush.bf16.msra.mxu1 %v795_v0  ;;  %v762_v2 = vld [vmem:[%s1283_s0] sm:$0xff]  ;;  %v763_v6 = vld [vmem:[%s1283_s0 + $0x8] sm:$0xff]  ;;  %v772_v11 = vld [vmem:[%s1283_s0 + $0x50] sm:$0xff] }
   0x3   :  { %797 = vmatpush.bf16.msra.mxu2 %v795_v0  ;;  %798 = vmatpush.bf16.msra.mxu3 %v795_v0  ;;  %v770_v3 = vld [vmem:[%s1283_s0 + $0x40] sm:$0xff]  ;;  %v771_v7 = vld [vmem:[%s1283_s0 + $0x48] sm:$0xff]  ;;  %v780_v12 = vld [vmem:[%s1283_s0 + $0x90] sm:$0xff] }
   0x4   :  { %v778_v4 = vld [vmem:[%s1283_s0 + $0x80] sm:$0xff]  ;;  %v779_v8 = vld [vmem:[%s1283_s0 + $0x88] sm:$0xff]  ;;  %v788_v13 = vld [vmem:[%s1283_s0 + $0xd0] sm:$0xff] }
   0x5   :  { %v786_v5 = vld [vmem:[%s1283_s0 + $0xc0] sm:$0xff]  ;;  %v787_v9 = vld [vmem:[%s1283_s0 + $0xc8] sm:$0xff]  ;;  %v765_v14 = vld [vmem:[%s1283_s0 + $0x18] sm:$0xff] }
   0x6   :  { %363 = vmatpush.bf16.msra.mxu0 %v794_v1  ;;  %799 = vmatpush.bf16.msra.mxu1 %v794_v1  ;;  %v773_v15 = vld [vmem:[%s1283_s0 + $0x58] sm:$0xff]  ;;  %v766_v18 = vld [vmem:[%s1283_s0 + $0x20] sm:$0xff]  ;;  %v767_v22 = vld [vmem:[%s1283_s0 + $0x28] sm:$0xff] }
   0x7   :  { %800 = vmatpush.bf16.msra.mxu2 %v794_v1  ;;  %801 = vmatpush.bf16.msra.mxu3 %v794_v1  ;;  %v781_v16 = vld [vmem:[%s1283_s0 + $0x98] sm:$0xff]  ;;  %v774_v19 = vld [vmem:[%s1283_s0 + $0x60] sm:$0xff]  ;;  %v775_v23 = vld [vmem:[%s1283_s0 + $0x68] sm:$0xff] }
   0x8   :  { %v789_v17 = vld [vmem:[%s1283_s0 + $0xd8] sm:$0xff]  ;;  %v782_v20 = vld [vmem:[%s1283_s0 + $0xa0] sm:$0xff]  ;;  %v783_v24 = vld [vmem:[%s1283_s0 + $0xa8] sm:$0xff] }
   0x9   :  { %730 = vmatmul.msk.bf16.vlgmr.msra.gmra.mxu0 %vm259_vm0, %v762_v2  ;;  %738 = vmatmul.msk.bf16.vlgmr.msra.gmra.mxu1 %vm259_vm0, %v770_v3  ;;  %v790_v21 = vld [vmem:[%s1283_s0 + $0xe0] sm:$0xff]  ;;  %v791_v25 = vld [vmem:[%s1283_s0 + $0xe8] sm:$0xff]  ;;  %v768_v26 = vld [vmem:[%s1283_s0 + $0x30] sm:$0xff] }
   0xa   :  { %746 = vmatmul.msk.bf16.vlgmr.msra.gmra.mxu2 %vm259_vm0, %v778_v4  ;;  %754 = vmatmul.msk.bf16.vlgmr.msra.gmra.mxu3 %vm259_vm0, %v786_v5  ;;  %v776_v27 = vld [vmem:[%s1283_s0 + $0x70] sm:$0xff]  ;;  %v769_v30 = vld [vmem:[%s1283_s0 + $0x38] sm:$0xff]  ;;  %v960_v34 = vld [vmem:[%s1284_s2] ss:$0 sm:$0xff] }
   0xb   :  { %v784_v28 = vld [vmem:[%s1283_s0 + $0xb0] sm:$0xff]  ;;  %v777_v31 = vld [vmem:[%s1283_s0 + $0x78] sm:$0xff] }
   0xc   :  { %v792_v29 = vld [vmem:[%s1283_s0 + $0xf0] sm:$0xff]  ;;  %v785_v32 = vld [vmem:[%s1283_s0 + $0xb8] sm:$0xff] }
   0xd   :  { %v793_v33 = vld [vmem:[%s1283_s0 + $0xf8] sm:$0xff] }
  0x19   :  { %731 = vmatmul.msk.bf16.gmra.mxu0 %vm259_vm0, %v763_v6  ;;  %739 = vmatmul.msk.bf16.gmra.mxu1 %vm259_vm0, %v771_v7 }
  0x1a   :  { %747 = vmatmul.msk.bf16.gmra.mxu2 %vm259_vm0, %v779_v8  ;;  %755 = vmatmul.msk.bf16.gmra.mxu3 %vm259_vm0, %v787_v9 }
  0x29   :  { %732 = vmatmul.msk.bf16.gmra.mxu0 %vm259_vm0, %v764_v10  ;;  %740 = vmatmul.msk.bf16.gmra.mxu1 %vm259_vm0, %v772_v11 }
  0x2a   :  { %748 = vmatmul.msk.bf16.gmra.mxu2 %vm259_vm0, %v780_v12  ;;  %756 = vmatmul.msk.bf16.gmra.mxu3 %vm259_vm0, %v788_v13 }
  0x39   :  { %733 = vmatmul.msk.bf16.gmra.mxu0 %vm259_vm0, %v765_v14  ;;  %741 = vmatmul.msk.bf16.gmra.mxu1 %vm259_vm0, %v773_v15 }
  0x3a   :  { %749 = vmatmul.msk.bf16.gmra.mxu2 %vm259_vm0, %v781_v16  ;;  %757 = vmatmul.msk.bf16.gmra.mxu3 %vm259_vm0, %v789_v17 }
  0x49   :  { %734 = vmatmul.msk.bf16.gmra.mxu0 %vm259_vm0, %v766_v18  ;;  %742 = vmatmul.msk.bf16.gmra.mxu1 %vm259_vm0, %v774_v19 }
  0x4a   :  { %750 = vmatmul.msk.bf16.gmra.mxu2 %vm259_vm0, %v782_v20  ;;  %758 = vmatmul.msk.bf16.gmra.mxu3 %vm259_vm0, %v790_v21 }
  0x59   :  { %735 = vmatmul.msk.bf16.gmra.mxu0 %vm259_vm0, %v767_v22  ;;  %743 = vmatmul.msk.bf16.gmra.mxu1 %vm259_vm0, %v775_v23 }
  0x5a   :  { %751 = vmatmul.msk.bf16.gmra.mxu2 %vm259_vm0, %v783_v24  ;;  %759 = vmatmul.msk.bf16.gmra.mxu3 %vm259_vm0, %v791_v25 }
  0x69   :  { %736 = vmatmul.msk.bf16.gmra.mxu0 %vm259_vm0, %v768_v26  ;;  %744 = vmatmul.msk.bf16.gmra.mxu1 %vm259_vm0, %v776_v27 }
  0x6a   :  { %752 = vmatmul.msk.bf16.gmra.mxu2 %vm259_vm0, %v784_v28  ;;  %760 = vmatmul.msk.bf16.gmra.mxu3 %vm259_vm0, %v792_v29 }
  0x79   :  { %737 = vmatmul.msk.bf16.gmra.mxu0 %vm259_vm0, %v769_v30  ;;  %745 = vmatmul.msk.bf16.gmra.mxu1 %vm259_vm0, %v777_v31 }
  0x7a   :  { %753 = vmatmul.msk.bf16.gmra.mxu2 %vm259_vm0, %v785_v32  ;;  %761 = vmatmul.msk.bf16.gmra.mxu3 %vm259_vm0, %v793_v33 }
  0x86   :  { %v365_v35 = vpop.f32.mrf.mxu0  ;;  %v405_v36 = vpop.f32.mrf.mxu1 }
  0x87   :  { %v366_v37 = vadd.f32 %v960_v34, %v365_v35  ;;  %v406_v38 = vadd.f32 %v960_v34, %v405_v36 }
  0x89   :  { %526 = vst.msk [vmem:[%s1285_s3] sm:$0xff] %vm525_vm1, %v366_v37 }
  0x8a   :  { %542 = vst.msk [vmem:[%s1285_s3 + $0x80] sm:$0xff] %vm525_vm1, %v406_v38 }
  0x8d   :  { %v445_v39 = vpop.f32.mrf.mxu2  ;;  %v485_v40 = vpop.f32.mrf.mxu3 }
  0x8e   :  { %v446_v41 = vadd.f32 %v960_v34, %v445_v39  ;;  %v486_v42 = vadd.f32 %v960_v34, %v485_v40  ;;  %v367_v43 = vpop.f32.mrf.mxu0  ;;  %v407_v44 = vpop.f32.mrf.mxu1 }
  0x8f   :  { %v368_v45 = vadd.f32 %v960_v34, %v367_v43  ;;  %v408_v46 = vadd.f32 %v960_v34, %v407_v44 }
  0x90   :  { %558 = vst.msk [vmem:[%s1285_s3 + $0x100] sm:$0xff] %vm525_vm1, %v446_v41 }
  0x91   :  { %574 = vst.msk [vmem:[%s1285_s3 + $0x180] sm:$0xff] %vm525_vm1, %v486_v42 }
  0x92   :  { %527 = vst.msk [vmem:[%s1285_s3 + $0x8] sm:$0xff] %vm525_vm1, %v368_v45 }
  0x93   :  { %543 = vst.msk [vmem:[%s1285_s3 + $0x88] sm:$0xff] %vm525_vm1, %v408_v46 }
  0x95   :  { %v447_v47 = vpop.f32.mrf.mxu2  ;;  %v487_v48 = vpop.f32.mrf.mxu3 }
  0x96   :  { %v448_v49 = vadd.f32 %v960_v34, %v447_v47  ;;  %v488_v50 = vadd.f32 %v960_v34, %v487_v48  ;;  %v370_v51 = vpop.f32.mrf.mxu0  ;;  %v410_v52 = vpop.f32.mrf.mxu1 }
  0x97   :  { %v371_v53 = vadd.f32 %v960_v34, %v370_v51  ;;  %v411_v54 = vadd.f32 %v960_v34, %v410_v52 }
  0x98   :  { %559 = vst.msk [vmem:[%s1285_s3 + $0x108] sm:$0xff] %vm525_vm1, %v448_v49 }
  0x99   :  { %575 = vst.msk [vmem:[%s1285_s3 + $0x188] sm:$0xff] %vm525_vm1, %v488_v50 }
  0x9a   :  { %528 = vst.msk [vmem:[%s1285_s3 + $0x10] sm:$0xff] %vm525_vm1, %v371_v53 }
  0x9b   :  { %544 = vst.msk [vmem:[%s1285_s3 + $0x90] sm:$0xff] %vm525_vm1, %v411_v54 }
  0x9d   :  { %v450_v55 = vpop.f32.mrf.mxu2  ;;  %v490_v56 = vpop.f32.mrf.mxu3 }
  0x9e   :  { %v451_v57 = vadd.f32 %v960_v34, %v450_v55  ;;  %v491_v58 = vadd.f32 %v960_v34, %v490_v56  ;;  %v372_v59 = vpop.f32.mrf.mxu0  ;;  %v412_v60 = vpop.f32.mrf.mxu1 }
  0x9f   :  { %v373_v61 = vadd.f32 %v960_v34, %v372_v59  ;;  %v413_v62 = vadd.f32 %v960_v34, %v412_v60 }
  0xa0   :  { %560 = vst.msk [vmem:[%s1285_s3 + $0x110] sm:$0xff] %vm525_vm1, %v451_v57 }
  0xa1   :  { %576 = vst.msk [vmem:[%s1285_s3 + $0x190] sm:$0xff] %vm525_vm1, %v491_v58 }
  0xa2   :  { %529 = vst.msk [vmem:[%s1285_s3 + $0x18] sm:$0xff] %vm525_vm1, %v373_v61 }
  0xa3   :  { %545 = vst.msk [vmem:[%s1285_s3 + $0x98] sm:$0xff] %vm525_vm1, %v413_v62 }
  0xa5   :  { %v452_v63 = vpop.f32.mrf.mxu2  ;;  %v492_v0 = vpop.f32.mrf.mxu3 }
  0xa6   :  { %v453_v1 = vadd.f32 %v960_v34, %v452_v63  ;;  %v493_v2 = vadd.f32 %v960_v34, %v492_v0  ;;  %v375_v3 = vpop.f32.mrf.mxu0  ;;  %v415_v4 = vpop.f32.mrf.mxu1 }
  0xa7   :  { %v376_v5 = vadd.f32 %v960_v34, %v375_v3  ;;  %v416_v6 = vadd.f32 %v960_v34, %v415_v4 }
  0xa8   :  { %561 = vst.msk [vmem:[%s1285_s3 + $0x118] sm:$0xff] %vm525_vm1, %v453_v1 }
  0xa9   :  { %577 = vst.msk [vmem:[%s1285_s3 + $0x198] sm:$0xff] %vm525_vm1, %v493_v2 }
  0xaa   :  { %530 = vst.msk [vmem:[%s1285_s3 + $0x20] sm:$0xff] %vm525_vm1, %v376_v5 }
  0xab   :  { %546 = vst.msk [vmem:[%s1285_s3 + $0xa0] sm:$0xff] %vm525_vm1, %v416_v6 }
  0xad   :  { %v455_v7 = vpop.f32.mrf.mxu2  ;;  %v495_v8 = vpop.f32.mrf.mxu3 }
  0xae   :  { %v456_v9 = vadd.f32 %v960_v34, %v455_v7  ;;  %v496_v10 = vadd.f32 %v960_v34, %v495_v8  ;;  %v377_v11 = vpop.f32.mrf.mxu0  ;;  %v417_v12 = vpop.f32.mrf.mxu1 }
  0xaf   :  { %v378_v13 = vadd.f32 %v960_v34, %v377_v11  ;;  %v418_v14 = vadd.f32 %v960_v34, %v417_v12 }
  0xb0   :  { %562 = vst.msk [vmem:[%s1285_s3 + $0x120] sm:$0xff] %vm525_vm1, %v456_v9 }
  0xb1   :  { %578 = vst.msk [vmem:[%s1285_s3 + $0x1a0] sm:$0xff] %vm525_vm1, %v496_v10 }
  0xb2   :  { %531 = vst.msk [vmem:[%s1285_s3 + $0x28] sm:$0xff] %vm525_vm1, %v378_v13 }
  0xb3   :  { %547 = vst.msk [vmem:[%s1285_s3 + $0xa8] sm:$0xff] %vm525_vm1, %v418_v14 }
  0xb5   :  { %v457_v15 = vpop.f32.mrf.mxu2  ;;  %v497_v16 = vpop.f32.mrf.mxu3 }
  0xb6   :  { %v458_v17 = vadd.f32 %v960_v34, %v457_v15  ;;  %v498_v18 = vadd.f32 %v960_v34, %v497_v16  ;;  %v380_v19 = vpop.f32.mrf.mxu0  ;;  %v420_v20 = vpop.f32.mrf.mxu1 }
  0xb7   :  { %v381_v21 = vadd.f32 %v960_v34, %v380_v19  ;;  %v421_v22 = vadd.f32 %v960_v34, %v420_v20 }
  0xb8   :  { %563 = vst.msk [vmem:[%s1285_s3 + $0x128] sm:$0xff] %vm525_vm1, %v458_v17 }
  0xb9   :  { %579 = vst.msk [vmem:[%s1285_s3 + $0x1a8] sm:$0xff] %vm525_vm1, %v498_v18 }
  0xba   :  { %532 = vst.msk [vmem:[%s1285_s3 + $0x30] sm:$0xff] %vm525_vm1, %v381_v21 }
  0xbb   :  { %548 = vst.msk [vmem:[%s1285_s3 + $0xb0] sm:$0xff] %vm525_vm1, %v421_v22 }
  0xbd   :  { %v460_v23 = vpop.f32.mrf.mxu2  ;;  %v500_v24 = vpop.f32.mrf.mxu3 }
  0xbe   :  { %v461_v25 = vadd.f32 %v960_v34, %v460_v23  ;;  %v501_v26 = vadd.f32 %v960_v34, %v500_v24  ;;  %v382_v27 = vpop.f32.mrf.mxu0  ;;  %v422_v28 = vpop.f32.mrf.mxu1 }
  0xbf   :  { %v383_v29 = vadd.f32 %v960_v34, %v382_v27  ;;  %v423_v30 = vadd.f32 %v960_v34, %v422_v28 }
  0xc0   :  { %564 = vst.msk [vmem:[%s1285_s3 + $0x130] sm:$0xff] %vm525_vm1, %v461_v25 }
  0xc1   :  { %580 = vst.msk [vmem:[%s1285_s3 + $0x1b0] sm:$0xff] %vm525_vm1, %v501_v26 }
  0xc2   :  { %533 = vst.msk [vmem:[%s1285_s3 + $0x38] sm:$0xff] %vm525_vm1, %v383_v29 }
  0xc3   :  { %549 = vst.msk [vmem:[%s1285_s3 + $0xb8] sm:$0xff] %vm525_vm1, %v423_v30 }
  0xc5   :  { %v462_v31 = vpop.f32.mrf.mxu2  ;;  %v502_v32 = vpop.f32.mrf.mxu3 }
  0xc6   :  { %v463_v33 = vadd.f32 %v960_v34, %v462_v31  ;;  %v503_v35 = vadd.f32 %v960_v34, %v502_v32  ;;  %v385_v36 = vpop.f32.mrf.mxu0  ;;  %v425_v37 = vpop.f32.mrf.mxu1 }
  0xc7   :  { %v386_v38 = vadd.f32 %v960_v34, %v385_v36  ;;  %v426_v39 = vadd.f32 %v960_v34, %v425_v37 }
  0xc8   :  { %565 = vst.msk [vmem:[%s1285_s3 + $0x138] sm:$0xff] %vm525_vm1, %v463_v33 }
  0xc9   :  { %581 = vst.msk [vmem:[%s1285_s3 + $0x1b8] sm:$0xff] %vm525_vm1, %v503_v35 }
  0xca   :  { %534 = vst.msk [vmem:[%s1285_s3 + $0x40] sm:$0xff] %vm525_vm1, %v386_v38 }
  0xcb   :  { %550 = vst.msk [vmem:[%s1285_s3 + $0xc0] sm:$0xff] %vm525_vm1, %v426_v39 }
  0xcd   :  { %v465_v40 = vpop.f32.mrf.mxu2  ;;  %v505_v41 = vpop.f32.mrf.mxu3 }
  0xce   :  { %v466_v42 = vadd.f32 %v960_v34, %v465_v40  ;;  %v506_v43 = vadd.f32 %v960_v34, %v505_v41  ;;  %v387_v44 = vpop.f32.mrf.mxu0  ;;  %v427_v45 = vpop.f32.mrf.mxu1 }
  0xcf   :  { %v388_v46 = vadd.f32 %v960_v34, %v387_v44  ;;  %v428_v47 = vadd.f32 %v960_v34, %v427_v45 }
  0xd0   :  { %566 = vst.msk [vmem:[%s1285_s3 + $0x140] sm:$0xff] %vm525_vm1, %v466_v42 }
  0xd1   :  { %582 = vst.msk [vmem:[%s1285_s3 + $0x1c0] sm:$0xff] %vm525_vm1, %v506_v43 }
  0xd2   :  { %535 = vst.msk [vmem:[%s1285_s3 + $0x48] sm:$0xff] %vm525_vm1, %v388_v46 }
  0xd3   :  { %551 = vst.msk [vmem:[%s1285_s3 + $0xc8] sm:$0xff] %vm525_vm1, %v428_v47 }
  0xd5   :  { %v467_v48 = vpop.f32.mrf.mxu2  ;;  %v507_v49 = vpop.f32.mrf.mxu3 }
  0xd6   :  { %v468_v50 = vadd.f32 %v960_v34, %v467_v48  ;;  %v508_v51 = vadd.f32 %v960_v34, %v507_v49  ;;  %v390_v52 = vpop.f32.mrf.mxu0  ;;  %v430_v53 = vpop.f32.mrf.mxu1 }
  0xd7   :  { %v391_v54 = vadd.f32 %v960_v34, %v390_v52  ;;  %v431_v55 = vadd.f32 %v960_v34, %v430_v53 }
  0xd8   :  { %567 = vst.msk [vmem:[%s1285_s3 + $0x148] sm:$0xff] %vm525_vm1, %v468_v50 }
  0xd9   :  { %583 = vst.msk [vmem:[%s1285_s3 + $0x1c8] sm:$0xff] %vm525_vm1, %v508_v51 }
  0xda   :  { %536 = vst.msk [vmem:[%s1285_s3 + $0x50] sm:$0xff] %vm525_vm1, %v391_v54 }
  0xdb   :  { %552 = vst.msk [vmem:[%s1285_s3 + $0xd0] sm:$0xff] %vm525_vm1, %v431_v55 }
  0xdd   :  { %v470_v56 = vpop.f32.mrf.mxu2  ;;  %v510_v57 = vpop.f32.mrf.mxu3 }
  0xde   :  { %v471_v58 = vadd.f32 %v960_v34, %v470_v56  ;;  %v511_v59 = vadd.f32 %v960_v34, %v510_v57  ;;  %v392_v60 = vpop.f32.mrf.mxu0  ;;  %v432_v61 = vpop.f32.mrf.mxu1 }
  0xdf   :  { %v393_v62 = vadd.f32 %v960_v34, %v392_v60  ;;  %v433_v63 = vadd.f32 %v960_v34, %v432_v61 }
  0xe0   :  { %568 = vst.msk [vmem:[%s1285_s3 + $0x150] sm:$0xff] %vm525_vm1, %v471_v58 }
  0xe1   :  { %584 = vst.msk [vmem:[%s1285_s3 + $0x1d0] sm:$0xff] %vm525_vm1, %v511_v59 }
  0xe2   :  { %537 = vst.msk [vmem:[%s1285_s3 + $0x58] sm:$0xff] %vm525_vm1, %v393_v62 }
  0xe3   :  { %553 = vst.msk [vmem:[%s1285_s3 + $0xd8] sm:$0xff] %vm525_vm1, %v433_v63 }
  0xe5   :  { %v472_v0 = vpop.f32.mrf.mxu2  ;;  %v512_v1 = vpop.f32.mrf.mxu3 }
  0xe6   :  { %v473_v2 = vadd.f32 %v960_v34, %v472_v0  ;;  %v513_v3 = vadd.f32 %v960_v34, %v512_v1  ;;  %v395_v4 = vpop.f32.mrf.mxu0  ;;  %v435_v5 = vpop.f32.mrf.mxu1 }
  0xe7   :  { %v396_v6 = vadd.f32 %v960_v34, %v395_v4  ;;  %v436_v7 = vadd.f32 %v960_v34, %v435_v5 }
  0xe8   :  { %569 = vst.msk [vmem:[%s1285_s3 + $0x158] sm:$0xff] %vm525_vm1, %v473_v2 }
  0xe9   :  { %585 = vst.msk [vmem:[%s1285_s3 + $0x1d8] sm:$0xff] %vm525_vm1, %v513_v3 }
  0xea   :  { %538 = vst.msk [vmem:[%s1285_s3 + $0x60] sm:$0xff] %vm525_vm1, %v396_v6 }
  0xeb   :  { %554 = vst.msk [vmem:[%s1285_s3 + $0xe0] sm:$0xff] %vm525_vm1, %v436_v7 }
  0xed   :  { %v475_v8 = vpop.f32.mrf.mxu2  ;;  %v515_v9 = vpop.f32.mrf.mxu3 }
  0xee   :  { %v476_v10 = vadd.f32 %v960_v34, %v475_v8  ;;  %v516_v11 = vadd.f32 %v960_v34, %v515_v9  ;;  %v397_v12 = vpop.f32.mrf.mxu0  ;;  %v437_v13 = vpop.f32.mrf.mxu1 }
  0xef   :  { %v398_v14 = vadd.f32 %v960_v34, %v397_v12  ;;  %v438_v15 = vadd.f32 %v960_v34, %v437_v13 }
  0xf0   :  { %570 = vst.msk [vmem:[%s1285_s3 + $0x160] sm:$0xff] %vm525_vm1, %v476_v10 }
  0xf1   :  { %586 = vst.msk [vmem:[%s1285_s3 + $0x1e0] sm:$0xff] %vm525_vm1, %v516_v11 }
  0xf2   :  { %539 = vst.msk [vmem:[%s1285_s3 + $0x68] sm:$0xff] %vm525_vm1, %v398_v14 }
  0xf3   :  { %555 = vst.msk [vmem:[%s1285_s3 + $0xe8] sm:$0xff] %vm525_vm1, %v438_v15 }
  0xf5   :  { %v477_v16 = vpop.f32.mrf.mxu2  ;;  %v517_v17 = vpop.f32.mrf.mxu3 }
  0xf6   :  { %v478_v18 = vadd.f32 %v960_v34, %v477_v16  ;;  %v518_v19 = vadd.f32 %v960_v34, %v517_v17  ;;  %v400_v20 = vpop.f32.mrf.mxu0  ;;  %v440_v21 = vpop.f32.mrf.mxu1 }
  0xf7   :  { %v401_v22 = vadd.f32 %v960_v34, %v400_v20  ;;  %v441_v23 = vadd.f32 %v960_v34, %v440_v21 }
  0xf8   :  { %571 = vst.msk [vmem:[%s1285_s3 + $0x168] sm:$0xff] %vm525_vm1, %v478_v18 }
  0xf9   :  { %587 = vst.msk [vmem:[%s1285_s3 + $0x1e8] sm:$0xff] %vm525_vm1, %v518_v19 }
  0xfa   :  { %540 = vst.msk [vmem:[%s1285_s3 + $0x70] sm:$0xff] %vm525_vm1, %v401_v22 }
  0xfb   :  { %556 = vst.msk [vmem:[%s1285_s3 + $0xf0] sm:$0xff] %vm525_vm1, %v441_v23 }
  0xfd   :  { %v480_v24 = vpop.f32.mrf.mxu2  ;;  %v520_v25 = vpop.f32.mrf.mxu3 }
  0xfe   :  { %v481_v26 = vadd.f32 %v960_v34, %v480_v24  ;;  %v521_v27 = vadd.f32 %v960_v34, %v520_v25  ;;  %v402_v28 = vpop.f32.mrf.mxu0  ;;  %v442_v29 = vpop.f32.mrf.mxu1 }
  0xff   :  { %v403_v30 = vadd.f32 %v960_v34, %v402_v28  ;;  %v443_v31 = vadd.f32 %v960_v34, %v442_v29 }
 0x100   :  { %572 = vst.msk [vmem:[%s1285_s3 + $0x170] sm:$0xff] %vm525_vm1, %v481_v26 }
 0x101   :  { %588 = vst.msk [vmem:[%s1285_s3 + $0x1f0] sm:$0xff] %vm525_vm1, %v521_v27 }
 0x102   :  { %541 = vst.msk [vmem:[%s1285_s3 + $0x78] sm:$0xff] %vm525_vm1, %v403_v30 }
 0x103   :  { %557 = vst.msk [vmem:[%s1285_s3 + $0xf8] sm:$0xff] %vm525_vm1, %v443_v31 }
 0x105   :  { %v482_v32 = vpop.f32.mrf.mxu2  ;;  %v522_v33 = vpop.f32.mrf.mxu3 }
 0x106   :  { %v483_v35 = vadd.f32 %v960_v34, %v482_v32  ;;  %v523_v36 = vadd.f32 %v960_v34, %v522_v33 }
 0x108   :  { %573 = vst.msk [vmem:[%s1285_s3 + $0x178] sm:$0xff] %vm525_vm1, %v483_v35 }
 0x109   :  { %589 = vst.msk [vmem:[%s1285_s3 + $0x1f8] sm:$0xff] %vm525_vm1, %v523_v36 }

</bundles_post_ra>
